<compile_context>
chip_gen: v7x
topology: tpu7x:2x2x1
jax: 0.10.0
libtpu: 0.0.40
codegen_flags: <defaults>
</compile_context>

<pallas_src>
import functools

import jax
import jax.numpy as jnp
from jax.experimental import pallas as pl
from jax.experimental.pallas import tpu as pltpu

IN_DIM, H1, H2, OUT_DIM = 2000, 1024, 512, 2
OUT_PAD = 128     # lane-dense output width (real logits live in [:, :2])
MAX_TB = 512      # max batch tile (amortizes the ~0.35us/step grid overhead)


def _round_up(x, m):
    return ((x + m - 1) // m) * m


def _mlp_kernel(x_ref, w1_ref, w2_ref, w3_ref, o_ref):
    """Fused (Linear->ReLU)->(Linear->ReLU)->Linear over one (TB, 2000) tile."""
    # f32 -> bf16 cast in-kernel (VPU work hidden under the MXU); whole tile
    # goes through one dot per layer so the MXU sees full-height LHS pushes.
    xs = x_ref[...].astype(jnp.bfloat16)
    h1 = jnp.dot(xs, w1_ref[...], preferred_element_type=jnp.float32)
    h1 = jnp.maximum(h1, 0.0).astype(jnp.bfloat16)
    h2 = jnp.dot(h1, w2_ref[...], preferred_element_type=jnp.float32)
    h2 = jnp.maximum(h2, 0.0).astype(jnp.bfloat16)
    # OUT_PAD = 128 lanes -> unmasked, lane-dense store.
    o_ref[...] = jnp.dot(h2, w3_ref[...], preferred_element_type=jnp.float32)


def _vmem_limit_bytes(tb):
    bf16, f32 = 2, 4
    w = (IN_DIM * H1 + H1 * H2 + H2 * OUT_PAD) * bf16          # single-buffered weights
    io = 2 * tb * (IN_DIM + OUT_PAD) * f32                     # double-buffered f32 x / out
    tmp = tb * (IN_DIM * bf16                                   # bf16 x copy
                + H1 * (f32 + bf16)                             # h1 f32 + bf16
                + H2 * (f32 + bf16))                            # h2 f32 + bf16
    need = w + io + tmp
    # Headroom for Mosaic internal scratch; stay well under v7x's 64 MiB.
    return min(int(1.25 * need) + (4 << 20), 56 << 20)


def prepare_weights(w1_t, w2_t, w3_t):
    """One-time, model-load-time weight prep (NOT in the per-call hot path).

    w*_t are (in_features, out_features) f32. Returns bf16 weights with W3
    padded to 128 output lanes (zero pad is exact: padded lanes never read).
    """
    w1 = w1_t.astype(jnp.bfloat16)                              # (2000, 1024)
    w2 = w2_t.astype(jnp.bfloat16)                              # (1024, 512)
    w3 = jnp.zeros((H2, OUT_PAD), jnp.bfloat16).at[:, :OUT_DIM].set(
        w3_t.astype(jnp.bfloat16))                              # (512, 128)
    return w1, w2, w3


@jax.jit
def va_predictor(muse, w1, w2, w3):
    """muse: (B, 2000) float32; w1/w2/w3 from prepare_weights. Returns (B, 2) f32."""
    B = muse.shape[0]
    TB = min(_round_up(max(B, 1), 128), MAX_TB)
    n_tiles = pl.cdiv(B, TB)

    out = pl.pallas_call(
        _mlp_kernel,
        out_shape=jax.ShapeDtypeStruct((B, OUT_PAD), jnp.float32),
        grid_spec=pltpu.PrefetchScalarGridSpec(
            num_scalar_prefetch=0,
            grid=(n_tiles,),
            in_specs=[
                # x tile: last dim = full array dim (2000) -> (8,128) rule OK;
                # partial last batch tile is masked by Pallas.
                pl.BlockSpec((TB, IN_DIM), lambda i: (i, 0)),
                # Constant-index weights: resident across the grid, single
                # buffer (double-buffering never-refetched blocks wastes VMEM).
                pl.BlockSpec((IN_DIM, H1), lambda i: (0, 0),
                             pipeline_mode=pl.Buffered(1)),
                pl.BlockSpec((H1, H2), lambda i: (0, 0),
                             pipeline_mode=pl.Buffered(1)),
                pl.BlockSpec((H2, OUT_PAD), lambda i: (0, 0),
                             pipeline_mode=pl.Buffered(1)),
            ],
            out_specs=pl.BlockSpec((TB, OUT_PAD), lambda i: (i, 0)),
        ),
        compiler_params=pltpu.CompilerParams(
            # On v7x (2 TCs) sharding < 4 tiles duplicates the weight DMA for
            # less compute than it saves; "parallel" is a no-op on v5e/v6e.
            dimension_semantics=(("parallel",) if n_tiles >= 4 else ("arbitrary",)),
            vmem_limit_bytes=_vmem_limit_bytes(TB),
        ),
    )(muse, w1, w2, w3)
    # Fused under the same jit -> no standalone HBM slice pass.
    return out[:, :OUT_DIM]


# TODO(synk): optional weight quantization (int8 on v5e/v6e, fp8-e4m3 on v7x)
# would halve the small-batch weight DMA; omitted to keep numerics tight.


def _init_linear_t(key, in_dim, out_dim):
    # Deterministic Kaiming-uniform-like init (same bound as nn.Linear default),
    # stored transposed as (in_dim, out_dim).
    bound = 1.0 / (in_dim ** 0.5)
    return jax.random.uniform(
        key, (in_dim, out_dim), jnp.float32, minval=-bound, maxval=bound)


def _reference(muse, w1_t, w2_t, w3_t):
    h = jnp.maximum(muse @ w1_t, 0.0)
    h = jnp.maximum(h @ w2_t, 0.0)
    return h @ w3_t


if __name__ == "__main__":
    key = jax.random.PRNGKey(0)
    k_x, k1, k2, k3, k_big = jax.random.split(key, 5)

    w1_t = _init_linear_t(k1, IN_DIM, H1)
    w2_t = _init_linear_t(k2, H1, H2)
    w3_t = _init_linear_t(k3, H2, OUT_DIM)

    # One-time weight prep (outside the per-call hot path).
    w1, w2, w3 = prepare_weights(w1_t, w2_t, w3_t)
    w1, w2, w3 = jax.block_until_ready((w1, w2, w3))

    # Small batch: single grid step, heavily partial (2 of 128 rows) tile.
    B = 2
    muse = jax.random.normal(k_x, (B, IN_DIM), jnp.float32)
    pre = jax.block_until_ready(va_predictor(muse, w1, w2, w3))
    ref = _reference(muse, w1_t, w2_t, w3_t)
    assert pre.shape == (B, OUT_DIM)
    # bf16 weights/activations vs. f32 reference -> modest tolerance.
    assert jnp.allclose(pre, ref, atol=2e-2, rtol=2e-2)

    # Larger batch: TB=512, 3 grid steps, partial last tile.
    B2 = 1050
    muse2 = jax.random.normal(k_big, (B2, IN_DIM), jnp.float32)
    pre2 = jax.block_until_ready(va_predictor(muse2, w1, w2, w3))
    ref2 = _reference(muse2, w1_t, w2_t, w3_t)
    assert pre2.shape == (B2, OUT_DIM)
    assert jnp.allclose(pre2, ref2, atol=2e-2, rtol=2e-2)

    print("KERNEL_OK")
</pallas_src>

<mosaic_0001>
module attributes {stable_mosaic.version = 11 : i64} {
  func.func @_mlp_kernel(%arg0: i32, %arg1: memref<128x2000xf32, #tpu.memory_space<vmem>>, %arg2: memref<2000x1024xbf16, #tpu.memory_space<vmem>>, %arg3: memref<1024x512xbf16, #tpu.memory_space<vmem>>, %arg4: memref<512x128xbf16, #tpu.memory_space<vmem>>, %arg5: memref<128x128xf32, #tpu.memory_space<vmem>>) attributes {dimension_semantics = [#tpu.dimension_semantics<arbitrary>], iteration_bounds = array<i64: 1>, scalar_prefetch = 0 : i64, scratch_operands = 0 : i64, tpu.core_type = #tpu.core_type<tc>, window_params = [{transform_indices = @transform_0, window_bounds = array<i64: 128, 2000>}, {pipeline_mode = #tpu.pipeline_mode<synchronous>, transform_indices = @transform_1, window_bounds = array<i64: 2000, 1024>}, {pipeline_mode = #tpu.pipeline_mode<synchronous>, transform_indices = @transform_2, window_bounds = array<i64: 1024, 512>}, {pipeline_mode = #tpu.pipeline_mode<synchronous>, transform_indices = @transform_3, window_bounds = array<i64: 512, 128>}, {transform_indices = @transform_4, window_bounds = array<i64: 128, 128>}]} {
    %c0 = arith.constant 0 : index
    %c0_0 = arith.constant 0 : index
    %0 = vector.load %arg1[%c0, %c0_0] : memref<128x2000xf32, #tpu.memory_space<vmem>>, vector<128x2000xf32>
    %1 = arith.truncf %0 : vector<128x2000xf32> to vector<128x2000xbf16>
    %c0_1 = arith.constant 0 : index
    %c0_2 = arith.constant 0 : index
    %2 = vector.load %arg2[%c0_1, %c0_2] : memref<2000x1024xbf16, #tpu.memory_space<vmem>>, vector<2000x1024xbf16>
    %cst = arith.constant dense<0.000000e+00> : vector<128x1024xf32>
    %3 = tpu.matmul %1, %2, %cst {dimension_numbers = #tpu.dot_dimension_numbers<[1], [0], [0], [1], [0, 0, 1, 1], [], []>} : vector<128x2000xbf16>, vector<2000x1024xbf16>, vector<128x1024xf32> -> vector<128x1024xf32>
    %cst_3 = arith.constant 0.000000e+00 : f32
    %4 = vector.broadcast %cst_3 : f32 to vector<128x1024xf32>
    %5 = arith.maximumf %3, %4 : vector<128x1024xf32>
    %6 = arith.truncf %5 : vector<128x1024xf32> to vector<128x1024xbf16>
    %c0_4 = arith.constant 0 : index
    %c0_5 = arith.constant 0 : index
    %7 = vector.load %arg3[%c0_4, %c0_5] : memref<1024x512xbf16, #tpu.memory_space<vmem>>, vector<1024x512xbf16>
    %cst_6 = arith.constant dense<0.000000e+00> : vector<128x512xf32>
    %8 = tpu.matmul %6, %7, %cst_6 {dimension_numbers = #tpu.dot_dimension_numbers<[1], [0], [0], [1], [0, 0, 1, 1], [], []>} : vector<128x1024xbf16>, vector<1024x512xbf16>, vector<128x512xf32> -> vector<128x512xf32>
    %cst_7 = arith.constant 0.000000e+00 : f32
    %9 = vector.broadcast %cst_7 : f32 to vector<128x512xf32>
    %10 = arith.maximumf %8, %9 : vector<128x512xf32>
    %11 = arith.truncf %10 : vector<128x512xf32> to vector<128x512xbf16>
    %c0_8 = arith.constant 0 : index
    %c0_9 = arith.constant 0 : index
    %12 = vector.load %arg4[%c0_8, %c0_9] : memref<512x128xbf16, #tpu.memory_space<vmem>>, vector<512x128xbf16>
    %cst_10 = arith.constant dense<0.000000e+00> : vector<128x128xf32>
    %13 = tpu.matmul %11, %12, %cst_10 {dimension_numbers = #tpu.dot_dimension_numbers<[1], [0], [0], [1], [0, 0, 1, 1], [], []>} : vector<128x512xbf16>, vector<512x128xbf16>, vector<128x128xf32> -> vector<128x128xf32>
    %c0_11 = arith.constant 0 : index
    %c0_12 = arith.constant 0 : index
    %14 = vector.load %arg5[%c0_11, %c0_12] : memref<128x128xf32, #tpu.memory_space<vmem>>, vector<128x128xf32>
    tpu.vector_store %arg5[%c0_11, %c0_12], %13 {strides = array<i32>} : memref<128x128xf32, #tpu.memory_space<vmem>>, vector<128x128xf32>,
    return
  }
  func.func @transform_0(%arg0: i32) -> (i32, i32) {
    %c0_i32 = arith.constant 0 : i32
    %c0_i32_0 = arith.constant 0 : i32
    return %arg0, %c0_i32 : i32, i32
  }
  func.func @transform_1(%arg0: i32) -> (i32, i32) {
    %c0_i32 = arith.constant 0 : i32
    %c0_i32_0 = arith.constant 0 : i32
    %c0_i32_1 = arith.constant 0 : i32
    return %c0_i32, %c0_i32_0 : i32, i32
  }
  func.func @transform_2(%arg0: i32) -> (i32, i32) {
    %c0_i32 = arith.constant 0 : i32
    %c0_i32_0 = arith.constant 0 : i32
    %c0_i32_1 = arith.constant 0 : i32
    return %c0_i32, %c0_i32_0 : i32, i32
  }
  func.func @transform_3(%arg0: i32) -> (i32, i32) {
    %c0_i32 = arith.constant 0 : i32
    %c0_i32_0 = arith.constant 0 : i32
    %c0_i32_1 = arith.constant 0 : i32
    return %c0_i32, %c0_i32_0 : i32, i32
  }
  func.func @transform_4(%arg0: i32) -> (i32, i32) {
    %c0_i32 = arith.constant 0 : i32
    %c0_i32_0 = arith.constant 0 : i32
    return %arg0, %c0_i32 : i32, i32
  }
}

</mosaic_0001>

<bundles_post_ra>
// kernel: va_predictor.1
= control target key start
LH: loop header
LB: loop body
LE: loop exit
PB: predicated region body
PF: predicated region fallthrough
CT: control target
= control target key end

     0   :  { %9 = vsyncpa [#allocation3], 0  ;;  %s23749_s0 = inlined_call_operand.hbm [shape: f32[2,2000], index: 0, kind: input, shape index: {}]   ;;  %s23750_s1 = inlined_call_operand.hbm [shape: bf16[2000,1024], index: 1, kind: input, shape index: {}]   ;;  %s23751_s2 = inlined_call_operand.hbm [shape: bf16[1024,512], index: 2, kind: input, shape index: {}]   ;;  %s23752_s3 = inlined_call_operand.hbm [shape: bf16[512,128], index: 3, kind: input, shape index: {}]   ;;  %s23753_s4 = inlined_call_operand.hbm [shape: f32[2,128], index: 4, kind: output, shape index: {}]  }
   0x1   :  { %10 = vsyncpa [#allocation6], 0 }
   0x2   :  { %11 = vsyncpa [#allocation9], 0 }
   0x3   :  { %12 = vsyncpa [#allocation4], 0 }
   0x4   :  { %17 = vsyncadd [#allocation3], 32256  ;;  %s19211_s15 = smov [#allocation5]   ;;  %s19212_s17 = smov [#allocation2]  }
   0x5   :  { %s30_s16 = sshll.u32 %s19211_s15, 4  ;;  %s18_s18 = sshll.u32 %s19212_s17, 4  ;;  %s31_s16 = int_to_ptr.vmem [resolvable:$true] %s30_s16  ;;  %s19249_s18 = int_to_ptr.vmem [resolvable:$true] %s18_s18 }
   0x6   :  { %s19093_s21 = scalar_lea.hbm %s23750_s1, 128000 }
   0x7   :  { %p19094_p0 = scmp.ne.s32.totalorder %s23750_s1, %s19093_s21  ;;  %p19097_p1 = scmp.lt.u32.totalorder %s19093_s21, %s23750_s1 }
   0x9   :  { %p19099_p2 = pnand %p19097_p1, %p19094_p0 }
   0xb   :  { %19102 = shalt.err (!%p19099_p2)
}
   0xc   :  { %s19103_s26 = scalar_lea.vmem %s31_s16, 128000  ;;  %p19108_p4 = scmp.lt.s32.totalorder %s31_s16, %s31_s16 }
   0xd   :  { %p19104_p3 = scmp.ne.s32.totalorder %s31_s16, %s19103_s26  ;;  %p19109_p5 = scmp.lt.s32.totalorder %s19103_s26, %s19103_s26 }
   0xf   :  { %p19110_p6 = por %p19109_p5, %p19108_p4 }
  0x11   :  { %p19111_p7 = pnand %p19110_p6, %p19104_p3 }
  0x13   :  { %19114 = shalt.err (!%p19111_p7)
}
  0x14   :  { %s19213_s27 = smov 512   ;;  %s19214_s28 = smov 32  }
  0x15   :  { %36 = dma.hbm_to_vmem [thread:$0]  %s23750_s1, 128000, %s31_s16, [#allocation6], %s19213_s27, %s19213_s27, %s19214_s28  }
  0x16   :  { %s19115_s7 = scalar_lea.hbm %s23749_s0, 512 }
  0x17   :  { %p19116_p8 = scmp.ne.s32.totalorder %s23749_s0, %s19115_s7  ;;  %p19119_p9 = scmp.lt.u32.totalorder %s19115_s7, %s23749_s0 }
  0x19   :  { %p19121_p10 = pnand %p19119_p9, %p19116_p8 }
  0x1b   :  { %19124 = shalt.err (!%p19121_p10)
}
  0x1c   :  { %s19125_s12 = scalar_lea.vmem %s19249_s18, 512  ;;  %s19129_s1 = scalar_lea.vmem %s19249_s18, 32768 }
  0x1d   :  { %p19126_p11 = scmp.ne.s32.totalorder %s19249_s18, %s19125_s12  ;;  %p19130_p12 = scmp.lt.s32.totalorder %s19249_s18, %s19249_s18 }
  0x1e   :  { %p19131_p13 = scmp.lt.s32.totalorder %s19129_s1, %s19125_s12 }
  0x20   :  { %p19132_p0 = por %p19131_p13, %p19130_p12 }
  0x22   :  { %p19133_p1 = pnand %p19132_p0, %p19126_p11 }
  0x24   :  { %19136 = shalt.err (!%p19133_p1)
}
  0x25   :  { %24 = dma.hbm_to_vmem [thread:$0]  %s23749_s0, 512, %s19249_s18, [#allocation3], %s19213_s27, %s19213_s27, %s19214_s28  }
  0x26   :  { %s19215_s15 = smov [#allocation7]   ;;  %s19137_s20 = scalar_lea.hbm %s23751_s2, 32768 }
  0x27   :  { %s42_s16 = sshll.u32 %s19215_s15, 4  ;;  %p19138_p2 = scmp.ne.s32.totalorder %s23751_s2, %s19137_s20  ;;  %s43_s16 = int_to_ptr.vmem [resolvable:$true] %s42_s16 }
  0x28   :  { %p19141_p3 = scmp.lt.u32.totalorder %s19137_s20, %s23751_s2 }
  0x2a   :  { %p19143_p4 = pnand %p19141_p3, %p19138_p2 }
  0x2c   :  { %19146 = shalt.err (!%p19143_p4)
}
  0x2d   :  { %s19147_s25 = scalar_lea.vmem %s43_s16, 32768  ;;  %p19152_p6 = scmp.lt.s32.totalorder %s43_s16, %s43_s16 }
  0x2e   :  { %p19148_p5 = scmp.ne.s32.totalorder %s43_s16, %s19147_s25  ;;  %p19153_p7 = scmp.lt.s32.totalorder %s19147_s25, %s19147_s25 }
  0x30   :  { %p19154_p8 = por %p19153_p7, %p19152_p6 }
  0x32   :  { %p19155_p9 = pnand %p19154_p8, %p19148_p5 }
  0x34   :  { %19158 = shalt.err (!%p19155_p9)
}
  0x35   :  { %s19216_s0 = smov 256   ;;  %s19217_s18 = smov 16  }
  0x36   :  { %48 = dma.hbm_to_vmem [thread:$0]  %s23751_s2, 32768, %s43_s16, [#allocation6], %s19216_s0, %s19216_s0, %s19217_s18  }
  0x37   :  { %s19218_s29 = smov [#allocation8]   ;;  %s19159_s7 = scalar_lea.hbm %s23752_s3, 4096 }
  0x38   :  { %s54_s30 = sshll.u32 %s19218_s29, 4  ;;  %p19160_p10 = scmp.ne.s32.totalorder %s23752_s3, %s19159_s7  ;;  %s55_s30 = int_to_ptr.vmem [resolvable:$true] %s54_s30 }
  0x39   :  { %p19163_p11 = scmp.lt.u32.totalorder %s19159_s7, %s23752_s3 }
  0x3b   :  { %p19165_p12 = pnand %p19163_p11, %p19160_p10 }
  0x3d   :  { %19168 = shalt.err (!%p19165_p12)
}
  0x3e   :  { %s19169_s12 = scalar_lea.vmem %s55_s30, 4096  ;;  %p19174_p0 = scmp.lt.s32.totalorder %s55_s30, %s55_s30 }
  0x3f   :  { %p19170_p13 = scmp.ne.s32.totalorder %s55_s30, %s19169_s12  ;;  %p19175_p1 = scmp.lt.s32.totalorder %s19169_s12, %s19169_s12 }
  0x41   :  { %p19176_p2 = por %p19175_p1, %p19174_p0 }
  0x43   :  { %p19177_p3 = pnand %p19176_p2, %p19170_p13 }
  0x45   :  { %19180 = shalt.err (!%p19177_p3)
}
  0x46   :  { %s19219_s2 = smov 64   ;;  %s19220_s1 = smov 4  }
  0x47   :  { %60 = dma.hbm_to_vmem [thread:$0]  %s23752_s3, 4096, %s55_s30, [#allocation9], %s19219_s2, %s19219_s2, %s19220_s1  }
  0x48   :  { %19203 = dma.done.wait [#allocation3], 32768  }
  0x49   :  { %19204 = vsyncadd [#allocation3], 4294934528 }
  0x4a   :  { %19205 = dma.done.wait [#allocation6], 160768  }
  0x4b   :  { %19206 = vsyncadd [#allocation6], 4294806528 }
  0x4c   :  { %19207 = dma.done.wait [#allocation9], 4096  }
  0x4d   :  { %19208 = vsyncadd [#allocation9], 4294963200  ;;  %v3274_v0 = vld [vmem:[#allocation5] sm:$0xff]  ;;  %v3275_v2 = vld [vmem:[#allocation5 + $0x8] sm:$0xff]  ;;  %v19221_v35 = vmov 1983009808   ;;  %v593_v37 = vlaneseq }
  0x4e   :  { %v3278_v1 = vld [vmem:[#allocation5 + $0x20] sm:$0xff]  ;;  %v3279_v4 = vld [vmem:[#allocation5 + $0x28] sm:$0xff]  ;;  %v591_v36 = vunpack.c.l.s4 %v19221_v35  ;;  %vm9274_vm0 = vcmask 654336  }
  0x4f   :  { %v16129_v3 = vcombine.high %v3274_v0, %v3278_v1  ;;  %v16128_v5 = vcombine.low %v3274_v0, %v3278_v1  ;;  %v3282_v6 = vld [vmem:[#allocation5 + $0x40] sm:$0xff]  ;;  %v16131_v8 = vcombine.high %v3275_v2, %v3279_v4  ;;  %v16130_v9 = vcombine.low %v3275_v2, %v3279_v4  ;;  %v3283_v11 = vld [vmem:[#allocation5 + $0x48] sm:$0xff] }
  0x50   :  { %v3286_v7 = vld [vmem:[#allocation5 + $0x60] sm:$0xff]  ;;  %v3287_v12 = vld [vmem:[#allocation5 + $0x68] sm:$0xff]  ;;  %v592_v46 = vunpack.c.0.s8 %v591_v36  ;;  %v594_v47 = vshrl.u32 %v593_v37, 7 }
  0x51   :  { %v16137_v10 = vcombine.high %v3282_v6, %v3286_v7  ;;  %v3290_v13 = vld [vmem:[#allocation5 + $0x80] sm:$0xff]  ;;  %9299 = vmatprep.subr.bf16.mxu0 %v16129_v3  ;;  %v16139_v14 = vcombine.high %v3283_v11, %v3287_v12  ;;  %v3291_v16 = vld [vmem:[#allocation5 + $0x88] sm:$0xff]  ;;  %10203 = vmatprep.subr.bf16.mxu1 %v16131_v8  ;;  %v16136_v18 = vcombine.low %v3282_v6, %v3286_v7 }
  0x52   :  { %v3294_v15 = vld [vmem:[#allocation5 + $0xa0] sm:$0xff]  ;;  %v3295_v17 = vld [vmem:[#allocation5 + $0xa8] sm:$0xff]  ;;  %9300 = vmatpush1.bf16.msra.mxu0 %v16128_v5  ;;  %10204 = vmatpush1.bf16.msra.mxu1 %v16130_v9  ;;  %v16138_v19 = vcombine.low %v3283_v11, %v3287_v12  ;;  %v19307_v58 = vsub.s32 %v592_v46, %v594_v47 }
  0x53   :  { %9301 = vmatprep.subr.bf16.mxu0 %v16137_v10  ;;  %v16145_v20 = vcombine.high %v3290_v13, %v3294_v15  ;;  %10205 = vmatprep.subr.bf16.mxu1 %v16139_v14  ;;  %v16147_v21 = vcombine.high %v3291_v16, %v3295_v17  ;;  %v3298_v22 = vld [vmem:[#allocation5 + $0xc0] sm:$0xff]  ;;  %v3299_v24 = vld [vmem:[#allocation5 + $0xc8] sm:$0xff]  ;;  %v16144_v26 = vcombine.low %v3290_v13, %v3294_v15 }
  0x54   :  { %v3302_v23 = vld [vmem:[#allocation5 + $0xe0] sm:$0xff]  ;;  %v3303_v25 = vld [vmem:[#allocation5 + $0xe8] sm:$0xff]  ;;  %v16146_v27 = vcombine.low %v3291_v16, %v3295_v17 }
  0x55   :  { %v16153_v28 = vcombine.high %v3298_v22, %v3302_v23  ;;  %v16155_v29 = vcombine.high %v3299_v24, %v3303_v25  ;;  %v3306_v30 = vld [vmem:[#allocation5 + $0x100] sm:$0xff]  ;;  %v3307_v32 = vld [vmem:[#allocation5 + $0x108] sm:$0xff]  ;;  %v16152_v34 = vcombine.low %v3298_v22, %v3302_v23  ;;  %v16154_v38 = vcombine.low %v3299_v24, %v3303_v25 }
  0x56   :  { %9302 = vmatpush1.bf16.msra.mxu0 %v16136_v18  ;;  %10206 = vmatpush1.bf16.msra.mxu1 %v16138_v19  ;;  %v3310_v31 = vld [vmem:[#allocation5 + $0x120] sm:$0xff]  ;;  %v3311_v33 = vld [vmem:[#allocation5 + $0x128] sm:$0xff] }
  0x57   :  { %9303 = vmatprep.subr.bf16.mxu0 %v16145_v20  ;;  %10207 = vmatprep.subr.bf16.mxu1 %v16147_v21  ;;  %v16161_v39 = vcombine.high %v3306_v30, %v3310_v31  ;;  %v16163_v40 = vcombine.high %v3307_v32, %v3311_v33  ;;  %v3314_v41 = vld [vmem:[#allocation5 + $0x140] sm:$0xff]  ;;  %v3315_v43 = vld [vmem:[#allocation5 + $0x148] sm:$0xff]  ;;  %v16160_v45 = vcombine.low %v3306_v30, %v3310_v31 }
  0x58   :  { %v3318_v42 = vld [vmem:[#allocation5 + $0x160] sm:$0xff]  ;;  %v3319_v44 = vld [vmem:[#allocation5 + $0x168] sm:$0xff]  ;;  %v16162_v48 = vcombine.low %v3307_v32, %v3311_v33 }
  0x59   :  { %v16169_v49 = vcombine.high %v3314_v41, %v3318_v42  ;;  %v16171_v50 = vcombine.high %v3315_v43, %v3319_v44  ;;  %v3322_v51 = vld [vmem:[#allocation5 + $0x180] sm:$0xff]  ;;  %v3323_v53 = vld [vmem:[#allocation5 + $0x188] sm:$0xff]  ;;  %v16168_v55 = vcombine.low %v3314_v41, %v3318_v42  ;;  %v16170_v59 = vcombine.low %v3315_v43, %v3319_v44 }
  0x5a   :  { %9304 = vmatpush1.bf16.msra.mxu0 %v16144_v26  ;;  %10208 = vmatpush1.bf16.msra.mxu1 %v16146_v27  ;;  %v3326_v52 = vld [vmem:[#allocation5 + $0x1a0] sm:$0xff]  ;;  %v3327_v54 = vld [vmem:[#allocation5 + $0x1a8] sm:$0xff] }
  0x5b   :  { %9305 = vmatprep.subr.bf16.mxu0 %v16153_v28  ;;  %10209 = vmatprep.subr.bf16.mxu1 %v16155_v29  ;;  %v3330_v56 = vld [vmem:[#allocation5 + $0x1c0] sm:$0xff]  ;;  %v16177_v60 = vcombine.high %v3322_v51, %v3326_v52  ;;  %v3331_v61 = vld [vmem:[#allocation5 + $0x1c8] sm:$0xff]  ;;  %v16179_v1 = vcombine.high %v3323_v53, %v3327_v54  ;;  %v16176_v12 = vcombine.low %v3322_v51, %v3326_v52 }
  0x5c   :  { %v3334_v57 = vld [vmem:[#allocation5 + $0x1e0] sm:$0xff]  ;;  %v3335_v62 = vld [vmem:[#allocation5 + $0x1e8] sm:$0xff]  ;;  %v16178_v16 = vcombine.low %v3323_v53, %v3327_v54 }
  0x5d   :  { %v19309_v63 = vld [vmem:[#allocation2] sm:$0xff]  ;;  %v16185_v17 = vcombine.high %v3330_v56, %v3334_v57  ;;  %v16187_v19 = vcombine.high %v3331_v61, %v3335_v62  ;;  %v3339_v24 = vld [vmem:[#allocation5 + $0x208] sm:$0xff]  ;;  %v16184_v27 = vcombine.low %v3330_v56, %v3334_v57  ;;  %v16186_v29 = vcombine.low %v3331_v61, %v3335_v62 }
  0x5e   :  { %9306 = vmatpush1.bf16.msra.mxu0 %v16152_v34  ;;  %10210 = vmatpush1.bf16.msra.mxu1 %v16154_v38  ;;  %v19311_v0 = vld [vmem:[#allocation2 + $0x20] sm:$0xff]  ;;  %v3343_v25 = vld [vmem:[#allocation5 + $0x228] sm:$0xff] }
  0x5f   :  { %9307 = vmatprep.subr.bf16.mxu0 %v16161_v39  ;;  %10211 = vmatprep.subr.bf16.mxu1 %v16163_v40  ;;  %v19313_v2 = vld [vmem:[#allocation2 + $0x40] sm:$0xff]  ;;  %v586_v5 = vcombine.low %v19309_v63, %v19311_v0  ;;  %v587_v6 = vcombine.high %v19309_v63, %v19311_v0  ;;  %v16195_v31 = vcombine.high %v3339_v24, %v3343_v25  ;;  %v3347_v35 = vld [vmem:[#allocation5 + $0x248] sm:$0xff] }
  0x60   :  { %v19315_v3 = vld [vmem:[#allocation2 + $0x60] sm:$0xff]  ;;  %v3351_v36 = vld [vmem:[#allocation5 + $0x268] sm:$0xff]  ;;  %v16194_v39 = vcombine.low %v3339_v24, %v3343_v25 }
  0x61   :  { %v19317_v4 = vld [vmem:[#allocation2 + $0x80] sm:$0xff]  ;;  %v588_v10 = vcombine.low %v19313_v2, %v19315_v3  ;;  %v19334_v13 = vrot.slane %v586_v5, %v19307_v58  ;;  %v19360_v42 = vld [vmem:[#allocation5 + $0x288] sm:$0xff]  ;;  %v16203_v44 = vcombine.high %v3347_v35, %v3351_v36  ;;  %v16202_v56 = vcombine.low %v3347_v35, %v3351_v36 }
  0x62   :  { %9308 = vmatpush1.bf16.msra.mxu0 %v16160_v45  ;;  %10212 = vmatpush1.bf16.msra.mxu1 %v16162_v48  ;;  %v19323_v7 = vld [vmem:[#allocation2 + $0xa0] sm:$0xff]  ;;  %v19362_v43 = vld [vmem:[#allocation5 + $0x2a8] sm:$0xff] }
  0x63   :  { %9309 = vmatprep.subr.bf16.mxu0 %v16169_v49  ;;  %10213 = vmatprep.subr.bf16.mxu1 %v16171_v50  ;;  %v19325_v8 = vld [vmem:[#allocation2 + $0xc0] sm:$0xff]  ;;  %v730_v14 = vcombine.low %v19317_v4, %v19323_v7  ;;  %v19341_v18 = vrot.slane %v588_v10, %v19307_v58  ;;  %v19368_v47 = vld [vmem:[#allocation5 + $0x2c8] sm:$0xff] }
  0x64   :  { %v19327_v9 = vld [vmem:[#allocation2 + $0xe0] sm:$0xff]  ;;  %v19371_v48 = vld [vmem:[#allocation5 + $0x2e8] sm:$0xff] }
  0x65   :  { %v732_v15 = vcombine.low %v19325_v8, %v19327_v9  ;;  %v3338_v20 = vld [vmem:[#allocation5 + $0x200] sm:$0xff]  ;;  %v19344_v22 = vrot.slane %v730_v14, %v19307_v58  ;;  %v619_v26 = vcombine.high %v19334_v13, %v19341_v18  ;;  %v19377_v52 = vld [vmem:[#allocation5 + $0x308] sm:$0xff] }
  0x66   :  { %9310 = vmatpush1.bf16.msra.mxu0 %v16168_v55  ;;  %10214 = vmatpush1.bf16.msra.mxu1 %v16170_v59  ;;  %v3342_v21 = vld [vmem:[#allocation5 + $0x220] sm:$0xff]  ;;  %v19379_v53 = vld [vmem:[#allocation5 + $0x328] sm:$0xff] }
  0x67   :  { %9311 = vmatprep.subr.bf16.mxu0 %v16177_v60  ;;  %10215 = vmatprep.subr.bf16.mxu1 %v16179_v1  ;;  %v19347_v23 = vrot.slane %v732_v15, %v19307_v58  ;;  %v16193_v30 = vcombine.high %v3338_v20, %v3342_v21  ;;  %v3346_v32 = vld [vmem:[#allocation5 + $0x240] sm:$0xff]  ;;  %v16192_v37 = vcombine.low %v3338_v20, %v3342_v21  ;;  %v19387_v59 = vld [vmem:[#allocation5 + $0x348] sm:$0xff] }
  0x68   :  { %v3350_v33 = vld [vmem:[#allocation5 + $0x260] sm:$0xff]  ;;  %v19389_v60 = vld [vmem:[#allocation5 + $0x368] sm:$0xff]  ;;  %v16211_v1 = vcombine.high %v19360_v42, %v19362_v43  ;;  %v16210_v15 = vcombine.low %v19360_v42, %v19362_v43 }
  0x69   :  { %v763_v28 = vcombine.high %v19344_v22, %v19347_v23  ;;  %v19355_v38 = vld [vmem:[#allocation5 + $0x280] sm:$0xff]  ;;  %v16201_v40 = vcombine.high %v3346_v32, %v3350_v33  ;;  %v16200_v51 = vcombine.low %v3346_v32, %v3350_v33  ;;  %v19397_v5 = vld [vmem:[#allocation5 + $0x388] sm:$0xff] }
  0x6a   :  { %9312 = vmatpush1.bf16.msra.mxu0 %v16176_v12  ;;  %10216 = vmatpush1.bf16.msra.mxu1 %v16178_v16  ;;  %v19358_v41 = vld [vmem:[#allocation5 + $0x2a0] sm:$0xff]  ;;  %v19399_v10 = vld [vmem:[#allocation5 + $0x3a8] sm:$0xff] }
  0x6b   :  { %9313 = vmatprep.subr.bf16.mxu0 %v16185_v17  ;;  %10217 = vmatprep.subr.bf16.mxu1 %v16187_v19  ;;  %v19353_v34 = vpack.c.bf16 %v763_v28, %v619_v26  ;;  %v19364_v45 = vld [vmem:[#allocation5 + $0x2c0] sm:$0xff]  ;;  %v16209_v57 = vcombine.high %v19355_v38, %v19358_v41  ;;  %v16208_v14 = vcombine.low %v19355_v38, %v19358_v41  ;;  %v19451_v42 = vld [vmem:[#allocation5 + $0x3c8] sm:$0xff] }
  0x6c   :  { %v19366_v46 = vld [vmem:[#allocation5 + $0x2e0] sm:$0xff]  ;;  %v16219_v17 = vcombine.high %v19368_v47, %v19371_v48  ;;  %v19453_v43 = vld [vmem:[#allocation5 + $0x3e8] sm:$0xff] }
  0x6d   :  { %24152 = vst [vmem:[#allocation15_spill] sm:$0xff] %v19353_v34  ;;  %9331 = vmatprep.mubr.bf16.mxu0 %v19353_v34  ;;  %10235 = vmatprep.mubr.bf16.mxu1 %v19353_v34  ;;  %v19373_v49 = vld [vmem:[#allocation5 + $0x300] sm:$0xff]  ;;  %v16217_v16 = vcombine.high %v19364_v45, %v19366_v46  ;;  %v16216_v24 = vcombine.low %v19364_v45, %v19366_v46  ;;  %v19469_v11 = vld [vmem:[#allocation5 + $0x428] sm:$0xff] }
  0x6e   :  { %9314 = vmatpush1.bf16.msra.mxu0 %v16184_v27  ;;  %10218 = vmatpush1.bf16.msra.mxu1 %v16186_v29  ;;  %v19375_v50 = vld [vmem:[#allocation5 + $0x320] sm:$0xff]  ;;  %v19475_v45 = vld [vmem:[#allocation5 + $0x448] sm:$0xff]  ;;  %v24167_v34 = vcombine.low %v19368_v47, %v19371_v48 }
  0x6f   :  { %9315 = vmatprep.subr.bf16.mxu0 %v16193_v30  ;;  %10219 = vmatprep.subr.bf16.mxu1 %v16195_v31  ;;  %v19381_v54 = vld [vmem:[#allocation5 + $0x340] sm:$0xff]  ;;  %v19491_v32 = vld [vmem:[#allocation5 + $0x468] sm:$0xff] }
  0x70   :  { %v19383_v55 = vld [vmem:[#allocation5 + $0x360] sm:$0xff] }
  0x71   :  { %v19391_v61 = vld [vmem:[#allocation5 + $0x380] sm:$0xff] }
  0x72   :  { %9316 = vmatpush1.bf16.msra.mxu0 %v16192_v37  ;;  %10220 = vmatpush1.bf16.msra.mxu1 %v16194_v39  ;;  %v19393_v62 = vld [vmem:[#allocation5 + $0x3a0] sm:$0xff] }
  0x73   :  { %9317 = vmatprep.subr.bf16.mxu0 %v16201_v40  ;;  %10221 = vmatprep.subr.bf16.mxu1 %v16203_v44  ;;  %v19401_v12 = vld [vmem:[#allocation5 + $0x3c0] sm:$0xff] }
  0x74   :  { %v19411_v19 = vld [vmem:[#allocation5 + $0x3e0] sm:$0xff] }
  0x75   :  { %v19413_v20 = vld [vmem:[#allocation2 + $0x100] sm:$0xff] }
  0x76   :  { %v19415_v21 = vld [vmem:[#allocation2 + $0x120] sm:$0xff]  ;;  %9318 = vmatpush1.bf16.msra.mxu0 %v16200_v51  ;;  %10222 = vmatpush1.bf16.msra.mxu1 %v16202_v56 }
  0x77   :  { %v19425_v28 = vld [vmem:[#allocation2 + $0x140] sm:$0xff]  ;;  %9319 = vmatprep.subr.bf16.mxu0 %v16209_v57  ;;  %10223 = vmatprep.subr.bf16.mxu1 %v16211_v1  ;;  %v19467_v1 = vld [vmem:[#allocation5 + $0x408] sm:$0xff]  ;;  %v874_v46 = vcombine.low %v19413_v20, %v19415_v21 }
  0x78   :  { %24153 = vst [vmem:[#allocation16_spill] sm:$0xff] %v19425_v28  ;;  %v19427_v29 = vld [vmem:[#allocation2 + $0x160] sm:$0xff] }
  0x79   :  { %24154 = vst [vmem:[#allocation17_spill] sm:$0xff] %v19427_v29  ;;  %v19429_v30 = vld [vmem:[#allocation2 + $0x180] sm:$0xff]  ;;  %v876_v51 = vcombine.low %v19425_v28, %v19427_v29  ;;  %v884_v63 = vrot.slane %v874_v46, %v19307_v58  ;;  %v24183_v29 = vcombine.high %v19381_v54, %v19383_v55 }
  0x7a   :  { %24155 = vst [vmem:[#allocation18_spill] sm:$0xff] %v19429_v30  ;;  %v19437_v35 = vld [vmem:[#allocation2 + $0x1a0] sm:$0xff]  ;;  %9320 = vmatpush1.bf16.msra.mxu0 %v16208_v14  ;;  %10224 = vmatpush1.bf16.msra.mxu1 %v16210_v15  ;;  %v618_v15 = vcombine.low %v19334_v13, %v19341_v18  ;;  %v762_v14 = vcombine.low %v19344_v22, %v19347_v23  ;;  %v19537_v22 = vld [vmem:[#allocation5 + $0x488] sm:$0xff] }
  0x7b   :  { %24156 = vst [vmem:[#allocation19_spill] sm:$0xff] %v19437_v35  ;;  %v19439_v36 = vld [vmem:[#allocation2 + $0x1c0] sm:$0xff]  ;;  %v1018_v56 = vcombine.low %v19429_v30, %v19437_v35  ;;  %9321 = vmatprep.subr.bf16.mxu0 %v16217_v16  ;;  %10225 = vmatprep.subr.bf16.mxu1 %v16219_v17  ;;  %v19515_v17 = vrot.slane %v587_v6, %v19307_v58  ;;  %v19539_v23 = vld [vmem:[#allocation5 + $0x4a8] sm:$0xff] }
  0x7c   :  { %24157 = vst [vmem:[#allocation20_spill] sm:$0xff] %v19439_v36  ;;  %v19441_v37 = vld [vmem:[#allocation2 + $0x1e0] sm:$0xff]  ;;  %v898_v0 = vrot.slane %v876_v51, %v19307_v58  ;;  %v24170_v16 = vcombine.high %v19377_v52, %v19379_v53  ;;  %v19572_v35 = vpack.c.bf16 %v762_v14, %v618_v15 }
  0x7d   :  { %24158 = vst [vmem:[#allocation21_spill] sm:$0xff] %v19441_v37  ;;  %v19455_v44 = vld [vmem:[#allocation5 + $0x400] sm:$0xff]  ;;  %v1020_v39 = vcombine.low %v19439_v36, %v19441_v37  ;;  %v1028_v6 = vrot.slane %v1018_v56, %v19307_v58 }
  0x7e   :  { %v19465_v57 = vld [vmem:[#allocation5 + $0x420] sm:$0xff]  ;;  %9322 = vmatpush1.bf16.msra.mxu0 %v16216_v24  ;;  %10226 = vmatpush1.bf16.msra.mxu1 %v24167_v34  ;;  %v24168_v24 = vcombine.high %v19373_v49, %v19375_v50  ;;  %24174 = vst [vmem:[#allocation34_spill] sm:$0xff] %v19572_v35  ;;  %v907_v14 = vcombine.high %v884_v63, %v898_v0 }
  0x7f   :  { %v19471_v41 = vld [vmem:[#allocation5 + $0x440] sm:$0xff]  ;;  %v1042_v13 = vrot.slane %v1020_v39, %v19307_v58  ;;  %10227 = vmatprep.subr.bf16.mxu1 %v24170_v16 }
  0x80   :  { %v19473_v40 = vld [vmem:[#allocation5 + $0x460] sm:$0xff]  ;;  %9323 = vmatprep.subr.bf16.mxu0 %v24168_v24 }
  0x81   :  { %v19493_v27 = vld [vmem:[#allocation2 + $0x200] sm:$0xff]  ;;  %v1051_v15 = vcombine.high %v1028_v6, %v1042_v13  ;;  %v1050_v16 = vcombine.low %v1028_v6, %v1042_v13 }
  0x82   :  { %24159 = vst [vmem:[#allocation22_spill] sm:$0xff] %v19493_v27  ;;  %v19495_v31 = vld [vmem:[#allocation2 + $0x220] sm:$0xff] }
  0x83   :  { %24160 = vst [vmem:[#allocation23_spill] sm:$0xff] %v19495_v31  ;;  %v19503_v38 = vld [vmem:[#allocation5 + $0x480] sm:$0xff]  ;;  %v1162_v47 = vcombine.low %v19493_v27, %v19495_v31 }
  0x84   :  { %v19505_v26 = vld [vmem:[#allocation2 + $0x240] sm:$0xff] }
  0x85   :  { %24161 = vst [vmem:[#allocation24_spill] sm:$0xff] %v19505_v26  ;;  %v19507_v33 = vld [vmem:[#allocation2 + $0x260] sm:$0xff] }
  0x86   :  { %24162 = vst [vmem:[#allocation25_spill] sm:$0xff] %v19507_v33  ;;  %v19509_v25 = vld [vmem:[#allocation2 + $0x280] sm:$0xff]  ;;  %v1164_v48 = vcombine.low %v19505_v26, %v19507_v33  ;;  %v24182_v26 = vcombine.low %v19377_v52, %v19379_v53  ;;  %v24185_v52 = vcombine.high %v19387_v59, %v19389_v60  ;;  %v1172_v53 = vrot.slane %v1162_v47, %v19307_v58 }
  0x87   :  { %24163 = vst [vmem:[#allocation26_spill] sm:$0xff] %v19509_v25  ;;  %v19525_v36 = vld [vmem:[#allocation2 + $0x2a0] sm:$0xff] }
  0x88   :  { %24164 = vst [vmem:[#allocation27_spill] sm:$0xff] %v19525_v36  ;;  %v19527_v37 = vld [vmem:[#allocation2 + $0x2c0] sm:$0xff]  ;;  %v1306_v24 = vcombine.low %v19509_v25, %v19525_v36  ;;  %v906_v36 = vcombine.low %v884_v63, %v898_v0  ;;  %10228 = vmatpush1.bf16.msra.mxu1 %v24182_v26  ;;  %v19607_v63 = vld [vmem:[#allocation5 + $0x4c8] sm:$0xff]  ;;  %v1186_v26 = vrot.slane %v1164_v48, %v19307_v58 }
  0x89   :  { %24165 = vst [vmem:[#allocation28_spill] sm:$0xff] %v19527_v37  ;;  %v19529_v30 = vld [vmem:[#allocation2 + $0x2e0] sm:$0xff]  ;;  %v19609_v0 = vld [vmem:[#allocation5 + $0x4e8] sm:$0xff]  ;;  %10229 = vmatprep.subr.bf16.mxu1 %v24185_v52 }
  0x8a   :  { %24166 = vst [vmem:[#allocation29_spill] sm:$0xff] %v19529_v30  ;;  %v19535_v18 = vld [vmem:[#allocation5 + $0x4a0] sm:$0xff]  ;;  %v1308_v39 = vcombine.low %v19527_v37, %v19529_v30  ;;  %v24178_v30 = vcombine.low %v19373_v49, %v19375_v50  ;;  %v19624_v49 = vld [vmem:[#allocation5 + $0x528] sm:$0xff] }
  0x8b   :  { %v19553_v56 = vld [vmem:[#allocation5 + $0x4c0] sm:$0xff] }
  0x8c   :  { %24169 = vst [vmem:[#allocation30_spill] sm:$0xff] %v19553_v56  ;;  %v19558_v34 = vld [vmem:[#allocation5 + $0x4e0] sm:$0xff]  ;;  %9324 = vmatpush1.bf16.msra.mxu0 %v24178_v30  ;;  %v1330_v13 = vrot.slane %v1308_v39, %v19307_v58  ;;  %v19622_v30 = vld [vmem:[#allocation5 + $0x508] sm:$0xff]  ;;  %v24187_v39 = vcombine.low %v19381_v54, %v19383_v55  ;;  %v19639_v56 = vpack.c.bf16 %v1050_v16, %v906_v36 }
  0x8d   :  { %24171 = vst [vmem:[#allocation31_spill] sm:$0xff] %v19558_v34  ;;  %v19568_v51 = vld [vmem:[#allocation2 + $0x300] sm:$0xff]  ;;  %9325 = vmatprep.subr.bf16.mxu0 %v24183_v29  ;;  %v1316_v29 = vrot.slane %v1306_v24, %v19307_v58  ;;  %v19637_v24 = vpack.c.bf16 %v1051_v15, %v907_v14  ;;  %v24192_v54 = vcombine.low %v19387_v59, %v19389_v60  ;;  %v19663_v15 = vld [vmem:[#allocation5 + $0x568] sm:$0xff] }
  0x8e   :  { %24172 = vst [vmem:[#allocation32_spill] sm:$0xff] %v19568_v51  ;;  %v19570_v46 = vld [vmem:[#allocation2 + $0x320] sm:$0xff]  ;;  %24189 = vst [vmem:[#allocation44_spill] sm:$0xff] %v19639_v56  ;;  %v24193_v55 = vcombine.high %v19391_v61, %v19393_v62  ;;  %v24197_v59 = vcombine.high %v19397_v5, %v19399_v10  ;;  %v1195_v60 = vcombine.high %v1172_v53, %v1186_v26 }
  0x8f   :  { %24173 = vst [vmem:[#allocation33_spill] sm:$0xff] %v19570_v46  ;;  %v19580_v33 = vld [vmem:[#allocation2 + $0x340] sm:$0xff]  ;;  %v1450_v34 = vcombine.low %v19568_v51, %v19570_v46  ;;  %24188 = vst [vmem:[#allocation43_spill] sm:$0xff] %v19637_v24  ;;  %10230 = vmatpush1.bf16.msra.mxu1 %v24192_v54  ;;  %v1339_v54 = vcombine.high %v1316_v29, %v1330_v13  ;;  %v1338_v36 = vcombine.low %v1316_v29, %v1330_v13  ;;  %v19713_v13 = vld [vmem:[#allocation5 + $0x5a8] sm:$0xff] }
  0x90   :  { %24175 = vst [vmem:[#allocation35_spill] sm:$0xff] %v19580_v33  ;;  %v19582_v25 = vld [vmem:[#allocation2 + $0x360] sm:$0xff]  ;;  %9326 = vmatpush1.bf16.msra.mxu0 %v24187_v39  ;;  %24194 = vst [vmem:[#allocation47_spill] sm:$0xff] %v19663_v15  ;;  %10231 = vmatprep.subr.bf16.mxu1 %v24197_v59 }
  0x91   :  { %24176 = vst [vmem:[#allocation36_spill] sm:$0xff] %v19582_v25  ;;  %v19584_v37 = vld [vmem:[#allocation2 + $0x380] sm:$0xff]  ;;  %v1452_v52 = vcombine.low %v19580_v33, %v19582_v25  ;;  %9327 = vmatprep.subr.bf16.mxu0 %v24193_v55  ;;  %v1194_v55 = vcombine.low %v1172_v53, %v1186_v26  ;;  %v1460_v14 = vrot.slane %v1450_v34, %v19307_v58  ;;  %v19711_v34 = vld [vmem:[#allocation5 + $0x588] sm:$0xff] }
  0x92   :  { %24177 = vst [vmem:[#allocation37_spill] sm:$0xff] %v19584_v37  ;;  %v19589_v31 = vld [vmem:[#allocation2 + $0x3a0] sm:$0xff]  ;;  %v24201_v26 = vcombine.low %v19391_v61, %v19393_v62  ;;  %v24203_v61 = vcombine.high %v19401_v12, %v19411_v19 }
  0x93   :  { %24179 = vst [vmem:[#allocation38_spill] sm:$0xff] %v19589_v31  ;;  %v19591_v27 = vld [vmem:[#allocation2 + $0x3c0] sm:$0xff]  ;;  %v1594_v47 = vcombine.low %v19584_v37, %v19589_v31  ;;  %v19649_v31 = vld [vmem:[#allocation5 + $0x548] sm:$0xff] }
  0x94   :  { %24180 = vst [vmem:[#allocation39_spill] sm:$0xff] %v19591_v27  ;;  %v19593_v28 = vld [vmem:[#allocation2 + $0x3e0] sm:$0xff]  ;;  %24191 = vst [vmem:[#allocation46_spill] sm:$0xff] %v19649_v31  ;;  %9328 = vmatpush1.bf16.msra.mxu0 %v24201_v26 }
  0x95   :  { %24181 = vst [vmem:[#allocation40_spill] sm:$0xff] %v19593_v28  ;;  %v19611_v6 = vld [vmem:[#allocation5 + $0x500] sm:$0xff]  ;;  %v1596_v48 = vcombine.low %v19591_v27, %v19593_v28  ;;  %v1474_v28 = vrot.slane %v1452_v52, %v19307_v58  ;;  %v1604_v46 = vrot.slane %v1594_v47, %v19307_v58  ;;  %9329 = vmatprep.subr.bf16.mxu0 %v24203_v61 }
  0x96   :  { %24184 = vst [vmem:[#allocation41_spill] sm:$0xff] %v19611_v6  ;;  %v19620_v50 = vld [vmem:[#allocation5 + $0x520] sm:$0xff]  ;;  %v19724_v61 = vpack.c.bf16 %v1338_v36, %v1194_v55  ;;  %v24207_v36 = vcombine.low %v19401_v12, %v19411_v19  ;;  %v24208_v12 = vcombine.low %v19451_v42, %v19453_v43  ;;  %v24209_v19 = vcombine.high %v19455_v44, %v19465_v57 }
  0x97   :  { %24186 = vst [vmem:[#allocation42_spill] sm:$0xff] %v19620_v50  ;;  %v19645_v25 = vld [vmem:[#allocation5 + $0x540] sm:$0xff]  ;;  %v1618_v50 = vrot.slane %v1596_v48, %v19307_v58  ;;  %v24202_v48 = vcombine.low %v19397_v5, %v19399_v10  ;;  %v24204_v10 = vcombine.high %v19451_v42, %v19453_v43  ;;  %v24212_v55 = vcombine.high %v19467_v1, %v19469_v11  ;;  %v19789_v42 = vld [vmem:[#allocation5 + $0x648] sm:$0xff] }
  0x98   :  { %v19647_v37 = vld [vmem:[#allocation5 + $0x560] sm:$0xff]  ;;  %24206 = vst [vmem:[#allocation54_spill] sm:$0xff] %v19724_v61  ;;  %9330 = vmatpush1.bf16.msra.mxu0 %v24207_v36 }
  0x99   :  { %24190 = vst [vmem:[#allocation45_spill] sm:$0xff] %v19647_v37  ;;  %v19665_v39 = vld [vmem:[#allocation2 + $0x400] sm:$0xff]  ;;  %10232 = vmatpush1.bf16.msra.mxu1 %v24202_v48  ;;  %v19722_v48 = vpack.c.bf16 %v1339_v54, %v1195_v60  ;;  %v1626_v31 = vcombine.low %v1604_v46, %v1618_v50  ;;  %v19734_v37 = vld [vmem:[#allocation5 + $0x5c8] sm:$0xff]  ;;  %9412 = vmatprep.subr.bf16.mxu0 %v24209_v19 }
  0x9a   :  { %24195 = vst [vmem:[#allocation48_spill] sm:$0xff] %v19665_v39  ;;  %v19667_v51 = vld [vmem:[#allocation2 + $0x420] sm:$0xff]  ;;  %10233 = vmatprep.subr.bf16.mxu1 %v24204_v10  ;;  %v19736_v60 = vld [vmem:[#allocation5 + $0x5e8] sm:$0xff] }
  0x9b   :  { %24196 = vst [vmem:[#allocation49_spill] sm:$0xff] %v19667_v51  ;;  %v19672_v33 = vld [vmem:[#allocation2 + $0x440] sm:$0xff]  ;;  %v1738_v52 = vcombine.low %v19665_v39, %v19667_v51  ;;  %24205 = vst [vmem:[#allocation53_spill] sm:$0xff] %v19722_v48  ;;  %v1483_v51 = vcombine.high %v1460_v14, %v1474_v28  ;;  %v19763_v54 = vld [vmem:[#allocation5 + $0x608] sm:$0xff]  ;;  %9332 = vmatmul.mubr.bf16.vlgmr.msra.gmra.mrb[0].mxu0 %v19572_v35 }
  0x9c   :  { %24198 = vst [vmem:[#allocation50_spill] sm:$0xff] %v19672_v33  ;;  %v19674_v16 = vld [vmem:[#allocation2 + $0x460] sm:$0xff]  ;;  %24210 = vst [vmem:[#allocation55_spill] sm:$0xff] %v19763_v54  ;;  %v24221_v54 = vcombine.high %v19475_v45, %v19491_v32  ;;  %9341 = vmatprep.mubr.bf16.mxu0 %v19637_v24 }
  0x9d   :  { %24199 = vst [vmem:[#allocation51_spill] sm:$0xff] %v19674_v16  ;;  %v19676_v27 = vld [vmem:[#allocation2 + $0x480] sm:$0xff]  ;;  %v1740_v5 = vcombine.low %v19672_v33, %v19674_v16  ;;  %v1627_v33 = vcombine.high %v1604_v46, %v1618_v50  ;;  %v1482_v16 = vcombine.low %v1460_v14, %v1474_v28  ;;  %10234 = vmatpush1.bf16.msra.mxu1 %v24208_v12  ;;  %v19765_v28 = vld [vmem:[#allocation5 + $0x628] sm:$0xff] }
  0x9e   :  { %v19682_v6 = vld [vmem:[#allocation2 + $0x4a0] sm:$0xff]  ;;  %v1748_v36 = vrot.slane %v1738_v52, %v19307_v58  ;;  %24211 = vst [vmem:[#allocation56_spill] sm:$0xff] %v19765_v28  ;;  %10316 = vmatprep.subr.bf16.mxu1 %v24212_v55 }
  0x9f   :  { %v19684_v59 = vld [vmem:[#allocation2 + $0x4c0] sm:$0xff]  ;;  %v1882_v15 = vcombine.low %v19676_v27, %v19682_v6  ;;  %v1762_v10 = vrot.slane %v1740_v5, %v19307_v58  ;;  %v19781_v14 = vpack.c.bf16 %v1627_v33, %v1483_v51  ;;  %v19817_v51 = vld [vmem:[#allocation5 + $0x668] sm:$0xff] }
  0xa0   :  { %24200 = vst [vmem:[#allocation52_spill] sm:$0xff] %v19684_v59  ;;  %v19686_v53 = vld [vmem:[#allocation2 + $0x4e0] sm:$0xff]  ;;  %10236 = vmatmul.mubr.bf16.vlgmr.msra.gmra.mrb[0].mxu1 %v19572_v35  ;;  %v24219_v35 = vcombine.low %v19467_v1, %v19469_v11  ;;  %v24223_v1 = vcombine.low %v19471_v41, %v19473_v40 }
  0xa1   :  { %v19699_v47 = vld [vmem:[#allocation5 + $0x580] sm:$0xff]  ;;  %v1884_v39 = vcombine.low %v19684_v59, %v19686_v53  ;;  %v1892_v12 = vrot.slane %v1882_v15, %v19307_v58  ;;  %24213 = vst [vmem:[#allocation57_spill] sm:$0xff] %v19781_v14  ;;  %v19783_v59 = vpack.c.bf16 %v1626_v31, %v1482_v16  ;;  %10245 = vmatprep.mubr.bf16.mxu1 %v19637_v24 }
  0xa2   :  { %v19709_v26 = vld [vmem:[#allocation5 + $0x5a0] sm:$0xff]  ;;  %10317 = vmatpush1.bf16.msra.mxu1 %v24219_v35 }
  0xa3   :  { %v19726_v62 = vld [vmem:[#allocation5 + $0x5c0] sm:$0xff]  ;;  %v1906_v52 = vrot.slane %v1884_v39, %v19307_v58  ;;  %24214 = vst [vmem:[#allocation58_spill] sm:$0xff] %v19783_v59  ;;  %v24216_v39 = vcombine.low %v19455_v44, %v19465_v57  ;;  %v24220_v44 = vcombine.high %v19471_v41, %v19473_v40  ;;  %v1771_v57 = vcombine.high %v1748_v36, %v1762_v10 }
  0xa4   :  { %v19728_v29 = vld [vmem:[#allocation5 + $0x5e0] sm:$0xff]  ;;  %10318 = vmatprep.subr.bf16.mxu1 %v24221_v54  ;;  %v24222_v54 = vcombine.high %v19313_v2, %v19315_v3  ;;  %v733_v3 = vcombine.high %v19325_v8, %v19327_v9  ;;  %9342 = vmatmul.mubr.bf16.gmra.mrb[4].mxu0 %v19639_v56 }
  0xa5   :  { %v19749_v46 = vld [vmem:[#allocation5 + $0x600] sm:$0xff]  ;;  %9413 = vmatpush1.bf16.msra.mxu0 %v24216_v39  ;;  %v1770_v39 = vcombine.low %v1748_v36, %v1762_v10  ;;  %v1915_v11 = vcombine.high %v1892_v12, %v1906_v52  ;;  %v1914_v35 = vcombine.low %v1892_v12, %v1906_v52  ;;  %v731_v52 = vcombine.high %v19317_v4, %v19323_v7 }
  0xa6   :  { %v19751_v50 = vld [vmem:[#allocation5 + $0x620] sm:$0xff]  ;;  %9414 = vmatprep.subr.bf16.mxu0 %v24220_v44  ;;  %v617_v12 = vrot.slane %v24222_v54, %v19307_v58  ;;  %v24224_v4 = vcombine.low %v19475_v45, %v19491_v32  ;;  %v24225_v7 = vcombine.high %v19503_v38, %v19535_v18  ;;  %v24226_v54 = vcombine.high %v19537_v22, %v19539_v23 }
  0xa7   :  { %v19776_v19 = vld [vmem:[#allocation5 + $0x640] sm:$0xff]  ;;  %v19871_v24 = vpack.c.bf16 %v1915_v11, %v1771_v57  ;;  %v19873_v8 = vpack.c.bf16 %v1914_v35, %v1770_v39  ;;  %v761_v32 = vrot.slane %v733_v3, %v19307_v58  ;;  %v875_v57 = vcombine.high %v19413_v20, %v19415_v21  ;;  %v19901_v20 = vld [vmem:[#allocation5 + $0x688] sm:$0xff]  ;;  %9351 = vmatprep.mubr.bf16.mxu0 %v19722_v48 }
  0xa8   :  { %v19778_v5 = vld [vmem:[#allocation5 + $0x660] sm:$0xff]  ;;  %10319 = vmatpush1.bf16.msra.mxu1 %v24224_v4  ;;  %v620_v40 = vcombine.low %v19515_v17, %v617_v12  ;;  %v621_v41 = vcombine.high %v19515_v17, %v617_v12  ;;  %v24229_v39 = vcombine.low %v19503_v38, %v19535_v18  ;;  %v24233_v4 = vld [vmem:[#allocation30_spill] sm:$0xff]  ;;  %v19903_v21 = vld [vmem:[#allocation5 + $0x6a8] sm:$0xff] }
  0xa9   :  { %v19791_v15 = vld [vmem:[#allocation2 + $0x500] sm:$0xff]  ;;  %9415 = vmatpush1.bf16.msra.mxu0 %v24223_v1  ;;  %v747_v1 = vrot.slane %v731_v52, %v19307_v58  ;;  %10320 = vmatprep.subr.bf16.mxu1 %v24226_v54  ;;  %24227 = vst [vmem:[#allocation62_spill] sm:$0xff] %v19871_v24  ;;  %24228 = vst [vmem:[#allocation63_spill] sm:$0xff] %v19873_v8  ;;  %v24230_v52 = vld [vmem:[#allocation17_spill] sm:$0xff]  ;;  %v891_v38 = vrot.slane %v875_v57, %v19307_v58 }
  0xaa   :  { %24215 = vst [vmem:[#allocation59_spill] sm:$0xff] %v19791_v15  ;;  %v19803_v16 = vld [vmem:[#allocation2 + $0x520] sm:$0xff]  ;;  %9416 = vmatprep.subr.bf16.mxu0 %v24225_v7  ;;  %10246 = vmatmul.mubr.bf16.gmra.mrb[4].mxu1 %v19639_v56  ;;  %v24239_v12 = vld [vmem:[#allocation20_spill] sm:$0xff] }
  0xab   :  { %v19805_v43 = vld [vmem:[#allocation2 + $0x540] sm:$0xff]  ;;  %v2026_v44 = vcombine.low %v19791_v15, %v19803_v16  ;;  %v764_v11 = vcombine.low %v747_v1, %v761_v32  ;;  %v765_v35 = vcombine.high %v747_v1, %v761_v32  ;;  %v24238_v32 = vld [vmem:[#allocation21_spill] sm:$0xff]  ;;  %10255 = vmatprep.mubr.bf16.mxu1 %v19722_v48  ;;  %v24260_v48 = vld [vmem:[#allocation26_spill] sm:$0xff] }
  0xac   :  { %24217 = vst [vmem:[#allocation60_spill] sm:$0xff] %v19805_v43  ;;  %v19807_v55 = vld [vmem:[#allocation2 + $0x560] sm:$0xff]  ;;  %9352 = vmatmul.mubr.bf16.gmra.mrb[8].mxu0 %v19724_v61 }
  0xad   :  { %24218 = vst [vmem:[#allocation61_spill] sm:$0xff] %v19807_v55  ;;  %v19819_v31 = vld [vmem:[#allocation2 + $0x580] sm:$0xff]  ;;  %v2028_v33 = vcombine.low %v19805_v43, %v19807_v55  ;;  %v19880_v45 = vrot.slane %v2026_v44, %v19307_v58  ;;  %9417 = vmatpush1.bf16.msra.mxu0 %v24229_v39  ;;  %v24231_v44 = vld [vmem:[#allocation16_spill] sm:$0xff]  ;;  %v24237_v39 = vld [vmem:[#allocation18_spill] sm:$0xff]  ;;  %9361 = vmatprep.mubr.bf16.mxu0 %v19781_v14 }
  0xae   :  { %v19821_v28 = vld [vmem:[#allocation2 + $0x5a0] sm:$0xff]  ;;  %v877_v3 = vcombine.high %v24231_v44, %v24230_v52  ;;  %v1021_v52 = vcombine.high %v24239_v12, %v24238_v32  ;;  %v19916_v44 = vpack.c.bf16 %v764_v11, %v620_v40  ;;  %v24246_v32 = vcombine.low %v19607_v63, %v19609_v0 }
  0xaf   :  { %v19830_v10 = vld [vmem:[#allocation2 + $0x5c0] sm:$0xff]  ;;  %v2170_v43 = vcombine.low %v19819_v31, %v19821_v28  ;;  %v19883_v17 = vrot.slane %v2028_v33, %v19307_v58  ;;  %v24232_v33 = vcombine.low %v19537_v22, %v19539_v23  ;;  %v24240_v22 = vcombine.high %v19607_v63, %v19609_v0 }
  0xb0   :  { %v19832_v36 = vld [vmem:[#allocation2 + $0x5e0] sm:$0xff]  ;;  %v19914_v23 = vpack.c.bf16 %v765_v35, %v621_v41  ;;  %24242 = vst [vmem:[#allocation16_spill] sm:$0xff] %v19916_v44  ;;  %v1049_v41 = vrot.slane %v1021_v52, %v19307_v58 }
  0xb1   :  { %v19853_v55 = vld [vmem:[#allocation5 + $0x680] sm:$0xff]  ;;  %v2172_v9 = vcombine.low %v19830_v10, %v19832_v36  ;;  %10321 = vmatpush1.bf16.msra.mxu1 %v24232_v33  ;;  %v905_v33 = vrot.slane %v877_v3, %v19307_v58  ;;  %v19921_v57 = vrot.slane %v2170_v43, %v19307_v58  ;;  %v24257_v43 = vld [vmem:[#allocation25_spill] sm:$0xff] }
  0xb2   :  { %v19855_v2 = vld [vmem:[#allocation5 + $0x6a0] sm:$0xff]  ;;  %10322 = vmatprep.subr.bf16.mxu1 %v24240_v22  ;;  %24241 = vst [vmem:[#allocation17_spill] sm:$0xff] %v19914_v23  ;;  %v24247_v22 = vld [vmem:[#allocation41_spill] sm:$0xff]  ;;  %10256 = vmatmul.mubr.bf16.gmra.mrb[8].mxu1 %v19724_v61 }
  0xb3   :  { %v24234_v7 = vld [vmem:[#allocation31_spill] sm:$0xff]  ;;  %v19935_v11 = vrot.slane %v2172_v9, %v19307_v58  ;;  %v909_v35 = vcombine.high %v891_v38, %v905_v33  ;;  %v908_v3 = vcombine.low %v891_v38, %v905_v33  ;;  %v24250_v9 = vcombine.high %v19622_v30, %v19624_v49  ;;  %10265 = vmatprep.mubr.bf16.mxu1 %v19781_v14 }
  0xb4   :  { %v24235_v54 = vcombine.high %v24233_v4, %v24234_v7  ;;  %v24236_v18 = vld [vmem:[#allocation19_spill] sm:$0xff]  ;;  %v24245_v40 = vcombine.low %v24233_v4, %v24234_v7  ;;  %v2059_v38 = vcombine.high %v19880_v45, %v19883_v17  ;;  %v24258_v4 = vld [vmem:[#allocation24_spill] sm:$0xff]  ;;  %9362 = vmatmul.mubr.bf16.gmra.mrb[12].mxu0 %v19783_v59 }
  0xb5   :  { %v1019_v1 = vcombine.high %v24237_v39, %v24236_v18  ;;  %v19927_v18 = vld [vmem:[#allocation5 + $0x6e0] sm:$0xff]  ;;  %10323 = vmatpush1.bf16.msra.mxu1 %v24246_v32  ;;  %v19959_v32 = vld [vmem:[#allocation5 + $0x6c8] sm:$0xff]  ;;  %v1165_v15 = vcombine.high %v24258_v4, %v24257_v43  ;;  %v24263_v4 = vld [vmem:[#allocation29_spill] sm:$0xff]  ;;  %9371 = vmatprep.mubr.bf16.mxu0 %v19871_v24 }
  0xb6   :  { %9418 = vmatprep.subr.bf16.mxu0 %v24235_v54  ;;  %v19925_v54 = vld [vmem:[#allocation5 + $0x6c0] sm:$0xff]  ;;  %24244 = vst [vmem:[#allocation31_spill] sm:$0xff] %v19927_v18  ;;  %10324 = vmatprep.subr.bf16.mxu1 %v24250_v9  ;;  %24253 = vst [vmem:[#allocation19_spill] sm:$0xff] %v19959_v32  ;;  %v24274_v32 = vcombine.high %v19699_v47, %v19709_v26 }
  0xb7   :  { %24243 = vst [vmem:[#allocation30_spill] sm:$0xff] %v19925_v54  ;;  %v1035_v39 = vrot.slane %v1019_v1, %v19307_v58  ;;  %9419 = vmatpush1.bf16.msra.mxu0 %v24245_v40  ;;  %v24248_v1 = vld [vmem:[#allocation42_spill] sm:$0xff]  ;;  %v24251_v33 = vld [vmem:[#allocation23_spill] sm:$0xff] }
  0xb8   :  { %v24249_v12 = vcombine.high %v24247_v22, %v24248_v1  ;;  %v24259_v63 = vld [vmem:[#allocation27_spill] sm:$0xff]  ;;  %v24279_v54 = vld [vmem:[#allocation38_spill] sm:$0xff] }
  0xb9   :  { %v1053_v7 = vcombine.high %v1035_v39, %v1049_v41  ;;  %v1052_v52 = vcombine.low %v1035_v39, %v1049_v41  ;;  %v19961_v39 = vld [vmem:[#allocation5 + $0x6e8] sm:$0xff]  ;;  %v1307_v56 = vcombine.high %v24260_v48, %v24259_v63  ;;  %v19977_v0 = vld [vmem:[#allocation2 + $0x600] sm:$0xff]  ;;  %v2203_v63 = vcombine.high %v19921_v57, %v19935_v11 }
  0xba   :  { %9420 = vmatprep.subr.bf16.mxu0 %v24249_v12  ;;  %v24252_v12 = vld [vmem:[#allocation22_spill] sm:$0xff]  ;;  %24254 = vst [vmem:[#allocation18_spill] sm:$0xff] %v19961_v39  ;;  %v19998_v61 = vld [vmem:[#allocation2 + $0x6a0] sm:$0xff]  ;;  %10266 = vmatmul.mubr.bf16.gmra.mrb[12].mxu1 %v19783_v59 }
  0xbb   :  { %v1163_v40 = vcombine.high %v24252_v12, %v24251_v33  ;;  %v19963_v41 = vpack.c.bf16 %v1053_v7, %v909_v35  ;;  %v19965_v9 = vpack.c.bf16 %v1052_v52, %v908_v3  ;;  %v24261_v33 = vcombine.low %v24247_v22, %v24248_v1  ;;  %v19979_v35 = vld [vmem:[#allocation2 + $0x620] sm:$0xff]  ;;  %v24264_v7 = vld [vmem:[#allocation28_spill] sm:$0xff]  ;;  %v24266_v22 = vld [vmem:[#allocation45_spill] sm:$0xff]  ;;  %10275 = vmatprep.mubr.bf16.mxu1 %v19871_v24 }
  0xbc   :  { %v19981_v3 = vld [vmem:[#allocation2 + $0x640] sm:$0xff]  ;;  %v1309_v48 = vcombine.high %v24264_v7, %v24263_v4  ;;  %v24265_v52 = vcombine.low %v19622_v30, %v19624_v49  ;;  %v24267_v1 = vcombine.high %v19645_v25, %v24266_v22  ;;  %v1323_v4 = vrot.slane %v1307_v56, %v19307_v58  ;;  %v24269_v7 = vld [vmem:[#allocation46_spill] sm:$0xff]  ;;  %9372 = vmatmul.mubr.bf16.gmra.mrb[16].mxu0 %v19873_v8 }
  0xbd   :  { %24255 = vst [vmem:[#allocation21_spill] sm:$0xff] %v19963_v41  ;;  %24256 = vst [vmem:[#allocation20_spill] sm:$0xff] %v19965_v9  ;;  %9421 = vmatpush1.bf16.msra.mxu0 %v24261_v33  ;;  %v1179_v43 = vrot.slane %v1163_v40, %v19307_v58  ;;  %v19994_v33 = vld [vmem:[#allocation2 + $0x660] sm:$0xff]  ;;  %v1193_v40 = vrot.slane %v1165_v15, %v19307_v58 }
  0xbe   :  { %24262 = vst [vmem:[#allocation41_spill] sm:$0xff] %v19981_v3  ;;  %10325 = vmatpush1.bf16.msra.mxu1 %v24265_v52  ;;  %9422 = vmatprep.subr.bf16.mxu0 %v24267_v1  ;;  %24268 = vst [vmem:[#allocation42_spill] sm:$0xff] %v19994_v33  ;;  %v19996_v12 = vld [vmem:[#allocation2 + $0x680] sm:$0xff]  ;;  %v1337_v9 = vrot.slane %v1309_v48, %v19307_v58  ;;  %v24272_v52 = vcombine.low %v19645_v25, %v24266_v22  ;;  %v24277_v22 = vld [vmem:[#allocation36_spill] sm:$0xff] }
  0xbf   :  { %v24270_v49 = vld [vmem:[#allocation47_spill] sm:$0xff]  ;;  %v1197_v44 = vcombine.high %v1179_v43, %v1193_v40  ;;  %v1196_v23 = vcombine.low %v1179_v43, %v1193_v40  ;;  %v2316_v48 = vcombine.low %v19981_v3, %v19994_v33  ;;  %v2458_v1 = vcombine.low %v19996_v12, %v19998_v61  ;;  %v24275_v43 = vld [vmem:[#allocation33_spill] sm:$0xff]  ;;  %v24276_v40 = vld [vmem:[#allocation32_spill] sm:$0xff] }
  0xc0   :  { %v24271_v30 = vcombine.high %v24269_v7, %v24270_v49  ;;  %v20014_v56 = vld [vmem:[#allocation2 + $0x6c0] sm:$0xff]  ;;  %v1341_v15 = vcombine.high %v1323_v4, %v1337_v9  ;;  %v1340_v14 = vcombine.low %v1323_v4, %v1337_v9  ;;  %v24273_v39 = vcombine.low %v24269_v7, %v24270_v49  ;;  %v24280_v3 = vld [vmem:[#allocation37_spill] sm:$0xff] }
  0xc1   :  { %v20016_v41 = vld [vmem:[#allocation2 + $0x6e0] sm:$0xff]  ;;  %9423 = vmatpush1.bf16.msra.mxu0 %v24272_v52  ;;  %v1451_v25 = vcombine.high %v24276_v40, %v24275_v43  ;;  %v1595_v33 = vcombine.high %v24280_v3, %v24279_v54  ;;  %v24281_v9 = vcombine.high %v19711_v34, %v19713_v13  ;;  %v20051_v40 = vpack.c.bf16 %v2203_v63, %v2059_v38 }
  0xc2   :  { %10326 = vmatprep.subr.bf16.mxu1 %v24271_v30  ;;  %v2314_v30 = vcombine.low %v19977_v0, %v19979_v35  ;;  %9424 = vmatprep.subr.bf16.mxu0 %v24274_v32  ;;  %v24278_v52 = vld [vmem:[#allocation35_spill] sm:$0xff]  ;;  %v20044_v4 = vpack.c.bf16 %v1341_v15, %v1197_v44  ;;  %v20046_v7 = vpack.c.bf16 %v1340_v14, %v1196_v23  ;;  %v24284_v32 = vld [vmem:[#allocation40_spill] sm:$0xff] }
  0xc3   :  { %10327 = vmatpush1.bf16.msra.mxu1 %v24273_v39  ;;  %v1453_v18 = vcombine.high %v24278_v52, %v24277_v22  ;;  %v2460_v39 = vcombine.low %v20014_v56, %v20016_v41  ;;  %v24285_v49 = vld [vmem:[#allocation39_spill] sm:$0xff]  ;;  %24286 = vst [vmem:[#allocation25_spill] sm:$0xff] %v20051_v40  ;;  %v1467_v54 = vrot.slane %v1451_v25, %v19307_v58 }
  0xc4   :  { %10328 = vmatprep.subr.bf16.mxu1 %v24281_v9  ;;  %24282 = vst [vmem:[#allocation23_spill] sm:$0xff] %v20044_v4  ;;  %24283 = vst [vmem:[#allocation22_spill] sm:$0xff] %v20046_v7  ;;  %v1597_v43 = vcombine.high %v24285_v49, %v24284_v32  ;;  %v20053_v22 = vld [vmem:[#allocation2 + $0x700] sm:$0xff]  ;;  %v1611_v52 = vrot.slane %v1595_v33, %v19307_v58  ;;  %v24287_v14 = vcombine.low %v19699_v47, %v19709_v26 }
  0xc5   :  { %v1481_v3 = vrot.slane %v1453_v18, %v19307_v58  ;;  %v20063_v23 = vrot.slane %v2314_v30, %v19307_v58  ;;  %v20066_v44 = vrot.slane %v2316_v48, %v19307_v58  ;;  %v20068_v38 = vld [vmem:[#allocation2 + $0x720] sm:$0xff]  ;;  %v24288_v33 = vcombine.low %v19711_v34, %v19713_v13  ;;  %10276 = vmatmul.mubr.bf16.gmra.mrb[16].mxu1 %v19873_v8  ;;  %v20497_v8 = vld [vmem:[#allocation2 + $0x128] sm:$0xff] }
  0xc6   :  { %9425 = vmatpush1.bf16.msra.mxu0 %v24287_v14  ;;  %v20070_v63 = vld [vmem:[#allocation2 + $0x740] sm:$0xff]  ;;  %v1625_v18 = vrot.slane %v1597_v43, %v19307_v58  ;;  %v24289_v47 = vcombine.high %v19726_v62, %v19728_v29  ;;  %v20082_v26 = vrot.slane %v2458_v1, %v19307_v58  ;;  %v24290_v25 = vcombine.high %v19734_v37, %v19736_v60 }
  0xc7   :  { %v20072_v15 = vld [vmem:[#allocation2 + $0x760] sm:$0xff]  ;;  %10329 = vmatpush1.bf16.msra.mxu1 %v24288_v33  ;;  %v1485_v30 = vcombine.high %v1467_v54, %v1481_v3  ;;  %v1484_v48 = vcombine.low %v1467_v54, %v1481_v3  ;;  %v20089_v9 = vrot.slane %v2460_v39, %v19307_v58  ;;  %v2602_v1 = vcombine.low %v20053_v22, %v20068_v38  ;;  %v24291_v54 = vld [vmem:[#allocation49_spill] sm:$0xff]  ;;  %v24292_v3 = vld [vmem:[#allocation48_spill] sm:$0xff] }
  0xc8   :  { %9426 = vmatprep.subr.bf16.mxu0 %v24289_v47  ;;  %10330 = vmatprep.subr.bf16.mxu1 %v24290_v25  ;;  %v20091_v34 = vld [vmem:[#allocation2 + $0x780] sm:$0xff]  ;;  %v1629_v32 = vcombine.high %v1611_v52, %v1625_v18  ;;  %v1628_v49 = vcombine.low %v1611_v52, %v1625_v18  ;;  %v2604_v43 = vcombine.low %v20070_v63, %v20072_v15  ;;  %v24294_v39 = vld [vmem:[#allocation50_spill] sm:$0xff] }
  0xc9   :  { %v20093_v13 = vld [vmem:[#allocation2 + $0x7a0] sm:$0xff]  ;;  %v1739_v14 = vcombine.high %v24292_v3, %v24291_v54  ;;  %v24295_v25 = vcombine.low %v19726_v62, %v19728_v29  ;;  %v1883_v7 = vcombine.high %v19676_v27, %v19682_v6  ;;  %v24298_v54 = vld [vmem:[#allocation52_spill] sm:$0xff]  ;;  %v24300_v29 = vcombine.high %v19749_v46, %v19751_v50  ;;  %9381 = vmatprep.mubr.bf16.mxu0 %v20051_v40 }
  0xca   :  { %v24293_v33 = vld [vmem:[#allocation51_spill] sm:$0xff]  ;;  %v20111_v18 = vpack.c.bf16 %v1629_v32, %v1485_v30  ;;  %v20113_v24 = vpack.c.bf16 %v1628_v49, %v1484_v48  ;;  %v1885_v3 = vcombine.high %v24298_v54, %v19686_v53  ;;  %v2746_v62 = vcombine.low %v20091_v34, %v20093_v13  ;;  %v24302_v27 = vld [vmem:[#allocation56_spill] sm:$0xff]  ;;  %10285 = vmatprep.mubr.bf16.mxu1 %v20051_v40 }
  0xcb   :  { %v1741_v47 = vcombine.high %v24294_v39, %v24293_v33  ;;  %9427 = vmatpush1.bf16.msra.mxu0 %v24295_v25  ;;  %v20107_v59 = vld [vmem:[#allocation2 + $0x7c0] sm:$0xff]  ;;  %v24299_v33 = vcombine.low %v19734_v37, %v19736_v60  ;;  %v1755_v30 = vrot.slane %v1739_v14, %v19307_v58  ;;  %v24304_v53 = vcombine.low %v19880_v45, %v19883_v17 }
  0xcc   :  { %v20109_v52 = vld [vmem:[#allocation2 + $0x7e0] sm:$0xff]  ;;  %24296 = vst [vmem:[#allocation24_spill] sm:$0xff] %v20111_v18  ;;  %24297 = vst [vmem:[#allocation27_spill] sm:$0xff] %v20113_v24  ;;  %9428 = vmatprep.subr.bf16.mxu0 %v24300_v29  ;;  %v24305_v37 = vcombine.low %v19921_v57, %v19935_v11  ;;  %v2347_v49 = vcombine.high %v20063_v23, %v20066_v44  ;;  %v1899_v39 = vrot.slane %v1883_v7, %v19307_v58 }
  0xcd   :  { %10331 = vmatpush1.bf16.msra.mxu1 %v24299_v33  ;;  %v1769_v48 = vrot.slane %v1741_v47, %v19307_v58  ;;  %v24301_v32 = vld [vmem:[#allocation55_spill] sm:$0xff]  ;;  %v1913_v14 = vrot.slane %v1885_v3, %v19307_v58  ;;  %v2491_v47 = vcombine.high %v20082_v26, %v20089_v9  ;;  %v2748_v45 = vcombine.low %v20107_v59, %v20109_v52 }
  0xce   :  { %v24303_v6 = vcombine.high %v24301_v32, %v24302_v27  ;;  %v20138_v60 = vpack.c.bf16 %v24305_v37, %v24304_v53  ;;  %v24307_v57 = vcombine.low %v19749_v46, %v19751_v50  ;;  %v20153_v11 = vld [vmem:[#allocation5 + $0x700] sm:$0xff]  ;;  %v20156_v7 = vrot.slane %v2602_v1, %v19307_v58  ;;  %v20168_v46 = vld [vmem:[#allocation5 + $0x728] sm:$0xff] }
  0xcf   :  { %v1773_v17 = vcombine.high %v1755_v30, %v1769_v48  ;;  %v1772_v25 = vcombine.low %v1755_v30, %v1769_v48  ;;  %v1917_v54 = vcombine.high %v1899_v39, %v1913_v14  ;;  %v1916_v3 = vcombine.low %v1899_v39, %v1913_v14  ;;  %v20164_v30 = vld [vmem:[#allocation5 + $0x720] sm:$0xff]  ;;  %v20166_v48 = vld [vmem:[#allocation5 + $0x708] sm:$0xff]  ;;  %v24314_v39 = vld [vmem:[#allocation61_spill] sm:$0xff] }
  0xd0   :  { %10332 = vmatprep.subr.bf16.mxu1 %v24303_v6  ;;  %24306 = vst [vmem:[#allocation26_spill] sm:$0xff] %v20138_v60  ;;  %9429 = vmatpush1.bf16.msra.mxu0 %v24307_v57  ;;  %v24308_v33 = vcombine.low %v24301_v32, %v24302_v27  ;;  %v24309_v29 = vcombine.high %v19776_v19, %v19778_v5  ;;  %v24310_v6 = vld [vmem:[#allocation59_spill] sm:$0xff]  ;;  %v24315_v14 = vld [vmem:[#allocation60_spill] sm:$0xff] }
  0xd1   :  { %v20171_v50 = vrot.slane %v2604_v43, %v19307_v58  ;;  %v20174_v1 = vrot.slane %v2746_v62, %v19307_v58  ;;  %v2027_v32 = vcombine.high %v24310_v6, %v19803_v16  ;;  %v24311_v27 = vcombine.high %v19789_v42, %v19817_v51  ;;  %9382 = vmatmul.mubr.bf16.gmra.mrb[20].mxu0 %v20138_v60 }
  0xd2   :  { %10333 = vmatpush1.bf16.msra.mxu1 %v24308_v33  ;;  %9430 = vmatprep.subr.bf16.mxu0 %v24309_v29  ;;  %v20182_v53 = vpack.c.bf16 %v1917_v54, %v1773_v17  ;;  %v20184_v37 = vpack.c.bf16 %v1916_v3, %v1772_v25  ;;  %v2029_v43 = vcombine.high %v24315_v14, %v24314_v39  ;;  %v24323_v39 = vld [vmem:[#allocation41_spill] sm:$0xff] }
  0xd3   :  { %10334 = vmatprep.subr.bf16.mxu1 %v24311_v27  ;;  %v20190_v62 = vrot.slane %v2748_v45, %v19307_v58  ;;  %v2043_v16 = vrot.slane %v2027_v32, %v19307_v58  ;;  %v2171_v57 = vcombine.high %v19819_v31, %v19821_v28  ;;  %v2173_v33 = vcombine.high %v19830_v10, %v19832_v36  ;;  %v20235_v32 = vld [vmem:[#allocation5 + $0x760] sm:$0xff]  ;;  %v24322_v27 = vld [vmem:[#allocation42_spill] sm:$0xff] }
  0xd4   :  { %24312 = vst [vmem:[#allocation29_spill] sm:$0xff] %v20182_v53  ;;  %24313 = vst [vmem:[#allocation28_spill] sm:$0xff] %v20184_v37  ;;  %v24316_v17 = vcombine.low %v19776_v19, %v19778_v5  ;;  %v2346_v25 = vcombine.low %v20063_v23, %v20066_v44  ;;  %v16353_v54 = vcombine.high %v20153_v11, %v20164_v30  ;;  %10286 = vmatmul.mubr.bf16.gmra.mrb[20].mxu1 %v20138_v60  ;;  %v20482_v60 = vld [vmem:[#allocation5 + $0xba0] sm:$0xff] }
  0xd5   :  { %v16355_v45 = vcombine.high %v20166_v48, %v20168_v46  ;;  %v2057_v3 = vrot.slane %v2029_v43, %v19307_v58  ;;  %v24317_v28 = vcombine.low %v19789_v42, %v19817_v51  ;;  %v24318_v31 = vcombine.high %v19853_v55, %v19855_v2 }
  0xd6   :  { %9431 = vmatpush1.bf16.msra.mxu0 %v24316_v17  ;;  %v2490_v19 = vcombine.low %v20082_v26, %v20089_v9  ;;  %v2187_v5 = vrot.slane %v2171_v57, %v19307_v58  ;;  %v2201_v10 = vrot.slane %v2173_v33, %v19307_v58  ;;  %v24319_v36 = vcombine.high %v19901_v20, %v19903_v21 }
  0xd7   :  { %10335 = vmatpush1.bf16.msra.mxu1 %v24317_v28  ;;  %9432 = vmatprep.subr.bf16.mxu0 %v24318_v31  ;;  %v20220_v23 = vpack.c.bf16 %v2491_v47, %v2347_v49  ;;  %v2635_v42 = vcombine.high %v20156_v7, %v20171_v50  ;;  %v2061_v51 = vcombine.high %v2043_v16, %v2057_v3  ;;  %v20233_v47 = vld [vmem:[#allocation5 + $0x740] sm:$0xff]  ;;  %v24331_v28 = vld [vmem:[#allocation18_spill] sm:$0xff] }
  0xd8   :  { %10336 = vmatprep.subr.bf16.mxu1 %v24319_v36  ;;  %v2060_v44 = vcombine.low %v2043_v16, %v2057_v3  ;;  %v2779_v26 = vcombine.high %v20174_v1, %v20190_v62  ;;  %v2205_v9 = vcombine.high %v2187_v5, %v2201_v10  ;;  %v2204_v29 = vcombine.low %v2187_v5, %v2201_v10  ;;  %v24330_v3 = vld [vmem:[#allocation19_spill] sm:$0xff] }
  0xd9   :  { %24320 = vst [vmem:[#allocation45_spill] sm:$0xff] %v20220_v23  ;;  %v2315_v6 = vcombine.high %v19977_v0, %v19979_v35  ;;  %v24321_v49 = vcombine.low %v19853_v55, %v19855_v2  ;;  %v2317_v14 = vcombine.high %v24323_v39, %v24322_v27  ;;  %v2459_v43 = vcombine.high %v19996_v12, %v19998_v61  ;;  %v24325_v35 = vld [vmem:[#allocation30_spill] sm:$0xff]  ;;  %v24326_v55 = vld [vmem:[#allocation31_spill] sm:$0xff]  ;;  %v3511_v12 = vld [vmem:[#allocation5 + $0x768] sm:$0xff] }
  0xda   :  { %v2461_v16 = vcombine.high %v20014_v56, %v20016_v41  ;;  %v24324_v0 = vcombine.low %v19901_v20, %v19903_v21  ;;  %v24327_v2 = vcombine.high %v24325_v35, %v24326_v55  ;;  %v20249_v57 = vpack.c.bf16 %v2205_v9, %v2061_v51  ;;  %9391 = vmatprep.mubr.bf16.mxu0 %v20220_v23  ;;  %v3507_v41 = vld [vmem:[#allocation5 + $0x748] sm:$0xff] }
  0xdb   :  { %9433 = vmatpush1.bf16.msra.mxu0 %v24321_v49  ;;  %v20251_v33 = vpack.c.bf16 %v2204_v29, %v2060_v44  ;;  %v2331_v17 = vrot.slane %v2315_v6, %v19307_v58  ;;  %v24332_v61 = vcombine.high %v24330_v3, %v24331_v28  ;;  %v2345_v20 = vrot.slane %v2317_v14, %v19307_v58 }
  0xdc   :  { %10337 = vmatpush1.bf16.msra.mxu1 %v24324_v0  ;;  %9434 = vmatprep.subr.bf16.mxu0 %v24327_v2  ;;  %24328 = vst [vmem:[#allocation46_spill] sm:$0xff] %v20249_v57  ;;  %v2475_v21 = vrot.slane %v2459_v43, %v19307_v58  ;;  %v2489_v56 = vrot.slane %v2461_v16, %v19307_v58 }
  0xdd   :  { %24329 = vst [vmem:[#allocation47_spill] sm:$0xff] %v20251_v33  ;;  %10338 = vmatprep.subr.bf16.mxu1 %v24332_v61  ;;  %10295 = vmatprep.mubr.bf16.mxu1 %v20220_v23  ;;  %v20262_v31 = vpack.c.bf16 %v2490_v19, %v2346_v25  ;;  %v16352_v5 = vcombine.low %v20153_v11, %v20164_v30  ;;  %v3518_v19 = vld [vmem:[#allocation5 + $0x7a0] sm:$0xff] }
  0xde   :  { %v16354_v10 = vcombine.low %v20166_v48, %v20168_v46  ;;  %v16361_v36 = vcombine.high %v20233_v47, %v20235_v32  ;;  %v24334_v51 = vcombine.low %v24325_v35, %v24326_v55  ;;  %v2349_v44 = vcombine.high %v2331_v17, %v2345_v20  ;;  %v3514_v46 = vld [vmem:[#allocation5 + $0x780] sm:$0xff] }
  0xdf   :  { %24333 = vst [vmem:[#allocation33_spill] sm:$0xff] %v20262_v31  ;;  %v2493_v9 = vcombine.high %v2475_v21, %v2489_v56  ;;  %v2348_v29 = vcombine.low %v2331_v17, %v2345_v20  ;;  %v2492_v6 = vcombine.low %v2475_v21, %v2489_v56  ;;  %v24335_v25 = vcombine.low %v24330_v3, %v24331_v28  ;;  %v3531_v20 = vld [vmem:[#allocation5 + $0x808] sm:$0xff]  ;;  %v20480_v23 = vld [vmem:[#allocation5 + $0xb80] sm:$0xff] }
  0xe0   :  { %9435 = vmatpush1.bf16.msra.mxu0 %v24334_v51  ;;  %v16363_v11 = vcombine.high %v3507_v41, %v3511_v12  ;;  %v2634_v30 = vcombine.low %v20156_v7, %v20171_v50  ;;  %v2778_v48 = vcombine.low %v20174_v1, %v20190_v62  ;;  %v20280_v49 = vpack.c.bf16 %v2779_v26, %v2635_v42  ;;  %v3515_v50 = vld [vmem:[#allocation5 + $0x788] sm:$0xff] }
  0xe1   :  { %10339 = vmatpush1.bf16.msra.mxu1 %v24335_v25  ;;  %9436 = vmatprep.subr.bf16.mxu0 %v16353_v54  ;;  %v20282_v27 = vpack.c.bf16 %v2493_v9, %v2349_v44  ;;  %v20284_v39 = vpack.c.bf16 %v2492_v6, %v2348_v29  ;;  %v2603_v14 = vcombine.high %v20053_v22, %v20068_v38  ;;  %v3519_v54 = vld [vmem:[#allocation5 + $0x7a8] sm:$0xff]  ;;  %v3538_v44 = vld [vmem:[#allocation5 + $0x840] sm:$0xff] }
  0xe2   :  { %10340 = vmatprep.subr.bf16.mxu1 %v16355_v45  ;;  %24336 = vst [vmem:[#allocation32_spill] sm:$0xff] %v20280_v49  ;;  %9392 = vmatmul.mubr.bf16.gmra.mrb[24].mxu0 %v20262_v31  ;;  %v16360_v7 = vcombine.low %v20233_v47, %v20235_v32  ;;  %v2605_v1 = vcombine.high %v20070_v63, %v20072_v15  ;;  %v3527_v32 = vld [vmem:[#allocation5 + $0x7e8] sm:$0xff]  ;;  %v3542_v9 = vld [vmem:[#allocation5 + $0x860] sm:$0xff] }
  0xe3   :  { %24337 = vst [vmem:[#allocation36_spill] sm:$0xff] %v20282_v27  ;;  %24338 = vst [vmem:[#allocation35_spill] sm:$0xff] %v20284_v39  ;;  %v2747_v62 = vcombine.high %v20091_v34, %v20093_v13  ;;  %v2749_v45 = vcombine.high %v20107_v59, %v20109_v52  ;;  %10296 = vmatmul.mubr.bf16.gmra.mrb[24].mxu1 %v20262_v31  ;;  %v16362_v22 = vcombine.low %v3507_v41, %v3511_v12  ;;  %v3522_v34 = vld [vmem:[#allocation5 + $0x7c0] sm:$0xff]  ;;  %v3523_v52 = vld [vmem:[#allocation5 + $0x7c8] sm:$0xff] }
  0xe4   :  { %9437 = vmatpush1.bf16.msra.mxu0 %v16352_v5  ;;  %v16369_v38 = vcombine.high %v3514_v46, %v3518_v19  ;;  %v2619_v42 = vrot.slane %v2603_v14, %v19307_v58  ;;  %v2633_v26 = vrot.slane %v2605_v1, %v19307_v58  ;;  %9401 = vmatprep.mubr.bf16.mxu0 %v20280_v49  ;;  %v3526_v13 = vld [vmem:[#allocation5 + $0x7e0] sm:$0xff]  ;;  %v3535_v21 = vld [vmem:[#allocation5 + $0x828] sm:$0xff] }
  0xe5   :  { %10341 = vmatpush1.bf16.msra.mxu1 %v16354_v10  ;;  %9438 = vmatprep.subr.bf16.mxu0 %v16361_v36  ;;  %v2763_v47 = vrot.slane %v2747_v62, %v19307_v58  ;;  %v2777_v63 = vrot.slane %v2749_v45, %v19307_v58  ;;  %v20303_v15 = vpack.c.bf16 %v2778_v48, %v2634_v30  ;;  %v3530_v41 = vld [vmem:[#allocation5 + $0x800] sm:$0xff]  ;;  %v24342_v36 = vld [vmem:[#allocation17_spill] sm:$0xff]  ;;  %v3539_v29 = vld [vmem:[#allocation5 + $0x848] sm:$0xff] }
  0xe6   :  { %10342 = vmatprep.subr.bf16.mxu1 %v16363_v11  ;;  %v16371_v59 = vcombine.high %v3515_v50, %v3519_v54  ;;  %10305 = vmatprep.mubr.bf16.mxu1 %v20280_v49  ;;  %v2637_v43 = vcombine.high %v2619_v42, %v2633_v26  ;;  %v2636_v0 = vcombine.low %v2619_v42, %v2633_v26  ;;  %v3534_v12 = vld [vmem:[#allocation5 + $0x820] sm:$0xff]  ;;  %v3543_v6 = vld [vmem:[#allocation5 + $0x868] sm:$0xff]  ;;  %v24344_v42 = vld [vmem:[#allocation21_spill] sm:$0xff] }
  0xe7   :  { %24339 = vst [vmem:[#allocation38_spill] sm:$0xff] %v20303_v15  ;;  %v2781_v16 = vcombine.high %v2763_v47, %v2777_v63  ;;  %v2780_v35 = vcombine.low %v2763_v47, %v2777_v63  ;;  %v16368_v55 = vcombine.low %v3514_v46, %v3518_v19  ;;  %v16370_v2 = vcombine.low %v3515_v50, %v3519_v54  ;;  %v3546_v48 = vld [vmem:[#allocation5 + $0x880] sm:$0xff]  ;;  %v3547_v19 = vld [vmem:[#allocation5 + $0x888] sm:$0xff] }
  0xe8   :  { %9439 = vmatpush1.bf16.msra.mxu0 %v16360_v7  ;;  %v16377_v17 = vcombine.high %v3522_v34, %v3526_v13  ;;  %v16379_v61 = vcombine.high %v3523_v52, %v3527_v32  ;;  %v16376_v56 = vcombine.low %v3522_v34, %v3526_v13  ;;  %v16378_v5 = vcombine.low %v3523_v52, %v3527_v32  ;;  %v3550_v46 = vld [vmem:[#allocation5 + $0x8a0] sm:$0xff]  ;;  %v3551_v7 = vld [vmem:[#allocation5 + $0x8a8] sm:$0xff] }
  0xe9   :  { %10343 = vmatpush1.bf16.msra.mxu1 %v16362_v22  ;;  %9440 = vmatprep.subr.bf16.mxu0 %v16369_v38  ;;  %v20306_v3 = vpack.c.bf16 %v2781_v16, %v2637_v43  ;;  %v20308_v28 = vpack.c.bf16 %v2780_v35, %v2636_v0  ;;  %v16385_v10 = vcombine.high %v3530_v41, %v3534_v12  ;;  %v24343_v50 = vld [vmem:[#allocation16_spill] sm:$0xff]  ;;  %v3554_v45 = vld [vmem:[#allocation5 + $0x8c0] sm:$0xff] }
  0xea   :  { %10344 = vmatprep.subr.bf16.mxu1 %v16371_v59  ;;  %9402 = vmatmul.mubr.bf16.gmra.mrb[28].mxu0 %v20303_v15  ;;  %v16387_v51 = vcombine.high %v3531_v20, %v3535_v21  ;;  %v16384_v25 = vcombine.low %v3530_v41, %v3534_v12  ;;  %v16386_v11 = vcombine.low %v3531_v20, %v3535_v21  ;;  %v3558_v22 = vld [vmem:[#allocation5 + $0x8e0] sm:$0xff]  ;;  %v3555_v38 = vld [vmem:[#allocation5 + $0x8c8] sm:$0xff] }
  0xeb   :  { %24340 = vst [vmem:[#allocation37_spill] sm:$0xff] %v20306_v3  ;;  %24341 = vst [vmem:[#allocation40_spill] sm:$0xff] %v20308_v28  ;;  %10306 = vmatmul.mubr.bf16.gmra.mrb[28].mxu1 %v20303_v15  ;;  %9444 = vmatprep.mubr.bf16.mxu0 %v24342_v36  ;;  %v16393_v30 = vcombine.high %v3538_v44, %v3542_v9  ;;  %v16395_v14 = vcombine.high %v3539_v29, %v3543_v6  ;;  %v3559_v47 = vld [vmem:[#allocation5 + $0x8e8] sm:$0xff]  ;;  %v20318_v13 = vld [vmem:[#allocation5 + $0x900] sm:$0xff] }
  0xec   :  { %9441 = vmatpush1.bf16.msra.mxu0 %v16368_v55  ;;  %10348 = vmatprep.mubr.bf16.mxu1 %v24342_v36  ;;  %v16392_v54 = vcombine.low %v3538_v44, %v3542_v9  ;;  %v16394_v1 = vcombine.low %v3539_v29, %v3543_v6  ;;  %v16401_v62 = vcombine.high %v3546_v48, %v3550_v46  ;;  %v20320_v52 = vld [vmem:[#allocation5 + $0x920] sm:$0xff]  ;;  %v20322_v32 = vld [vmem:[#allocation5 + $0x908] sm:$0xff] }
  0xed   :  { %10345 = vmatpush1.bf16.msra.mxu1 %v16370_v2  ;;  %9442 = vmatprep.subr.bf16.mxu0 %v16377_v17  ;;  %v16403_v26 = vcombine.high %v3547_v19, %v3551_v7  ;;  %v16400_v63 = vcombine.low %v3546_v48, %v3550_v46  ;;  %v16402_v59 = vcombine.low %v3547_v19, %v3551_v7  ;;  %v20324_v16 = vld [vmem:[#allocation5 + $0x928] sm:$0xff]  ;;  %v20327_v35 = vld [vmem:[#allocation5 + $0x940] sm:$0xff] }
  0xee   :  { %10346 = vmatprep.subr.bf16.mxu1 %v16379_v61  ;;  %v16409_v34 = vcombine.high %v3554_v45, %v3558_v22  ;;  %v16411_v43 = vcombine.high %v3555_v38, %v3559_v47  ;;  %v24345_v0 = vld [vmem:[#allocation20_spill] sm:$0xff]  ;;  %v20329_v55 = vld [vmem:[#allocation5 + $0x960] sm:$0xff]  ;;  %v16408_v2 = vcombine.low %v3554_v45, %v3558_v22  ;;  %v16410_v41 = vcombine.low %v3555_v38, %v3559_v47 }
  0xef   :  { %v20332_v17 = vld [vmem:[#allocation5 + $0x948] sm:$0xff]  ;;  %v16417_v12 = vcombine.high %v20318_v13, %v20320_v52  ;;  %v20338_v20 = vld [vmem:[#allocation5 + $0x980] sm:$0xff]  ;;  %v16416_v48 = vcombine.low %v20318_v13, %v20320_v52  ;;  %v16418_v46 = vcombine.low %v20322_v32, %v20324_v16  ;;  %v24357_v40 = vcombine.low %v20327_v35, %v20329_v55 }
  0xf0   :  { %9443 = vmatpush1.bf16.msra.mxu0 %v16376_v56  ;;  %v20334_v61 = vld [vmem:[#allocation5 + $0x968] sm:$0xff]  ;;  %v20340_v21 = vld [vmem:[#allocation5 + $0x9a0] sm:$0xff] }
  0xf1   :  { %10347 = vmatpush1.bf16.msra.mxu1 %v16378_v5  ;;  %9525 = vmatprep.subr.bf16.mxu0 %v16385_v10  ;;  %v20342_v56 = vld [vmem:[#allocation5 + $0x988] sm:$0xff]  ;;  %v16419_v10 = vcombine.high %v20322_v32, %v20324_v16  ;;  %v20351_v44 = vld [vmem:[#allocation5 + $0x9e0] sm:$0xff]  ;;  %v24348_v16 = vld [vmem:[#allocation22_spill] sm:$0xff] }
  0xf2   :  { %10429 = vmatprep.subr.bf16.mxu1 %v16387_v51  ;;  %v20344_v5 = vld [vmem:[#allocation5 + $0x9a8] sm:$0xff]  ;;  %v20349_v51 = vld [vmem:[#allocation5 + $0x9c0] sm:$0xff] }
  0xf3   :  { %9445 = vmatmul.mubr.bf16.vlgmr.msra.gmra.mrb[0].mxu0 %v24343_v50  ;;  %v20353_v9 = vld [vmem:[#allocation5 + $0x9c8] sm:$0xff]  ;;  %v20358_v6 = vld [vmem:[#allocation5 + $0xa00] sm:$0xff]  ;;  %v24366_v27 = vcombine.low %v20342_v56, %v20344_v5 }
  0xf4   :  { %10349 = vmatmul.mubr.bf16.vlgmr.msra.gmra.mrb[0].mxu1 %v24343_v50  ;;  %9526 = vmatpush1.bf16.msra.mxu0 %v16384_v25  ;;  %v20355_v29 = vld [vmem:[#allocation5 + $0x9e8] sm:$0xff]  ;;  %v20360_v25 = vld [vmem:[#allocation5 + $0xa20] sm:$0xff] }
  0xf5   :  { %10430 = vmatpush1.bf16.msra.mxu1 %v16386_v11  ;;  %9527 = vmatprep.subr.bf16.mxu0 %v16393_v30  ;;  %v20362_v11 = vld [vmem:[#allocation5 + $0xa08] sm:$0xff]  ;;  %v20374_v7 = vld [vmem:[#allocation5 + $0xa60] sm:$0xff] }
  0xf6   :  { %10431 = vmatprep.subr.bf16.mxu1 %v16395_v14  ;;  %9454 = vmatprep.mubr.bf16.mxu0 %v24344_v42  ;;  %v20364_v30 = vld [vmem:[#allocation5 + $0xa28] sm:$0xff]  ;;  %v20372_v14 = vld [vmem:[#allocation5 + $0xa40] sm:$0xff] }
  0xf7   :  { %10358 = vmatprep.mubr.bf16.mxu1 %v24344_v42  ;;  %v20382_v45 = vld [vmem:[#allocation5 + $0xa48] sm:$0xff]  ;;  %v20386_v38 = vld [vmem:[#allocation5 + $0xa80] sm:$0xff] }
  0xf8   :  { %9528 = vmatpush1.bf16.msra.mxu0 %v16392_v54  ;;  %v16425_v54 = vcombine.high %v20327_v35, %v20329_v55  ;;  %v20384_v22 = vld [vmem:[#allocation5 + $0xa68] sm:$0xff]  ;;  %v20402_v32 = vld [vmem:[#allocation5 + $0xac0] sm:$0xff]  ;;  %v24358_v35 = vcombine.low %v20332_v17, %v20334_v61 }
  0xf9   :  { %10432 = vmatpush1.bf16.msra.mxu1 %v16394_v1  ;;  %9529 = vmatprep.subr.bf16.mxu0 %v16401_v62  ;;  %v16427_v62 = vcombine.high %v20332_v17, %v20334_v61  ;;  %v20398_v13 = vld [vmem:[#allocation5 + $0xa88] sm:$0xff]  ;;  %24346 = vst [vmem:[#allocation39_spill] sm:$0xff] %v20402_v32  ;;  %v20461_v50 = vld [vmem:[#allocation5 + $0xb40] sm:$0xff]  ;;  %v24361_v61 = vcombine.high %v20342_v56, %v20344_v5 }
  0xfa   :  { %10433 = vmatprep.subr.bf16.mxu1 %v16403_v26  ;;  %v20388_v26 = vld [vmem:[#allocation5 + $0xaa0] sm:$0xff]  ;;  %v20400_v52 = vld [vmem:[#allocation5 + $0xaa8] sm:$0xff]  ;;  %24353 = vst [vmem:[#allocation55_spill] sm:$0xff] %v20461_v50 }
  0xfb   :  { %9455 = vmatmul.mubr.bf16.gmra.mrb[4].mxu0 %v24345_v0  ;;  %v20417_v47 = vld [vmem:[#allocation5 + $0xae8] sm:$0xff]  ;;  %v20463_v36 = vld [vmem:[#allocation5 + $0xb60] sm:$0xff] }
  0xfc   :  { %10359 = vmatmul.mubr.bf16.gmra.mrb[4].mxu1 %v24345_v0  ;;  %9530 = vmatpush1.bf16.msra.mxu0 %v16400_v63  ;;  %v16433_v63 = vcombine.high %v20338_v20, %v20340_v21  ;;  %24350 = vst [vmem:[#allocation51_spill] sm:$0xff] %v20417_v47  ;;  %v20421_v1 = vld [vmem:[#allocation2 + $0x28] sm:$0xff]  ;;  %24354 = vst [vmem:[#allocation56_spill] sm:$0xff] %v20463_v36  ;;  %v20535_v32 = vld [vmem:[#allocation5 + $0xbe0] sm:$0xff] }
  0xfd   :  { %10434 = vmatpush1.bf16.msra.mxu1 %v16402_v59  ;;  %9531 = vmatprep.subr.bf16.mxu0 %v16409_v34  ;;  %v20415_v59 = vld [vmem:[#allocation5 + $0xac8] sm:$0xff]  ;;  %24364 = vst [vmem:[#allocation31_spill] sm:$0xff] %v20535_v32  ;;  %v20580_v56 = vld [vmem:[#allocation5 + $0xc20] sm:$0xff] }
  0xfe   :  { %10435 = vmatprep.subr.bf16.mxu1 %v16411_v43  ;;  %9464 = vmatprep.mubr.bf16.mxu0 %v20044_v4  ;;  %v20404_v43 = vld [vmem:[#allocation5 + $0xae0] sm:$0xff]  ;;  %24349 = vst [vmem:[#allocation48_spill] sm:$0xff] %v20415_v59  ;;  %v20419_v34 = vld [vmem:[#allocation2 + $0x8] sm:$0xff]  ;;  %24371 = vst [vmem:[#allocation64_spill] sm:$0xff] %v20580_v56 }
  0xff   :  { %10368 = vmatprep.mubr.bf16.mxu1 %v20044_v4  ;;  %24347 = vst [vmem:[#allocation49_spill] sm:$0xff] %v20404_v43  ;;  %v20423_v19 = vld [vmem:[#allocation2 + $0x48] sm:$0xff]  ;;  %v622_v4 = vcombine.low %v20419_v34, %v20421_v1  ;;  %v20533_v43 = vld [vmem:[#allocation5 + $0xbc0] sm:$0xff] }
 0x100   :  { %9532 = vmatpush1.bf16.msra.mxu0 %v16408_v2  ;;  %v20425_v2 = vld [vmem:[#allocation2 + $0x68] sm:$0xff]  ;;  %24363 = vst [vmem:[#allocation30_spill] sm:$0xff] %v20533_v43  ;;  %v20601_v50 = vld [vmem:[#allocation5 + $0xc40] sm:$0xff] }
 0x101   :  { %10436 = vmatpush1.bf16.msra.mxu1 %v16410_v41  ;;  %9533 = vmatprep.subr.bf16.mxu0 %v16417_v12  ;;  %v20442_v12 = vld [vmem:[#allocation5 + $0xb20] sm:$0xff]  ;;  %v20444_v42 = vld [vmem:[#allocation5 + $0xb08] sm:$0xff]  ;;  %v624_v31 = vcombine.low %v20423_v19, %v20425_v2 }
 0x102   :  { %10437 = vmatprep.subr.bf16.mxu1 %v16419_v10  ;;  %24351 = vst [vmem:[#allocation50_spill] sm:$0xff] %v20444_v42  ;;  %v20446_v10 = vld [vmem:[#allocation5 + $0xb28] sm:$0xff]  ;;  %v20628_v32 = vld [vmem:[#allocation5 + $0xc80] sm:$0xff] }
 0x103   :  { %9465 = vmatmul.mubr.bf16.gmra.mrb[8].mxu0 %v24348_v16  ;;  %24352 = vst [vmem:[#allocation52_spill] sm:$0xff] %v20446_v10  ;;  %v20448_v41 = vld [vmem:[#allocation2 + $0x88] sm:$0xff]  ;;  %v24365_v10 = vcombine.low %v20338_v20, %v20340_v21 }
 0x104   :  { %10369 = vmatmul.mubr.bf16.gmra.mrb[8].mxu1 %v24348_v16  ;;  %9534 = vmatpush1.bf16.msra.mxu0 %v16416_v48  ;;  %v20440_v16 = vld [vmem:[#allocation5 + $0xb00] sm:$0xff]  ;;  %v20465_v15 = vld [vmem:[#allocation5 + $0xb48] sm:$0xff] }
 0x105   :  { %10438 = vmatpush1.bf16.msra.mxu1 %v16418_v46  ;;  %9535 = vmatprep.subr.bf16.mxu0 %v16425_v54  ;;  %v20450_v46 = vld [vmem:[#allocation2 + $0xa8] sm:$0xff]  ;;  %24355 = vst [vmem:[#allocation59_spill] sm:$0xff] %v20465_v15  ;;  %v20630_v15 = vld [vmem:[#allocation5 + $0xca0] sm:$0xff] }
 0x106   :  { %v20452_v54 = vld [vmem:[#allocation2 + $0xc8] sm:$0xff]  ;;  %10439 = vmatprep.subr.bf16.mxu1 %v16427_v62  ;;  %9474 = vmatprep.mubr.bf16.mxu0 %v20111_v18  ;;  %v766_v55 = vcombine.low %v20448_v41, %v20450_v46 }
 0x107   :  { %v20467_v49 = vld [vmem:[#allocation5 + $0xb68] sm:$0xff]  ;;  %10378 = vmatprep.mubr.bf16.mxu1 %v20111_v18 }
 0x108   :  { %24356 = vst [vmem:[#allocation61_spill] sm:$0xff] %v20467_v49  ;;  %v20469_v62 = vld [vmem:[#allocation2 + $0xe8] sm:$0xff]  ;;  %9536 = vmatpush1.bf16.msra.mxu0 %v24357_v40  ;;  %v20558_v40 = vrot.slane %v624_v31, %v19307_v58  ;;  %v776_v21 = vrot.slane %v766_v55, %v19307_v58 }
 0x109   :  { %v20495_v18 = vld [vmem:[#allocation2 + $0x108] sm:$0xff]  ;;  %10440 = vmatpush1.bf16.msra.mxu1 %v24358_v35  ;;  %9537 = vmatprep.subr.bf16.mxu0 %v16433_v63  ;;  %v768_v48 = vcombine.low %v20452_v54, %v20469_v62  ;;  %v20555_v63 = vrot.slane %v622_v4, %v19307_v58  ;;  %v24367_v35 = vcombine.high %v20349_v51, %v20351_v44 }
 0x10a   :  { %v20508_v0 = vld [vmem:[#allocation2 + $0x148] sm:$0xff]  ;;  %10441 = vmatprep.subr.bf16.mxu1 %v24361_v61  ;;  %v910_v31 = vcombine.low %v20495_v18, %v20497_v8 }
 0x10b   :  { %v20510_v28 = vld [vmem:[#allocation2 + $0x168] sm:$0xff]  ;;  %9475 = vmatmul.mubr.bf16.gmra.mrb[12].mxu0 %v20113_v24  ;;  %v790_v4 = vrot.slane %v768_v48, %v19307_v58  ;;  %v654_v36 = vcombine.low %v20555_v63, %v20558_v40 }
 0x10c   :  { %v20512_v3 = vld [vmem:[#allocation2 + $0x188] sm:$0xff]  ;;  %10379 = vmatmul.mubr.bf16.gmra.mrb[12].mxu1 %v20113_v24  ;;  %9538 = vmatpush1.bf16.msra.mxu0 %v24365_v10  ;;  %v24370_v10 = vcombine.high %v20353_v9, %v20355_v29  ;;  %v912_v48 = vcombine.low %v20508_v0, %v20510_v28 }
 0x10d   :  { %24359 = vst [vmem:[#allocation60_spill] sm:$0xff] %v20512_v3  ;;  %v20514_v39 = vld [vmem:[#allocation2 + $0x1a8] sm:$0xff]  ;;  %10442 = vmatpush1.bf16.msra.mxu1 %v24366_v27  ;;  %9539 = vmatprep.subr.bf16.mxu0 %v24367_v35  ;;  %v20578_v27 = vld [vmem:[#allocation5 + $0xc00] sm:$0xff] }
 0x10e   :  { %24360 = vst [vmem:[#allocation42_spill] sm:$0xff] %v20514_v39  ;;  %v20516_v17 = vld [vmem:[#allocation2 + $0x1c8] sm:$0xff]  ;;  %10443 = vmatprep.subr.bf16.mxu1 %v24370_v10  ;;  %9484 = vmatprep.mubr.bf16.mxu0 %v20182_v53  ;;  %v1054_v55 = vcombine.low %v20512_v3, %v20514_v39  ;;  %v20603_v3 = vld [vmem:[#allocation5 + $0xc60] sm:$0xff]  ;;  %v799_v10 = vcombine.high %v776_v21, %v790_v4 }
 0x10f   :  { %v20529_v47 = vld [vmem:[#allocation5 + $0xb88] sm:$0xff]  ;;  %10388 = vmatprep.mubr.bf16.mxu1 %v20182_v53  ;;  %24374 = vst [vmem:[#allocation67_spill] sm:$0xff] %v20603_v3  ;;  %v24375_v53 = vcombine.low %v20349_v51, %v20351_v44  ;;  %v24377_v51 = vcombine.high %v20358_v6, %v20360_v25  ;;  %v798_v44 = vcombine.low %v776_v21, %v790_v4 }
 0x110   :  { %v20531_v59 = vld [vmem:[#allocation5 + $0xba8] sm:$0xff] }
 0x111   :  { %24362 = vst [vmem:[#allocation41_spill] sm:$0xff] %v20531_v59  ;;  %v20537_v61 = vld [vmem:[#allocation2 + $0x1e8] sm:$0xff]  ;;  %9540 = vmatpush1.bf16.msra.mxu0 %v24375_v53  ;;  %v24376_v59 = vcombine.low %v20353_v9, %v20355_v29  ;;  %v655_v53 = vcombine.high %v20555_v63, %v20558_v40  ;;  %v920_v9 = vrot.slane %v910_v31, %v19307_v58 }
 0x112   :  { %v20566_v24 = vld [vmem:[#allocation5 + $0xbc8] sm:$0xff]  ;;  %v1056_v42 = vcombine.low %v20516_v17, %v20537_v61  ;;  %9541 = vmatprep.subr.bf16.mxu0 %v24377_v51  ;;  %v934_v29 = vrot.slane %v912_v48, %v19307_v58  ;;  %v24380_v31 = vcombine.low %v20358_v6, %v20360_v25  ;;  %v24382_v6 = vcombine.high %v20372_v14, %v20374_v7 }
 0x113   :  { %24368 = vst [vmem:[#allocation19_spill] sm:$0xff] %v20566_v24  ;;  %v20568_v20 = vld [vmem:[#allocation5 + $0xbe8] sm:$0xff]  ;;  %10444 = vmatpush1.bf16.msra.mxu1 %v24376_v59  ;;  %v1064_v59 = vrot.slane %v1054_v55, %v19307_v58  ;;  %9485 = vmatmul.mubr.bf16.gmra.mrb[16].mxu0 %v20184_v37  ;;  %v20652_v55 = vld [vmem:[#allocation5 + $0xcc0] sm:$0xff]  ;;  %v20684_v25 = vpack.c.bf16 %v799_v10, %v655_v53 }
 0x114   :  { %24369 = vst [vmem:[#allocation18_spill] sm:$0xff] %v20568_v20  ;;  %v20582_v5 = vld [vmem:[#allocation5 + $0xc08] sm:$0xff]  ;;  %v24379_v20 = vcombine.high %v20362_v11, %v20364_v30  ;;  %v1078_v40 = vrot.slane %v1056_v42, %v19307_v58  ;;  %v20654_v42 = vld [vmem:[#allocation5 + $0xce0] sm:$0xff]  ;;  %10389 = vmatmul.mubr.bf16.gmra.mrb[16].mxu1 %v20184_v37  ;;  %v24381_v37 = vcombine.low %v20362_v11, %v20364_v30 }
 0x115   :  { %24372 = vst [vmem:[#allocation65_spill] sm:$0xff] %v20582_v5  ;;  %v20584_v35 = vld [vmem:[#allocation5 + $0xc28] sm:$0xff]  ;;  %9542 = vmatpush1.bf16.msra.mxu0 %v24380_v31  ;;  %24383 = vst [vmem:[#allocation69_spill] sm:$0xff] %v20684_v25  ;;  %v20686_v31 = vpack.c.bf16 %v798_v44, %v654_v36  ;;  %9494 = vmatprep.mubr.bf16.mxu0 %v20249_v57  ;;  %v943_v11 = vcombine.high %v920_v9, %v934_v29  ;;  %v20732_v36 = vld [vmem:[#allocation5 + $0xd00] sm:$0xff] }
 0x116   :  { %24373 = vst [vmem:[#allocation66_spill] sm:$0xff] %v20584_v35  ;;  %v20605_v39 = vld [vmem:[#allocation5 + $0xc48] sm:$0xff]  ;;  %10445 = vmatprep.subr.bf16.mxu1 %v24379_v20  ;;  %9543 = vmatprep.subr.bf16.mxu0 %v24382_v6  ;;  %v1087_v30 = vcombine.high %v1064_v59, %v1078_v40  ;;  %v942_v53 = vcombine.low %v920_v9, %v934_v29 }
 0x117   :  { %v20626_v49 = vld [vmem:[#allocation5 + $0xc68] sm:$0xff]  ;;  %10446 = vmatpush1.bf16.msra.mxu1 %v24381_v37  ;;  %24384 = vst [vmem:[#allocation70_spill] sm:$0xff] %v20686_v31  ;;  %v24385_v37 = vcombine.high %v20382_v45, %v20384_v22  ;;  %10398 = vmatprep.mubr.bf16.mxu1 %v20249_v57  ;;  %v1086_v44 = vcombine.low %v1064_v59, %v1078_v40 }
 0x118   :  { %24378 = vst [vmem:[#allocation68_spill] sm:$0xff] %v20626_v49  ;;  %v20639_v63 = vld [vmem:[#allocation5 + $0xc88] sm:$0xff]  ;;  %v24387_v59 = vcombine.low %v20382_v45, %v20384_v22  ;;  %v24389_v48 = vcombine.high %v20398_v13, %v20400_v52  ;;  %v20737_v45 = vpack.c.bf16 %v1087_v30, %v943_v11  ;;  %v623_v40 = vcombine.high %v20419_v34, %v20421_v1 }
 0x119   :  { %v20641_v21 = vld [vmem:[#allocation5 + $0xca8] sm:$0xff]  ;;  %10447 = vmatprep.subr.bf16.mxu1 %v24385_v37  ;;  %v24386_v37 = vcombine.low %v20372_v14, %v20374_v7  ;;  %v24388_v14 = vcombine.high %v20386_v38, %v20388_v26  ;;  %v767_v11 = vcombine.high %v20448_v41, %v20450_v46  ;;  %v769_v30 = vcombine.high %v20452_v54, %v20469_v62  ;;  %v24394_v41 = vld [vmem:[#allocation39_spill] sm:$0xff]  ;;  %v24395_v46 = vld [vmem:[#allocation49_spill] sm:$0xff] }
 0x11a   :  { %v20656_v51 = vld [vmem:[#allocation2 + $0x208] sm:$0xff]  ;;  %24390 = vst [vmem:[#allocation71_spill] sm:$0xff] %v20737_v45  ;;  %v24392_v7 = vcombine.low %v20386_v38, %v20388_v26  ;;  %v24396_v54 = vcombine.high %v24394_v41, %v24395_v46  ;;  %v911_v6 = vcombine.high %v20495_v18, %v20497_v8  ;;  %v1057_v8 = vcombine.high %v20516_v17, %v20537_v61  ;;  %v24413_v18 = vld [vmem:[#allocation35_spill] sm:$0xff] }
 0x11b   :  { %v20658_v24 = vld [vmem:[#allocation2 + $0x228] sm:$0xff]  ;;  %9544 = vmatpush1.bf16.msra.mxu0 %v24386_v37  ;;  %10448 = vmatpush1.bf16.msra.mxu1 %v24387_v59  ;;  %v20748_v37 = vpack.c.bf16 %v1086_v44, %v942_v53  ;;  %v783_v53 = vrot.slane %v767_v11, %v19307_v58  ;;  %v797_v44 = vrot.slane %v769_v30, %v19307_v58  ;;  %v20794_v11 = vld [vmem:[#allocation5 + $0xd60] sm:$0xff] }
 0x11c   :  { %v20660_v43 = vld [vmem:[#allocation2 + $0x248] sm:$0xff]  ;;  %v1198_v9 = vcombine.low %v20656_v51, %v20658_v24  ;;  %9545 = vmatprep.subr.bf16.mxu0 %v24388_v14  ;;  %10449 = vmatprep.subr.bf16.mxu1 %v24389_v48  ;;  %v20743_v14 = vld [vmem:[#allocation5 + $0xd20] sm:$0xff]  ;;  %v625_v48 = vcombine.high %v20423_v19, %v20425_v2  ;;  %v639_v19 = vrot.slane %v623_v40, %v19307_v58 }
 0x11d   :  { %v20662_v4 = vld [vmem:[#allocation2 + $0x268] sm:$0xff]  ;;  %9495 = vmatmul.mubr.bf16.gmra.mrb[20].mxu0 %v20251_v33  ;;  %24391 = vst [vmem:[#allocation72_spill] sm:$0xff] %v20748_v37  ;;  %10399 = vmatmul.mubr.bf16.gmra.mrb[20].mxu1 %v20251_v33  ;;  %v24393_v2 = vcombine.low %v20398_v13, %v20400_v52  ;;  %24402 = vst [vmem:[#allocation49_spill] sm:$0xff] %v20794_v11  ;;  %v801_v49 = vcombine.high %v783_v53, %v797_v44 }
 0x11e   :  { %v20674_v5 = vld [vmem:[#allocation5 + $0xcc8] sm:$0xff]  ;;  %v1200_v29 = vcombine.low %v20660_v43, %v20662_v4  ;;  %v20761_v1 = vrot.slane %v1198_v9, %v19307_v58  ;;  %v653_v26 = vrot.slane %v625_v48, %v19307_v58  ;;  %v20792_v48 = vld [vmem:[#allocation5 + $0xd40] sm:$0xff]  ;;  %v927_v57 = vrot.slane %v911_v6, %v19307_v58 }
 0x11f   :  { %v20676_v56 = vld [vmem:[#allocation5 + $0xce8] sm:$0xff]  ;;  %9546 = vmatpush1.bf16.msra.mxu0 %v24392_v7  ;;  %10450 = vmatpush1.bf16.msra.mxu1 %v24393_v2  ;;  %24401 = vst [vmem:[#allocation39_spill] sm:$0xff] %v20792_v48  ;;  %v1085_v61 = vrot.slane %v1057_v8, %v19307_v58  ;;  %v24419_v8 = vld [vmem:[#allocation59_spill] sm:$0xff] }
 0x120   :  { %v20690_v35 = vld [vmem:[#allocation2 + $0x288] sm:$0xff]  ;;  %v20764_v34 = vrot.slane %v1200_v29, %v19307_v58  ;;  %9547 = vmatprep.subr.bf16.mxu0 %v24396_v54  ;;  %v24398_v29 = vld [vmem:[#allocation51_spill] sm:$0xff]  ;;  %v656_v30 = vcombine.low %v639_v19, %v653_v26  ;;  %v657_v54 = vcombine.high %v639_v19, %v653_v26 }
 0x121   :  { %v20692_v20 = vld [vmem:[#allocation2 + $0x2a8] sm:$0xff] }
 0x122   :  { %v20694_v3 = vld [vmem:[#allocation2 + $0x2c8] sm:$0xff]  ;;  %v1342_v22 = vcombine.low %v20690_v35, %v20692_v20 }
 0x123   :  { %v20702_v10 = vld [vmem:[#allocation2 + $0x2e8] sm:$0xff] }
 0x124   :  { %v1344_v59 = vcombine.low %v20694_v3, %v20702_v10  ;;  %v20773_v62 = vld [vmem:[#allocation5 + $0xd08] sm:$0xff]  ;;  %v20785_v52 = vrot.slane %v1342_v22, %v19307_v58  ;;  %v24403_v22 = vcombine.low %v24394_v41, %v24395_v46  ;;  %v24405_v41 = vcombine.high %v20440_v16, %v20442_v12 }
 0x125   :  { %v20775_v38 = vld [vmem:[#allocation5 + $0xd28] sm:$0xff] }
 0x126   :  { %v24397_v9 = vld [vmem:[#allocation48_spill] sm:$0xff]  ;;  %v20788_v40 = vrot.slane %v1344_v59, %v19307_v58  ;;  %9548 = vmatpush1.bf16.msra.mxu0 %v24403_v22  ;;  %v1231_v59 = vcombine.high %v20761_v1, %v20764_v34 }
 0x127   :  { %v24399_v7 = vcombine.high %v24397_v9, %v24398_v29  ;;  %v24400_v13 = vld [vmem:[#allocation36_spill] sm:$0xff]  ;;  %v24404_v19 = vcombine.low %v24397_v9, %v24398_v29  ;;  %9549 = vmatprep.subr.bf16.mxu0 %v24405_v41 }
 0x128   :  { %9504 = vmatprep.mubr.bf16.mxu0 %v24400_v13  ;;  %10408 = vmatprep.mubr.bf16.mxu1 %v24400_v13  ;;  %v20808_v33 = vld [vmem:[#allocation5 + $0xd48] sm:$0xff]  ;;  %v24408_v13 = vld [vmem:[#allocation50_spill] sm:$0xff] }
 0x129   :  { %10451 = vmatprep.subr.bf16.mxu1 %v24399_v7  ;;  %v800_v7 = vcombine.low %v783_v53, %v797_v44  ;;  %v20816_v46 = vld [vmem:[#allocation5 + $0xd68] sm:$0xff]  ;;  %v20822_v44 = vpack.c.bf16 %v801_v49, %v657_v54  ;;  %v913_v49 = vcombine.high %v20508_v0, %v20510_v28  ;;  %v24411_v54 = vld [vmem:[#allocation42_spill] sm:$0xff]  ;;  %9505 = vmatmul.mubr.bf16.gmra.mrb[24].mxu0 %v24413_v18 }
 0x12a   :  { %10452 = vmatpush1.bf16.msra.mxu1 %v24404_v19  ;;  %v20818_v26 = vld [vmem:[#allocation2 + $0x308] sm:$0xff]  ;;  %v1230_v19 = vcombine.low %v20761_v1, %v20764_v34  ;;  %v1374_v1 = vcombine.low %v20785_v52, %v20788_v40  ;;  %v24414_v28 = vcombine.low %v20440_v16, %v20442_v12 }
 0x12b   :  { %v20820_v53 = vld [vmem:[#allocation2 + $0x328] sm:$0xff]  ;;  %24406 = vst [vmem:[#allocation48_spill] sm:$0xff] %v20822_v44  ;;  %v20824_v22 = vpack.c.bf16 %v800_v7, %v656_v30  ;;  %10409 = vmatmul.mubr.bf16.gmra.mrb[24].mxu1 %v24413_v18  ;;  %v941_v0 = vrot.slane %v913_v49, %v19307_v58  ;;  %v1199_v44 = vcombine.high %v20656_v51, %v20658_v24 }
 0x12c   :  { %v24409_v9 = vld [vmem:[#allocation52_spill] sm:$0xff]  ;;  %9550 = vmatpush1.bf16.msra.mxu0 %v24414_v28  ;;  %v24422_v28 = vld [vmem:[#allocation37_spill] sm:$0xff] }
 0x12d   :  { %24407 = vst [vmem:[#allocation51_spill] sm:$0xff] %v20824_v22  ;;  %v24410_v29 = vcombine.high %v24408_v13, %v24409_v9  ;;  %v20833_v41 = vld [vmem:[#allocation2 + $0x348] sm:$0xff]  ;;  %9514 = vmatprep.mubr.bf16.mxu0 %v24422_v28  ;;  %v945_v34 = vcombine.high %v927_v57, %v941_v0  ;;  %v944_v16 = vcombine.low %v927_v57, %v941_v0 }
 0x12e   :  { %v20835_v2 = vld [vmem:[#allocation2 + $0x368] sm:$0xff]  ;;  %10418 = vmatprep.mubr.bf16.mxu1 %v24422_v28  ;;  %v1343_v0 = vcombine.high %v20690_v35, %v20692_v20  ;;  %v1215_v51 = vrot.slane %v1199_v44, %v19307_v58 }
 0x12f   :  { %10453 = vmatprep.subr.bf16.mxu1 %v24410_v29  ;;  %v24412_v30 = vld [vmem:[#allocation60_spill] sm:$0xff]  ;;  %v1375_v29 = vcombine.high %v20785_v52, %v20788_v40  ;;  %v24415_v52 = vcombine.low %v24408_v13, %v24409_v9  ;;  %v24416_v40 = vld [vmem:[#allocation55_spill] sm:$0xff]  ;;  %v24420_v13 = vld [vmem:[#allocation61_spill] sm:$0xff]  ;;  %v1488_v18 = vcombine.low %v20833_v41, %v20835_v2 }
 0x130   :  { %v1055_v7 = vcombine.high %v24412_v30, %v24411_v54  ;;  %v24417_v54 = vld [vmem:[#allocation56_spill] sm:$0xff]  ;;  %v24421_v9 = vcombine.high %v24419_v8, %v24420_v13  ;;  %v24425_v24 = vcombine.low %v24419_v8, %v24420_v13  ;;  %v24434_v13 = vld [vmem:[#allocation30_spill] sm:$0xff] }
 0x131   :  { %10454 = vmatpush1.bf16.msra.mxu1 %v24415_v52  ;;  %v24418_v30 = vcombine.high %v24416_v40, %v24417_v54  ;;  %v20868_v12 = vld [vmem:[#allocation2 + $0x388] sm:$0xff]  ;;  %v24423_v11 = vcombine.low %v24416_v40, %v24417_v54  ;;  %v20913_v20 = vpack.c.bf16 %v1375_v29, %v1231_v59  ;;  %v24432_v59 = vcombine.low %v20480_v23, %v20482_v60 }
 0x132   :  { %v1071_v17 = vrot.slane %v1055_v7, %v19307_v58  ;;  %v20870_v49 = vld [vmem:[#allocation2 + $0x3a8] sm:$0xff]  ;;  %v1486_v7 = vcombine.low %v20818_v26, %v20820_v53  ;;  %10455 = vmatprep.subr.bf16.mxu1 %v24421_v9  ;;  %v1201_v9 = vcombine.high %v20660_v43, %v20662_v4  ;;  %v24426_v43 = vcombine.high %v20480_v23, %v20482_v60  ;;  %v20943_v60 = vld [vmem:[#allocation5 + $0xd80] sm:$0xff] }
 0x133   :  { %9551 = vmatprep.subr.bf16.mxu0 %v24418_v30  ;;  %v20878_v52 = vld [vmem:[#allocation2 + $0x3c8] sm:$0xff]  ;;  %v1630_v48 = vcombine.low %v20868_v12, %v20870_v49  ;;  %24430 = vst [vmem:[#allocation42_spill] sm:$0xff] %v20913_v20  ;;  %v20930_v29 = vrot.slane %v1488_v18, %v19307_v58  ;;  %v20945_v23 = vld [vmem:[#allocation5 + $0xda0] sm:$0xff] }
 0x134   :  { %v20880_v30 = vld [vmem:[#allocation2 + $0x3e8] sm:$0xff]  ;;  %v1089_v6 = vcombine.high %v1071_v17, %v1085_v61  ;;  %v1088_v22 = vcombine.low %v1071_v17, %v1085_v61  ;;  %9552 = vmatpush1.bf16.msra.mxu0 %v24423_v11  ;;  %v1345_v17 = vcombine.high %v20694_v3, %v20702_v10  ;;  %v1229_v11 = vrot.slane %v1201_v9, %v19307_v58  ;;  %v24435_v9 = vld [vmem:[#allocation31_spill] sm:$0xff] }
 0x135   :  { %10456 = vmatpush1.bf16.msra.mxu1 %v24425_v24  ;;  %9553 = vmatprep.subr.bf16.mxu0 %v24426_v43  ;;  %v1359_v10 = vrot.slane %v1343_v0, %v19307_v58  ;;  %v24431_v40 = vld [vmem:[#allocation40_spill] sm:$0xff]  ;;  %v1632_v44 = vcombine.low %v20878_v52, %v20880_v30  ;;  %v24436_v0 = vcombine.high %v24434_v13, %v24435_v9 }
 0x136   :  { %v20894_v57 = vpack.c.bf16 %v1089_v6, %v945_v34  ;;  %v20906_v4 = vpack.c.bf16 %v1088_v22, %v944_v16  ;;  %v24428_v34 = vld [vmem:[#allocation41_spill] sm:$0xff]  ;;  %v1373_v61 = vrot.slane %v1345_v17, %v19307_v58  ;;  %9515 = vmatmul.mubr.bf16.gmra.mrb[28].mxu0 %v24431_v40  ;;  %v20921_v22 = vrot.slane %v1486_v7, %v19307_v58  ;;  %v20947_v18 = vld [vmem:[#allocation5 + $0xd88] sm:$0xff] }
 0x137   :  { %v24429_v35 = vcombine.high %v20529_v47, %v24428_v34  ;;  %v1233_v54 = vcombine.high %v1215_v51, %v1229_v11  ;;  %v1232_v6 = vcombine.low %v1215_v51, %v1229_v11  ;;  %10419 = vmatmul.mubr.bf16.gmra.mrb[28].mxu1 %v24431_v40  ;;  %v24433_v7 = vcombine.low %v20529_v47, %v24428_v34  ;;  %v24438_v47 = vld [vmem:[#allocation19_spill] sm:$0xff]  ;;  %v24439_v51 = vld [vmem:[#allocation18_spill] sm:$0xff] }
 0x138   :  { %24424 = vst [vmem:[#allocation50_spill] sm:$0xff] %v20894_v57  ;;  %24427 = vst [vmem:[#allocation52_spill] sm:$0xff] %v20906_v4  ;;  %9554 = vmatpush1.bf16.msra.mxu0 %v24432_v59  ;;  %v1377_v16 = vcombine.high %v1359_v10, %v1373_v61  ;;  %v1376_v8 = vcombine.low %v1359_v10, %v1373_v61  ;;  %v20938_v17 = vpack.c.bf16 %v1374_v1, %v1230_v19  ;;  %v20955_v19 = vld [vmem:[#allocation5 + $0xda8] sm:$0xff] }
 0x139   :  { %10457 = vmatprep.subr.bf16.mxu1 %v24429_v35  ;;  %9555 = vmatprep.subr.bf16.mxu0 %v24436_v0  ;;  %v20941_v24 = vrot.slane %v1630_v48, %v19307_v58  ;;  %v1487_v43 = vcombine.high %v20818_v26, %v20820_v53  ;;  %v24440_v11 = vcombine.high %v24438_v47, %v24439_v51  ;;  %v20992_v59 = vld [vmem:[#allocation2 + $0x428] sm:$0xff] }
 0x13a   :  { %10458 = vmatpush1.bf16.msra.mxu1 %v24433_v7  ;;  %24437 = vst [vmem:[#allocation60_spill] sm:$0xff] %v20938_v17  ;;  %9557 = vmatprep.mubr.bf16.mxu0 %v20684_v25  ;;  %v20957_v1 = vpack.c.bf16 %v1377_v16, %v1233_v54  ;;  %v20959_v48 = vpack.c.bf16 %v1376_v8, %v1232_v6  ;;  %v20990_v6 = vld [vmem:[#allocation2 + $0x408] sm:$0xff]  ;;  %v24447_v7 = vld [vmem:[#allocation65_spill] sm:$0xff] }
 0x13b   :  { %10459 = vmatprep.subr.bf16.mxu1 %v24440_v11  ;;  %v1489_v34 = vcombine.high %v20833_v41, %v20835_v2  ;;  %10461 = vmatprep.mubr.bf16.mxu1 %v20684_v25  ;;  %v20965_v35 = vrot.slane %v1632_v44, %v19307_v58  ;;  %v1503_v26 = vrot.slane %v1487_v43, %v19307_v58  ;;  %v21007_v11 = vld [vmem:[#allocation2 + $0x488] sm:$0xff]  ;;  %v21026_v43 = vld [vmem:[#allocation5 + $0xde0] sm:$0xff] }
 0x13c   :  { %24441 = vst [vmem:[#allocation55_spill] sm:$0xff] %v20957_v1  ;;  %24442 = vst [vmem:[#allocation56_spill] sm:$0xff] %v20959_v48  ;;  %v1631_v53 = vcombine.high %v20868_v12, %v20870_v49  ;;  %v1633_v10 = vcombine.high %v20878_v52, %v20880_v30  ;;  %v24443_v61 = vcombine.low %v24434_v13, %v24435_v9  ;;  %v24445_v49 = vld [vmem:[#allocation64_spill] sm:$0xff]  ;;  %v24448_v13 = vld [vmem:[#allocation66_spill] sm:$0xff] }
 0x13d   :  { %v1517_v54 = vrot.slane %v1489_v34, %v19307_v58  ;;  %v24444_v12 = vcombine.low %v24438_v47, %v24439_v51  ;;  %v24446_v52 = vcombine.high %v20578_v27, %v24445_v49  ;;  %v24449_v9 = vcombine.high %v24447_v7, %v24448_v13  ;;  %v21003_v47 = vld [vmem:[#allocation2 + $0x448] sm:$0xff] }
 0x13e   :  { %9556 = vmatpush1.bf16.msra.mxu0 %v24443_v61  ;;  %v1647_v16 = vrot.slane %v1631_v53, %v19307_v58  ;;  %v1661_v8 = vrot.slane %v1633_v10, %v19307_v58  ;;  %v21005_v51 = vld [vmem:[#allocation2 + $0x468] sm:$0xff]  ;;  %v1663_v10 = vcombine.high %v20941_v24, %v20965_v35  ;;  %v1775_v41 = vcombine.high %v20990_v6, %v20992_v59 }
 0x13f   :  { %10460 = vmatpush1.bf16.msra.mxu1 %v24444_v12  ;;  %9638 = vmatprep.subr.bf16.mxu0 %v24446_v52  ;;  %v1521_v34 = vcombine.high %v1503_v26, %v1517_v54  ;;  %v1520_v53 = vcombine.low %v1503_v26, %v1517_v54  ;;  %v21012_v61 = vld [vmem:[#allocation2 + $0x4a8] sm:$0xff]  ;;  %v24450_v26 = vcombine.low %v20578_v27, %v24445_v49  ;;  %v21024_v54 = vld [vmem:[#allocation5 + $0xdc0] sm:$0xff] }
 0x140   :  { %10542 = vmatprep.subr.bf16.mxu1 %v24449_v9  ;;  %v21014_v12 = vld [vmem:[#allocation2 + $0x4c8] sm:$0xff]  ;;  %v1665_v9 = vcombine.high %v1647_v16, %v1661_v8  ;;  %v1664_v0 = vcombine.low %v1647_v16, %v1661_v8  ;;  %v1777_v44 = vcombine.high %v21003_v47, %v21005_v51  ;;  %v1919_v3 = vcombine.high %v21007_v11, %v21012_v61  ;;  %v24452_v27 = vld [vmem:[#allocation67_spill] sm:$0xff] }
 0x141   :  { %9558 = vmatmul.mubr.bf16.vlgmr.msra.gmra.mrb[0].mxu0 %v20686_v31  ;;  %v21016_v52 = vld [vmem:[#allocation2 + $0x4e8] sm:$0xff]  ;;  %v24451_v8 = vcombine.low %v24447_v7, %v24448_v13  ;;  %v24453_v49 = vcombine.high %v20601_v50, %v24452_v27 }
 0x142   :  { %10462 = vmatmul.mubr.bf16.vlgmr.msra.gmra.mrb[0].mxu1 %v20686_v31  ;;  %9639 = vmatpush1.bf16.msra.mxu0 %v24450_v26  ;;  %v1921_v16 = vcombine.high %v21014_v12, %v21016_v52  ;;  %v21040_v26 = vld [vmem:[#allocation5 + $0xdc8] sm:$0xff]  ;;  %v21042_v30 = vpack.c.bf16 %v1665_v9, %v1521_v34  ;;  %v21044_v2 = vpack.c.bf16 %v1664_v0, %v1520_v53 }
 0x143   :  { %10543 = vmatpush1.bf16.msra.mxu1 %v24451_v8  ;;  %9640 = vmatprep.subr.bf16.mxu0 %v24453_v49  ;;  %v1791_v31 = vrot.slane %v1775_v41, %v19307_v58  ;;  %v24456_v25 = vld [vmem:[#allocation68_spill] sm:$0xff]  ;;  %v1805_v13 = vrot.slane %v1777_v44, %v19307_v58  ;;  %v1935_v8 = vrot.slane %v1919_v3, %v19307_v58 }
 0x144   :  { %24454 = vst [vmem:[#allocation59_spill] sm:$0xff] %v21042_v30  ;;  %24455 = vst [vmem:[#allocation61_spill] sm:$0xff] %v21044_v2  ;;  %v24457_v40 = vcombine.high %v20605_v39, %v24456_v25  ;;  %9567 = vmatprep.mubr.bf16.mxu0 %v20737_v45  ;;  %v21051_v7 = vld [vmem:[#allocation5 + $0xde8] sm:$0xff]  ;;  %v1949_v49 = vrot.slane %v1921_v16, %v19307_v58  ;;  %10471 = vmatprep.mubr.bf16.mxu1 %v20737_v45 }
 0x145   :  { %v1662_v0 = vcombine.low %v20941_v24, %v20965_v35  ;;  %v1774_v34 = vcombine.low %v20990_v6, %v20992_v59  ;;  %v21065_v53 = vld [vmem:[#allocation2 + $0x508] sm:$0xff]  ;;  %v24458_v3 = vcombine.low %v20601_v50, %v24452_v27  ;;  %v1809_v9 = vcombine.high %v1791_v31, %v1805_v13 }
 0x146   :  { %10544 = vmatprep.subr.bf16.mxu1 %v24457_v40  ;;  %v21067_v44 = vld [vmem:[#allocation2 + $0x528] sm:$0xff]  ;;  %v1953_v16 = vcombine.high %v1935_v8, %v1949_v49  ;;  %v1808_v24 = vcombine.low %v1791_v31, %v1805_v13  ;;  %v1952_v35 = vcombine.low %v1935_v8, %v1949_v49  ;;  %v24459_v41 = vcombine.low %v20605_v39, %v24456_v25 }
 0x147   :  { %9641 = vmatpush1.bf16.msra.mxu0 %v24458_v3  ;;  %v24460_v40 = vcombine.high %v20628_v32, %v20630_v15  ;;  %v1776_v59 = vcombine.low %v21003_v47, %v21005_v51  ;;  %v1918_v50 = vcombine.low %v21007_v11, %v21012_v61  ;;  %v21084_v27 = vld [vmem:[#allocation2 + $0x548] sm:$0xff]  ;;  %v24461_v39 = vcombine.high %v20639_v63, %v20641_v21 }
 0x148   :  { %10545 = vmatpush1.bf16.msra.mxu1 %v24459_v41  ;;  %v21086_v31 = vld [vmem:[#allocation2 + $0x568] sm:$0xff]  ;;  %v1920_v25 = vcombine.low %v21014_v12, %v21016_v52  ;;  %v21101_v51 = vpack.c.bf16 %v1953_v16, %v1809_v9  ;;  %v21103_v11 = vpack.c.bf16 %v1952_v35, %v1808_v24  ;;  %v2063_v61 = vcombine.high %v21065_v53, %v21067_v44 }
 0x149   :  { %9642 = vmatprep.subr.bf16.mxu0 %v24460_v40  ;;  %v21088_v13 = vld [vmem:[#allocation2 + $0x588] sm:$0xff]  ;;  %10546 = vmatprep.subr.bf16.mxu1 %v24461_v39  ;;  %v2065_v12 = vcombine.high %v21084_v27, %v21086_v31  ;;  %v24464_v3 = vcombine.low %v20628_v32, %v20630_v15  ;;  %v24465_v9 = vcombine.high %v20921_v22, %v20930_v29 }
 0x14a   :  { %v21095_v8 = vld [vmem:[#allocation2 + $0x5a8] sm:$0xff]  ;;  %24462 = vst [vmem:[#allocation41_spill] sm:$0xff] %v21101_v51  ;;  %24463 = vst [vmem:[#allocation30_spill] sm:$0xff] %v21103_v11  ;;  %9568 = vmatmul.mubr.bf16.gmra.mrb[4].mxu0 %v20748_v37  ;;  %10472 = vmatmul.mubr.bf16.gmra.mrb[4].mxu1 %v20748_v37  ;;  %v21126_v24 = vrot.slane %v1774_v34, %v19307_v58  ;;  %v2079_v35 = vrot.slane %v2063_v61, %v19307_v58 }
 0x14b   :  { %v21097_v49 = vld [vmem:[#allocation2 + $0x5c8] sm:$0xff]  ;;  %v2207_v52 = vcombine.high %v21088_v13, %v21095_v8  ;;  %9643 = vmatpush1.bf16.msra.mxu0 %v24464_v3  ;;  %v21123_v16 = vpack.c.bf16 %v1663_v10, %v24465_v9  ;;  %v24467_v39 = vcombine.low %v20639_v63, %v20641_v21  ;;  %v24468_v6 = vcombine.high %v20652_v55, %v20654_v42 }
 0x14c   :  { %v21099_v47 = vld [vmem:[#allocation2 + $0x5e8] sm:$0xff]  ;;  %v2093_v34 = vrot.slane %v2065_v12, %v19307_v58  ;;  %v24469_v63 = vcombine.high %v20674_v5, %v20676_v56  ;;  %9577 = vmatprep.mubr.bf16.mxu0 %v20913_v20  ;;  %v21151_v21 = vrot.slane %v1776_v59, %v19307_v58  ;;  %v21159_v12 = vld [vmem:[#allocation5 + $0xe00] sm:$0xff]  ;;  %10481 = vmatprep.mubr.bf16.mxu1 %v20913_v20 }
 0x14d   :  { %v2209_v40 = vcombine.high %v21097_v49, %v21099_v47  ;;  %24466 = vst [vmem:[#allocation31_spill] sm:$0xff] %v21123_v16  ;;  %10547 = vmatpush1.bf16.msra.mxu1 %v24467_v39  ;;  %9644 = vmatprep.subr.bf16.mxu0 %v24468_v6  ;;  %v21135_v15 = vld [vmem:[#allocation2 + $0x608] sm:$0xff]  ;;  %v2223_v61 = vrot.slane %v2207_v52, %v19307_v58  ;;  %v21161_v52 = vld [vmem:[#allocation5 + $0xe20] sm:$0xff] }
 0x14e   :  { %v21137_v32 = vld [vmem:[#allocation2 + $0x628] sm:$0xff]  ;;  %10548 = vmatprep.subr.bf16.mxu1 %v24469_v63  ;;  %v21154_v6 = vrot.slane %v1918_v50, %v19307_v58  ;;  %v21157_v39 = vrot.slane %v1920_v25, %v19307_v58  ;;  %v2097_v63 = vcombine.high %v2079_v35, %v2093_v34  ;;  %v2096_v59 = vcombine.low %v2079_v35, %v2093_v34 }
 0x14f   :  { %v21139_v3 = vld [vmem:[#allocation2 + $0x648] sm:$0xff]  ;;  %v2237_v9 = vrot.slane %v2209_v40, %v19307_v58  ;;  %v24470_v50 = vcombine.low %v20652_v55, %v20654_v42  ;;  %v24471_v25 = vcombine.low %v20921_v22, %v20930_v29  ;;  %v2062_v11 = vcombine.low %v21065_v53, %v21067_v44 }
 0x150   :  { %v21141_v10 = vld [vmem:[#allocation2 + $0x668] sm:$0xff]  ;;  %v2351_v51 = vcombine.high %v21135_v15, %v21137_v32  ;;  %v24473_v35 = vcombine.low %v20674_v5, %v20676_v56  ;;  %v24474_v55 = vcombine.high %v20732_v36, %v20743_v14  ;;  %v24477_v44 = vcombine.high %v20773_v62, %v20775_v38 }
 0x151   :  { %v21163_v40 = vld [vmem:[#allocation2 + $0x688] sm:$0xff]  ;;  %v2241_v37 = vcombine.high %v2223_v61, %v2237_v9  ;;  %v2240_v45 = vcombine.low %v2223_v61, %v2237_v9  ;;  %9645 = vmatpush1.bf16.msra.mxu0 %v24470_v50  ;;  %v21174_v28 = vpack.c.bf16 %v1662_v0, %v24471_v25  ;;  %v2353_v20 = vcombine.high %v21139_v3, %v21141_v10  ;;  %v24480_v9 = vld [vmem:[#allocation39_spill] sm:$0xff] }
 0x152   :  { %v21165_v41 = vld [vmem:[#allocation2 + $0x6a8] sm:$0xff]  ;;  %10549 = vmatpush1.bf16.msra.mxu1 %v24473_v35  ;;  %9646 = vmatprep.subr.bf16.mxu0 %v24474_v55  ;;  %v2064_v56 = vcombine.low %v21084_v27, %v21086_v31  ;;  %v2367_v5 = vrot.slane %v2351_v51, %v19307_v58  ;;  %v1951_v61 = vcombine.high %v21154_v6, %v21157_v39 }
 0x153   :  { %24472 = vst [vmem:[#allocation19_spill] sm:$0xff] %v21174_v28  ;;  %v21188_v42 = vld [vmem:[#allocation2 + $0x6c8] sm:$0xff]  ;;  %v21192_v29 = vpack.c.bf16 %v2241_v37, %v2097_v63  ;;  %v21194_v0 = vpack.c.bf16 %v2240_v45, %v2096_v59  ;;  %v2495_v53 = vcombine.high %v21163_v40, %v21165_v41  ;;  %10550 = vmatprep.subr.bf16.mxu1 %v24477_v44 }
 0x154   :  { %v21190_v22 = vld [vmem:[#allocation2 + $0x6e8] sm:$0xff]  ;;  %v2381_v34 = vrot.slane %v2353_v20, %v19307_v58  ;;  %9578 = vmatmul.mubr.bf16.gmra.mrb[8].mxu0 %v20938_v17  ;;  %v1807_v45 = vcombine.high %v21126_v24, %v21151_v21  ;;  %10482 = vmatmul.mubr.bf16.gmra.mrb[8].mxu1 %v20938_v17  ;;  %v24478_v31 = vcombine.low %v20732_v36, %v20743_v14  ;;  %v24481_v17 = vld [vmem:[#allocation49_spill] sm:$0xff] }
 0x155   :  { %24475 = vst [vmem:[#allocation18_spill] sm:$0xff] %v21192_v29  ;;  %24476 = vst [vmem:[#allocation64_spill] sm:$0xff] %v21194_v0  ;;  %v2497_v37 = vcombine.high %v21188_v42, %v21190_v22  ;;  %v21214_v63 = vld [vmem:[#allocation5 + $0xe08] sm:$0xff]  ;;  %v2511_v20 = vrot.slane %v2495_v53, %v19307_v58  ;;  %v24479_v53 = vcombine.low %v20773_v62, %v20775_v38  ;;  %9587 = vmatprep.mubr.bf16.mxu0 %v21123_v16 }
 0x156   :  { %v21216_v27 = vld [vmem:[#allocation5 + $0xe28] sm:$0xff]  ;;  %9647 = vmatpush1.bf16.msra.mxu0 %v24478_v31  ;;  %v2385_v35 = vcombine.high %v2367_v5, %v2381_v34  ;;  %v2384_v44 = vcombine.low %v2367_v5, %v2381_v34  ;;  %v24482_v36 = vcombine.high %v24480_v9, %v24481_v17  ;;  %v21239_v14 = vrot.slane %v2062_v11, %v19307_v58 }
 0x157   :  { %v21223_v51 = vld [vmem:[#allocation2 + $0x708] sm:$0xff]  ;;  %v2525_v55 = vrot.slane %v2497_v37, %v19307_v58  ;;  %10551 = vmatpush1.bf16.msra.mxu1 %v24479_v53  ;;  %v2206_v31 = vcombine.low %v21088_v13, %v21095_v8  ;;  %v2208_v0 = vcombine.low %v21097_v49, %v21099_v47  ;;  %v24483_v62 = vcombine.high %v20808_v33, %v20816_v46 }
 0x158   :  { %v21225_v59 = vld [vmem:[#allocation2 + $0x728] sm:$0xff]  ;;  %9648 = vmatprep.subr.bf16.mxu0 %v24482_v36  ;;  %v21256_v38 = vrot.slane %v2064_v56, %v19307_v58  ;;  %10491 = vmatprep.mubr.bf16.mxu1 %v21123_v16  ;;  %v24484_v56 = vcombine.low %v24480_v9, %v24481_v17  ;;  %v24487_v16 = vcombine.low %v20808_v33, %v20816_v46 }
 0x159   :  { %v21227_v50 = vld [vmem:[#allocation2 + $0x748] sm:$0xff]  ;;  %10552 = vmatprep.subr.bf16.mxu1 %v24483_v62  ;;  %v2529_v13 = vcombine.high %v2511_v20, %v2525_v55  ;;  %v2528_v8 = vcombine.low %v2511_v20, %v2525_v55  ;;  %v2639_v49 = vcombine.high %v21223_v51, %v21225_v59  ;;  %v1806_v20 = vcombine.low %v21126_v24, %v21151_v21 }
 0x15a   :  { %v21229_v25 = vld [vmem:[#allocation2 + $0x768] sm:$0xff]  ;;  %9649 = vmatpush1.bf16.msra.mxu0 %v24484_v56  ;;  %v16579_v55 = vcombine.high %v21214_v63, %v21216_v27  ;;  %v24488_v2 = vcombine.high %v20943_v60, %v20945_v23  ;;  %v24489_v21 = vcombine.high %v20947_v18, %v20955_v19  ;;  %v21298_v33 = vrot.slane %v2208_v0, %v19307_v58 }
 0x15b   :  { %v21245_v29 = vld [vmem:[#allocation2 + $0x788] sm:$0xff]  ;;  %v2641_v47 = vcombine.high %v21227_v50, %v21229_v25  ;;  %v21276_v36 = vpack.c.bf16 %v2529_v13, %v2385_v35  ;;  %v21278_v62 = vpack.c.bf16 %v2528_v8, %v2384_v44  ;;  %10553 = vmatpush1.bf16.msra.mxu1 %v24487_v16  ;;  %v2655_v17 = vrot.slane %v2639_v49, %v19307_v58 }
 0x15c   :  { %v21247_v5 = vld [vmem:[#allocation2 + $0x7a8] sm:$0xff]  ;;  %9650 = vmatprep.subr.bf16.mxu0 %v24488_v2  ;;  %10554 = vmatprep.subr.bf16.mxu1 %v24489_v21  ;;  %v21292_v35 = vpack.c.bf16 %v1951_v61, %v1807_v45  ;;  %v21295_v44 = vrot.slane %v2206_v31, %v19307_v58  ;;  %v1950_v2 = vcombine.low %v21154_v6, %v21157_v39  ;;  %v3730_v39 = vld [vmem:[#allocation5 + $0xe40] sm:$0xff] }
 0x15d   :  { %v21249_v34 = vld [vmem:[#allocation2 + $0x7c8] sm:$0xff]  ;;  %v2783_v37 = vcombine.high %v21245_v29, %v21247_v5  ;;  %24485 = vst [vmem:[#allocation65_spill] sm:$0xff] %v21276_v36  ;;  %24486 = vst [vmem:[#allocation66_spill] sm:$0xff] %v21278_v62  ;;  %v2669_v9 = vrot.slane %v2641_v47, %v19307_v58  ;;  %9588 = vmatmul.mubr.bf16.gmra.mrb[12].mxu0 %v21174_v28  ;;  %v2095_v16 = vcombine.high %v21239_v14, %v21256_v38  ;;  %v3734_v47 = vld [vmem:[#allocation5 + $0xe60] sm:$0xff] }
 0x15e   :  { %v21258_v11 = vld [vmem:[#allocation2 + $0x7e8] sm:$0xff]  ;;  %24490 = vst [vmem:[#allocation67_spill] sm:$0xff] %v21292_v35  ;;  %10492 = vmatmul.mubr.bf16.gmra.mrb[12].mxu1 %v21174_v28  ;;  %v24491_v45 = vcombine.low %v20943_v60, %v20945_v23  ;;  %v2350_v0 = vcombine.low %v21135_v15, %v21137_v32  ;;  %v24492_v49 = vcombine.low %v20947_v18, %v20955_v19  ;;  %v24530_v62 = vld [vmem:[#allocation61_spill] sm:$0xff] }
 0x15f   :  { %v2785_v53 = vcombine.high %v21249_v34, %v21258_v11  ;;  %v2799_v24 = vrot.slane %v2783_v37, %v19307_v58  ;;  %v2673_v13 = vcombine.high %v2655_v17, %v2669_v9  ;;  %v2672_v8 = vcombine.low %v2655_v17, %v2669_v9  ;;  %v3731_v37 = vld [vmem:[#allocation5 + $0xe48] sm:$0xff]  ;;  %9597 = vmatprep.mubr.bf16.mxu0 %v21292_v35 }
 0x160   :  { %9651 = vmatpush1.bf16.msra.mxu0 %v24491_v45  ;;  %10555 = vmatpush1.bf16.msra.mxu1 %v24492_v49  ;;  %v24493_v6 = vcombine.high %v21024_v54, %v21026_v43  ;;  %v2352_v60 = vcombine.low %v21139_v3, %v21141_v10  ;;  %v2494_v23 = vcombine.low %v21163_v40, %v21165_v41  ;;  %v3735_v19 = vld [vmem:[#allocation5 + $0xe68] sm:$0xff]  ;;  %v21337_v3 = vld [vmem:[#allocation5 + $0xe80] sm:$0xff] }
 0x161   :  { %v2813_v46 = vrot.slane %v2785_v53, %v19307_v58  ;;  %v2496_v15 = vcombine.low %v21188_v42, %v21190_v22  ;;  %v24494_v18 = vcombine.high %v21040_v26, %v21051_v7  ;;  %v2239_v32 = vcombine.high %v21295_v44, %v21298_v33  ;;  %10501 = vmatprep.mubr.bf16.mxu1 %v21292_v35  ;;  %v3747_v45 = vld [vmem:[#allocation5 + $0xec8] sm:$0xff] }
 0x162   :  { %9652 = vmatprep.subr.bf16.mxu0 %v24493_v6  ;;  %v21335_v41 = vpack.c.bf16 %v1950_v2, %v1806_v20  ;;  %v24498_v10 = vcombine.low %v21024_v54, %v21026_v43  ;;  %v16576_v40 = vcombine.low %v21159_v12, %v21161_v52  ;;  %v16578_v42 = vcombine.low %v21214_v63, %v21216_v27  ;;  %v3742_v43 = vld [vmem:[#allocation5 + $0xea0] sm:$0xff]  ;;  %v3739_v54 = vld [vmem:[#allocation5 + $0xe88] sm:$0xff] }
 0x163   :  { %v2817_v61 = vcombine.high %v2799_v24, %v2813_v46  ;;  %v2816_v31 = vcombine.low %v2799_v24, %v2813_v46  ;;  %10556 = vmatprep.subr.bf16.mxu1 %v24494_v18  ;;  %v16585_v22 = vcombine.high %v3730_v39, %v3734_v47  ;;  %v21347_v17 = vrot.slane %v2350_v0, %v19307_v58  ;;  %v3743_v24 = vld [vmem:[#allocation5 + $0xea8] sm:$0xff] }
 0x164   :  { %24497 = vst [vmem:[#allocation49_spill] sm:$0xff] %v21335_v41  ;;  %9653 = vmatpush1.bf16.msra.mxu0 %v24498_v10  ;;  %v24499_v20 = vcombine.low %v21040_v26, %v21051_v7  ;;  %v24500_v9 = vcombine.high %v21159_v12, %v21161_v52  ;;  %v21356_v21 = vrot.slane %v2352_v60, %v19307_v58  ;;  %v3766_v10 = vld [vmem:[#allocation5 + $0xf60] sm:$0xff] }
 0x165   :  { %v21330_v53 = vpack.c.bf16 %v2817_v61, %v2673_v13  ;;  %v21332_v56 = vpack.c.bf16 %v2816_v31, %v2672_v8  ;;  %v21359_v63 = vrot.slane %v2494_v23, %v19307_v58  ;;  %v21362_v27 = vrot.slane %v2496_v15, %v19307_v58  ;;  %9598 = vmatmul.mubr.bf16.gmra.mrb[16].mxu0 %v21335_v41  ;;  %v3755_v23 = vld [vmem:[#allocation5 + $0xf08] sm:$0xff] }
 0x166   :  { %10557 = vmatpush1.bf16.msra.mxu1 %v24499_v20  ;;  %9654 = vmatprep.subr.bf16.mxu0 %v24500_v9  ;;  %v16587_v46 = vcombine.high %v3731_v37, %v3735_v19  ;;  %v21364_v26 = vpack.c.bf16 %v2239_v32, %v2095_v16  ;;  %v16584_v7 = vcombine.low %v3730_v39, %v3734_v47  ;;  %v3750_v16 = vld [vmem:[#allocation5 + $0xee0] sm:$0xff]  ;;  %v3759_v15 = vld [vmem:[#allocation5 + $0xf28] sm:$0xff] }
 0x167   :  { %24495 = vst [vmem:[#allocation68_spill] sm:$0xff] %v21330_v53  ;;  %24496 = vst [vmem:[#allocation39_spill] sm:$0xff] %v21332_v56  ;;  %10558 = vmatprep.subr.bf16.mxu1 %v16579_v55  ;;  %v2094_v12 = vcombine.low %v21239_v14, %v21256_v38  ;;  %v2238_v52 = vcombine.low %v21295_v44, %v21298_v33  ;;  %10502 = vmatmul.mubr.bf16.gmra.mrb[16].mxu1 %v21335_v41  ;;  %v3746_v55 = vld [vmem:[#allocation5 + $0xec0] sm:$0xff]  ;;  %v3751_v44 = vld [vmem:[#allocation5 + $0xee8] sm:$0xff] }
 0x168   :  { %24501 = vst [vmem:[#allocation73_spill] sm:$0xff] %v21364_v26  ;;  %9655 = vmatpush1.bf16.msra.mxu0 %v16576_v40  ;;  %v16586_v2 = vcombine.low %v3731_v37, %v3735_v19  ;;  %v16593_v13 = vcombine.high %v21337_v3, %v3742_v43  ;;  %v16595_v8 = vcombine.high %v3739_v54, %v3743_v24  ;;  %v3763_v40 = vld [vmem:[#allocation5 + $0xf48] sm:$0xff] }
 0x169   :  { %9656 = vmatprep.subr.bf16.mxu0 %v16585_v22  ;;  %v2383_v0 = vcombine.high %v21347_v17, %v21356_v21  ;;  %v2527_v14 = vcombine.high %v21359_v63, %v21362_v27  ;;  %v2638_v38 = vcombine.low %v21223_v51, %v21225_v59  ;;  %9607 = vmatprep.mubr.bf16.mxu0 %v21364_v26  ;;  %v3767_v22 = vld [vmem:[#allocation5 + $0xf68] sm:$0xff] }
 0x16a   :  { %10559 = vmatpush1.bf16.msra.mxu1 %v16578_v42  ;;  %v2640_v33 = vcombine.low %v21227_v50, %v21229_v25  ;;  %v2782_v61 = vcombine.low %v21245_v29, %v21247_v5  ;;  %v2784_v31 = vcombine.low %v21249_v34, %v21258_v11  ;;  %10511 = vmatprep.mubr.bf16.mxu1 %v21364_v26  ;;  %v3754_v50 = vld [vmem:[#allocation5 + $0xf00] sm:$0xff] }
 0x16b   :  { %10560 = vmatprep.subr.bf16.mxu1 %v16587_v46  ;;  %v21387_v49 = vpack.c.bf16 %v2238_v52, %v2094_v12  ;;  %v16592_v51 = vcombine.low %v21337_v3, %v3742_v43  ;;  %v16594_v59 = vcombine.low %v3739_v54, %v3743_v24  ;;  %v16601_v6 = vcombine.high %v3746_v55, %v3750_v16  ;;  %v3758_v29 = vld [vmem:[#allocation5 + $0xf20] sm:$0xff]  ;;  %v3771_v52 = vld [vmem:[#allocation5 + $0xf88] sm:$0xff] }
 0x16c   :  { %9657 = vmatpush1.bf16.msra.mxu0 %v16584_v7  ;;  %v16603_v39 = vcombine.high %v3747_v45, %v3751_v44  ;;  %v21390_v47 = vpack.c.bf16 %v2527_v14, %v2383_v0  ;;  %v2648_v25 = vrot.slane %v2638_v38, %v19307_v58  ;;  %v2662_v5 = vrot.slane %v2640_v33, %v19307_v58  ;;  %v3762_v3 = vld [vmem:[#allocation5 + $0xf40] sm:$0xff]  ;;  %v3779_v0 = vld [vmem:[#allocation5 + $0xfc8] sm:$0xff] }
 0x16d   :  { %24502 = vst [vmem:[#allocation74_spill] sm:$0xff] %v21387_v49  ;;  %9658 = vmatprep.subr.bf16.mxu0 %v16593_v13  ;;  %v2792_v34 = vrot.slane %v2782_v61, %v19307_v58  ;;  %v2806_v11 = vrot.slane %v2784_v31, %v19307_v58  ;;  %9608 = vmatmul.mubr.bf16.gmra.mrb[20].mxu0 %v21387_v49  ;;  %v3774_v46 = vld [vmem:[#allocation5 + $0xfa0] sm:$0xff]  ;;  %v3783_v38 = vld [vmem:[#allocation5 + $0xfe8] sm:$0xff] }
 0x16e   :  { %10561 = vmatpush1.bf16.msra.mxu1 %v16586_v2  ;;  %24503 = vst [vmem:[#allocation75_spill] sm:$0xff] %v21390_v47  ;;  %v2382_v37 = vcombine.low %v21347_v17, %v21356_v21  ;;  %v2526_v60 = vcombine.low %v21359_v63, %v21362_v27  ;;  %v16600_v18 = vcombine.low %v3746_v55, %v3750_v16  ;;  %v3770_v27 = vld [vmem:[#allocation5 + $0xf80] sm:$0xff]  ;;  %v3775_v2 = vld [vmem:[#allocation5 + $0xfa8] sm:$0xff] }
 0x16f   :  { %10562 = vmatprep.subr.bf16.mxu1 %v16595_v8  ;;  %10512 = vmatmul.mubr.bf16.gmra.mrb[20].mxu1 %v21387_v49  ;;  %v16602_v19 = vcombine.low %v3747_v45, %v3751_v44  ;;  %v16609_v32 = vcombine.high %v3754_v50, %v3758_v29  ;;  %v16611_v42 = vcombine.high %v3755_v23, %v3759_v15  ;;  %v3778_v16 = vld [vmem:[#allocation5 + $0xfc0] sm:$0xff] }
 0x170   :  { %9659 = vmatpush1.bf16.msra.mxu0 %v16592_v51  ;;  %9617 = vmatprep.mubr.bf16.mxu0 %v21390_v47  ;;  %v2671_v17 = vcombine.high %v2648_v25, %v2662_v5  ;;  %v2815_v20 = vcombine.high %v2792_v34, %v2806_v11  ;;  %v21404_v9 = vpack.c.bf16 %v2526_v60, %v2382_v37  ;;  %v3782_v45 = vld [vmem:[#allocation5 + $0xfe0] sm:$0xff]  ;;  %v3795_v37 = vld [vmem:[#allocation5 + $0x1048] sm:$0xff] }
 0x171   :  { %9660 = vmatprep.subr.bf16.mxu0 %v16601_v6  ;;  %10521 = vmatprep.mubr.bf16.mxu1 %v21390_v47  ;;  %v16608_v43 = vcombine.low %v3754_v50, %v3758_v29  ;;  %v16610_v54 = vcombine.low %v3755_v23, %v3759_v15  ;;  %v16617_v24 = vcombine.high %v3762_v3, %v3766_v10  ;;  %v3786_v51 = vld [vmem:[#allocation5 + $0x1000] sm:$0xff]  ;;  %v3787_v6 = vld [vmem:[#allocation5 + $0x1008] sm:$0xff]  ;;  %v21599_v47 = vld [vmem:[#allocation2 + $0x170] sm:$0xff] }
 0x172   :  { %10563 = vmatpush1.bf16.msra.mxu1 %v16594_v59  ;;  %24504 = vst [vmem:[#allocation76_spill] sm:$0xff] %v21404_v9  ;;  %v16619_v21 = vcombine.high %v3763_v40, %v3767_v22  ;;  %v21406_v63 = vpack.c.bf16 %v2815_v20, %v2671_v17  ;;  %v2670_v7 = vcombine.low %v2648_v25, %v2662_v5  ;;  %v3790_v59 = vld [vmem:[#allocation5 + $0x1020] sm:$0xff]  ;;  %v3791_v50 = vld [vmem:[#allocation5 + $0x1028] sm:$0xff]  ;;  %24511 = vst [vmem:[#allocation81_spill] sm:$0xff] %v21599_v47 }
 0x173   :  { %10564 = vmatprep.subr.bf16.mxu1 %v16603_v39  ;;  %v2814_v12 = vcombine.low %v2792_v34, %v2806_v11  ;;  %v16616_v13 = vcombine.low %v3762_v3, %v3766_v10  ;;  %v16618_v8 = vcombine.low %v3763_v40, %v3767_v22  ;;  %v16625_v55 = vcombine.high %v3770_v27, %v3774_v46  ;;  %v3794_v34 = vld [vmem:[#allocation5 + $0x1040] sm:$0xff]  ;;  %v24507_v60 = vld [vmem:[#allocation48_spill] sm:$0xff] }
 0x174   :  { %9661 = vmatpush1.bf16.msra.mxu0 %v16600_v18  ;;  %24505 = vst [vmem:[#allocation77_spill] sm:$0xff] %v21406_v63  ;;  %v16627_v14 = vcombine.high %v3771_v52, %v3775_v2  ;;  %v16624_v33 = vcombine.low %v3770_v27, %v3774_v46  ;;  %v16626_v61 = vcombine.low %v3771_v52, %v3775_v2  ;;  %v3798_v11 = vld [vmem:[#allocation5 + $0x1060] sm:$0xff]  ;;  %v3799_v15 = vld [vmem:[#allocation5 + $0x1068] sm:$0xff] }
 0x175   :  { %9662 = vmatprep.subr.bf16.mxu0 %v16609_v32  ;;  %9618 = vmatmul.mubr.bf16.gmra.mrb[24].mxu0 %v21404_v9  ;;  %v21412_v44 = vpack.c.bf16 %v2814_v12, %v2670_v7  ;;  %v16633_v31 = vcombine.high %v3778_v16, %v3782_v45  ;;  %v16635_v39 = vcombine.high %v3779_v0, %v3783_v38  ;;  %v3802_v3 = vld [vmem:[#allocation5 + $0x1080] sm:$0xff]  ;;  %v21418_v40 = vld [vmem:[#allocation5 + $0x1088] sm:$0xff] }
 0x176   :  { %10565 = vmatpush1.bf16.msra.mxu1 %v16602_v19  ;;  %9627 = vmatprep.mubr.bf16.mxu0 %v21406_v63  ;;  %v16632_v29 = vcombine.low %v3778_v16, %v3782_v45  ;;  %v16634_v25 = vcombine.low %v3779_v0, %v3783_v38  ;;  %v16641_v5 = vcombine.high %v3786_v51, %v3790_v59  ;;  %v3806_v10 = vld [vmem:[#allocation5 + $0x10a0] sm:$0xff]  ;;  %v21420_v22 = vld [vmem:[#allocation5 + $0x10a8] sm:$0xff] }
 0x177   :  { %10566 = vmatprep.subr.bf16.mxu1 %v16611_v42  ;;  %10522 = vmatmul.mubr.bf16.gmra.mrb[24].mxu1 %v21404_v9  ;;  %24506 = vst [vmem:[#allocation78_spill] sm:$0xff] %v21412_v44  ;;  %v16643_v23 = vcombine.high %v3787_v6, %v3791_v50  ;;  %v16640_v18 = vcombine.low %v3786_v51, %v3790_v59  ;;  %v24508_v17 = vld [vmem:[#allocation51_spill] sm:$0xff]  ;;  %v21436_v52 = vld [vmem:[#allocation5 + $0x1108] sm:$0xff]  ;;  %v21597_v9 = vld [vmem:[#allocation2 + $0x150] sm:$0xff] }
 0x178   :  { %9663 = vmatpush1.bf16.msra.mxu0 %v16608_v43  ;;  %10531 = vmatprep.mubr.bf16.mxu1 %v21406_v63  ;;  %v16642_v19 = vcombine.low %v3787_v6, %v3791_v50  ;;  %v16649_v32 = vcombine.high %v3794_v34, %v3798_v11  ;;  %v16651_v42 = vcombine.high %v3795_v37, %v3799_v15  ;;  %v21424_v43 = vld [vmem:[#allocation5 + $0x10c0] sm:$0xff]  ;;  %v21438_v2 = vld [vmem:[#allocation5 + $0x1128] sm:$0xff] }
 0x179   :  { %9664 = vmatprep.subr.bf16.mxu0 %v16617_v24  ;;  %v16648_v20 = vcombine.low %v3794_v34, %v3798_v11  ;;  %v21428_v24 = vld [vmem:[#allocation5 + $0x10c8] sm:$0xff]  ;;  %v16650_v27 = vcombine.low %v3795_v37, %v3799_v15  ;;  %v16657_v46 = vcombine.high %v3802_v3, %v3806_v10  ;;  %v21432_v7 = vld [vmem:[#allocation5 + $0x1100] sm:$0xff]  ;;  %v16656_v38 = vcombine.low %v3802_v3, %v3806_v10  ;;  %v21547_v37 = vld [vmem:[#allocation2 + $0xf0] sm:$0xff] }
 0x17a   :  { %10567 = vmatpush1.bf16.msra.mxu1 %v16610_v54  ;;  %v21426_v54 = vld [vmem:[#allocation5 + $0x10e0] sm:$0xff]  ;;  %v21447_v16 = vld [vmem:[#allocation5 + $0x1148] sm:$0xff]  ;;  %24510 = vst [vmem:[#allocation80_spill] sm:$0xff] %v21597_v9  ;;  %v24513_v28 = vcombine.low %v21436_v52, %v21438_v2 }
 0x17b   :  { %10568 = vmatprep.subr.bf16.mxu1 %v16619_v21  ;;  %v21430_v21 = vld [vmem:[#allocation5 + $0x10e8] sm:$0xff]  ;;  %v21434_v12 = vld [vmem:[#allocation5 + $0x1120] sm:$0xff]  ;;  %v16664_v59 = vcombine.low %v21424_v43, %v21426_v54  ;;  %v16665_v6 = vcombine.high %v21424_v43, %v21426_v54 }
 0x17c   :  { %9665 = vmatpush1.bf16.msra.mxu0 %v16616_v13  ;;  %v16659_v13 = vcombine.high %v21418_v40, %v21420_v22  ;;  %v21449_v45 = vld [vmem:[#allocation5 + $0x1168] sm:$0xff]  ;;  %v21452_v0 = vld [vmem:[#allocation5 + $0x1180] sm:$0xff]  ;;  %v16673_v11 = vcombine.high %v21432_v7, %v21434_v12 }
 0x17d   :  { %9666 = vmatprep.subr.bf16.mxu0 %v16625_v55  ;;  %9628 = vmatmul.mubr.bf16.gmra.mrb[28].mxu0 %v21412_v44  ;;  %v21445_v55 = vld [vmem:[#allocation5 + $0x1160] sm:$0xff]  ;;  %v21497_v10 = vld [vmem:[#allocation5 + $0x1208] sm:$0xff] }
 0x17e   :  { %10569 = vmatpush1.bf16.msra.mxu1 %v16618_v8  ;;  %9670 = vmatprep.mubr.bf16.mxu0 %v24507_v60  ;;  %v21443_v8 = vld [vmem:[#allocation5 + $0x1140] sm:$0xff]  ;;  %v21528_v3 = vld [vmem:[#allocation5 + $0x1268] sm:$0xff] }
 0x17f   :  { %10570 = vmatprep.subr.bf16.mxu1 %v16627_v14  ;;  %10532 = vmatmul.mubr.bf16.gmra.mrb[28].mxu1 %v21412_v44  ;;  %v21454_v14 = vld [vmem:[#allocation5 + $0x11a0] sm:$0xff]  ;;  %v21584_v44 = vld [vmem:[#allocation2 + $0x130] sm:$0xff] }
 0x180   :  { %9667 = vmatpush1.bf16.msra.mxu0 %v16624_v33  ;;  %10574 = vmatprep.mubr.bf16.mxu1 %v24507_v60  ;;  %v16658_v33 = vcombine.low %v21418_v40, %v21420_v22  ;;  %v21462_v51 = vld [vmem:[#allocation5 + $0x11c0] sm:$0xff]  ;;  %v21499_v40 = vld [vmem:[#allocation5 + $0x1228] sm:$0xff] }
 0x181   :  { %9668 = vmatprep.subr.bf16.mxu0 %v16633_v31  ;;  %v21460_v31 = vld [vmem:[#allocation5 + $0x11a8] sm:$0xff]  ;;  %v21470_v50 = vld [vmem:[#allocation5 + $0x11e0] sm:$0xff] }
 0x182   :  { %10571 = vmatpush1.bf16.msra.mxu1 %v16626_v61  ;;  %v21458_v61 = vld [vmem:[#allocation5 + $0x1188] sm:$0xff]  ;;  %v21486_v15 = vld [vmem:[#allocation5 + $0x1220] sm:$0xff] }
 0x183   :  { %10572 = vmatprep.subr.bf16.mxu1 %v16635_v39  ;;  %v16666_v39 = vcombine.low %v21428_v24, %v21430_v21  ;;  %v21508_v43 = vld [vmem:[#allocation5 + $0x1240] sm:$0xff]  ;;  %v21593_v60 = vld [vmem:[#allocation5 + $0x12c8] sm:$0xff] }
 0x184   :  { %9669 = vmatpush1.bf16.msra.mxu0 %v16632_v29  ;;  %v21472_v29 = vld [vmem:[#allocation5 + $0x11c8] sm:$0xff]  ;;  %v21510_v54 = vld [vmem:[#allocation5 + $0x1260] sm:$0xff] }
 0x185   :  { %9751 = vmatprep.subr.bf16.mxu0 %v16641_v5  ;;  %v16667_v5 = vcombine.high %v21428_v24, %v21430_v21  ;;  %v21512_v24 = vld [vmem:[#allocation2 + $0x10] sm:$0xff]  ;;  %v21609_v26 = vld [vmem:[#allocation5 + $0x1320] sm:$0xff] }
 0x186   :  { %10573 = vmatpush1.bf16.msra.mxu1 %v16634_v25  ;;  %v21474_v25 = vld [vmem:[#allocation5 + $0x11e8] sm:$0xff]  ;;  %v21514_v21 = vld [vmem:[#allocation2 + $0x30] sm:$0xff] }
 0x187   :  { %10655 = vmatprep.subr.bf16.mxu1 %v16643_v23  ;;  %9671 = vmatmul.mubr.bf16.vlgmr.msra.gmra.mrb[0].mxu0 %v24508_v17  ;;  %v21484_v23 = vld [vmem:[#allocation5 + $0x1200] sm:$0xff] }
 0x188   :  { %9752 = vmatpush1.bf16.msra.mxu0 %v16640_v18  ;;  %9680 = vmatprep.mubr.bf16.mxu0 %v20894_v57  ;;  %v16675_v18 = vcombine.high %v21436_v52, %v21438_v2  ;;  %v21629_v52 = vld [vmem:[#allocation2 + $0x1d0] sm:$0xff]  ;;  %v24518_v2 = vcombine.high %v21447_v16, %v21449_v45 }
 0x189   :  { %10575 = vmatmul.mubr.bf16.vlgmr.msra.gmra.mrb[0].mxu1 %v24508_v17  ;;  %9753 = vmatprep.subr.bf16.mxu0 %v16649_v32  ;;  %v21534_v32 = vld [vmem:[#allocation2 + $0xd0] sm:$0xff]  ;;  %24517 = vst [vmem:[#allocation84_spill] sm:$0xff] %v21629_v52 }
 0x18a   :  { %10656 = vmatpush1.bf16.msra.mxu1 %v16642_v19  ;;  %10584 = vmatprep.mubr.bf16.mxu1 %v20894_v57  ;;  %v21530_v19 = vld [vmem:[#allocation2 + $0x90] sm:$0xff]  ;;  %v21568_v57 = vld [vmem:[#allocation5 + $0x1288] sm:$0xff] }
 0x18b   :  { %10657 = vmatprep.subr.bf16.mxu1 %v16651_v42  ;;  %v21532_v42 = vld [vmem:[#allocation2 + $0xb0] sm:$0xff] }
 0x18c   :  { %9754 = vmatpush1.bf16.msra.mxu0 %v16648_v20  ;;  %v21526_v20 = vld [vmem:[#allocation5 + $0x1248] sm:$0xff] }
 0x18d   :  { %9755 = vmatprep.subr.bf16.mxu0 %v16657_v46  ;;  %v21518_v46 = vld [vmem:[#allocation2 + $0x70] sm:$0xff] }
 0x18e   :  { %10658 = vmatpush1.bf16.msra.mxu1 %v16650_v27  ;;  %v21516_v27 = vld [vmem:[#allocation2 + $0x50] sm:$0xff] }
 0x18f   :  { %10659 = vmatprep.subr.bf16.mxu1 %v16659_v13  ;;  %9681 = vmatmul.mubr.bf16.gmra.mrb[4].mxu0 %v20906_v4  ;;  %v21543_v13 = vld [vmem:[#allocation5 + $0x1280] sm:$0xff]  ;;  %v661_v22 = vcombine.high %v21516_v27, %v21518_v46 }
 0x190   :  { %9756 = vmatpush1.bf16.msra.mxu0 %v16656_v38  ;;  %9690 = vmatprep.mubr.bf16.mxu0 %v20957_v1  ;;  %v21545_v38 = vld [vmem:[#allocation5 + $0x12a0] sm:$0xff] }
 0x191   :  { %10585 = vmatmul.mubr.bf16.gmra.mrb[4].mxu1 %v20906_v4  ;;  %9757 = vmatprep.subr.bf16.mxu0 %v16665_v6  ;;  %v659_v6 = vcombine.high %v21512_v24, %v21514_v21  ;;  %v689_v17 = vrot.slane %v661_v22, %v19307_v58  ;;  %v21595_v4 = vld [vmem:[#allocation5 + $0x12e8] sm:$0xff]  ;;  %v21607_v22 = vld [vmem:[#allocation5 + $0x1300] sm:$0xff] }
 0x192   :  { %10660 = vmatpush1.bf16.msra.mxu1 %v16658_v33  ;;  %10594 = vmatprep.mubr.bf16.mxu1 %v20957_v1  ;;  %v803_v1 = vcombine.high %v21530_v19, %v21532_v42  ;;  %v21582_v33 = vld [vmem:[#allocation2 + $0x110] sm:$0xff] }
 0x193   :  { %10661 = vmatprep.subr.bf16.mxu1 %v16667_v5  ;;  %v805_v5 = vcombine.high %v21534_v32, %v21547_v37  ;;  %v675_v34 = vrot.slane %v659_v6, %v19307_v58  ;;  %24509 = vst [vmem:[#allocation79_spill] sm:$0xff] %v21582_v33 }
 0x194   :  { %9758 = vmatpush1.bf16.msra.mxu0 %v16664_v59  ;;  %v21570_v59 = vld [vmem:[#allocation5 + $0x12a8] sm:$0xff]  ;;  %v819_v63 = vrot.slane %v803_v1, %v19307_v58 }
 0x195   :  { %9759 = vmatprep.subr.bf16.mxu0 %v16673_v11  ;;  %v21580_v11 = vld [vmem:[#allocation5 + $0x12e0] sm:$0xff]  ;;  %v833_v6 = vrot.slane %v805_v5, %v19307_v58  ;;  %v692_v49 = vcombine.low %v675_v34, %v689_v17  ;;  %v693_v1 = vcombine.high %v675_v34, %v689_v17  ;;  %v24512_v5 = vcombine.low %v21432_v7, %v21434_v12  ;;  %v21621_v34 = vld [vmem:[#allocation5 + $0x1308] sm:$0xff] }
 0x196   :  { %10662 = vmatpush1.bf16.msra.mxu1 %v16666_v39  ;;  %v21578_v39 = vld [vmem:[#allocation5 + $0x12c0] sm:$0xff]  ;;  %v24514_v17 = vcombine.high %v21443_v8, %v21445_v55  ;;  %v949_v12 = vcombine.high %v21597_v9, %v21599_v47  ;;  %v24531_v47 = vcombine.low %v21452_v0, %v21454_v14 }
 0x197   :  { %10663 = vmatprep.subr.bf16.mxu1 %v16675_v18  ;;  %9691 = vmatmul.mubr.bf16.gmra.mrb[8].mxu0 %v20959_v48  ;;  %v836_v41 = vcombine.low %v819_v63, %v833_v6  ;;  %v837_v35 = vcombine.high %v819_v63, %v833_v6  ;;  %v21625_v18 = vld [vmem:[#allocation2 + $0x190] sm:$0xff] }
 0x198   :  { %9760 = vmatpush1.bf16.msra.mxu0 %v24512_v5  ;;  %v21623_v5 = vld [vmem:[#allocation5 + $0x1328] sm:$0xff]  ;;  %24515 = vst [vmem:[#allocation82_spill] sm:$0xff] %v21625_v18  ;;  %v21627_v63 = vld [vmem:[#allocation2 + $0x1b0] sm:$0xff]  ;;  %9700 = vmatprep.mubr.bf16.mxu0 %v21042_v30 }
 0x199   :  { %10595 = vmatmul.mubr.bf16.gmra.mrb[8].mxu1 %v20959_v48  ;;  %9761 = vmatprep.subr.bf16.mxu0 %v24514_v17  ;;  %24516 = vst [vmem:[#allocation83_spill] sm:$0xff] %v21627_v63  ;;  %v21637_v6 = vld [vmem:[#allocation2 + $0x1f0] sm:$0xff]  ;;  %v21639_v17 = vpack.c.bf16 %v837_v35, %v693_v1  ;;  %v21641_v7 = vpack.c.bf16 %v836_v41, %v692_v49 }
 0x19a   :  { %10664 = vmatpush1.bf16.msra.mxu1 %v24513_v28  ;;  %v947_v28 = vcombine.high %v21582_v33, %v21584_v44  ;;  %24519 = vst [vmem:[#allocation85_spill] sm:$0xff] %v21637_v6  ;;  %10604 = vmatprep.mubr.bf16.mxu1 %v21042_v30  ;;  %v1093_v53 = vcombine.high %v21629_v52, %v21637_v6  ;;  %v21664_v48 = vld [vmem:[#allocation2 + $0x230] sm:$0xff]  ;;  %v21696_v52 = vld [vmem:[#allocation5 + $0x1360] sm:$0xff]  ;;  %v21698_v6 = vld [vmem:[#allocation5 + $0x1348] sm:$0xff] }
 0x19b   :  { %10665 = vmatprep.subr.bf16.mxu1 %v24518_v2  ;;  %24520 = vst [vmem:[#allocation86_spill] sm:$0xff] %v21639_v17  ;;  %24521 = vst [vmem:[#allocation87_spill] sm:$0xff] %v21641_v7  ;;  %v1091_v2 = vcombine.high %v21625_v18, %v21627_v63  ;;  %v24522_v35 = vcombine.low %v21443_v8, %v21445_v55  ;;  %v977_v30 = vrot.slane %v949_v12, %v19307_v58  ;;  %v21677_v49 = vld [vmem:[#allocation2 + $0x270] sm:$0xff]  ;;  %v21694_v17 = vld [vmem:[#allocation5 + $0x1340] sm:$0xff] }
 0x19c   :  { %v963_v56 = vrot.slane %v947_v28, %v19307_v58  ;;  %v21662_v28 = vld [vmem:[#allocation2 + $0x210] sm:$0xff]  ;;  %v24523_v7 = vcombine.low %v21447_v16, %v21449_v45  ;;  %v24524_v8 = vcombine.high %v21452_v0, %v21454_v14  ;;  %v1121_v45 = vrot.slane %v1093_v53, %v19307_v58  ;;  %v21700_v18 = vld [vmem:[#allocation5 + $0x1368] sm:$0xff] }
 0x19d   :  { %9762 = vmatpush1.bf16.msra.mxu0 %v24522_v35  ;;  %v21675_v35 = vld [vmem:[#allocation2 + $0x250] sm:$0xff]  ;;  %v1107_v16 = vrot.slane %v1091_v2, %v19307_v58  ;;  %v1235_v55 = vcombine.high %v21662_v28, %v21664_v48  ;;  %v21729_v0 = vld [vmem:[#allocation5 + $0x1388] sm:$0xff] }
 0x19e   :  { %10666 = vmatpush1.bf16.msra.mxu1 %v24523_v7  ;;  %9763 = vmatprep.subr.bf16.mxu0 %v24524_v8  ;;  %v21679_v1 = vld [vmem:[#allocation2 + $0x290] sm:$0xff]  ;;  %v24528_v7 = vcombine.high %v21458_v61, %v21460_v31  ;;  %v981_v53 = vcombine.high %v963_v56, %v977_v30  ;;  %v980_v63 = vcombine.low %v963_v56, %v977_v30 }
 0x19f   :  { %24525 = vst [vmem:[#allocation88_spill] sm:$0xff] %v21679_v1  ;;  %v21681_v41 = vld [vmem:[#allocation2 + $0x2b0] sm:$0xff]  ;;  %9701 = vmatmul.mubr.bf16.gmra.mrb[12].mxu0 %v24530_v62  ;;  %v1125_v8 = vcombine.high %v1107_v16, %v1121_v45  ;;  %v1124_v9 = vcombine.low %v1107_v16, %v1121_v45  ;;  %v1237_v33 = vcombine.high %v21675_v35, %v21677_v49 }
 0x1a0   :  { %24526 = vst [vmem:[#allocation89_spill] sm:$0xff] %v21681_v41  ;;  %v21683_v12 = vld [vmem:[#allocation2 + $0x2d0] sm:$0xff]  ;;  %10667 = vmatprep.subr.bf16.mxu1 %v24528_v7  ;;  %v1379_v30 = vcombine.high %v21679_v1, %v21681_v41  ;;  %v24532_v16 = vcombine.low %v21458_v61, %v21460_v31  ;;  %v24533_v45 = vcombine.high %v21462_v51, %v21470_v50  ;;  %v21725_v7 = vld [vmem:[#allocation5 + $0x1380] sm:$0xff] }
 0x1a1   :  { %24527 = vst [vmem:[#allocation90_spill] sm:$0xff] %v21683_v12  ;;  %v21702_v2 = vld [vmem:[#allocation2 + $0x2f0] sm:$0xff]  ;;  %10605 = vmatmul.mubr.bf16.gmra.mrb[12].mxu1 %v24530_v62  ;;  %9764 = vmatpush1.bf16.msra.mxu0 %v24531_v47  ;;  %v21727_v47 = vld [vmem:[#allocation5 + $0x13a0] sm:$0xff]  ;;  %v21731_v14 = vpack.c.bf16 %v1125_v8, %v981_v53  ;;  %v21733_v62 = vpack.c.bf16 %v1124_v9, %v980_v63 }
 0x1a2   :  { %24529 = vst [vmem:[#allocation91_spill] sm:$0xff] %v21702_v2  ;;  %v1381_v56 = vcombine.high %v21683_v12, %v21702_v2  ;;  %10668 = vmatpush1.bf16.msra.mxu1 %v24532_v16  ;;  %9765 = vmatprep.subr.bf16.mxu0 %v24533_v45  ;;  %v1251_v12 = vrot.slane %v1235_v55, %v19307_v58  ;;  %v24537_v31 = vld [vmem:[#allocation41_spill] sm:$0xff]  ;;  %v21740_v16 = vld [vmem:[#allocation5 + $0x13a8] sm:$0xff] }
 0x1a3   :  { %24534 = vst [vmem:[#allocation92_spill] sm:$0xff] %v21731_v14  ;;  %24535 = vst [vmem:[#allocation93_spill] sm:$0xff] %v21733_v62  ;;  %v24536_v61 = vcombine.high %v21472_v29, %v21474_v25  ;;  %9710 = vmatprep.mubr.bf16.mxu0 %v24537_v31  ;;  %v1265_v45 = vrot.slane %v1237_v33, %v19307_v58  ;;  %v1395_v2 = vrot.slane %v1379_v30, %v19307_v58  ;;  %v21754_v53 = vld [vmem:[#allocation2 + $0x310] sm:$0xff]  ;;  %v21777_v14 = vld [vmem:[#allocation5 + $0x13c0] sm:$0xff] }
 0x1a4   :  { %v1409_v1 = vrot.slane %v1381_v56, %v19307_v58  ;;  %10614 = vmatprep.mubr.bf16.mxu1 %v24537_v31  ;;  %v21756_v33 = vld [vmem:[#allocation2 + $0x330] sm:$0xff]  ;;  %v24538_v30 = vcombine.low %v21462_v51, %v21470_v50  ;;  %v24539_v55 = vcombine.low %v21472_v29, %v21474_v25  ;;  %v24540_v8 = vcombine.high %v21484_v23, %v21486_v15  ;;  %v24547_v50 = vld [vmem:[#allocation30_spill] sm:$0xff] }
 0x1a5   :  { %10669 = vmatprep.subr.bf16.mxu1 %v24536_v61  ;;  %v21761_v56 = vld [vmem:[#allocation2 + $0x350] sm:$0xff]  ;;  %v1269_v9 = vcombine.high %v1251_v12, %v1265_v45  ;;  %v1268_v31 = vcombine.low %v1251_v12, %v1265_v45  ;;  %v658_v45 = vcombine.low %v21512_v24, %v21514_v21  ;;  %v1523_v51 = vcombine.high %v21754_v53, %v21756_v33 }
 0x1a6   :  { %9766 = vmatpush1.bf16.msra.mxu0 %v24538_v30  ;;  %v21763_v61 = vld [vmem:[#allocation2 + $0x370] sm:$0xff]  ;;  %v1413_v63 = vcombine.high %v1395_v2, %v1409_v1  ;;  %v1412_v62 = vcombine.low %v1395_v2, %v1409_v1  ;;  %10670 = vmatpush1.bf16.msra.mxu1 %v24539_v55  ;;  %v21779_v1 = vld [vmem:[#allocation5 + $0x13e0] sm:$0xff]  ;;  %v24543_v2 = vcombine.high %v21497_v10, %v21499_v40 }
 0x1a7   :  { %9767 = vmatprep.subr.bf16.mxu0 %v24540_v8  ;;  %v21781_v12 = vld [vmem:[#allocation2 + $0x390] sm:$0xff]  ;;  %9711 = vmatmul.mubr.bf16.gmra.mrb[16].mxu0 %v24547_v50  ;;  %v24549_v41 = vcombine.low %v21497_v10, %v21499_v40  ;;  %v24552_v10 = vcombine.high %v21526_v20, %v21528_v3  ;;  %v24553_v40 = vld [vmem:[#allocation18_spill] sm:$0xff] }
 0x1a8   :  { %24541 = vst [vmem:[#allocation94_spill] sm:$0xff] %v21781_v12  ;;  %v21783_v29 = vld [vmem:[#allocation2 + $0x3b0] sm:$0xff]  ;;  %10671 = vmatprep.subr.bf16.mxu1 %v24543_v2  ;;  %v21794_v8 = vpack.c.bf16 %v1413_v63, %v1269_v9  ;;  %v21796_v30 = vpack.c.bf16 %v1412_v62, %v1268_v31  ;;  %v1525_v2 = vcombine.high %v21761_v56, %v21763_v61 }
 0x1a9   :  { %v21785_v25 = vld [vmem:[#allocation2 + $0x3d0] sm:$0xff]  ;;  %v1667_v24 = vcombine.high %v21781_v12, %v21783_v29  ;;  %10615 = vmatmul.mubr.bf16.gmra.mrb[16].mxu1 %v24547_v50  ;;  %v24548_v62 = vcombine.low %v21484_v23, %v21486_v15  ;;  %v660_v31 = vcombine.low %v21516_v27, %v21518_v46  ;;  %v802_v9 = vcombine.low %v21530_v19, %v21532_v42 }
 0x1aa   :  { %24542 = vst [vmem:[#allocation95_spill] sm:$0xff] %v21785_v25  ;;  %v21792_v55 = vld [vmem:[#allocation2 + $0x3f0] sm:$0xff]  ;;  %24545 = vst [vmem:[#allocation97_spill] sm:$0xff] %v21794_v8  ;;  %v1539_v63 = vrot.slane %v1523_v51, %v19307_v58  ;;  %10672 = vmatpush1.bf16.msra.mxu1 %v24549_v41  ;;  %v1553_v19 = vrot.slane %v1525_v2, %v19307_v58  ;;  %9720 = vmatprep.mubr.bf16.mxu0 %v24553_v40  ;;  %v21841_v51 = vld [vmem:[#allocation5 + $0x13c8] sm:$0xff] }
 0x1ab   :  { %24544 = vst [vmem:[#allocation96_spill] sm:$0xff] %v21792_v55  ;;  %24546 = vst [vmem:[#allocation98_spill] sm:$0xff] %v21796_v30  ;;  %v1669_v21 = vcombine.high %v21785_v25, %v21792_v55  ;;  %9768 = vmatpush1.bf16.msra.mxu0 %v24548_v62  ;;  %v24550_v30 = vcombine.high %v21508_v43, %v21510_v54  ;;  %v21824_v50 = vld [vmem:[#allocation2 + $0x410] sm:$0xff]  ;;  %v1683_v42 = vrot.slane %v1667_v24, %v19307_v58 }
 0x1ac   :  { %v21826_v23 = vld [vmem:[#allocation2 + $0x430] sm:$0xff]  ;;  %10673 = vmatprep.subr.bf16.mxu1 %v24552_v10  ;;  %v21846_v62 = vrot.slane %v658_v45, %v19307_v58  ;;  %v804_v2 = vcombine.low %v21534_v32, %v21547_v37  ;;  %10624 = vmatprep.mubr.bf16.mxu1 %v24553_v40  ;;  %v1557_v10 = vcombine.high %v1539_v63, %v1553_v19  ;;  %v21907_v40 = vld [vmem:[#allocation5 + $0x1428] sm:$0xff] }
 0x1ad   :  { %9769 = vmatprep.subr.bf16.mxu0 %v24550_v30  ;;  %v21828_v15 = vld [vmem:[#allocation2 + $0x450] sm:$0xff]  ;;  %v1697_v46 = vrot.slane %v1669_v21, %v19307_v58  ;;  %v21843_v30 = vld [vmem:[#allocation5 + $0x13e8] sm:$0xff]  ;;  %v1556_v25 = vcombine.low %v1539_v63, %v1553_v19  ;;  %v24556_v55 = vcombine.low %v21508_v43, %v21510_v54  ;;  %v21859_v45 = vrot.slane %v660_v31, %v19307_v58  ;;  %v21874_v54 = vld [vmem:[#allocation5 + $0x1400] sm:$0xff] }
 0x1ae   :  { %24551 = vst [vmem:[#allocation99_spill] sm:$0xff] %v21828_v15  ;;  %v21830_v27 = vld [vmem:[#allocation2 + $0x470] sm:$0xff]  ;;  %v21862_v12 = vrot.slane %v802_v9, %v19307_v58  ;;  %v1811_v37 = vcombine.high %v21824_v50, %v21826_v23  ;;  %v24557_v63 = vcombine.low %v21526_v20, %v21528_v3  ;;  %v24558_v43 = vcombine.high %v21543_v13, %v21545_v38 }
 0x1af   :  { %v21850_v24 = vld [vmem:[#allocation2 + $0x490] sm:$0xff]  ;;  %v1701_v8 = vcombine.high %v1683_v42, %v1697_v46  ;;  %v1700_v41 = vcombine.low %v1683_v42, %v1697_v46  ;;  %9770 = vmatpush1.bf16.msra.mxu0 %v24556_v55  ;;  %v1813_v32 = vcombine.high %v21828_v15, %v21830_v27  ;;  %v24563_v3 = vcombine.high %v21568_v57, %v21570_v59  ;;  %v21892_v46 = vld [vmem:[#allocation5 + $0x1420] sm:$0xff] }
 0x1b0   :  { %24554 = vst [vmem:[#allocation100_spill] sm:$0xff] %v21850_v24  ;;  %v21852_v21 = vld [vmem:[#allocation2 + $0x4b0] sm:$0xff]  ;;  %10674 = vmatpush1.bf16.msra.mxu1 %v24557_v63  ;;  %9771 = vmatprep.subr.bf16.mxu0 %v24558_v43  ;;  %v21890_v20 = vrot.slane %v804_v2, %v19307_v58  ;;  %v1827_v63 = vrot.slane %v1811_v37, %v19307_v58 }
 0x1b1   :  { %24555 = vst [vmem:[#allocation101_spill] sm:$0xff] %v21852_v21  ;;  %v21876_v55 = vld [vmem:[#allocation2 + $0x4d0] sm:$0xff]  ;;  %v21880_v9 = vpack.c.bf16 %v1701_v8, %v1557_v10  ;;  %v21882_v19 = vpack.c.bf16 %v1700_v41, %v1556_v25  ;;  %v1955_v42 = vcombine.high %v21850_v24, %v21852_v21  ;;  %10675 = vmatprep.subr.bf16.mxu1 %v24563_v3  ;;  %v24564_v8 = vld [vmem:[#allocation64_spill] sm:$0xff] }
 0x1b2   :  { %24559 = vst [vmem:[#allocation102_spill] sm:$0xff] %v21876_v55  ;;  %v21878_v31 = vld [vmem:[#allocation2 + $0x4f0] sm:$0xff]  ;;  %v1841_v43 = vrot.slane %v1813_v32, %v19307_v58  ;;  %9721 = vmatmul.mubr.bf16.gmra.mrb[20].mxu0 %v24564_v8  ;;  %v21905_v3 = vld [vmem:[#allocation5 + $0x1408] sm:$0xff]  ;;  %10625 = vmatmul.mubr.bf16.gmra.mrb[20].mxu1 %v24564_v8  ;;  %v24565_v32 = vcombine.low %v21543_v13, %v21545_v38 }
 0x1b3   :  { %24560 = vst [vmem:[#allocation103_spill] sm:$0xff] %v21878_v31  ;;  %24561 = vst [vmem:[#allocation104_spill] sm:$0xff] %v21880_v9  ;;  %v1957_v25 = vcombine.high %v21876_v55, %v21878_v31  ;;  %v1971_v37 = vrot.slane %v1955_v42, %v19307_v58  ;;  %v21916_v41 = vld [vmem:[#allocation2 + $0x530] sm:$0xff]  ;;  %v24570_v42 = vcombine.low %v21568_v57, %v21570_v59  ;;  %9730 = vmatprep.mubr.bf16.mxu0 %v21276_v36 }
 0x1b4   :  { %24562 = vst [vmem:[#allocation105_spill] sm:$0xff] %v21882_v19  ;;  %9772 = vmatpush1.bf16.msra.mxu0 %v24565_v32  ;;  %v21914_v19 = vld [vmem:[#allocation2 + $0x510] sm:$0xff]  ;;  %24567 = vst [vmem:[#allocation107_spill] sm:$0xff] %v21916_v41  ;;  %v1845_v2 = vcombine.high %v1827_v63, %v1841_v43  ;;  %v1844_v31 = vcombine.low %v1827_v63, %v1841_v43  ;;  %v24571_v13 = vcombine.high %v21578_v39, %v21580_v11 }
 0x1b5   :  { %24566 = vst [vmem:[#allocation106_spill] sm:$0xff] %v21914_v19  ;;  %v21918_v10 = vld [vmem:[#allocation2 + $0x550] sm:$0xff]  ;;  %v1985_v55 = vrot.slane %v1957_v25, %v19307_v58  ;;  %10676 = vmatpush1.bf16.msra.mxu1 %v24570_v42  ;;  %v691_v38 = vcombine.high %v21846_v62, %v21859_v45  ;;  %v24575_v57 = vcombine.high %v21593_v60, %v21595_v4 }
 0x1b6   :  { %24568 = vst [vmem:[#allocation108_spill] sm:$0xff] %v21918_v10  ;;  %v21920_v9 = vld [vmem:[#allocation2 + $0x570] sm:$0xff]  ;;  %9773 = vmatprep.subr.bf16.mxu0 %v24571_v13  ;;  %v835_v59 = vcombine.high %v21862_v12, %v21890_v20  ;;  %10634 = vmatprep.mubr.bf16.mxu1 %v21276_v36  ;;  %v2099_v32 = vcombine.high %v21914_v19, %v21916_v41 }
 0x1b7   :  { %24569 = vst [vmem:[#allocation109_spill] sm:$0xff] %v21920_v9  ;;  %v21935_v24 = vld [vmem:[#allocation2 + $0x590] sm:$0xff]  ;;  %10677 = vmatprep.subr.bf16.mxu1 %v24575_v57  ;;  %v1989_v42 = vcombine.high %v1971_v37, %v1985_v55  ;;  %v1988_v13 = vcombine.low %v1971_v37, %v1985_v55  ;;  %v2101_v8 = vcombine.high %v21918_v10, %v21920_v9  ;;  %v24586_v55 = vld [vmem:[#allocation66_spill] sm:$0xff]  ;;  %v24592_v10 = vld [vmem:[#allocation84_spill] sm:$0xff] }
 0x1b8   :  { %24572 = vst [vmem:[#allocation110_spill] sm:$0xff] %v21935_v24  ;;  %v21937_v63 = vld [vmem:[#allocation2 + $0x5b0] sm:$0xff]  ;;  %v24577_v15 = vcombine.low %v21578_v39, %v21580_v11  ;;  %v2115_v39 = vrot.slane %v2099_v32, %v19307_v58 }
 0x1b9   :  { %24573 = vst [vmem:[#allocation111_spill] sm:$0xff] %v21937_v63  ;;  %v21939_v43 = vld [vmem:[#allocation2 + $0x5d0] sm:$0xff]  ;;  %v2243_v57 = vcombine.high %v21935_v24, %v21937_v63  ;;  %v21965_v36 = vpack.c.bf16 %v1989_v42, %v1845_v2  ;;  %v21967_v19 = vpack.c.bf16 %v1988_v13, %v1844_v31  ;;  %v24580_v24 = vcombine.low %v21593_v60, %v21595_v4  ;;  %v24583_v4 = vld [vmem:[#allocation79_spill] sm:$0xff]  ;;  %v24585_v42 = vld [vmem:[#allocation80_spill] sm:$0xff] }
 0x1ba   :  { %24574 = vst [vmem:[#allocation112_spill] sm:$0xff] %v21939_v43  ;;  %v21947_v25 = vld [vmem:[#allocation2 + $0x5f0] sm:$0xff]  ;;  %9774 = vmatpush1.bf16.msra.mxu0 %v24577_v15  ;;  %v2129_v11 = vrot.slane %v2101_v8, %v19307_v58  ;;  %v24582_v2 = vcombine.high %v21621_v34, %v21623_v5  ;;  %v946_v60 = vcombine.low %v24583_v4, %v21584_v44  ;;  %v24588_v4 = vld [vmem:[#allocation83_spill] sm:$0xff] }
 0x1bb   :  { %24576 = vst [vmem:[#allocation113_spill] sm:$0xff] %v21947_v25  ;;  %v2245_v21 = vcombine.high %v21939_v43, %v21947_v25  ;;  %24578 = vst [vmem:[#allocation114_spill] sm:$0xff] %v21965_v36  ;;  %10678 = vmatpush1.bf16.msra.mxu1 %v24580_v24  ;;  %v24581_v43 = vcombine.high %v21607_v22, %v21609_v26  ;;  %v2259_v15 = vrot.slane %v2243_v57, %v19307_v58  ;;  %v24584_v24 = vld [vmem:[#allocation81_spill] sm:$0xff] }
 0x1bc   :  { %24579 = vst [vmem:[#allocation115_spill] sm:$0xff] %v21967_v19  ;;  %10679 = vmatprep.subr.bf16.mxu1 %v24582_v2  ;;  %v948_v13 = vcombine.low %v24585_v42, %v24584_v24  ;;  %v21989_v32 = vld [vmem:[#allocation2 + $0x630] sm:$0xff]  ;;  %9731 = vmatmul.mubr.bf16.gmra.mrb[24].mxu0 %v24586_v55  ;;  %v22001_v44 = vpack.c.bf16 %v835_v59, %v691_v38  ;;  %v24589_v24 = vld [vmem:[#allocation82_spill] sm:$0xff] }
 0x1bd   :  { %9775 = vmatprep.subr.bf16.mxu0 %v24581_v43  ;;  %v21987_v43 = vld [vmem:[#allocation2 + $0x610] sm:$0xff]  ;;  %v2273_v31 = vrot.slane %v2245_v21, %v19307_v58  ;;  %v1090_v42 = vcombine.low %v24589_v24, %v24588_v4  ;;  %v2133_v19 = vcombine.high %v2115_v39, %v2129_v11  ;;  %v2132_v36 = vcombine.low %v2115_v39, %v2129_v11 }
 0x1be   :  { %v21991_v8 = vld [vmem:[#allocation2 + $0x650] sm:$0xff]  ;;  %24587 = vst [vmem:[#allocation79_spill] sm:$0xff] %v22001_v44  ;;  %10635 = vmatmul.mubr.bf16.gmra.mrb[24].mxu1 %v24586_v55  ;;  %v24590_v25 = vcombine.low %v21607_v22, %v21609_v26  ;;  %v24593_v38 = vcombine.low %v21621_v34, %v21623_v5  ;;  %v24594_v59 = vcombine.high %v21694_v17, %v21696_v52  ;;  %v24596_v5 = vld [vmem:[#allocation68_spill] sm:$0xff] }
 0x1bf   :  { %v21993_v57 = vld [vmem:[#allocation2 + $0x670] sm:$0xff]  ;;  %v2277_v41 = vcombine.high %v2259_v15, %v2273_v31  ;;  %v2276_v21 = vcombine.low %v2259_v15, %v2273_v31  ;;  %v2387_v26 = vcombine.high %v21987_v43, %v21989_v32  ;;  %v24595_v34 = vcombine.high %v21698_v6, %v21700_v18  ;;  %9740 = vmatprep.mubr.bf16.mxu0 %v24596_v5 }
 0x1c0   :  { %v21995_v37 = vld [vmem:[#allocation2 + $0x690] sm:$0xff]  ;;  %9776 = vmatpush1.bf16.msra.mxu0 %v24590_v25  ;;  %10680 = vmatpush1.bf16.msra.mxu1 %v24593_v38  ;;  %v2389_v22 = vcombine.high %v21991_v8, %v21993_v57  ;;  %v22039_v31 = vrot.slane %v946_v60, %v19307_v58 }
 0x1c1   :  { %v21997_v2 = vld [vmem:[#allocation2 + $0x6b0] sm:$0xff]  ;;  %9777 = vmatprep.subr.bf16.mxu0 %v24594_v59  ;;  %10681 = vmatprep.subr.bf16.mxu1 %v24595_v34  ;;  %v22033_v25 = vpack.c.bf16 %v2276_v21, %v2132_v36  ;;  %v2403_v4 = vrot.slane %v2387_v26, %v19307_v58  ;;  %v22048_v36 = vrot.slane %v948_v13, %v19307_v58  ;;  %v24604_v34 = vld [vmem:[#allocation88_spill] sm:$0xff] }
 0x1c2   :  { %v24591_v63 = vld [vmem:[#allocation85_spill] sm:$0xff]  ;;  %10644 = vmatprep.mubr.bf16.mxu1 %v24596_v5  ;;  %v2417_v24 = vrot.slane %v2389_v22, %v19307_v58  ;;  %v24600_v59 = vcombine.low %v21698_v6, %v21700_v18  ;;  %v24601_v26 = vcombine.high %v21725_v7, %v21727_v47  ;;  %v1236_v18 = vcombine.low %v21675_v35, %v21677_v49  ;;  %v24607_v5 = vld [vmem:[#allocation39_spill] sm:$0xff] }
 0x1c3   :  { %v1092_v9 = vcombine.low %v24592_v10, %v24591_v63  ;;  %v22017_v39 = vld [vmem:[#allocation2 + $0x6d0] sm:$0xff]  ;;  %v2531_v10 = vcombine.high %v21995_v37, %v21997_v2  ;;  %v22031_v63 = vpack.c.bf16 %v2277_v41, %v2133_v19  ;;  %24598 = vst [vmem:[#allocation80_spill] sm:$0xff] %v22033_v25  ;;  %v24599_v19 = vcombine.low %v21694_v17, %v21696_v52 }
 0x1c4   :  { %v22019_v11 = vld [vmem:[#allocation2 + $0x6f0] sm:$0xff]  ;;  %v22051_v41 = vrot.slane %v1090_v42, %v19307_v58  ;;  %10682 = vmatpush1.bf16.msra.mxu1 %v24600_v59  ;;  %v1234_v52 = vcombine.low %v21662_v28, %v21664_v48  ;;  %v2420_v22 = vcombine.low %v2403_v4, %v2417_v24  ;;  %9741 = vmatmul.mubr.bf16.gmra.mrb[28].mxu0 %v24607_v5 }
 0x1c5   :  { %24597 = vst [vmem:[#allocation81_spill] sm:$0xff] %v22031_v63  ;;  %v2533_v15 = vcombine.high %v22017_v39, %v22019_v11  ;;  %v2547_v38 = vrot.slane %v2531_v10, %v19307_v58  ;;  %9778 = vmatpush1.bf16.msra.mxu0 %v24599_v19  ;;  %v22054_v21 = vrot.slane %v1092_v9, %v19307_v58  ;;  %v22065_v17 = vld [vmem:[#allocation2 + $0x710] sm:$0xff] }
 0x1c6   :  { %9779 = vmatprep.subr.bf16.mxu0 %v24601_v26  ;;  %v22067_v13 = vld [vmem:[#allocation2 + $0x730] sm:$0xff]  ;;  %v2421_v9 = vcombine.high %v2403_v4, %v2417_v24  ;;  %v24602_v10 = vcombine.high %v21729_v0, %v21740_v16  ;;  %v24608_v4 = vld [vmem:[#allocation91_spill] sm:$0xff]  ;;  %v24609_v24 = vld [vmem:[#allocation90_spill] sm:$0xff]  ;;  %10645 = vmatmul.mubr.bf16.gmra.mrb[28].mxu1 %v24607_v5  ;;  %v24614_v63 = vcombine.high %v21777_v14, %v21779_v1 }
 0x1c7   :  { %v2561_v60 = vrot.slane %v2533_v15, %v19307_v58  ;;  %v22069_v42 = vld [vmem:[#allocation2 + $0x750] sm:$0xff]  ;;  %v1380_v55 = vcombine.low %v24609_v24, %v24608_v4  ;;  %v2675_v49 = vcombine.high %v22065_v17, %v22067_v13  ;;  %v24613_v24 = vcombine.low %v21729_v0, %v21740_v16  ;;  %v3922_v5 = vld [vmem:[#allocation5 + $0x1440] sm:$0xff]  ;;  %9783 = vmatprep.mubr.bf16.mxu0 %v22001_v44  ;;  %v3927_v0 = vld [vmem:[#allocation5 + $0x1468] sm:$0xff] }
 0x1c8   :  { %10683 = vmatprep.subr.bf16.mxu1 %v24602_v10  ;;  %v24603_v6 = vld [vmem:[#allocation89_spill] sm:$0xff]  ;;  %v979_v16 = vcombine.high %v22039_v31, %v22048_v36  ;;  %10687 = vmatprep.mubr.bf16.mxu1 %v22001_v44 }
 0x1c9   :  { %v1378_v15 = vcombine.low %v24604_v34, %v24603_v6  ;;  %v22078_v19 = vld [vmem:[#allocation2 + $0x770] sm:$0xff]  ;;  %v2565_v59 = vcombine.high %v2547_v38, %v2561_v60  ;;  %v2564_v26 = vcombine.low %v2547_v38, %v2561_v60  ;;  %v24610_v38 = vcombine.low %v21725_v7, %v21727_v47  ;;  %10684 = vmatpush1.bf16.msra.mxu1 %v24613_v24  ;;  %v22138_v24 = vld [vmem:[#allocation5 + $0x14a0] sm:$0xff] }
 0x1ca   :  { %v22080_v48 = vld [vmem:[#allocation2 + $0x790] sm:$0xff]  ;;  %v2677_v35 = vcombine.high %v22069_v42, %v22078_v19  ;;  %v2691_v7 = vrot.slane %v2675_v49, %v19307_v58  ;;  %v24617_v49 = vcombine.low %v21862_v12, %v21890_v20 }
 0x1cb   :  { %24605 = vst [vmem:[#allocation83_spill] sm:$0xff] %v22080_v48  ;;  %v22082_v28 = vld [vmem:[#allocation2 + $0x7b0] sm:$0xff]  ;;  %9780 = vmatpush1.bf16.msra.mxu0 %v24610_v38  ;;  %v22101_v60 = vpack.c.bf16 %v2565_v59, %v2421_v9  ;;  %v22103_v34 = vpack.c.bf16 %v2564_v26, %v2420_v22  ;;  %v24615_v22 = vcombine.high %v21841_v51, %v21843_v30  ;;  %v22136_v38 = vld [vmem:[#allocation5 + $0x1480] sm:$0xff] }
 0x1cc   :  { %24606 = vst [vmem:[#allocation82_spill] sm:$0xff] %v22082_v28  ;;  %v22087_v10 = vld [vmem:[#allocation2 + $0x7d0] sm:$0xff]  ;;  %v2819_v6 = vcombine.high %v22080_v48, %v22082_v28  ;;  %9781 = vmatprep.subr.bf16.mxu0 %v24614_v63  ;;  %v3926_v48 = vld [vmem:[#allocation5 + $0x1460] sm:$0xff]  ;;  %v3923_v28 = vld [vmem:[#allocation5 + $0x1448] sm:$0xff]  ;;  %v2705_v47 = vrot.slane %v2677_v35, %v19307_v58  ;;  %v1123_v63 = vcombine.high %v22051_v41, %v22054_v21 }
 0x1cd   :  { %v22089_v25 = vld [vmem:[#allocation2 + $0x7f0] sm:$0xff]  ;;  %24611 = vst [vmem:[#allocation85_spill] sm:$0xff] %v22101_v60  ;;  %24612 = vst [vmem:[#allocation84_spill] sm:$0xff] %v22103_v34  ;;  %10685 = vmatprep.subr.bf16.mxu1 %v24615_v22  ;;  %v24616_v26 = vcombine.low %v21846_v62, %v21859_v45  ;;  %v22140_v22 = vld [vmem:[#allocation5 + $0x1488] sm:$0xff]  ;;  %v24619_v62 = vcombine.low %v21777_v14, %v21779_v1  ;;  %v16777_v12 = vcombine.high %v3922_v5, %v3926_v48 }
 0x1ce   :  { %v2821_v4 = vcombine.high %v22087_v10, %v22089_v25  ;;  %v2835_v9 = vrot.slane %v2819_v6, %v19307_v58  ;;  %v16770_v6 = vcombine.low %v21905_v3, %v21907_v40  ;;  %v2709_v44 = vcombine.high %v2691_v7, %v2705_v47 }
 0x1cf   :  { %v22132_v35 = vpack.c.bf16 %v24617_v49, %v24616_v26  ;;  %v2708_v34 = vcombine.low %v2691_v7, %v2705_v47  ;;  %9782 = vmatpush1.bf16.msra.mxu0 %v24619_v62  ;;  %v22148_v45 = vrot.slane %v1234_v52, %v19307_v58  ;;  %v24620_v49 = vcombine.low %v21841_v51, %v21843_v30  ;;  %v3950_v62 = vld [vmem:[#allocation5 + $0x1520] sm:$0xff] }
 0x1d0   :  { %v2849_v59 = vrot.slane %v2821_v4, %v19307_v58  ;;  %v22142_v4 = vld [vmem:[#allocation5 + $0x14a8] sm:$0xff]  ;;  %v24621_v60 = vcombine.high %v21874_v54, %v21892_v46  ;;  %v22157_v7 = vrot.slane %v1236_v18, %v19307_v58  ;;  %v22160_v14 = vrot.slane %v1378_v15, %v19307_v58 }
 0x1d1   :  { %24618 = vst [vmem:[#allocation89_spill] sm:$0xff] %v22132_v35  ;;  %10686 = vmatpush1.bf16.msra.mxu1 %v24620_v49  ;;  %v22163_v1 = vrot.slane %v1380_v55, %v19307_v58  ;;  %v24622_v52 = vcombine.high %v21905_v3, %v21907_v40  ;;  %v16779_v47 = vcombine.high %v3923_v28, %v3927_v0  ;;  %v3947_v49 = vld [vmem:[#allocation5 + $0x1508] sm:$0xff] }
 0x1d2   :  { %v2853_v20 = vcombine.high %v2835_v9, %v2849_v59  ;;  %v2852_v26 = vcombine.low %v2835_v9, %v2849_v59  ;;  %9864 = vmatprep.subr.bf16.mxu0 %v24621_v60  ;;  %v22168_v51 = vpack.c.bf16 %v1123_v63, %v979_v16  ;;  %9784 = vmatmul.mubr.bf16.vlgmr.msra.gmra.mrb[0].mxu0 %v22132_v35  ;;  %v24628_v16 = vld [vmem:[#allocation95_spill] sm:$0xff] }
 0x1d3   :  { %10768 = vmatprep.subr.bf16.mxu1 %v24622_v52  ;;  %v16776_v18 = vcombine.low %v3922_v5, %v3926_v48  ;;  %v978_v15 = vcombine.low %v22039_v31, %v22048_v36  ;;  %v1122_v55 = vcombine.low %v22051_v41, %v22054_v21  ;;  %v24625_v40 = vcombine.low %v21874_v54, %v21892_v46  ;;  %v3938_v5 = vld [vmem:[#allocation5 + $0x14c0] sm:$0xff]  ;;  %v3939_v36 = vld [vmem:[#allocation5 + $0x14c8] sm:$0xff] }
 0x1d4   :  { %24623 = vst [vmem:[#allocation88_spill] sm:$0xff] %v22168_v51  ;;  %v22170_v30 = vpack.c.bf16 %v2853_v20, %v2709_v44  ;;  %v22172_v9 = vpack.c.bf16 %v2852_v26, %v2708_v34  ;;  %10688 = vmatmul.mubr.bf16.vlgmr.msra.gmra.mrb[0].mxu1 %v22132_v35  ;;  %v16778_v3 = vcombine.low %v3923_v28, %v3927_v0  ;;  %v3942_v31 = vld [vmem:[#allocation5 + $0x14e0] sm:$0xff]  ;;  %v3943_v46 = vld [vmem:[#allocation5 + $0x14e8] sm:$0xff]  ;;  %v24626_v28 = vld [vmem:[#allocation94_spill] sm:$0xff] }
 0x1d5   :  { %9865 = vmatpush1.bf16.msra.mxu0 %v24625_v40  ;;  %v16785_v44 = vcombine.high %v22136_v38, %v22138_v24  ;;  %v16787_v60 = vcombine.high %v22140_v22, %v22142_v4  ;;  %10769 = vmatpush1.bf16.msra.mxu1 %v16770_v6  ;;  %v1267_v41 = vcombine.high %v22148_v45, %v22157_v7  ;;  %v24627_v0 = vld [vmem:[#allocation96_spill] sm:$0xff]  ;;  %v3958_v40 = vld [vmem:[#allocation5 + $0x1560] sm:$0xff] }
 0x1d6   :  { %24624 = vst [vmem:[#allocation91_spill] sm:$0xff] %v22170_v30  ;;  %9866 = vmatprep.subr.bf16.mxu0 %v16777_v12  ;;  %v1411_v21 = vcombine.high %v22160_v14, %v22163_v1  ;;  %v1522_v54 = vcombine.low %v21754_v53, %v21756_v33  ;;  %10770 = vmatprep.subr.bf16.mxu1 %v16779_v47  ;;  %v3951_v52 = vld [vmem:[#allocation5 + $0x1528] sm:$0xff] }
 0x1d7   :  { %9793 = vmatprep.mubr.bf16.mxu0 %v22168_v51  ;;  %v1524_v48 = vcombine.low %v21761_v56, %v21763_v61  ;;  %v1666_v34 = vcombine.low %v24626_v28, %v21783_v29  ;;  %v1668_v63 = vcombine.low %v24628_v16, %v24627_v0  ;;  %10697 = vmatprep.mubr.bf16.mxu1 %v22168_v51  ;;  %v3946_v29 = vld [vmem:[#allocation5 + $0x1500] sm:$0xff]  ;;  %v3963_v0 = vld [vmem:[#allocation5 + $0x1588] sm:$0xff] }
 0x1d8   :  { %v22201_v59 = vpack.c.bf16 %v1122_v55, %v978_v15  ;;  %v16784_v53 = vcombine.low %v22136_v38, %v22138_v24  ;;  %v16786_v33 = vcombine.low %v22140_v22, %v22142_v4  ;;  %v16793_v56 = vcombine.high %v3938_v5, %v3942_v31  ;;  %v3954_v55 = vld [vmem:[#allocation5 + $0x1540] sm:$0xff]  ;;  %v3967_v16 = vld [vmem:[#allocation5 + $0x15a8] sm:$0xff] }
 0x1d9   :  { %9867 = vmatpush1.bf16.msra.mxu0 %v16776_v18  ;;  %10771 = vmatpush1.bf16.msra.mxu1 %v16778_v3  ;;  %v16795_v61 = vcombine.high %v3939_v36, %v3943_v46  ;;  %v22207_v6 = vpack.c.bf16 %v1411_v21, %v1267_v41  ;;  %v22210_v12 = vrot.slane %v1522_v54, %v19307_v58  ;;  %v24631_v3 = vld [vmem:[#allocation99_spill] sm:$0xff]  ;;  %v3959_v41 = vld [vmem:[#allocation5 + $0x1568] sm:$0xff] }
 0x1da   :  { %24629 = vst [vmem:[#allocation90_spill] sm:$0xff] %v22201_v59  ;;  %9868 = vmatprep.subr.bf16.mxu0 %v16785_v44  ;;  %10772 = vmatprep.subr.bf16.mxu1 %v16787_v60  ;;  %v22213_v20 = vrot.slane %v1524_v48, %v19307_v58  ;;  %v22216_v38 = vrot.slane %v1666_v34, %v19307_v58  ;;  %v24633_v44 = vld [vmem:[#allocation100_spill] sm:$0xff]  ;;  %v24635_v60 = vld [vmem:[#allocation102_spill] sm:$0xff]  ;;  %v3962_v48 = vld [vmem:[#allocation5 + $0x1580] sm:$0xff] }
 0x1db   :  { %24630 = vst [vmem:[#allocation94_spill] sm:$0xff] %v22207_v6  ;;  %v22219_v24 = vrot.slane %v1668_v63, %v19307_v58  ;;  %9794 = vmatmul.mubr.bf16.gmra.mrb[4].mxu0 %v22201_v59  ;;  %v16792_v22 = vcombine.low %v3938_v5, %v3942_v31  ;;  %v1266_v4 = vcombine.low %v22148_v45, %v22157_v7  ;;  %v24632_v7 = vld [vmem:[#allocation101_spill] sm:$0xff]  ;;  %v3966_v34 = vld [vmem:[#allocation5 + $0x15a0] sm:$0xff] }
 0x1dc   :  { %v1410_v26 = vcombine.low %v22160_v14, %v22163_v1  ;;  %10698 = vmatmul.mubr.bf16.gmra.mrb[4].mxu1 %v22201_v59  ;;  %v16794_v47 = vcombine.low %v3939_v36, %v3943_v46  ;;  %v16801_v18 = vcombine.high %v3946_v29, %v3950_v62  ;;  %v1810_v15 = vcombine.low %v21824_v50, %v21826_v23  ;;  %v24634_v1 = vld [vmem:[#allocation103_spill] sm:$0xff] }
 0x1dd   :  { %9869 = vmatpush1.bf16.msra.mxu0 %v16784_v53  ;;  %10773 = vmatpush1.bf16.msra.mxu1 %v16786_v33  ;;  %v1812_v45 = vcombine.low %v24631_v3, %v21830_v27  ;;  %v1954_v14 = vcombine.low %v24633_v44, %v24632_v7  ;;  %v1956_v5 = vcombine.low %v24635_v60, %v24634_v1  ;;  %v3955_v27 = vld [vmem:[#allocation5 + $0x1548] sm:$0xff]  ;;  %v24642_v7 = vld [vmem:[#allocation111_spill] sm:$0xff]  ;;  %v24643_v44 = vld [vmem:[#allocation110_spill] sm:$0xff] }
 0x1de   :  { %9870 = vmatprep.subr.bf16.mxu0 %v16793_v56  ;;  %10774 = vmatprep.subr.bf16.mxu1 %v16795_v61  ;;  %v16803_v31 = vcombine.high %v3947_v49, %v3951_v52  ;;  %v1555_v50 = vcombine.high %v22210_v12, %v22213_v20  ;;  %v1699_v23 = vcombine.high %v22216_v38, %v22219_v24  ;;  %v24641_v3 = vld [vmem:[#allocation108_spill] sm:$0xff]  ;;  %v24644_v1 = vld [vmem:[#allocation113_spill] sm:$0xff]  ;;  %v22595_v59 = vld [vmem:[#allocation5 + $0x1a80] sm:$0xff] }
 0x1df   :  { %9803 = vmatprep.mubr.bf16.mxu0 %v22207_v6  ;;  %10707 = vmatprep.mubr.bf16.mxu1 %v22207_v6  ;;  %v22241_v36 = vpack.c.bf16 %v1410_v26, %v1266_v4  ;;  %v16800_v21 = vcombine.low %v3946_v29, %v3950_v62  ;;  %v16802_v54 = vcombine.low %v3947_v49, %v3951_v52  ;;  %v3970_v52 = vld [vmem:[#allocation5 + $0x15c0] sm:$0xff]  ;;  %v24645_v60 = vld [vmem:[#allocation112_spill] sm:$0xff] }
 0x1e0   :  { %v16809_v46 = vcombine.high %v3954_v55, %v3958_v40  ;;  %v22244_v28 = vrot.slane %v1810_v15, %v19307_v58  ;;  %v22247_v63 = vrot.slane %v1812_v45, %v19307_v58  ;;  %v22250_v53 = vrot.slane %v1954_v14, %v19307_v58  ;;  %v24638_v15 = vld [vmem:[#allocation107_spill] sm:$0xff] }
 0x1e1   :  { %24636 = vst [vmem:[#allocation96_spill] sm:$0xff] %v22241_v36  ;;  %9871 = vmatpush1.bf16.msra.mxu0 %v16792_v22  ;;  %10775 = vmatpush1.bf16.msra.mxu1 %v16794_v47  ;;  %v22253_v33 = vrot.slane %v1956_v5, %v19307_v58  ;;  %v16811_v56 = vcombine.high %v3955_v27, %v3959_v41  ;;  %v22577_v6 = vld [vmem:[#allocation5 + $0x1a60] sm:$0xff] }
 0x1e2   :  { %9872 = vmatprep.subr.bf16.mxu0 %v16801_v18  ;;  %10776 = vmatprep.subr.bf16.mxu1 %v16803_v31  ;;  %v22255_v61 = vpack.c.bf16 %v1699_v23, %v1555_v50  ;;  %v16808_v29 = vcombine.low %v3954_v55, %v3958_v40  ;;  %v1554_v62 = vcombine.low %v22210_v12, %v22213_v20  ;;  %v24639_v12 = vld [vmem:[#allocation106_spill] sm:$0xff]  ;;  %v3975_v55 = vld [vmem:[#allocation5 + $0x15e8] sm:$0xff]  ;;  %v24640_v40 = vld [vmem:[#allocation109_spill] sm:$0xff] }
 0x1e3   :  { %9804 = vmatmul.mubr.bf16.gmra.mrb[8].mxu0 %v22241_v36  ;;  %v1698_v22 = vcombine.low %v22216_v38, %v22219_v24  ;;  %v16810_v4 = vcombine.low %v3955_v27, %v3959_v41  ;;  %v16817_v26 = vcombine.high %v3962_v48, %v3966_v34  ;;  %v16819_v49 = vcombine.high %v3963_v0, %v3967_v16  ;;  %v3974_v38 = vld [vmem:[#allocation5 + $0x15e0] sm:$0xff]  ;;  %v3971_v24 = vld [vmem:[#allocation5 + $0x15c8] sm:$0xff] }
 0x1e4   :  { %24637 = vst [vmem:[#allocation95_spill] sm:$0xff] %v22255_v61  ;;  %10708 = vmatmul.mubr.bf16.gmra.mrb[8].mxu1 %v22241_v36  ;;  %v1843_v47 = vcombine.high %v22244_v28, %v22247_v63  ;;  %v1987_v18 = vcombine.high %v22250_v53, %v22253_v33  ;;  %v2098_v20 = vcombine.low %v24639_v12, %v24638_v15  ;;  %v22575_v36 = vld [vmem:[#allocation5 + $0x1a40] sm:$0xff] }
 0x1e5   :  { %9873 = vmatpush1.bf16.msra.mxu0 %v16800_v21  ;;  %10777 = vmatpush1.bf16.msra.mxu1 %v16802_v54  ;;  %v2100_v45 = vcombine.low %v24641_v3, %v24640_v40  ;;  %v2242_v14 = vcombine.low %v24643_v44, %v24642_v7  ;;  %v2244_v5 = vcombine.low %v24645_v60, %v24644_v1  ;;  %v3978_v54 = vld [vmem:[#allocation5 + $0x1600] sm:$0xff] }
 0x1e6   :  { %9874 = vmatprep.subr.bf16.mxu0 %v16809_v46  ;;  %10778 = vmatprep.subr.bf16.mxu1 %v16811_v56  ;;  %v22277_v31 = vpack.c.bf16 %v1698_v22, %v1554_v62  ;;  %v16816_v50 = vcombine.low %v3962_v48, %v3966_v34  ;;  %v16818_v23 = vcombine.low %v3963_v0, %v3967_v16  ;;  %v3982_v46 = vld [vmem:[#allocation5 + $0x1620] sm:$0xff]  ;;  %v3983_v22 = vld [vmem:[#allocation5 + $0x1628] sm:$0xff] }
 0x1e7   :  { %9813 = vmatprep.mubr.bf16.mxu0 %v22255_v61  ;;  %10717 = vmatprep.mubr.bf16.mxu1 %v22255_v61  ;;  %v16825_v27 = vcombine.high %v3970_v52, %v3974_v38  ;;  %v16827_v41 = vcombine.high %v3971_v24, %v3975_v55  ;;  %v22279_v21 = vpack.c.bf16 %v1987_v18, %v1843_v47  ;;  %v3986_v47 = vld [vmem:[#allocation5 + $0x1640] sm:$0xff] }
 0x1e8   :  { %24646 = vst [vmem:[#allocation99_spill] sm:$0xff] %v22277_v31  ;;  %v22282_v56 = vrot.slane %v2098_v20, %v19307_v58  ;;  %v22285_v15 = vrot.slane %v2100_v45, %v19307_v58  ;;  %v22288_v62 = vrot.slane %v2242_v14, %v19307_v58  ;;  %v22291_v48 = vrot.slane %v2244_v5, %v19307_v58  ;;  %v3998_v20 = vld [vmem:[#allocation5 + $0x16a0] sm:$0xff] }
 0x1e9   :  { %9875 = vmatpush1.bf16.msra.mxu0 %v16808_v29  ;;  %10779 = vmatpush1.bf16.msra.mxu1 %v16810_v4  ;;  %24647 = vst [vmem:[#allocation101_spill] sm:$0xff] %v22279_v21  ;;  %v16824_v34 = vcombine.low %v3970_v52, %v3974_v38  ;;  %v1842_v0 = vcombine.low %v22244_v28, %v22247_v63  ;;  %v3979_v29 = vld [vmem:[#allocation5 + $0x1608] sm:$0xff]  ;;  %v3990_v52 = vld [vmem:[#allocation5 + $0x1660] sm:$0xff] }
 0x1ea   :  { %9876 = vmatprep.subr.bf16.mxu0 %v16817_v26  ;;  %10780 = vmatprep.subr.bf16.mxu1 %v16819_v49  ;;  %v1986_v16 = vcombine.low %v22250_v53, %v22253_v33  ;;  %v16826_v4 = vcombine.low %v3971_v24, %v3975_v55  ;;  %v16833_v26 = vcombine.high %v3978_v54, %v3982_v46  ;;  %v3995_v38 = vld [vmem:[#allocation5 + $0x1688] sm:$0xff]  ;;  %v22597_v51 = vld [vmem:[#allocation5 + $0x1aa0] sm:$0xff] }
 0x1eb   :  { %9814 = vmatmul.mubr.bf16.gmra.mrb[12].mxu0 %v22277_v31  ;;  %v2386_v49 = vcombine.low %v21987_v43, %v21989_v32  ;;  %v2388_v28 = vcombine.low %v21991_v8, %v21993_v57  ;;  %v2530_v63 = vcombine.low %v21995_v37, %v21997_v2  ;;  %v2532_v53 = vcombine.low %v22017_v39, %v22019_v11  ;;  %v3987_v8 = vld [vmem:[#allocation5 + $0x1648] sm:$0xff]  ;;  %v3994_v11 = vld [vmem:[#allocation5 + $0x1680] sm:$0xff] }
 0x1ec   :  { %10718 = vmatmul.mubr.bf16.gmra.mrb[12].mxu1 %v22277_v31  ;;  %9823 = vmatprep.mubr.bf16.mxu0 %v22279_v21  ;;  %v16835_v33 = vcombine.high %v3979_v29, %v3983_v22  ;;  %v2131_v43 = vcombine.high %v22282_v56, %v22285_v15  ;;  %v2275_v32 = vcombine.high %v22288_v62, %v22291_v48  ;;  %v3991_v57 = vld [vmem:[#allocation5 + $0x1668] sm:$0xff]  ;;  %v22558_v31 = vld [vmem:[#allocation2 + $0x498] sm:$0xff] }
 0x1ed   :  { %9877 = vmatpush1.bf16.msra.mxu0 %v16816_v50  ;;  %10781 = vmatpush1.bf16.msra.mxu1 %v16818_v23  ;;  %v22313_v18 = vpack.c.bf16 %v1986_v16, %v1842_v0  ;;  %v16832_v37 = vcombine.low %v3978_v54, %v3982_v46  ;;  %v16834_v2 = vcombine.low %v3979_v29, %v3983_v22  ;;  %v3999_v24 = vld [vmem:[#allocation5 + $0x16a8] sm:$0xff]  ;;  %v4002_v23 = vld [vmem:[#allocation5 + $0x16c0] sm:$0xff] }
 0x1ee   :  { %9878 = vmatprep.subr.bf16.mxu0 %v16825_v27  ;;  %10782 = vmatprep.subr.bf16.mxu1 %v16827_v41  ;;  %v16841_v39 = vcombine.high %v3986_v47, %v3990_v52  ;;  %v22316_v12 = vrot.slane %v2386_v49, %v19307_v58  ;;  %v22319_v55 = vrot.slane %v2388_v28, %v19307_v58  ;;  %v4006_v46 = vld [vmem:[#allocation5 + $0x16e0] sm:$0xff] }
 0x1ef   :  { %10727 = vmatprep.mubr.bf16.mxu1 %v22279_v21  ;;  %24648 = vst [vmem:[#allocation100_spill] sm:$0xff] %v22313_v18  ;;  %v22322_v40 = vrot.slane %v2530_v63, %v19307_v58  ;;  %v22325_v3 = vrot.slane %v2532_v53, %v19307_v58  ;;  %v16843_v45 = vcombine.high %v3987_v8, %v3991_v57  ;;  %v4011_v63 = vld [vmem:[#allocation5 + $0x1708] sm:$0xff]  ;;  %24681 = vst [vmem:[#allocation126_spill] sm:$0xff] %v22558_v31 }
 0x1f0   :  { %v22327_v7 = vpack.c.bf16 %v2275_v32, %v2131_v43  ;;  %v16840_v44 = vcombine.low %v3986_v47, %v3990_v52  ;;  %v2130_v14 = vcombine.low %v22282_v56, %v22285_v15  ;;  %v2274_v1 = vcombine.low %v22288_v62, %v22291_v48  ;;  %v4003_v56 = vld [vmem:[#allocation5 + $0x16c8] sm:$0xff]  ;;  %v24650_v48 = vld [vmem:[#allocation82_spill] sm:$0xff] }
 0x1f1   :  { %9879 = vmatpush1.bf16.msra.mxu0 %v16824_v34  ;;  %10783 = vmatpush1.bf16.msra.mxu1 %v16826_v4  ;;  %v16842_v60 = vcombine.low %v3987_v8, %v3991_v57  ;;  %v16849_v5 = vcombine.high %v3994_v11, %v3998_v20  ;;  %v16851_v50 = vcombine.high %v3995_v38, %v3999_v24  ;;  %v4007_v15 = vld [vmem:[#allocation5 + $0x16e8] sm:$0xff]  ;;  %v24651_v34 = vld [vmem:[#allocation83_spill] sm:$0xff] }
 0x1f2   :  { %9880 = vmatprep.subr.bf16.mxu0 %v16833_v26  ;;  %10784 = vmatprep.subr.bf16.mxu1 %v16835_v33  ;;  %24649 = vst [vmem:[#allocation103_spill] sm:$0xff] %v22327_v7  ;;  %v2419_v27 = vcombine.high %v22316_v12, %v22319_v55  ;;  %v2563_v41 = vcombine.high %v22322_v40, %v22325_v3  ;;  %v4015_v53 = vld [vmem:[#allocation5 + $0x1728] sm:$0xff]  ;;  %v4018_v57 = vld [vmem:[#allocation5 + $0x1740] sm:$0xff] }
 0x1f3   :  { %9824 = vmatmul.mubr.bf16.gmra.mrb[16].mxu0 %v22313_v18  ;;  %v2674_v54 = vcombine.low %v22065_v17, %v22067_v13  ;;  %v2676_v62 = vcombine.low %v22069_v42, %v22078_v19  ;;  %v2818_v0 = vcombine.low %v24651_v34, %v24650_v48  ;;  %v2820_v16 = vcombine.low %v22087_v10, %v22089_v25  ;;  %v4010_v42 = vld [vmem:[#allocation5 + $0x1700] sm:$0xff] }
 0x1f4   :  { %10728 = vmatmul.mubr.bf16.gmra.mrb[16].mxu1 %v22313_v18  ;;  %9833 = vmatprep.mubr.bf16.mxu0 %v22327_v7  ;;  %v22349_v29 = vpack.c.bf16 %v2274_v1, %v2130_v14  ;;  %v16848_v17 = vcombine.low %v3994_v11, %v3998_v20  ;;  %v16850_v13 = vcombine.low %v3995_v38, %v3999_v24  ;;  %v4014_v19 = vld [vmem:[#allocation5 + $0x1720] sm:$0xff]  ;;  %v4023_v20 = vld [vmem:[#allocation5 + $0x1768] sm:$0xff] }
 0x1f5   :  { %9881 = vmatpush1.bf16.msra.mxu0 %v16832_v37  ;;  %10785 = vmatpush1.bf16.msra.mxu1 %v16834_v2  ;;  %v16857_v22 = vcombine.high %v4002_v23, %v4006_v46  ;;  %v16859_v4 = vcombine.high %v4003_v56, %v4007_v15  ;;  %v22351_v26 = vpack.c.bf16 %v2563_v41, %v2419_v27  ;;  %v4022_v37 = vld [vmem:[#allocation5 + $0x1760] sm:$0xff]  ;;  %v22539_v18 = vld [vmem:[#allocation5 + $0x1a08] sm:$0xff] }
 0x1f6   :  { %9882 = vmatprep.subr.bf16.mxu0 %v16841_v39  ;;  %10786 = vmatprep.subr.bf16.mxu1 %v16843_v45  ;;  %24652 = vst [vmem:[#allocation102_spill] sm:$0xff] %v22349_v29  ;;  %v2684_v49 = vrot.slane %v2674_v54, %v19307_v58  ;;  %v2698_v25 = vrot.slane %v2676_v62, %v19307_v58  ;;  %v4026_v45 = vld [vmem:[#allocation5 + $0x1780] sm:$0xff]  ;;  %v4039_v62 = vld [vmem:[#allocation5 + $0x17e8] sm:$0xff] }
 0x1f7   :  { %10737 = vmatprep.mubr.bf16.mxu1 %v22327_v7  ;;  %24653 = vst [vmem:[#allocation107_spill] sm:$0xff] %v22351_v26  ;;  %v2828_v10 = vrot.slane %v2818_v0, %v19307_v58  ;;  %v2842_v47 = vrot.slane %v2820_v16, %v19307_v58  ;;  %v2418_v52 = vcombine.low %v22316_v12, %v22319_v55  ;;  %v4019_v12 = vld [vmem:[#allocation5 + $0x1748] sm:$0xff]  ;;  %v4034_v54 = vld [vmem:[#allocation5 + $0x17c0] sm:$0xff] }
 0x1f8   :  { %v2562_v28 = vcombine.low %v22322_v40, %v22325_v3  ;;  %v16856_v33 = vcombine.low %v4002_v23, %v4006_v46  ;;  %v16858_v43 = vcombine.low %v4003_v56, %v4007_v15  ;;  %v16865_v32 = vcombine.high %v4010_v42, %v4014_v19  ;;  %v4038_v46 = vld [vmem:[#allocation5 + $0x17e0] sm:$0xff]  ;;  %v4035_v15 = vld [vmem:[#allocation5 + $0x17c8] sm:$0xff] }
 0x1f9   :  { %9883 = vmatpush1.bf16.msra.mxu0 %v16840_v44  ;;  %10787 = vmatpush1.bf16.msra.mxu1 %v16842_v60  ;;  %v16867_v8 = vcombine.high %v4011_v63, %v4015_v53  ;;  %v2707_v2 = vcombine.high %v2684_v49, %v2698_v25  ;;  %v2851_v39 = vcombine.high %v2828_v10, %v2842_v47  ;;  %v4030_v44 = vld [vmem:[#allocation5 + $0x17a0] sm:$0xff]  ;;  %v4027_v60 = vld [vmem:[#allocation5 + $0x1788] sm:$0xff] }
 0x1fa   :  { %9884 = vmatprep.subr.bf16.mxu0 %v16849_v5  ;;  %10788 = vmatprep.subr.bf16.mxu1 %v16851_v50  ;;  %v22365_v11 = vpack.c.bf16 %v2562_v28, %v2418_v52  ;;  %v16864_v38 = vcombine.low %v4010_v42, %v4014_v19  ;;  %v16866_v24 = vcombine.low %v4011_v63, %v4015_v53  ;;  %v4031_v5 = vld [vmem:[#allocation5 + $0x17a8] sm:$0xff]  ;;  %v4054_v52 = vld [vmem:[#allocation5 + $0x1860] sm:$0xff] }
 0x1fb   :  { %9834 = vmatmul.mubr.bf16.gmra.mrb[20].mxu0 %v22349_v29  ;;  %v16873_v55 = vcombine.high %v4018_v57, %v4022_v37  ;;  %v16875_v40 = vcombine.high %v4019_v12, %v4023_v20  ;;  %v22367_v3 = vpack.c.bf16 %v2851_v39, %v2707_v2  ;;  %v2706_v14 = vcombine.low %v2684_v49, %v2698_v25  ;;  %v24657_v25 = vld [vmem:[#allocation86_spill] sm:$0xff]  ;;  %v4051_v28 = vld [vmem:[#allocation5 + $0x1848] sm:$0xff] }
 0x1fc   :  { %10738 = vmatmul.mubr.bf16.gmra.mrb[20].mxu1 %v22349_v29  ;;  %9843 = vmatprep.mubr.bf16.mxu0 %v22351_v26  ;;  %24654 = vst [vmem:[#allocation106_spill] sm:$0xff] %v22365_v11  ;;  %v2850_v1 = vcombine.low %v2828_v10, %v2842_v47  ;;  %v16872_v50 = vcombine.low %v4018_v57, %v4022_v37  ;;  %v4050_v47 = vld [vmem:[#allocation5 + $0x1840] sm:$0xff]  ;;  %v4055_v63 = vld [vmem:[#allocation5 + $0x1868] sm:$0xff]  ;;  %v22387_v39 = vld [vmem:[#allocation2 + $0x118] sm:$0xff] }
 0x1fd   :  { %9885 = vmatpush1.bf16.msra.mxu0 %v16848_v17  ;;  %10789 = vmatpush1.bf16.msra.mxu1 %v16850_v13  ;;  %24655 = vst [vmem:[#allocation109_spill] sm:$0xff] %v22367_v3  ;;  %v16874_v23 = vcombine.low %v4019_v12, %v4023_v20  ;;  %v16881_v27 = vcombine.high %v4026_v45, %v4030_v44  ;;  %v4042_v17 = vld [vmem:[#allocation5 + $0x1800] sm:$0xff]  ;;  %v22383_v57 = vld [vmem:[#allocation5 + $0x1888] sm:$0xff]  ;;  %v22389_v12 = vld [vmem:[#allocation2 + $0x138] sm:$0xff] }
 0x1fe   :  { %9886 = vmatprep.subr.bf16.mxu0 %v16857_v22  ;;  %10790 = vmatprep.subr.bf16.mxu1 %v16859_v4  ;;  %v16883_v41 = vcombine.high %v4027_v60, %v4031_v5  ;;  %v22373_v56 = vpack.c.bf16 %v2850_v1, %v2706_v14  ;;  %v16880_v48 = vcombine.low %v4026_v45, %v4030_v44  ;;  %v4046_v13 = vld [vmem:[#allocation5 + $0x1820] sm:$0xff]  ;;  %v4043_v22 = vld [vmem:[#allocation5 + $0x1808] sm:$0xff]  ;;  %v22399_v44 = vld [vmem:[#allocation2 + $0x1b8] sm:$0xff] }
 0x1ff   :  { %10747 = vmatprep.mubr.bf16.mxu1 %v22351_v26  ;;  %v16882_v34 = vcombine.low %v4027_v60, %v4031_v5  ;;  %v16889_v0 = vcombine.high %v4034_v54, %v4038_v46  ;;  %v16891_v16 = vcombine.high %v4035_v15, %v4039_v62  ;;  %v4047_v4 = vld [vmem:[#allocation5 + $0x1828] sm:$0xff]  ;;  %v16888_v42 = vcombine.low %v4034_v54, %v4038_v46  ;;  %v24658_v20 = vld [vmem:[#allocation87_spill] sm:$0xff]  ;;  %v22401_v14 = vld [vmem:[#allocation2 + $0x1d8] sm:$0xff] }
 0x200   :  { %24656 = vst [vmem:[#allocation108_spill] sm:$0xff] %v22373_v56  ;;  %v16890_v19 = vcombine.low %v4035_v15, %v4039_v62  ;;  %v16897_v49 = vcombine.high %v4042_v17, %v4046_v13  ;;  %v16899_v10 = vcombine.high %v4043_v22, %v4047_v4  ;;  %v16896_v53 = vcombine.low %v4042_v17, %v4046_v13  ;;  %v22385_v2 = vld [vmem:[#allocation5 + $0x18a8] sm:$0xff]  ;;  %v22403_v1 = vld [vmem:[#allocation2 + $0x1f8] sm:$0xff]  ;;  %v4066_v46 = vld [vmem:[#allocation5 + $0x18c0] sm:$0xff] }
 0x201   :  { %9887 = vmatpush1.bf16.msra.mxu0 %v16856_v33  ;;  %10791 = vmatpush1.bf16.msra.mxu1 %v16858_v43  ;;  %v16898_v33 = vcombine.low %v4043_v22, %v4047_v4  ;;  %v16905_v43 = vcombine.high %v4050_v47, %v4054_v52  ;;  %v16907_v37 = vcombine.high %v4051_v28, %v4055_v63  ;;  %v4070_v15 = vld [vmem:[#allocation5 + $0x18e0] sm:$0xff] }
 0x202   :  { %9888 = vmatprep.subr.bf16.mxu0 %v16865_v32  ;;  %10792 = vmatprep.subr.bf16.mxu1 %v16867_v8  ;;  %v22379_v32 = vld [vmem:[#allocation5 + $0x1880] sm:$0xff]  ;;  %v16906_v45 = vcombine.low %v4051_v28, %v4055_v63  ;;  %v983_v60 = vcombine.high %v22387_v39, %v22389_v12  ;;  %v16915_v54 = vcombine.high %v22383_v57, %v22385_v2  ;;  %v22433_v28 = vld [vmem:[#allocation5 + $0x1928] sm:$0xff]  ;;  %v22435_v63 = vld [vmem:[#allocation2 + $0x218] sm:$0xff] }
 0x203   :  { %9844 = vmatmul.mubr.bf16.gmra.mrb[24].mxu0 %v22365_v11  ;;  %v22381_v8 = vld [vmem:[#allocation5 + $0x18a0] sm:$0xff]  ;;  %v16914_v13 = vcombine.low %v22383_v57, %v22385_v2  ;;  %v22442_v2 = vld [vmem:[#allocation2 + $0x258] sm:$0xff] }
 0x204   :  { %10748 = vmatmul.mubr.bf16.gmra.mrb[24].mxu1 %v22365_v11  ;;  %9853 = vmatprep.mubr.bf16.mxu0 %v22367_v3  ;;  %v999_v62 = vrot.slane %v983_v60, %v19307_v58  ;;  %v16912_v17 = vcombine.low %v22379_v32, %v22381_v8  ;;  %v22426_v22 = vld [vmem:[#allocation5 + $0x1900] sm:$0xff] }
 0x205   :  { %9889 = vmatpush1.bf16.msra.mxu0 %v16864_v38  ;;  %10793 = vmatpush1.bf16.msra.mxu1 %v16866_v24  ;;  %v16904_v38 = vcombine.low %v4050_v47, %v4054_v52  ;;  %v22392_v24 = vld [vmem:[#allocation2 + $0x158] sm:$0xff]  ;;  %v22428_v4 = vld [vmem:[#allocation5 + $0x1920] sm:$0xff] }
 0x206   :  { %9890 = vmatprep.subr.bf16.mxu0 %v16873_v55  ;;  %10794 = vmatprep.subr.bf16.mxu1 %v16875_v40  ;;  %v22394_v55 = vld [vmem:[#allocation2 + $0x178] sm:$0xff]  ;;  %v22534_v29 = vld [vmem:[#allocation5 + $0x1a00] sm:$0xff] }
 0x207   :  { %10757 = vmatprep.mubr.bf16.mxu1 %v22367_v3  ;;  %v22396_v40 = vld [vmem:[#allocation2 + $0x198] sm:$0xff]  ;;  %v985_v5 = vcombine.high %v22392_v24, %v22394_v55 }
 0x209   :  { %9891 = vmatpush1.bf16.msra.mxu0 %v16872_v50  ;;  %10795 = vmatpush1.bf16.msra.mxu1 %v16874_v23  ;;  %v16913_v50 = vcombine.high %v22379_v32, %v22381_v8  ;;  %v1127_v23 = vcombine.high %v22396_v40, %v22399_v44  ;;  %v24660_v32 = vld [vmem:[#allocation93_spill] sm:$0xff]  ;;  %v16920_v8 = vcombine.low %v4066_v46, %v4070_v15 }
 0x20a   :  { %9892 = vmatprep.subr.bf16.mxu0 %v16881_v27  ;;  %10796 = vmatprep.subr.bf16.mxu1 %v16883_v41  ;;  %v1129_v27 = vcombine.high %v22401_v14, %v22403_v1  ;;  %v24659_v41 = vld [vmem:[#allocation92_spill] sm:$0xff] }
 0x20b   :  { %9854 = vmatmul.mubr.bf16.gmra.mrb[28].mxu0 %v22373_v56 }
 0x20c   :  { %10758 = vmatmul.mubr.bf16.gmra.mrb[28].mxu1 %v22373_v56  ;;  %9896 = vmatprep.mubr.bf16.mxu0 %v24657_v25  ;;  %v22507_v56 = vld [vmem:[#allocation2 + $0x3f8] sm:$0xff] }
 0x20d   :  { %9893 = vmatpush1.bf16.msra.mxu0 %v16880_v48  ;;  %10797 = vmatpush1.bf16.msra.mxu1 %v16882_v34  ;;  %v4067_v48 = vld [vmem:[#allocation5 + $0x18c8] sm:$0xff]  ;;  %24674 = vst [vmem:[#allocation121_spill] sm:$0xff] %v22507_v56 }
 0x20e   :  { %9894 = vmatprep.subr.bf16.mxu0 %v16889_v0  ;;  %10798 = vmatprep.subr.bf16.mxu1 %v16891_v16  ;;  %v4071_v34 = vld [vmem:[#allocation5 + $0x18e8] sm:$0xff]  ;;  %v1013_v0 = vrot.slane %v985_v5, %v19307_v58  ;;  %v1143_v16 = vrot.slane %v1127_v23, %v19307_v58  ;;  %v22451_v5 = vld [vmem:[#allocation2 + $0x2b8] sm:$0xff] }
 0x20f   :  { %10800 = vmatprep.mubr.bf16.mxu1 %v24657_v25  ;;  %v16923_v52 = vcombine.high %v4067_v48, %v4071_v34  ;;  %v16922_v57 = vcombine.low %v4067_v48, %v4071_v34  ;;  %v22455_v23 = vld [vmem:[#allocation2 + $0x2f8] sm:$0xff]  ;;  %v24663_v34 = vld [vmem:[#allocation97_spill] sm:$0xff] }
 0x210   :  { %v1016_v47 = vcombine.low %v999_v62, %v1013_v0  ;;  %v22505_v25 = vld [vmem:[#allocation2 + $0x3d8] sm:$0xff] }
 0x211   :  { %9895 = vmatpush1.bf16.msra.mxu0 %v16888_v42  ;;  %10799 = vmatpush1.bf16.msra.mxu1 %v16890_v19  ;;  %v1157_v42 = vrot.slane %v1129_v27, %v19307_v58  ;;  %v16921_v19 = vcombine.high %v4066_v46, %v4070_v15  ;;  %24673 = vst [vmem:[#allocation120_spill] sm:$0xff] %v22505_v25 }
 0x212   :  { %9977 = vmatprep.subr.bf16.mxu0 %v16897_v49  ;;  %10881 = vmatprep.subr.bf16.mxu1 %v16899_v10  ;;  %v22431_v49 = vld [vmem:[#allocation5 + $0x1908] sm:$0xff]  ;;  %v1017_v10 = vcombine.high %v999_v62, %v1013_v0 }
 0x213   :  { %v16931_v0 = vcombine.high %v22431_v49, %v22433_v28 }
 0x214   :  { %9897 = vmatmul.mubr.bf16.vlgmr.msra.gmra.mrb[0].mxu0 %v24658_v20  ;;  %10801 = vmatmul.mubr.bf16.vlgmr.msra.gmra.mrb[0].mxu1 %v24658_v20  ;;  %v22485_v20 = vld [vmem:[#allocation5 + $0x19a8] sm:$0xff] }
 0x215   :  { %9978 = vmatpush1.bf16.msra.mxu0 %v16896_v53  ;;  %10882 = vmatpush1.bf16.msra.mxu1 %v16898_v33  ;;  %v22437_v53 = vld [vmem:[#allocation2 + $0x238] sm:$0xff]  ;;  %v1161_v33 = vcombine.high %v1143_v16, %v1157_v42 }
 0x216   :  { %9979 = vmatprep.subr.bf16.mxu0 %v16905_v43  ;;  %10883 = vmatprep.subr.bf16.mxu1 %v16907_v37  ;;  %v1160_v43 = vcombine.low %v1143_v16, %v1157_v42  ;;  %v16929_v37 = vcombine.high %v22426_v22, %v22428_v4  ;;  %v1271_v60 = vcombine.high %v22435_v63, %v22437_v53  ;;  %v4082_v16 = vld [vmem:[#allocation5 + $0x1940] sm:$0xff] }
 0x217   :  { %9906 = vmatprep.mubr.bf16.mxu0 %v24659_v41  ;;  %10810 = vmatprep.mubr.bf16.mxu1 %v24659_v41  ;;  %v22457_v27 = vpack.c.bf16 %v1161_v33, %v1017_v10  ;;  %v16930_v33 = vcombine.low %v22431_v49, %v22433_v28  ;;  %v22483_v41 = vld [vmem:[#allocation5 + $0x1988] sm:$0xff]  ;;  %v24666_v49 = vld [vmem:[#allocation98_spill] sm:$0xff] }
 0x218   :  { %v1287_v15 = vrot.slane %v1271_v60, %v19307_v58  ;;  %v16946_v26 = vcombine.low %v22483_v41, %v22485_v20 }
 0x219   :  { %9980 = vmatpush1.bf16.msra.mxu0 %v16904_v38  ;;  %10884 = vmatpush1.bf16.msra.mxu1 %v16906_v45  ;;  %v22444_v38 = vld [vmem:[#allocation2 + $0x278] sm:$0xff]  ;;  %24661 = vst [vmem:[#allocation111_spill] sm:$0xff] %v22457_v27 }
 0x21a   :  { %9981 = vmatprep.subr.bf16.mxu0 %v16913_v50  ;;  %10885 = vmatprep.subr.bf16.mxu1 %v16915_v54  ;;  %v22446_v45 = vld [vmem:[#allocation2 + $0x298] sm:$0xff]  ;;  %v22459_v54 = vpack.c.bf16 %v1160_v43, %v1016_v47  ;;  %v1273_v46 = vcombine.high %v22442_v2, %v22444_v38 }
 0x21b   :  { %v22453_v50 = vld [vmem:[#allocation2 + $0x2d8] sm:$0xff]  ;;  %v1415_v62 = vcombine.high %v22446_v45, %v22451_v5 }
 0x21c   :  { %9907 = vmatmul.mubr.bf16.gmra.mrb[4].mxu0 %v24660_v32  ;;  %10811 = vmatmul.mubr.bf16.gmra.mrb[4].mxu1 %v24660_v32  ;;  %24662 = vst [vmem:[#allocation110_spill] sm:$0xff] %v22459_v54  ;;  %v1417_v48 = vcombine.high %v22453_v50, %v22455_v23  ;;  %v1301_v42 = vrot.slane %v1273_v46, %v19307_v58  ;;  %v22479_v32 = vld [vmem:[#allocation5 + $0x1980] sm:$0xff]  ;;  %v22631_v27 = vld [vmem:[#allocation2 + $0x518] sm:$0xff] }
 0x21d   :  { %9982 = vmatpush1.bf16.msra.mxu0 %v16912_v17  ;;  %10886 = vmatpush1.bf16.msra.mxu1 %v16914_v13  ;;  %v4086_v17 = vld [vmem:[#allocation5 + $0x1960] sm:$0xff]  ;;  %v4083_v13 = vld [vmem:[#allocation5 + $0x1948] sm:$0xff]  ;;  %v1431_v10 = vrot.slane %v1415_v62, %v19307_v58  ;;  %24688 = vst [vmem:[#allocation132_spill] sm:$0xff] %v22631_v27 }
 0x21e   :  { %9983 = vmatprep.subr.bf16.mxu0 %v16921_v19  ;;  %10887 = vmatprep.subr.bf16.mxu1 %v16923_v52  ;;  %v4087_v19 = vld [vmem:[#allocation5 + $0x1968] sm:$0xff]  ;;  %v1445_v47 = vrot.slane %v1417_v48, %v19307_v58  ;;  %v16928_v52 = vcombine.low %v22426_v22, %v22428_v4  ;;  %v1305_v43 = vcombine.high %v1287_v15, %v1301_v42  ;;  %v22487_v22 = vld [vmem:[#allocation2 + $0x318] sm:$0xff]  ;;  %v22629_v54 = vld [vmem:[#allocation5 + $0x1b20] sm:$0xff] }
 0x21f   :  { %9916 = vmatprep.mubr.bf16.mxu0 %v24663_v34  ;;  %10820 = vmatprep.mubr.bf16.mxu1 %v24663_v34  ;;  %v1304_v60 = vcombine.low %v1287_v15, %v1301_v42  ;;  %v16937_v46 = vcombine.high %v4082_v16, %v4086_v17  ;;  %v22481_v34 = vld [vmem:[#allocation5 + $0x19a0] sm:$0xff]  ;;  %24664 = vst [vmem:[#allocation113_spill] sm:$0xff] %v22487_v22  ;;  %v22489_v4 = vld [vmem:[#allocation2 + $0x338] sm:$0xff] }
 0x220   :  { %v1449_v62 = vcombine.high %v1431_v10, %v1445_v47  ;;  %v1448_v48 = vcombine.low %v1431_v10, %v1445_v47  ;;  %24665 = vst [vmem:[#allocation112_spill] sm:$0xff] %v22489_v4  ;;  %v16936_v28 = vcombine.low %v4082_v16, %v4086_v17  ;;  %v22496_v15 = vld [vmem:[#allocation2 + $0x398] sm:$0xff]  ;;  %v1559_v16 = vcombine.high %v22487_v22, %v22489_v4 }
 0x221   :  { %9984 = vmatpush1.bf16.msra.mxu0 %v16920_v8  ;;  %10888 = vmatpush1.bf16.msra.mxu1 %v16922_v57  ;;  %v16939_v8 = vcombine.high %v4083_v13, %v4087_v19  ;;  %v22492_v57 = vld [vmem:[#allocation2 + $0x358] sm:$0xff]  ;;  %24669 = vst [vmem:[#allocation116_spill] sm:$0xff] %v22496_v15 }
 0x222   :  { %9985 = vmatprep.subr.bf16.mxu0 %v16929_v37  ;;  %10889 = vmatprep.subr.bf16.mxu1 %v16931_v0  ;;  %24667 = vst [vmem:[#allocation82_spill] sm:$0xff] %v22492_v57  ;;  %v22494_v37 = vld [vmem:[#allocation2 + $0x378] sm:$0xff]  ;;  %v22498_v42 = vpack.c.bf16 %v1449_v62, %v1305_v43  ;;  %v22500_v10 = vpack.c.bf16 %v1448_v48, %v1304_v60  ;;  %v4098_v62 = vld [vmem:[#allocation5 + $0x19c0] sm:$0xff] }
 0x223   :  { %24668 = vst [vmem:[#allocation83_spill] sm:$0xff] %v22494_v37  ;;  %v16938_v0 = vcombine.low %v4083_v13, %v4087_v19  ;;  %v22503_v47 = vld [vmem:[#allocation2 + $0x3b8] sm:$0xff]  ;;  %v1561_v17 = vcombine.high %v22492_v57, %v22494_v37  ;;  %v16945_v43 = vcombine.high %v22479_v32, %v22481_v34  ;;  %v1705_v19 = vcombine.high %v22505_v25, %v22507_v56  ;;  %v4102_v48 = vld [vmem:[#allocation5 + $0x19e0] sm:$0xff] }
 0x224   :  { %9917 = vmatmul.mubr.bf16.gmra.mrb[8].mxu0 %v24666_v49  ;;  %24670 = vst [vmem:[#allocation117_spill] sm:$0xff] %v22498_v42  ;;  %24671 = vst [vmem:[#allocation118_spill] sm:$0xff] %v22500_v10  ;;  %10821 = vmatmul.mubr.bf16.gmra.mrb[8].mxu1 %v24666_v49  ;;  %v1703_v13 = vcombine.high %v22496_v15, %v22503_v47  ;;  %v16947_v60 = vcombine.high %v22483_v41, %v22485_v20  ;;  %v22526_v49 = vld [vmem:[#allocation5 + $0x19e8] sm:$0xff]  ;;  %v22545_v20 = vld [vmem:[#allocation2 + $0x418] sm:$0xff] }
 0x225   :  { %9986 = vmatpush1.bf16.msra.mxu0 %v16928_v52  ;;  %24672 = vst [vmem:[#allocation119_spill] sm:$0xff] %v22503_v47  ;;  %10890 = vmatpush1.bf16.msra.mxu1 %v16930_v33  ;;  %v24675_v52 = vld [vmem:[#allocation104_spill] sm:$0xff]  ;;  %v1575_v33 = vrot.slane %v1559_v16, %v19307_v58  ;;  %v1589_v3 = vrot.slane %v1561_v17, %v19307_v58  ;;  %v22536_v16 = vld [vmem:[#allocation5 + $0x1a20] sm:$0xff]  ;;  %24676 = vst [vmem:[#allocation122_spill] sm:$0xff] %v22545_v20 }
 0x226   :  { %9987 = vmatprep.subr.bf16.mxu0 %v16937_v46  ;;  %10891 = vmatprep.subr.bf16.mxu1 %v16939_v8  ;;  %v22524_v46 = vld [vmem:[#allocation5 + $0x19c8] sm:$0xff]  ;;  %v1719_v11 = vrot.slane %v1703_v13, %v19307_v58  ;;  %v16944_v8 = vcombine.low %v22479_v32, %v22481_v34  ;;  %v16953_v7 = vcombine.high %v4098_v62, %v4102_v48  ;;  %v22547_v41 = vld [vmem:[#allocation2 + $0x438] sm:$0xff] }
 0x227   :  { %9926 = vmatprep.mubr.bf16.mxu0 %v24675_v52  ;;  %10830 = vmatprep.mubr.bf16.mxu1 %v24675_v52  ;;  %v1733_v52 = vrot.slane %v1705_v19, %v19307_v58  ;;  %v1593_v17 = vcombine.high %v1575_v33, %v1589_v3  ;;  %v1592_v13 = vcombine.low %v1575_v33, %v1589_v3  ;;  %v22543_v34 = vld [vmem:[#allocation5 + $0x1a28] sm:$0xff]  ;;  %v24678_v19 = vld [vmem:[#allocation105_spill] sm:$0xff]  ;;  %v22556_v33 = vld [vmem:[#allocation2 + $0x478] sm:$0xff] }
 0x228   :  { %v16955_v32 = vcombine.high %v22524_v46, %v22526_v49  ;;  %24677 = vst [vmem:[#allocation123_spill] sm:$0xff] %v22547_v41  ;;  %v16961_v3 = vcombine.high %v22534_v29, %v22536_v16  ;;  %24680 = vst [vmem:[#allocation125_spill] sm:$0xff] %v22556_v33  ;;  %v1847_v61 = vcombine.high %v22545_v20, %v22547_v41  ;;  %v22659_v20 = vld [vmem:[#allocation2 + $0x5f8] sm:$0xff] }
 0x229   :  { %9988 = vmatpush1.bf16.msra.mxu0 %v16936_v28  ;;  %10892 = vmatpush1.bf16.msra.mxu1 %v16938_v0  ;;  %v1737_v28 = vcombine.high %v1719_v11, %v1733_v52  ;;  %v1736_v21 = vcombine.low %v1719_v11, %v1733_v52  ;;  %v16952_v0 = vcombine.low %v4098_v62, %v4102_v48  ;;  %v22563_v11 = vld [vmem:[#allocation2 + $0x4b8] sm:$0xff] }
 0x22a   :  { %9989 = vmatprep.subr.bf16.mxu0 %v16945_v43  ;;  %10893 = vmatprep.subr.bf16.mxu1 %v16947_v60  ;;  %v16954_v43 = vcombine.low %v22524_v46, %v22526_v49  ;;  %v22554_v60 = vld [vmem:[#allocation2 + $0x458] sm:$0xff]  ;;  %24682 = vst [vmem:[#allocation127_spill] sm:$0xff] %v22563_v11  ;;  %24698 = vst [vmem:[#allocation141_spill] sm:$0xff] %v22659_v20 }
 0x22b   :  { %24679 = vst [vmem:[#allocation124_spill] sm:$0xff] %v22554_v60  ;;  %v22565_v52 = vld [vmem:[#allocation2 + $0x4d8] sm:$0xff]  ;;  %v22569_v62 = vpack.c.bf16 %v1737_v28, %v1593_v17  ;;  %v22571_v48 = vpack.c.bf16 %v1736_v21, %v1592_v13  ;;  %v1849_v46 = vcombine.high %v22554_v60, %v22556_v33  ;;  %v16963_v13 = vcombine.high %v22539_v18, %v22543_v34  ;;  %v22593_v28 = vld [vmem:[#allocation5 + $0x1a68] sm:$0xff] }
 0x22c   :  { %9927 = vmatmul.mubr.bf16.gmra.mrb[12].mxu0 %v24678_v19  ;;  %10831 = vmatmul.mubr.bf16.gmra.mrb[12].mxu1 %v24678_v19  ;;  %24683 = vst [vmem:[#allocation128_spill] sm:$0xff] %v22565_v52  ;;  %v22567_v49 = vld [vmem:[#allocation2 + $0x4f8] sm:$0xff]  ;;  %v1991_v19 = vcombine.high %v22558_v31, %v22563_v11 }
 0x22d   :  { %9990 = vmatpush1.bf16.msra.mxu0 %v16944_v8  ;;  %24684 = vst [vmem:[#allocation129_spill] sm:$0xff] %v22567_v49  ;;  %24685 = vst [vmem:[#allocation130_spill] sm:$0xff] %v22569_v62  ;;  %10894 = vmatpush1.bf16.msra.mxu1 %v16946_v26  ;;  %v1863_v8 = vrot.slane %v1847_v61, %v19307_v58  ;;  %v1993_v17 = vcombine.high %v22565_v52, %v22567_v49  ;;  %v24687_v21 = vld [vmem:[#allocation114_spill] sm:$0xff]  ;;  %v22587_v26 = vld [vmem:[#allocation5 + $0x1a48] sm:$0xff] }
 0x22e   :  { %24686 = vst [vmem:[#allocation131_spill] sm:$0xff] %v22571_v48  ;;  %9991 = vmatprep.subr.bf16.mxu0 %v16953_v7  ;;  %10895 = vmatprep.subr.bf16.mxu1 %v16955_v32  ;;  %v1877_v7 = vrot.slane %v1849_v46, %v19307_v58  ;;  %v16960_v61 = vcombine.low %v22534_v29, %v22536_v16  ;;  %v22607_v29 = vld [vmem:[#allocation5 + $0x1aa8] sm:$0xff]  ;;  %v22609_v16 = vld [vmem:[#allocation5 + $0x1ac0] sm:$0xff]  ;;  %v22644_v52 = vld [vmem:[#allocation2 + $0x578] sm:$0xff] }
 0x22f   :  { %9936 = vmatprep.mubr.bf16.mxu0 %v24687_v21  ;;  %10840 = vmatprep.mubr.bf16.mxu1 %v24687_v21  ;;  %v2007_v32 = vrot.slane %v1991_v19, %v19307_v58  ;;  %v2021_v35 = vrot.slane %v1993_v17, %v19307_v58  ;;  %v16962_v48 = vcombine.low %v22539_v18, %v22543_v34  ;;  %v22605_v21 = vld [vmem:[#allocation5 + $0x1a88] sm:$0xff]  ;;  %v22646_v49 = vld [vmem:[#allocation2 + $0x598] sm:$0xff] }
 0x230   :  { %v1881_v62 = vcombine.high %v1863_v8, %v1877_v7  ;;  %v1880_v10 = vcombine.low %v1863_v8, %v1877_v7  ;;  %v16969_v19 = vcombine.high %v22575_v36, %v22577_v6  ;;  %v22615_v17 = vld [vmem:[#allocation5 + $0x1ac8] sm:$0xff]  ;;  %v16970_v42 = vcombine.low %v22587_v26, %v22593_v28  ;;  %v22627_v7 = vld [vmem:[#allocation5 + $0x1b00] sm:$0xff]  ;;  %24692 = vst [vmem:[#allocation135_spill] sm:$0xff] %v22644_v52  ;;  %v22655_v60 = vld [vmem:[#allocation2 + $0x5b8] sm:$0xff] }
 0x231   :  { %9992 = vmatpush1.bf16.msra.mxu0 %v16952_v0  ;;  %10896 = vmatpush1.bf16.msra.mxu1 %v16954_v43  ;;  %v22613_v0 = vld [vmem:[#allocation5 + $0x1ae0] sm:$0xff]  ;;  %v22617_v18 = vld [vmem:[#allocation5 + $0x1ae8] sm:$0xff]  ;;  %v2025_v34 = vcombine.high %v2007_v32, %v2021_v35  ;;  %v2024_v46 = vcombine.low %v2007_v32, %v2021_v35  ;;  %v16971_v8 = vcombine.high %v22587_v26, %v22593_v28  ;;  %v22633_v35 = vld [vmem:[#allocation2 + $0x538] sm:$0xff] }
 0x232   :  { %9993 = vmatprep.subr.bf16.mxu0 %v16961_v3  ;;  %10897 = vmatprep.subr.bf16.mxu1 %v16963_v13  ;;  %v16977_v3 = vcombine.high %v22595_v59, %v22597_v51  ;;  %24689 = vst [vmem:[#allocation133_spill] sm:$0xff] %v22633_v35  ;;  %v24690_v13 = vld [vmem:[#allocation115_spill] sm:$0xff]  ;;  %v16979_v26 = vcombine.high %v22605_v21, %v22607_v29  ;;  %v22640_v28 = vld [vmem:[#allocation5 + $0x1b08] sm:$0xff]  ;;  %v22642_v43 = vld [vmem:[#allocation2 + $0x558] sm:$0xff] }
 0x233   :  { %24691 = vst [vmem:[#allocation134_spill] sm:$0xff] %v22642_v43  ;;  %24693 = vst [vmem:[#allocation136_spill] sm:$0xff] %v22646_v49  ;;  %v22648_v31 = vpack.c.bf16 %v2025_v34, %v1881_v62  ;;  %v22650_v11 = vpack.c.bf16 %v2024_v46, %v1880_v10  ;;  %v22657_v33 = vld [vmem:[#allocation2 + $0x5d8] sm:$0xff]  ;;  %v2135_v41 = vcombine.high %v22631_v27, %v22633_v35  ;;  %v22669_v46 = vld [vmem:[#allocation5 + $0x1b40] sm:$0xff] }
 0x234   :  { %9937 = vmatmul.mubr.bf16.gmra.mrb[16].mxu0 %v24690_v13  ;;  %10841 = vmatmul.mubr.bf16.gmra.mrb[16].mxu1 %v24690_v13  ;;  %24696 = vst [vmem:[#allocation139_spill] sm:$0xff] %v22655_v60  ;;  %24697 = vst [vmem:[#allocation140_spill] sm:$0xff] %v22657_v33  ;;  %v2137_v62 = vcombine.high %v22642_v43, %v22644_v52  ;;  %v22671_v34 = vld [vmem:[#allocation5 + $0x1b60] sm:$0xff]  ;;  %v2279_v32 = vcombine.high %v22646_v49, %v22655_v60  ;;  %v22682_v10 = vld [vmem:[#allocation5 + $0x1b48] sm:$0xff] }
 0x235   :  { %24694 = vst [vmem:[#allocation137_spill] sm:$0xff] %v22648_v31  ;;  %24695 = vst [vmem:[#allocation138_spill] sm:$0xff] %v22650_v11  ;;  %9994 = vmatpush1.bf16.msra.mxu0 %v16960_v61  ;;  %10898 = vmatpush1.bf16.msra.mxu1 %v16962_v48  ;;  %v22667_v61 = vld [vmem:[#allocation5 + $0x1b28] sm:$0xff]  ;;  %v2281_v13 = vcombine.high %v22657_v33, %v22659_v20  ;;  %v24699_v11 = vld [vmem:[#allocation81_spill] sm:$0xff]  ;;  %v2151_v43 = vrot.slane %v2135_v41, %v19307_v58 }
 0x236   :  { %9995 = vmatprep.subr.bf16.mxu0 %v16969_v19  ;;  %10899 = vmatprep.subr.bf16.mxu1 %v16971_v8  ;;  %v16987_v19 = vcombine.high %v22615_v17, %v22617_v18  ;;  %v22684_v31 = vld [vmem:[#allocation5 + $0x1b68] sm:$0xff]  ;;  %v22692_v20 = vld [vmem:[#allocation5 + $0x1b80] sm:$0xff]  ;;  %v22696_v49 = vld [vmem:[#allocation2 + $0x18] sm:$0xff]  ;;  %v2165_v60 = vrot.slane %v2137_v62, %v19307_v58  ;;  %v2295_v52 = vrot.slane %v2279_v32, %v19307_v58 }
 0x237   :  { %9946 = vmatprep.mubr.bf16.mxu0 %v24699_v11  ;;  %10850 = vmatprep.mubr.bf16.mxu1 %v24699_v11  ;;  %v22694_v48 = vld [vmem:[#allocation5 + $0x1ba0] sm:$0xff]  ;;  %24700 = vst [vmem:[#allocation142_spill] sm:$0xff] %v22696_v49  ;;  %v24701_v41 = vcombine.low %v22575_v36, %v22577_v6  ;;  %v22709_v27 = vld [vmem:[#allocation2 + $0x38] sm:$0xff]  ;;  %v2309_v32 = vrot.slane %v2281_v13, %v19307_v58 }
 0x238   :  { %24702 = vst [vmem:[#allocation143_spill] sm:$0xff] %v22709_v27  ;;  %v22711_v35 = vld [vmem:[#allocation2 + $0x58] sm:$0xff]  ;;  %v2169_v11 = vcombine.high %v2151_v43, %v2165_v60  ;;  %v2168_v8 = vcombine.low %v2151_v43, %v2165_v60  ;;  %v24709_v60 = vld [vmem:[#allocation80_spill] sm:$0xff] }
 0x239   :  { %9996 = vmatpush1.bf16.msra.mxu0 %v24701_v41  ;;  %24703 = vst [vmem:[#allocation144_spill] sm:$0xff] %v22711_v35  ;;  %v22713_v62 = vld [vmem:[#allocation2 + $0x78] sm:$0xff]  ;;  %10900 = vmatpush1.bf16.msra.mxu1 %v16970_v42  ;;  %v22728_v42 = vld [vmem:[#allocation5 + $0x1b88] sm:$0xff]  ;;  %v2313_v47 = vcombine.high %v2295_v52, %v2309_v32  ;;  %v2312_v57 = vcombine.low %v2295_v52, %v2309_v32 }
 0x23a   :  { %24704 = vst [vmem:[#allocation145_spill] sm:$0xff] %v22713_v62  ;;  %9997 = vmatprep.subr.bf16.mxu0 %v16977_v3  ;;  %v22718_v36 = vld [vmem:[#allocation2 + $0x98] sm:$0xff]  ;;  %10901 = vmatprep.subr.bf16.mxu1 %v16979_v26  ;;  %v22730_v3 = vld [vmem:[#allocation5 + $0x1ba8] sm:$0xff]  ;;  %v694_v26 = vcombine.low %v22696_v49, %v22709_v27  ;;  %v696_v25 = vcombine.low %v22711_v35, %v22713_v62 }
 0x23b   :  { %24705 = vst [vmem:[#allocation146_spill] sm:$0xff] %v22718_v36  ;;  %v22720_v41 = vld [vmem:[#allocation2 + $0xb8] sm:$0xff]  ;;  %v24710_v32 = vcombine.low %v22595_v59, %v22597_v51  ;;  %v22763_v62 = vpack.c.bf16 %v2313_v47, %v2169_v11  ;;  %v22765_v27 = vpack.c.bf16 %v2312_v57, %v2168_v8  ;;  %v24714_v51 = vcombine.high %v22609_v16, %v22613_v0  ;;  %v22775_v59 = vld [vmem:[#allocation5 + $0x1bc0] sm:$0xff]  ;;  %v24715_v8 = vld [vmem:[#allocation85_spill] sm:$0xff] }
 0x23c   :  { %24706 = vst [vmem:[#allocation147_spill] sm:$0xff] %v22720_v41  ;;  %v22722_v33 = vld [vmem:[#allocation2 + $0xd8] sm:$0xff]  ;;  %9947 = vmatmul.mubr.bf16.gmra.mrb[20].mxu0 %v24709_v60  ;;  %10851 = vmatmul.mubr.bf16.gmra.mrb[20].mxu1 %v24709_v60  ;;  %v24713_v60 = vcombine.low %v22605_v21, %v22607_v29  ;;  %v838_v21 = vcombine.low %v22718_v36, %v22720_v41 }
 0x23d   :  { %24707 = vst [vmem:[#allocation148_spill] sm:$0xff] %v22722_v33  ;;  %v22732_v6 = vld [vmem:[#allocation2 + $0xf8] sm:$0xff]  ;;  %9998 = vmatpush1.bf16.msra.mxu0 %v24710_v32  ;;  %24711 = vst [vmem:[#allocation150_spill] sm:$0xff] %v22763_v62  ;;  %v22777_v32 = vld [vmem:[#allocation5 + $0x1be0] sm:$0xff]  ;;  %9956 = vmatprep.mubr.bf16.mxu0 %v24715_v8  ;;  %v24716_v62 = vcombine.low %v22609_v16, %v22613_v0  ;;  %v24717_v36 = vcombine.low %v22615_v17, %v22617_v18 }
 0x23e   :  { %24708 = vst [vmem:[#allocation149_spill] sm:$0xff] %v22732_v6  ;;  %v22734_v56 = vld [vmem:[#allocation2 + $0x618] sm:$0xff]  ;;  %24712 = vst [vmem:[#allocation151_spill] sm:$0xff] %v22765_v27  ;;  %10902 = vmatpush1.bf16.msra.mxu1 %v24713_v60  ;;  %9999 = vmatprep.subr.bf16.mxu0 %v24714_v51  ;;  %v840_v29 = vcombine.low %v22722_v33, %v22732_v6  ;;  %v17011_v33 = vcombine.high %v22728_v42, %v22730_v3 }
 0x23f   :  { %v22736_v15 = vld [vmem:[#allocation2 + $0x638] sm:$0xff]  ;;  %10903 = vmatprep.subr.bf16.mxu1 %v16987_v19  ;;  %10860 = vmatprep.mubr.bf16.mxu1 %v24715_v8  ;;  %v22820_v17 = vrot.slane %v694_v26, %v19307_v58  ;;  %v22823_v18 = vrot.slane %v696_v25, %v19307_v58  ;;  %v984_v26 = vcombine.low %v22392_v24, %v22394_v55 }
 0x240   :  { %v22745_v13 = vld [vmem:[#allocation2 + $0x658] sm:$0xff]  ;;  %v2423_v52 = vcombine.high %v22734_v56, %v22736_v15  ;;  %v24722_v41 = vcombine.low %v22627_v7, %v22629_v54 }
 0x241   :  { %v22747_v37 = vld [vmem:[#allocation2 + $0x678] sm:$0xff]  ;;  %10000 = vmatpush1.bf16.msra.mxu0 %v24716_v62 }
 0x242   :  { %v22749_v22 = vld [vmem:[#allocation2 + $0x698] sm:$0xff]  ;;  %v2425_v4 = vcombine.high %v22745_v13, %v22747_v37  ;;  %v2439_v47 = vrot.slane %v2423_v52, %v19307_v58  ;;  %v17009_v52 = vcombine.high %v22692_v20, %v22694_v48  ;;  %10904 = vmatpush1.bf16.msra.mxu1 %v24717_v36  ;;  %v22826_v36 = vrot.slane %v838_v21, %v19307_v58 }
 0x243   :  { %v22757_v43 = vld [vmem:[#allocation2 + $0x6b8] sm:$0xff] }
 0x244   :  { %v22759_v49 = vld [vmem:[#allocation2 + $0x6d8] sm:$0xff]  ;;  %v2567_v57 = vcombine.high %v22749_v22, %v22757_v43  ;;  %v2453_v60 = vrot.slane %v2425_v4, %v19307_v58  ;;  %v22815_v4 = vld [vmem:[#allocation5 + $0x1bc8] sm:$0xff] }
 0x245   :  { %v22761_v35 = vld [vmem:[#allocation2 + $0x6f8] sm:$0xff] }
 0x246   :  { %v2569_v11 = vcombine.high %v22759_v49, %v22761_v35  ;;  %v2583_v19 = vrot.slane %v2567_v57, %v19307_v58  ;;  %v2457_v8 = vcombine.high %v2439_v47, %v2453_v60  ;;  %v2456_v6 = vcombine.low %v2439_v47, %v2453_v60  ;;  %v22817_v47 = vld [vmem:[#allocation5 + $0x1be8] sm:$0xff]  ;;  %v22840_v25 = vld [vmem:[#allocation2 + $0x758] sm:$0xff] }
 0x247   :  { %v24718_v57 = vcombine.high %v22627_v7, %v22629_v54  ;;  %v22829_v60 = vrot.slane %v840_v29, %v19307_v58  ;;  %v22842_v16 = vld [vmem:[#allocation2 + $0x778] sm:$0xff]  ;;  %v24724_v54 = vcombine.high %v22669_v46, %v22671_v34 }
 0x248   :  { %v2597_v27 = vrot.slane %v2569_v11, %v19307_v58  ;;  %v24719_v11 = vcombine.high %v22640_v28, %v22667_v61  ;;  %v22844_v21 = vld [vmem:[#allocation2 + $0x798] sm:$0xff] }
 0x249   :  { %10001 = vmatprep.subr.bf16.mxu0 %v24718_v57  ;;  %v24720_v57 = vld [vmem:[#allocation84_spill] sm:$0xff]  ;;  %v22858_v24 = vld [vmem:[#allocation2 + $0x7d8] sm:$0xff] }
 0x24a   :  { %v2601_v0 = vcombine.high %v2583_v19, %v2597_v27  ;;  %v2600_v62 = vcombine.low %v2583_v19, %v2597_v27  ;;  %10905 = vmatprep.subr.bf16.mxu1 %v24719_v11  ;;  %v22831_v27 = vld [vmem:[#allocation2 + $0x718] sm:$0xff]  ;;  %9957 = vmatmul.mubr.bf16.gmra.mrb[24].mxu0 %v24720_v57  ;;  %v982_v11 = vcombine.low %v22387_v39, %v22389_v12 }
 0x24b   :  { %v22833_v19 = vld [vmem:[#allocation2 + $0x738] sm:$0xff]  ;;  %10861 = vmatmul.mubr.bf16.gmra.mrb[24].mxu1 %v24720_v57  ;;  %10002 = vmatpush1.bf16.msra.mxu0 %v24722_v41  ;;  %v1126_v39 = vcombine.low %v22396_v40, %v22399_v44  ;;  %v1128_v40 = vcombine.low %v22401_v14, %v22403_v1  ;;  %v24725_v41 = vcombine.high %v22682_v10, %v22684_v31 }
 0x24c   :  { %v22846_v29 = vpack.c.bf16 %v2601_v0, %v2457_v8  ;;  %v22848_v51 = vpack.c.bf16 %v2600_v62, %v2456_v6  ;;  %v22856_v12 = vld [vmem:[#allocation2 + $0x7b8] sm:$0xff]  ;;  %v2711_v8 = vcombine.high %v22831_v27, %v22833_v19  ;;  %v2713_v6 = vcombine.high %v22840_v25, %v22842_v16  ;;  %10003 = vmatprep.subr.bf16.mxu0 %v24724_v54 }
 0x24d   :  { %v22860_v55 = vld [vmem:[#allocation2 + $0x7f8] sm:$0xff]  ;;  %v24723_v0 = vcombine.low %v22640_v28, %v22667_v61  ;;  %v2855_v44 = vcombine.high %v22844_v21, %v22856_v12  ;;  %9966 = vmatprep.mubr.bf16.mxu0 %v22170_v30  ;;  %v727_v28 = vcombine.high %v22820_v17, %v22823_v18  ;;  %v871_v61 = vcombine.high %v22826_v36, %v22829_v60 }
 0x24e   :  { %24721 = vst [vmem:[#allocation152_spill] sm:$0xff] %v22848_v51  ;;  %v2857_v7 = vcombine.high %v22858_v24, %v22860_v55  ;;  %v2727_v14 = vrot.slane %v2711_v8, %v19307_v58  ;;  %10870 = vmatprep.mubr.bf16.mxu1 %v22170_v30  ;;  %v17018_v1 = vcombine.low %v22815_v4, %v22817_v47 }
 0x24f   :  { %10906 = vmatpush1.bf16.msra.mxu1 %v24723_v0  ;;  %v17019_v62 = vcombine.high %v22815_v4, %v22817_v47  ;;  %v2741_v0 = vrot.slane %v2713_v6, %v19307_v58  ;;  %v2871_v54 = vrot.slane %v2855_v44, %v19307_v58  ;;  %v22898_v57 = vrot.slane %v982_v11, %v19307_v58  ;;  %v4174_v6 = vld [vmem:[#allocation5 + $0x1c20] sm:$0xff] }
 0x250   :  { %10907 = vmatprep.subr.bf16.mxu1 %v24725_v41  ;;  %v24726_v41 = vcombine.low %v22669_v46, %v22671_v34  ;;  %v22901_v8 = vrot.slane %v984_v26, %v19307_v58  ;;  %v22904_v30 = vrot.slane %v1126_v39, %v19307_v58  ;;  %v2885_v51 = vrot.slane %v2857_v7, %v19307_v58  ;;  %v4170_v39 = vld [vmem:[#allocation5 + $0x1c00] sm:$0xff] }
 0x251   :  { %v24727_v4 = vcombine.low %v22682_v10, %v22684_v31  ;;  %v22911_v47 = vrot.slane %v1128_v40, %v19307_v58  ;;  %v2745_v46 = vcombine.high %v2727_v14, %v2741_v0  ;;  %v2744_v34 = vcombine.low %v2727_v14, %v2741_v0  ;;  %v4171_v10 = vld [vmem:[#allocation5 + $0x1c08] sm:$0xff] }
 0x252   :  { %10004 = vmatpush1.bf16.msra.mxu0 %v24726_v41  ;;  %v726_v11 = vcombine.low %v22820_v17, %v22823_v18  ;;  %v22915_v26 = vpack.c.bf16 %v871_v61, %v727_v28  ;;  %v2889_v44 = vcombine.high %v2871_v54, %v2885_v51  ;;  %v2888_v7 = vcombine.low %v2871_v54, %v2885_v51  ;;  %v4190_v28 = vld [vmem:[#allocation5 + $0x1ca0] sm:$0xff]  ;;  %v4179_v54 = vld [vmem:[#allocation5 + $0x1c48] sm:$0xff] }
 0x253   :  { %10908 = vmatpush1.bf16.msra.mxu1 %v24727_v4  ;;  %10005 = vmatprep.subr.bf16.mxu0 %v17009_v52  ;;  %v870_v31 = vcombine.low %v22826_v36, %v22829_v60  ;;  %v4175_v52 = vld [vmem:[#allocation5 + $0x1c28] sm:$0xff]  ;;  %v1270_v40 = vcombine.low %v22435_v63, %v22437_v53  ;;  %v1414_v17 = vcombine.low %v22446_v45, %v22451_v5  ;;  %v4178_v5 = vld [vmem:[#allocation5 + $0x1c40] sm:$0xff] }
 0x254   :  { %10909 = vmatprep.subr.bf16.mxu1 %v17011_v33  ;;  %9967 = vmatmul.mubr.bf16.gmra.mrb[28].mxu0 %v22172_v9  ;;  %v1272_v33 = vcombine.low %v22442_v2, %v22444_v38  ;;  %v24728_v51 = vcombine.low %v22692_v20, %v22694_v48  ;;  %v1416_v18 = vcombine.low %v22453_v50, %v22455_v23  ;;  %v4182_v50 = vld [vmem:[#allocation5 + $0x1c60] sm:$0xff]  ;;  %v4183_v41 = vld [vmem:[#allocation5 + $0x1c68] sm:$0xff] }
 0x255   :  { %10871 = vmatmul.mubr.bf16.gmra.mrb[28].mxu1 %v22172_v9  ;;  %v22932_v36 = vpack.c.bf16 %v2889_v44, %v2745_v46  ;;  %v22934_v60 = vpack.c.bf16 %v2888_v7, %v2744_v34  ;;  %v24731_v63 = vcombine.low %v22728_v42, %v22730_v3  ;;  %v24732_v53 = vcombine.high %v22775_v59, %v22777_v32  ;;  %v22950_v42 = vld [vmem:[#allocation5 + $0x1c80] sm:$0xff]  ;;  %v4187_v7 = vld [vmem:[#allocation5 + $0x1c88] sm:$0xff] }
 0x256   :  { %10006 = vmatpush1.bf16.msra.mxu0 %v24728_v51  ;;  %v17025_v2 = vcombine.high %v4170_v39, %v4174_v6  ;;  %v1015_v38 = vcombine.high %v22898_v57, %v22901_v8  ;;  %v1159_v45 = vcombine.high %v22904_v30, %v22911_v47  ;;  %10009 = vmatprep.mubr.bf16.mxu0 %v22915_v26  ;;  %v24739_v51 = vld [vmem:[#allocation116_spill] sm:$0xff] }
 0x257   :  { %24729 = vst [vmem:[#allocation153_spill] sm:$0xff] %v22932_v36  ;;  %24730 = vst [vmem:[#allocation154_spill] sm:$0xff] %v22934_v60  ;;  %10910 = vmatpush1.bf16.msra.mxu1 %v24731_v63  ;;  %10007 = vmatprep.subr.bf16.mxu0 %v24732_v53  ;;  %v17027_v23 = vcombine.high %v4171_v10, %v4175_v52  ;;  %v22948_v20 = vpack.c.bf16 %v870_v31, %v726_v11  ;;  %v4191_v31 = vld [vmem:[#allocation5 + $0x1ca8] sm:$0xff]  ;;  %v24740_v63 = vld [vmem:[#allocation121_spill] sm:$0xff] }
 0x258   :  { %10911 = vmatprep.subr.bf16.mxu1 %v17019_v62  ;;  %10913 = vmatprep.mubr.bf16.mxu1 %v22915_v26  ;;  %v17024_v48 = vcombine.low %v4170_v39, %v4174_v6  ;;  %v24733_v3 = vcombine.low %v22775_v59, %v22777_v32  ;;  %v22956_v61 = vrot.slane %v1270_v40, %v19307_v58  ;;  %v24737_v40 = vld [vmem:[#allocation82_spill] sm:$0xff]  ;;  %v24741_v53 = vld [vmem:[#allocation120_spill] sm:$0xff] }
 0x259   :  { %v22959_v14 = vrot.slane %v1272_v33, %v19307_v58  ;;  %v22962_v62 = vrot.slane %v1414_v17, %v19307_v58  ;;  %v22965_v0 = vrot.slane %v1416_v18, %v19307_v58  ;;  %v17033_v4 = vcombine.high %v4178_v5, %v4182_v50  ;;  %v24738_v17 = vld [vmem:[#allocation119_spill] sm:$0xff] }
 0x25a   :  { %10008 = vmatpush1.bf16.msra.mxu0 %v24733_v3  ;;  %v22967_v59 = vpack.c.bf16 %v1159_v45, %v1015_v38  ;;  %v17032_v32 = vcombine.low %v4178_v5, %v4182_v50  ;;  %v17026_v46 = vcombine.low %v4171_v10, %v4175_v52  ;;  %v1014_v34 = vcombine.low %v22898_v57, %v22901_v8  ;;  %v24734_v10 = vld [vmem:[#allocation112_spill] sm:$0xff]  ;;  %v24735_v52 = vld [vmem:[#allocation113_spill] sm:$0xff]  ;;  %v4198_v8 = vld [vmem:[#allocation5 + $0x1ce0] sm:$0xff] }
 0x25b   :  { %10912 = vmatpush1.bf16.msra.mxu1 %v17018_v1  ;;  %10090 = vmatprep.subr.bf16.mxu0 %v17025_v2  ;;  %v1158_v11 = vcombine.low %v22904_v30, %v22911_v47  ;;  %v17041_v39 = vcombine.high %v22950_v42, %v4190_v28  ;;  %v17035_v6 = vcombine.high %v4179_v54, %v4183_v41  ;;  %v4194_v30 = vld [vmem:[#allocation5 + $0x1cc0] sm:$0xff]  ;;  %v4195_v3 = vld [vmem:[#allocation5 + $0x1cc8] sm:$0xff] }
 0x25c   :  { %10994 = vmatprep.subr.bf16.mxu1 %v17027_v23  ;;  %v1303_v1 = vcombine.high %v22956_v61, %v22959_v14  ;;  %v1447_v44 = vcombine.high %v22962_v62, %v22965_v0  ;;  %v1558_v57 = vcombine.low %v24735_v52, %v24734_v10  ;;  %v24736_v47 = vld [vmem:[#allocation83_spill] sm:$0xff]  ;;  %v1702_v18 = vcombine.low %v24739_v51, %v24738_v17 }
 0x25d   :  { %10010 = vmatmul.mubr.bf16.vlgmr.msra.gmra.mrb[0].mxu0 %v22948_v20  ;;  %v1560_v33 = vcombine.low %v24737_v40, %v24736_v47  ;;  %v1704_v2 = vcombine.low %v24741_v53, %v24740_v63  ;;  %v17034_v38 = vcombine.low %v4179_v54, %v4183_v41  ;;  %v22990_v45 = vpack.c.bf16 %v1158_v11, %v1014_v34  ;;  %v24746_v47 = vld [vmem:[#allocation127_spill] sm:$0xff]  ;;  %v24748_v40 = vld [vmem:[#allocation129_spill] sm:$0xff] }
 0x25e   :  { %10914 = vmatmul.mubr.bf16.vlgmr.msra.gmra.mrb[0].mxu1 %v22948_v20  ;;  %10091 = vmatpush1.bf16.msra.mxu0 %v17024_v48  ;;  %v17043_v5 = vcombine.high %v4187_v7, %v4191_v31  ;;  %v17040_v50 = vcombine.low %v22950_v42, %v4190_v28  ;;  %v22993_v23 = vpack.c.bf16 %v1447_v44, %v1303_v1  ;;  %v4202_v28 = vld [vmem:[#allocation5 + $0x1d00] sm:$0xff]  ;;  %v24743_v1 = vld [vmem:[#allocation122_spill] sm:$0xff] }
 0x25f   :  { %10092 = vmatprep.subr.bf16.mxu0 %v17033_v4  ;;  %10019 = vmatprep.mubr.bf16.mxu0 %v22967_v59  ;;  %v17049_v48 = vcombine.high %v4194_v30, %v4198_v8  ;;  %v4199_v4 = vld [vmem:[#allocation5 + $0x1ce8] sm:$0xff]  ;;  %v22996_v10 = vrot.slane %v1558_v57, %v19307_v58  ;;  %v22999_v52 = vrot.slane %v1560_v33, %v19307_v58 }
 0x260   :  { %10923 = vmatprep.mubr.bf16.mxu1 %v22967_v59  ;;  %10995 = vmatpush1.bf16.msra.mxu1 %v17026_v46  ;;  %v23002_v54 = vrot.slane %v1702_v18, %v19307_v58  ;;  %v23005_v41 = vrot.slane %v1704_v2, %v19307_v58  ;;  %v1302_v42 = vcombine.low %v22956_v61, %v22959_v14  ;;  %v4206_v46 = vld [vmem:[#allocation5 + $0x1d20] sm:$0xff]  ;;  %v4203_v57 = vld [vmem:[#allocation5 + $0x1d08] sm:$0xff]  ;;  %v24744_v61 = vld [vmem:[#allocation125_spill] sm:$0xff] }
 0x261   :  { %10996 = vmatprep.subr.bf16.mxu1 %v17035_v6  ;;  %v17042_v34 = vcombine.low %v4187_v7, %v4191_v31  ;;  %v1446_v11 = vcombine.low %v22962_v62, %v22965_v0  ;;  %v24742_v6 = vld [vmem:[#allocation123_spill] sm:$0xff]  ;;  %v24745_v14 = vld [vmem:[#allocation124_spill] sm:$0xff]  ;;  %v24747_v7 = vld [vmem:[#allocation126_spill] sm:$0xff]  ;;  %v17057_v62 = vcombine.high %v4202_v28, %v4206_v46  ;;  %v1591_v0 = vcombine.high %v22996_v10, %v22999_v52 }
 0x262   :  { %10093 = vmatpush1.bf16.msra.mxu0 %v17032_v32  ;;  %v17048_v32 = vcombine.low %v4194_v30, %v4198_v8  ;;  %v1846_v44 = vcombine.low %v24743_v1, %v24742_v6  ;;  %v4207_v30 = vld [vmem:[#allocation5 + $0x1d28] sm:$0xff]  ;;  %v1848_v8 = vcombine.low %v24745_v14, %v24744_v61  ;;  %v1990_v31 = vcombine.low %v24747_v7, %v24746_v47  ;;  %v4210_v2 = vld [vmem:[#allocation5 + $0x1d40] sm:$0xff]  ;;  %v24753_v47 = vld [vmem:[#allocation134_spill] sm:$0xff] }
 0x263   :  { %10094 = vmatprep.subr.bf16.mxu0 %v17041_v39  ;;  %v17051_v39 = vcombine.high %v4195_v3, %v4199_v4  ;;  %v24749_v33 = vld [vmem:[#allocation128_spill] sm:$0xff]  ;;  %v1735_v51 = vcombine.high %v23002_v54, %v23005_v41  ;;  %v17050_v18 = vcombine.low %v4195_v3, %v4199_v4  ;;  %v23027_v63 = vpack.c.bf16 %v1446_v11, %v1302_v42  ;;  %v4222_v1 = vld [vmem:[#allocation5 + $0x1da0] sm:$0xff] }
 0x264   :  { %10997 = vmatpush1.bf16.msra.mxu1 %v17034_v38  ;;  %v1992_v17 = vcombine.low %v24749_v33, %v24748_v40  ;;  %v17056_v53 = vcombine.low %v4202_v28, %v4206_v46  ;;  %v4214_v38 = vld [vmem:[#allocation5 + $0x1d60] sm:$0xff]  ;;  %v23036_v6 = vrot.slane %v1990_v31, %v19307_v58  ;;  %v4211_v3 = vld [vmem:[#allocation5 + $0x1d48] sm:$0xff]  ;;  %v1734_v28 = vcombine.low %v23002_v54, %v23005_v41  ;;  %v24756_v33 = vld [vmem:[#allocation141_spill] sm:$0xff] }
 0x265   :  { %10020 = vmatmul.mubr.bf16.gmra.mrb[4].mxu0 %v22990_v45  ;;  %10998 = vmatprep.subr.bf16.mxu1 %v17043_v5  ;;  %v17059_v5 = vcombine.high %v4203_v57, %v4207_v30  ;;  %v4215_v4 = vld [vmem:[#allocation5 + $0x1d68] sm:$0xff]  ;;  %v23041_v42 = vpack.c.bf16 %v1735_v51, %v1591_v0  ;;  %v17065_v46 = vcombine.high %v4210_v2, %v4214_v38  ;;  %v24754_v40 = vld [vmem:[#allocation139_spill] sm:$0xff] }
 0x266   :  { %10924 = vmatmul.mubr.bf16.gmra.mrb[4].mxu1 %v22990_v45  ;;  %10095 = vmatpush1.bf16.msra.mxu0 %v17040_v50  ;;  %v23030_v50 = vrot.slane %v1846_v44, %v19307_v58  ;;  %v17058_v11 = vcombine.low %v4203_v57, %v4207_v30  ;;  %v24750_v44 = vld [vmem:[#allocation133_spill] sm:$0xff]  ;;  %v24751_v61 = vld [vmem:[#allocation132_spill] sm:$0xff]  ;;  %v17067_v31 = vcombine.high %v4211_v3, %v4215_v4 }
 0x267   :  { %10029 = vmatprep.mubr.bf16.mxu0 %v22993_v23  ;;  %10096 = vmatprep.subr.bf16.mxu0 %v17049_v48  ;;  %v23033_v48 = vrot.slane %v1848_v8, %v19307_v58  ;;  %v2134_v14 = vcombine.low %v24751_v61, %v24750_v44  ;;  %v24752_v8 = vld [vmem:[#allocation135_spill] sm:$0xff]  ;;  %v24757_v54 = vld [vmem:[#allocation140_spill] sm:$0xff]  ;;  %v17064_v57 = vcombine.low %v4210_v2, %v4214_v38 }
 0x268   :  { %10933 = vmatprep.mubr.bf16.mxu1 %v22993_v23  ;;  %10999 = vmatpush1.bf16.msra.mxu1 %v17042_v34  ;;  %v23039_v34 = vrot.slane %v1992_v17, %v19307_v58  ;;  %v2136_v7 = vcombine.low %v24753_v47, %v24752_v8  ;;  %v2280_v41 = vcombine.low %v24757_v54, %v24756_v33  ;;  %v4223_v0 = vld [vmem:[#allocation5 + $0x1da8] sm:$0xff]  ;;  %v4226_v38 = vld [vmem:[#allocation5 + $0x1dc0] sm:$0xff] }
 0x269   :  { %11000 = vmatprep.subr.bf16.mxu1 %v17051_v39  ;;  %v4218_v39 = vld [vmem:[#allocation5 + $0x1d80] sm:$0xff]  ;;  %v1879_v30 = vcombine.high %v23030_v50, %v23033_v48  ;;  %v2568_v33 = vcombine.low %v22759_v49, %v22761_v35 }
 0x26a   :  { %10097 = vmatpush1.bf16.msra.mxu0 %v17048_v32  ;;  %v1590_v32 = vcombine.low %v22996_v10, %v22999_v52  ;;  %v24755_v10 = vld [vmem:[#allocation136_spill] sm:$0xff]  ;;  %v2023_v17 = vcombine.high %v23036_v6, %v23039_v34  ;;  %v17073_v51 = vcombine.high %v4218_v39, %v4222_v1  ;;  %v4230_v44 = vld [vmem:[#allocation5 + $0x1de0] sm:$0xff]  ;;  %v23075_v47 = vrot.slane %v2280_v41, %v19307_v58 }
 0x26b   :  { %10098 = vmatprep.subr.bf16.mxu0 %v17057_v62  ;;  %v2278_v52 = vcombine.low %v24755_v10, %v24754_v40  ;;  %v4219_v62 = vld [vmem:[#allocation5 + $0x1d88] sm:$0xff]  ;;  %v17080_v54 = vcombine.low %v4226_v38, %v4230_v44 }
 0x26c   :  { %11001 = vmatpush1.bf16.msra.mxu1 %v17050_v18  ;;  %v17066_v18 = vcombine.low %v4211_v3, %v4215_v4  ;;  %v23069_v2 = vpack.c.bf16 %v1734_v28, %v1590_v32  ;;  %v17075_v61 = vcombine.high %v4219_v62, %v4223_v0  ;;  %v23077_v3 = vpack.c.bf16 %v2023_v17, %v1879_v30  ;;  %v4227_v4 = vld [vmem:[#allocation5 + $0x1dc8] sm:$0xff]  ;;  %v4246_v30 = vld [vmem:[#allocation5 + $0x1e60] sm:$0xff] }
 0x26d   :  { %10030 = vmatmul.mubr.bf16.gmra.mrb[8].mxu0 %v23027_v63  ;;  %11002 = vmatprep.subr.bf16.mxu1 %v17059_v5  ;;  %v23064_v5 = vrot.slane %v2134_v14, %v19307_v58  ;;  %v23072_v8 = vrot.slane %v2278_v52, %v19307_v58  ;;  %v1878_v32 = vcombine.low %v23030_v50, %v23033_v48  ;;  %v4235_v48 = vld [vmem:[#allocation5 + $0x1e08] sm:$0xff] }
 0x26e   :  { %10934 = vmatmul.mubr.bf16.gmra.mrb[8].mxu1 %v23027_v63  ;;  %10099 = vmatpush1.bf16.msra.mxu0 %v17056_v53  ;;  %v23067_v53 = vrot.slane %v2136_v7, %v19307_v58  ;;  %v2022_v28 = vcombine.low %v23036_v6, %v23039_v34  ;;  %v17081_v14 = vcombine.high %v4226_v38, %v4230_v44  ;;  %v4239_v6 = vld [vmem:[#allocation5 + $0x1e28] sm:$0xff] }
 0x26f   :  { %10039 = vmatprep.mubr.bf16.mxu0 %v23041_v42  ;;  %10943 = vmatprep.mubr.bf16.mxu1 %v23041_v42  ;;  %v17074_v7 = vcombine.low %v4219_v62, %v4223_v0  ;;  %v2311_v40 = vcombine.high %v23072_v8, %v23075_v47  ;;  %v2422_v50 = vcombine.low %v22734_v56, %v22736_v15  ;;  %v4243_v17 = vld [vmem:[#allocation5 + $0x1e48] sm:$0xff] }
 0x270   :  { %10100 = vmatprep.subr.bf16.mxu0 %v17065_v46  ;;  %11003 = vmatpush1.bf16.msra.mxu1 %v17058_v11  ;;  %v4231_v46 = vld [vmem:[#allocation5 + $0x1de8] sm:$0xff]  ;;  %v17072_v11 = vcombine.low %v4218_v39, %v4222_v1  ;;  %v4234_v39 = vld [vmem:[#allocation5 + $0x1e00] sm:$0xff]  ;;  %v2424_v34 = vcombine.low %v22745_v13, %v22747_v37  ;;  %v2566_v52 = vcombine.low %v22749_v22, %v22757_v43 }
 0x271   :  { %11004 = vmatprep.subr.bf16.mxu1 %v17067_v31  ;;  %v2167_v31 = vcombine.high %v23064_v5, %v23067_v53  ;;  %v4238_v1 = vld [vmem:[#allocation5 + $0x1e20] sm:$0xff]  ;;  %v17083_v10 = vcombine.high %v4227_v4, %v4231_v46  ;;  %v17082_v15 = vcombine.low %v4227_v4, %v4231_v46  ;;  %v23099_v41 = vpack.c.bf16 %v2022_v28, %v1878_v32  ;;  %v4247_v62 = vld [vmem:[#allocation5 + $0x1e68] sm:$0xff] }
 0x272   :  { %10101 = vmatpush1.bf16.msra.mxu0 %v17064_v57  ;;  %v17089_v56 = vcombine.high %v4234_v39, %v4238_v1  ;;  %v17091_v37 = vcombine.high %v4235_v48, %v4239_v6  ;;  %v4242_v13 = vld [vmem:[#allocation5 + $0x1e40] sm:$0xff]  ;;  %v23104_v22 = vrot.slane %v2422_v50, %v19307_v58  ;;  %v23107_v49 = vrot.slane %v2424_v34, %v19307_v58 }
 0x273   :  { %10102 = vmatprep.subr.bf16.mxu0 %v17073_v51  ;;  %v23101_v57 = vpack.c.bf16 %v2311_v40, %v2167_v31  ;;  %v23110_v35 = vrot.slane %v2566_v52, %v19307_v58  ;;  %v23113_v43 = vrot.slane %v2568_v33, %v19307_v58  ;;  %v2166_v0 = vcombine.low %v23064_v5, %v23067_v53  ;;  %v4254_v5 = vld [vmem:[#allocation5 + $0x1ea0] sm:$0xff] }
 0x274   :  { %11005 = vmatpush1.bf16.msra.mxu1 %v17066_v18  ;;  %v2310_v51 = vcombine.low %v23072_v8, %v23075_v47  ;;  %v17088_v18 = vcombine.low %v4234_v39, %v4238_v1  ;;  %v17090_v38 = vcombine.low %v4235_v48, %v4239_v6  ;;  %v17097_v44 = vcombine.high %v4242_v13, %v4246_v30  ;;  %v4258_v31 = vld [vmem:[#allocation5 + $0x1ec0] sm:$0xff]  ;;  %v4259_v1 = vld [vmem:[#allocation5 + $0x1ec8] sm:$0xff] }
 0x275   :  { %10040 = vmatmul.mubr.bf16.gmra.mrb[12].mxu0 %v23069_v2  ;;  %11006 = vmatprep.subr.bf16.mxu1 %v17075_v61  ;;  %v2710_v61 = vcombine.low %v22831_v27, %v22833_v19  ;;  %v2712_v4 = vcombine.low %v22840_v25, %v22842_v16  ;;  %v17099_v46 = vcombine.high %v4243_v17, %v4247_v62  ;;  %v4251_v19 = vld [vmem:[#allocation5 + $0x1e88] sm:$0xff]  ;;  %v4262_v40 = vld [vmem:[#allocation5 + $0x1ee0] sm:$0xff] }
 0x276   :  { %10944 = vmatmul.mubr.bf16.gmra.mrb[12].mxu1 %v23069_v2  ;;  %10049 = vmatprep.mubr.bf16.mxu0 %v23077_v3  ;;  %v2854_v53 = vcombine.low %v22844_v21, %v22856_v12  ;;  %v2856_v8 = vcombine.low %v22858_v24, %v22860_v55  ;;  %v2455_v27 = vcombine.high %v23104_v22, %v23107_v49  ;;  %v4255_v25 = vld [vmem:[#allocation5 + $0x1ea8] sm:$0xff] }
 0x277   :  { %10103 = vmatpush1.bf16.msra.mxu0 %v17072_v11  ;;  %10953 = vmatprep.mubr.bf16.mxu1 %v23077_v3  ;;  %v4250_v11 = vld [vmem:[#allocation5 + $0x1e80] sm:$0xff]  ;;  %v2599_v16 = vcombine.high %v23110_v35, %v23113_v43  ;;  %v17096_v47 = vcombine.low %v4242_v13, %v4246_v30  ;;  %v17098_v21 = vcombine.low %v4243_v17, %v4247_v62  ;;  %v24759_v30 = vld [vmem:[#allocation142_spill] sm:$0xff]  ;;  %v24761_v17 = vld [vmem:[#allocation144_spill] sm:$0xff] }
 0x278   :  { %10104 = vmatprep.subr.bf16.mxu0 %v17081_v14  ;;  %11007 = vmatpush1.bf16.msra.mxu1 %v17074_v7  ;;  %v17105_v12 = vcombine.high %v4250_v11, %v4254_v5  ;;  %v23136_v24 = vrot.slane %v2710_v61, %v19307_v58  ;;  %v23139_v55 = vrot.slane %v2712_v4, %v19307_v58  ;;  %v24758_v13 = vld [vmem:[#allocation143_spill] sm:$0xff] }
 0x279   :  { %11008 = vmatprep.subr.bf16.mxu1 %v17083_v10  ;;  %v23141_v32 = vpack.c.bf16 %v2310_v51, %v2166_v0  ;;  %v17107_v28 = vcombine.high %v4251_v19, %v4255_v25  ;;  %v23144_v14 = vrot.slane %v2854_v53, %v19307_v58  ;;  %v23147_v7 = vrot.slane %v2856_v8, %v19307_v58  ;;  %v4263_v10 = vld [vmem:[#allocation5 + $0x1ee8] sm:$0xff]  ;;  %v24762_v0 = vld [vmem:[#allocation147_spill] sm:$0xff]  ;;  %v24763_v51 = vld [vmem:[#allocation146_spill] sm:$0xff] }
 0x27a   :  { %v23149_v39 = vpack.c.bf16 %v2599_v16, %v2455_v27  ;;  %v2454_v50 = vcombine.low %v23104_v22, %v23107_v49  ;;  %v2598_v48 = vcombine.low %v23110_v35, %v23113_v43  ;;  %v17104_v6 = vcombine.low %v4250_v11, %v4254_v5  ;;  %v4267_v49 = vld [vmem:[#allocation5 + $0x1f08] sm:$0xff]  ;;  %v24760_v43 = vld [vmem:[#allocation145_spill] sm:$0xff] }
 0x27b   :  { %10105 = vmatpush1.bf16.msra.mxu0 %v17080_v54  ;;  %v17106_v34 = vcombine.low %v4251_v19, %v4255_v25  ;;  %v2743_v52 = vcombine.high %v23136_v24, %v23139_v55  ;;  %v17113_v33 = vcombine.high %v4258_v31, %v4262_v40  ;;  %v2887_v54 = vcombine.high %v23144_v14, %v23147_v7  ;;  %v4271_v35 = vld [vmem:[#allocation5 + $0x1f28] sm:$0xff]  ;;  %v3276_v27 = vld [vmem:[#allocation5 + $0x10] sm:$0xff] }
 0x27c   :  { %10106 = vmatprep.subr.bf16.mxu0 %v17089_v56  ;;  %11009 = vmatpush1.bf16.msra.mxu1 %v17082_v15  ;;  %v17115_v56 = vcombine.high %v4259_v1, %v4263_v10  ;;  %v4266_v15 = vld [vmem:[#allocation5 + $0x1f00] sm:$0xff]  ;;  %v695_v22 = vcombine.high %v24759_v30, %v24758_v13  ;;  %v697_v62 = vcombine.high %v24761_v17, %v24760_v43  ;;  %v3280_v16 = vld [vmem:[#allocation5 + $0x30] sm:$0xff]  ;;  %v3297_v43 = vld [vmem:[#allocation5 + $0xb8] sm:$0xff] }
 0x27d   :  { %10050 = vmatmul.mubr.bf16.gmra.mrb[16].mxu0 %v23099_v41  ;;  %11010 = vmatprep.subr.bf16.mxu1 %v17091_v37  ;;  %v4270_v37 = vld [vmem:[#allocation5 + $0x1f20] sm:$0xff]  ;;  %v17112_v4 = vcombine.low %v4258_v31, %v4262_v40  ;;  %v23171_v5 = vpack.c.bf16 %v2598_v48, %v2454_v50  ;;  %v23173_v53 = vpack.c.bf16 %v2887_v54, %v2743_v52  ;;  %v3288_v52 = vld [vmem:[#allocation5 + $0x70] sm:$0xff]  ;;  %v3285_v54 = vld [vmem:[#allocation5 + $0x58] sm:$0xff] }
 0x27e   :  { %10954 = vmatmul.mubr.bf16.gmra.mrb[16].mxu1 %v23099_v41  ;;  %10059 = vmatprep.mubr.bf16.mxu0 %v23101_v57  ;;  %v17121_v11 = vcombine.high %v4266_v15, %v4270_v37  ;;  %v17123_v8 = vcombine.high %v4267_v49, %v4271_v35  ;;  %v711_v19 = vrot.slane %v695_v22, %v19307_v58  ;;  %v3292_v22 = vld [vmem:[#allocation5 + $0x90] sm:$0xff] }
 0x27f   :  { %10963 = vmatprep.mubr.bf16.mxu1 %v23101_v57  ;;  %10107 = vmatpush1.bf16.msra.mxu0 %v17088_v18  ;;  %v839_v18 = vcombine.high %v24763_v51, %v24762_v0  ;;  %v725_v25 = vrot.slane %v697_v62, %v19307_v58  ;;  %v17120_v31 = vcombine.low %v4266_v15, %v4270_v37  ;;  %v24766_v51 = vld [vmem:[#allocation111_spill] sm:$0xff] }
 0x280   :  { %10108 = vmatprep.subr.bf16.mxu0 %v17097_v44  ;;  %11011 = vmatpush1.bf16.msra.mxu1 %v17090_v38  ;;  %v24764_v38 = vld [vmem:[#allocation149_spill] sm:$0xff]  ;;  %v24765_v44 = vld [vmem:[#allocation148_spill] sm:$0xff]  ;;  %v17122_v40 = vcombine.low %v4267_v49, %v4271_v35  ;;  %v2886_v50 = vcombine.low %v23144_v14, %v23147_v7  ;;  %v16132_v15 = vcombine.low %v3276_v27, %v3280_v16  ;;  %v3293_v35 = vld [vmem:[#allocation5 + $0x98] sm:$0xff] }
 0x281   :  { %11012 = vmatprep.subr.bf16.mxu1 %v17099_v46  ;;  %v841_v61 = vcombine.high %v24765_v44, %v24764_v38  ;;  %v17114_v46 = vcombine.low %v4259_v1, %v4263_v10  ;;  %v16133_v1 = vcombine.high %v3276_v27, %v3280_v16  ;;  %v2742_v10 = vcombine.low %v23136_v24, %v23139_v55  ;;  %v3284_v7 = vld [vmem:[#allocation5 + $0x50] sm:$0xff] }
 0x282   :  { %v728_v55 = vcombine.low %v711_v19, %v725_v25  ;;  %v16141_v13 = vcombine.high %v3284_v7, %v3288_v52  ;;  %v3296_v49 = vld [vmem:[#allocation5 + $0xb0] sm:$0xff]  ;;  %v16140_v17 = vcombine.low %v3284_v7, %v3288_v52 }
 0x283   :  { %10109 = vmatpush1.bf16.msra.mxu0 %v17096_v47  ;;  %v855_v47 = vrot.slane %v839_v18, %v19307_v58  ;;  %v16149_v0 = vcombine.high %v3292_v22, %v3296_v49  ;;  %v16151_v18 = vcombine.high %v3293_v35, %v3297_v43  ;;  %v3300_v38 = vld [vmem:[#allocation5 + $0xd0] sm:$0xff] }
 0x284   :  { %11013 = vmatpush1.bf16.msra.mxu1 %v17098_v21  ;;  %10110 = vmatprep.subr.bf16.mxu0 %v17105_v12  ;;  %v869_v21 = vrot.slane %v841_v61, %v19307_v58  ;;  %v3277_v12 = vld [vmem:[#allocation5 + $0x18] sm:$0xff]  ;;  %v729_v58 = vcombine.high %v711_v19, %v725_v25  ;;  %v3304_v44 = vld [vmem:[#allocation5 + $0xf0] sm:$0xff] }
 0x285   :  { %10060 = vmatmul.mubr.bf16.gmra.mrb[20].mxu0 %v23141_v32  ;;  %11014 = vmatprep.subr.bf16.mxu1 %v17107_v28  ;;  %v3281_v28 = vld [vmem:[#allocation5 + $0x38] sm:$0xff]  ;;  %v3308_v16 = vld [vmem:[#allocation5 + $0x110] sm:$0xff] }
 0x286   :  { %10964 = vmatmul.mubr.bf16.gmra.mrb[20].mxu1 %v23141_v32  ;;  %10069 = vmatprep.mubr.bf16.mxu0 %v23149_v39  ;;  %v16135_v48 = vcombine.high %v3277_v12, %v3281_v28  ;;  %v872_v14 = vcombine.low %v855_v47, %v869_v21  ;;  %v16134_v37 = vcombine.low %v3277_v12, %v3281_v28  ;;  %v3301_v61 = vld [vmem:[#allocation5 + $0xd8] sm:$0xff]  ;;  %v3312_v19 = vld [vmem:[#allocation5 + $0x130] sm:$0xff] }
 0x287   :  { %10973 = vmatprep.mubr.bf16.mxu1 %v23149_v39  ;;  %10111 = vmatpush1.bf16.msra.mxu0 %v17104_v6  ;;  %v873_v6 = vcombine.high %v855_v47, %v869_v21  ;;  %v24767_v25 = vld [vmem:[#allocation110_spill] sm:$0xff]  ;;  %v16156_v12 = vcombine.low %v3300_v38, %v3304_v44  ;;  %v3324_v52 = vld [vmem:[#allocation5 + $0x190] sm:$0xff] }
 0x288   :  { %11015 = vmatpush1.bf16.msra.mxu1 %v17106_v34  ;;  %10112 = vmatprep.subr.bf16.mxu0 %v17113_v33  ;;  %v23187_v34 = vpack.c.bf16 %v2886_v50, %v2742_v10  ;;  %v23197_v33 = vpack.c.bf16 %v872_v14, %v728_v55  ;;  %v3309_v47 = vld [vmem:[#allocation5 + $0x118] sm:$0xff]  ;;  %v3316_v10 = vld [vmem:[#allocation5 + $0x150] sm:$0xff] }
 0x289   :  { %11016 = vmatprep.subr.bf16.mxu1 %v17115_v56  ;;  %v23189_v24 = vpack.c.bf16 %v873_v6, %v729_v58  ;;  %v3289_v56 = vld [vmem:[#allocation5 + $0x78] sm:$0xff]  ;;  %v3320_v50 = vld [vmem:[#allocation5 + $0x170] sm:$0xff]  ;;  %v16164_v6 = vcombine.low %v3308_v16, %v3312_v19 }
 0x28a   :  { %v16143_v30 = vcombine.high %v3285_v54, %v3289_v56  ;;  %v16142_v62 = vcombine.low %v3285_v54, %v3289_v56  ;;  %v3313_v21 = vld [vmem:[#allocation5 + $0x138] sm:$0xff]  ;;  %v16173_v14 = vcombine.high %v3316_v10, %v3320_v50  ;;  %v3328_v54 = vld [vmem:[#allocation5 + $0x1b0] sm:$0xff] }
 0x28b   :  { %10113 = vmatpush1.bf16.msra.mxu0 %v17112_v4  ;;  %v3305_v4 = vld [vmem:[#allocation5 + $0xf8] sm:$0xff]  ;;  %v16166_v55 = vcombine.low %v3309_v47, %v3313_v21 }
 0x28c   :  { %11017 = vmatpush1.bf16.msra.mxu1 %v17114_v46  ;;  %10114 = vmatprep.subr.bf16.mxu0 %v17121_v11  ;;  %v16148_v46 = vcombine.low %v3292_v22, %v3296_v49  ;;  %v16150_v11 = vcombine.low %v3293_v35, %v3297_v43  ;;  %v16159_v27 = vcombine.high %v3301_v61, %v3305_v4  ;;  %v3321_v58 = vld [vmem:[#allocation5 + $0x178] sm:$0xff]  ;;  %v3332_v43 = vld [vmem:[#allocation5 + $0x1d0] sm:$0xff] }
 0x28d   :  { %10070 = vmatmul.mubr.bf16.gmra.mrb[24].mxu0 %v23171_v5  ;;  %11018 = vmatprep.subr.bf16.mxu1 %v17123_v8  ;;  %v16157_v8 = vcombine.high %v3300_v38, %v3304_v44  ;;  %v16158_v28 = vcombine.low %v3301_v61, %v3305_v4  ;;  %v24769_v56 = vld [vmem:[#allocation118_spill] sm:$0xff]  ;;  %v16181_v22 = vcombine.high %v3324_v52, %v3328_v54  ;;  %v3340_v4 = vld [vmem:[#allocation5 + $0x210] sm:$0xff] }
 0x28e   :  { %10974 = vmatmul.mubr.bf16.gmra.mrb[24].mxu1 %v23171_v5  ;;  %10079 = vmatprep.mubr.bf16.mxu0 %v23173_v53  ;;  %v24770_v49 = vld [vmem:[#allocation130_spill] sm:$0xff] }
 0x28f   :  { %10983 = vmatprep.mubr.bf16.mxu1 %v23173_v53  ;;  %10115 = vmatpush1.bf16.msra.mxu0 %v17120_v31  ;;  %v16165_v31 = vcombine.high %v3308_v16, %v3312_v19 }
 0x290   :  { %11019 = vmatpush1.bf16.msra.mxu1 %v17122_v40  ;;  %11107 = vmatprep.subr.bf16.mxu0 %v16133_v1  ;;  %v24768_v40 = vld [vmem:[#allocation117_spill] sm:$0xff]  ;;  %v16167_v1 = vcombine.high %v3309_v47, %v3313_v21 }
 0x291   :  { %12011 = vmatprep.subr.bf16.mxu1 %v16135_v48  ;;  %v3317_v48 = vld [vmem:[#allocation5 + $0x158] sm:$0xff]  ;;  %v24772_v21 = vld [vmem:[#allocation137_spill] sm:$0xff] }
 0x292   :  { %v16175_v7 = vcombine.high %v3317_v48, %v3321_v58 }
 0x295   :  { %10080 = vmatmul.mubr.bf16.gmra.mrb[28].mxu0 %v23187_v34 }
 0x296   :  { %10984 = vmatmul.mubr.bf16.gmra.mrb[28].mxu1 %v23187_v34  ;;  %17128 = vmatprep.mubr.msk.bf16.mxu0 %vm9274_vm0, %v23189_v24 }
 0x297   :  { %17136 = vmatprep.mubr.msk.bf16.mxu1 %vm9274_vm0, %v23189_v24 }
 0x29d   :  { %10123 = vmatmul.mubr.bf16.vlgmr.msra.gmra.mrb[0].mxu0 %v23197_v33 }
 0x29e   :  { %11027 = vmatmul.mubr.bf16.vlgmr.msra.gmra.mrb[0].mxu1 %v23197_v33  ;;  %11108 = vmatpush1.bf16.msra.mxu0 %v16132_v15  ;;  %v3325_v15 = vld [vmem:[#allocation5 + $0x198] sm:$0xff] }
 0x29f   :  { %12012 = vmatpush1.bf16.msra.mxu1 %v16134_v37  ;;  %11109 = vmatprep.subr.bf16.mxu0 %v16141_v13  ;;  %v3329_v37 = vld [vmem:[#allocation5 + $0x1b8] sm:$0xff]  ;;  %v16172_v13 = vcombine.low %v3316_v10, %v3320_v50 }
 0x2a0   :  { %12013 = vmatprep.subr.bf16.mxu1 %v16143_v30  ;;  %17129 = vmatprep.mubr.msk.bf16.mxu0 %vm9274_vm0, %v24766_v51  ;;  %v16174_v30 = vcombine.low %v3317_v48, %v3321_v58  ;;  %v16183_v35 = vcombine.high %v3325_v15, %v3329_v37  ;;  %v16182_v38 = vcombine.low %v3325_v15, %v3329_v37  ;;  %v3353_v10 = vld [vmem:[#allocation5 + $0x278] sm:$0xff] }
 0x2a1   :  { %17137 = vmatprep.mubr.msk.bf16.mxu1 %vm9274_vm0, %v24766_v51 }
 0x2a2   :  { %11110 = vmatpush1.bf16.msra.mxu0 %v16140_v17  ;;  %v3336_v17 = vld [vmem:[#allocation5 + $0x1f0] sm:$0xff] }
 0x2a3   :  { %12014 = vmatpush1.bf16.msra.mxu1 %v16142_v62  ;;  %11111 = vmatprep.subr.bf16.mxu0 %v16149_v0  ;;  %v3333_v62 = vld [vmem:[#allocation5 + $0x1d8] sm:$0xff]  ;;  %v16189_v44 = vcombine.high %v3332_v43, %v3336_v17  ;;  %v16188_v16 = vcombine.low %v3332_v43, %v3336_v17  ;;  %v3368_v43 = vld [vmem:[#allocation5 + $0x2f0] sm:$0xff] }
 0x2a4   :  { %12015 = vmatprep.subr.bf16.mxu1 %v16151_v18  ;;  %v3337_v0 = vld [vmem:[#allocation5 + $0x1f8] sm:$0xff]  ;;  %v16180_v18 = vcombine.low %v3324_v52, %v3328_v54 }
 0x2a5   :  { %10133 = vmatmul.mubr.bf16.gmra.mrb[4].mxu0 %v24767_v25  ;;  %v16191_v61 = vcombine.high %v3333_v62, %v3337_v0  ;;  %v16190_v19 = vcombine.low %v3333_v62, %v3337_v0  ;;  %v3357_v52 = vld [vmem:[#allocation5 + $0x298] sm:$0xff] }
 0x2a6   :  { %11037 = vmatmul.mubr.bf16.gmra.mrb[4].mxu1 %v24767_v25  ;;  %11112 = vmatpush1.bf16.msra.mxu0 %v16148_v46  ;;  %v3344_v46 = vld [vmem:[#allocation5 + $0x230] sm:$0xff]  ;;  %v3361_v54 = vld [vmem:[#allocation5 + $0x2b8] sm:$0xff] }
 0x2a7   :  { %12016 = vmatpush1.bf16.msra.mxu1 %v16150_v11  ;;  %11113 = vmatprep.subr.bf16.mxu0 %v16157_v8  ;;  %v24771_v11 = vld [vmem:[#allocation131_spill] sm:$0xff]  ;;  %v3341_v8 = vld [vmem:[#allocation5 + $0x218] sm:$0xff]  ;;  %v16197_v47 = vcombine.high %v3340_v4, %v3344_v46  ;;  %v16196_v50 = vcombine.low %v3340_v4, %v3344_v46  ;;  %v3376_v4 = vld [vmem:[#allocation5 + $0x330] sm:$0xff] }
 0x2a8   :  { %12017 = vmatprep.subr.bf16.mxu1 %v16159_v27  ;;  %17130 = vmatprep.mubr.msk.bf16.mxu0 %vm9274_vm0, %v24768_v40  ;;  %v3345_v27 = vld [vmem:[#allocation5 + $0x238] sm:$0xff]  ;;  %v24775_v46 = vld [vmem:[#allocation151_spill] sm:$0xff] }
 0x2a9   :  { %17138 = vmatprep.mubr.msk.bf16.mxu1 %vm9274_vm0, %v24768_v40  ;;  %v16198_v48 = vcombine.low %v3341_v8, %v3345_v27  ;;  %v3365_v17 = vld [vmem:[#allocation5 + $0x2d8] sm:$0xff] }
 0x2aa   :  { %11114 = vmatpush1.bf16.msra.mxu0 %v16156_v12  ;;  %v16199_v12 = vcombine.high %v3341_v8, %v3345_v27  ;;  %v3369_v62 = vld [vmem:[#allocation5 + $0x2f8] sm:$0xff] }
 0x2ab   :  { %12018 = vmatpush1.bf16.msra.mxu1 %v16158_v28  ;;  %11115 = vmatprep.subr.bf16.mxu0 %v16165_v31  ;;  %v3348_v28 = vld [vmem:[#allocation5 + $0x250] sm:$0xff]  ;;  %v3373_v8 = vld [vmem:[#allocation5 + $0x318] sm:$0xff] }
 0x2ac   :  { %12019 = vmatprep.subr.bf16.mxu1 %v16167_v1  ;;  %v3352_v31 = vld [vmem:[#allocation5 + $0x270] sm:$0xff]  ;;  %v3349_v1 = vld [vmem:[#allocation5 + $0x258] sm:$0xff] }
 0x2ad   :  { %10143 = vmatmul.mubr.bf16.gmra.mrb[8].mxu0 %v24769_v56  ;;  %v16205_v58 = vcombine.high %v3348_v28, %v3352_v31  ;;  %v16204_v15 = vcombine.low %v3348_v28, %v3352_v31  ;;  %v16206_v37 = vcombine.low %v3349_v1, %v3353_v10  ;;  %v3377_v27 = vld [vmem:[#allocation5 + $0x338] sm:$0xff]  ;;  %v3380_v28 = vld [vmem:[#allocation5 + $0x350] sm:$0xff] }
 0x2ae   :  { %11047 = vmatmul.mubr.bf16.gmra.mrb[8].mxu1 %v24769_v56  ;;  %11116 = vmatpush1.bf16.msra.mxu0 %v16164_v6  ;;  %v16207_v6 = vcombine.high %v3349_v1, %v3353_v10  ;;  %v3384_v31 = vld [vmem:[#allocation5 + $0x370] sm:$0xff]  ;;  %v3381_v1 = vld [vmem:[#allocation5 + $0x358] sm:$0xff] }
 0x2af   :  { %12020 = vmatpush1.bf16.msra.mxu1 %v16166_v55  ;;  %11117 = vmatprep.subr.bf16.mxu0 %v16173_v14  ;;  %v3356_v55 = vld [vmem:[#allocation5 + $0x290] sm:$0xff]  ;;  %v3385_v10 = vld [vmem:[#allocation5 + $0x378] sm:$0xff] }
 0x2b0   :  { %12021 = vmatprep.subr.bf16.mxu1 %v16175_v7  ;;  %17131 = vmatprep.mubr.msk.bf16.mxu0 %vm9274_vm0, %v24770_v49  ;;  %v3360_v14 = vld [vmem:[#allocation5 + $0x2b0] sm:$0xff]  ;;  %v24773_v7 = vld [vmem:[#allocation138_spill] sm:$0xff] }
 0x2b1   :  { %17139 = vmatprep.mubr.msk.bf16.mxu1 %vm9274_vm0, %v24770_v49  ;;  %v16212_v0 = vcombine.low %v3356_v55, %v3360_v14 }
 0x2b2   :  { %11118 = vmatpush1.bf16.msra.mxu0 %v16172_v13  ;;  %v16213_v13 = vcombine.high %v3356_v55, %v3360_v14  ;;  %v3388_v55 = vld [vmem:[#allocation5 + $0x390] sm:$0xff] }
 0x2b3   :  { %12022 = vmatpush1.bf16.msra.mxu1 %v16174_v30  ;;  %11119 = vmatprep.subr.bf16.mxu0 %v16181_v22  ;;  %v24774_v30 = vld [vmem:[#allocation150_spill] sm:$0xff]  ;;  %v16215_v22 = vcombine.high %v3357_v52, %v3361_v54  ;;  %v3392_v14 = vld [vmem:[#allocation5 + $0x3b0] sm:$0xff] }
 0x2b4   :  { %12023 = vmatprep.subr.bf16.mxu1 %v16183_v35  ;;  %v3364_v35 = vld [vmem:[#allocation5 + $0x2d0] sm:$0xff] }
 0x2b5   :  { %10153 = vmatmul.mubr.bf16.gmra.mrb[12].mxu0 %v24771_v11 }
 0x2b6   :  { %11057 = vmatmul.mubr.bf16.gmra.mrb[12].mxu1 %v24771_v11  ;;  %11120 = vmatpush1.bf16.msra.mxu0 %v16180_v18  ;;  %v16214_v18 = vcombine.low %v3357_v52, %v3361_v54  ;;  %v24776_v52 = vld [vmem:[#allocation152_spill] sm:$0xff]  ;;  %v3389_v54 = vld [vmem:[#allocation5 + $0x398] sm:$0xff] }
 0x2b7   :  { %12024 = vmatpush1.bf16.msra.mxu1 %v16182_v38  ;;  %11121 = vmatprep.subr.bf16.mxu0 %v16189_v44  ;;  %v16221_v38 = vcombine.high %v3364_v35, %v3368_v43  ;;  %v16223_v44 = vcombine.high %v3365_v17, %v3369_v62 }
 0x2b8   :  { %12025 = vmatprep.subr.bf16.mxu1 %v16191_v61  ;;  %17132 = vmatprep.mubr.msk.bf16.mxu0 %vm9274_vm0, %v24772_v21  ;;  %v3372_v61 = vld [vmem:[#allocation5 + $0x310] sm:$0xff] }
 0x2b9   :  { %17140 = vmatprep.mubr.msk.bf16.mxu1 %vm9274_vm0, %v24772_v21 }
 0x2ba   :  { %11122 = vmatpush1.bf16.msra.mxu0 %v16188_v16  ;;  %v16220_v16 = vcombine.low %v3364_v35, %v3368_v43  ;;  %v3396_v43 = vld [vmem:[#allocation5 + $0x3d0] sm:$0xff] }
 0x2bb   :  { %12026 = vmatpush1.bf16.msra.mxu1 %v16190_v19  ;;  %11123 = vmatprep.subr.bf16.mxu0 %v16197_v47  ;;  %v16222_v19 = vcombine.low %v3365_v17, %v3369_v62  ;;  %v16229_v47 = vcombine.high %v3372_v61, %v3376_v4  ;;  %v3400_v17 = vld [vmem:[#allocation5 + $0x3f0] sm:$0xff]  ;;  %v3397_v62 = vld [vmem:[#allocation5 + $0x3d8] sm:$0xff] }
 0x2bc   :  { %12027 = vmatprep.subr.bf16.mxu1 %v16199_v12  ;;  %v16231_v12 = vcombine.high %v3373_v8, %v3377_v27 }
 0x2bd   :  { %10163 = vmatmul.mubr.bf16.gmra.mrb[16].mxu0 %v24773_v7 }
 0x2be   :  { %11067 = vmatmul.mubr.bf16.gmra.mrb[16].mxu1 %v24773_v7  ;;  %11124 = vmatpush1.bf16.msra.mxu0 %v16196_v50  ;;  %v16228_v50 = vcombine.low %v3372_v61, %v3376_v4  ;;  %v3404_v4 = vld [vmem:[#allocation5 + $0x410] sm:$0xff] }
 0x2bf   :  { %12028 = vmatpush1.bf16.msra.mxu1 %v16198_v48  ;;  %11125 = vmatprep.subr.bf16.mxu0 %v16205_v58  ;;  %v16230_v48 = vcombine.low %v3373_v8, %v3377_v27  ;;  %v16237_v58 = vcombine.high %v3380_v28, %v3384_v31  ;;  %v3408_v8 = vld [vmem:[#allocation5 + $0x430] sm:$0xff]  ;;  %v3405_v27 = vld [vmem:[#allocation5 + $0x418] sm:$0xff] }
 0x2c0   :  { %12029 = vmatprep.subr.bf16.mxu1 %v16207_v6  ;;  %17133 = vmatprep.mubr.msk.bf16.mxu0 %vm9274_vm0, %v24774_v30  ;;  %v16239_v6 = vcombine.high %v3381_v1, %v3385_v10 }
 0x2c1   :  { %17141 = vmatprep.mubr.msk.bf16.mxu1 %vm9274_vm0, %v24774_v30 }
 0x2c2   :  { %11126 = vmatpush1.bf16.msra.mxu0 %v16204_v15  ;;  %v3393_v15 = vld [vmem:[#allocation5 + $0x3b8] sm:$0xff] }
 0x2c3   :  { %12030 = vmatpush1.bf16.msra.mxu1 %v16206_v37  ;;  %11127 = vmatprep.subr.bf16.mxu0 %v16213_v13  ;;  %v16236_v37 = vcombine.low %v3380_v28, %v3384_v31  ;;  %v16238_v13 = vcombine.low %v3381_v1, %v3385_v10  ;;  %v16247_v35 = vcombine.high %v3389_v54, %v3393_v15  ;;  %v24777_v28 = vld [vmem:[#allocation15_spill] sm:$0xff]  ;;  %v3412_v1 = vld [vmem:[#allocation5 + $0x450] sm:$0xff] }
 0x2c4   :  { %12031 = vmatprep.subr.bf16.mxu1 %v16215_v22  ;;  %v16245_v22 = vcombine.high %v3388_v55, %v3392_v14  ;;  %v3416_v10 = vld [vmem:[#allocation5 + $0x470] sm:$0xff] }
 0x2c5   :  { %10173 = vmatmul.mubr.bf16.gmra.mrb[20].mxu0 %v24775_v46 }
 0x2c6   :  { %11077 = vmatmul.mubr.bf16.gmra.mrb[20].mxu1 %v24775_v46  ;;  %11128 = vmatpush1.bf16.msra.mxu0 %v16212_v0  ;;  %v3401_v0 = vld [vmem:[#allocation5 + $0x3f8] sm:$0xff] }
 0x2c7   :  { %12032 = vmatpush1.bf16.msra.mxu1 %v16214_v18  ;;  %11129 = vmatprep.subr.bf16.mxu0 %v16221_v38  ;;  %v16244_v18 = vcombine.low %v3388_v55, %v3392_v14  ;;  %v16246_v38 = vcombine.low %v3389_v54, %v3393_v15  ;;  %v16255_v61 = vcombine.high %v3397_v62, %v3401_v0  ;;  %v3420_v54 = vld [vmem:[#allocation5 + $0x490] sm:$0xff] }
 0x2c8   :  { %12033 = vmatprep.subr.bf16.mxu1 %v16223_v44  ;;  %17134 = vmatprep.mubr.msk.bf16.mxu0 %vm9274_vm0, %v22846_v29  ;;  %v16253_v44 = vcombine.high %v3396_v43, %v3400_v17  ;;  %v16269_v55 = vcombine.high %v3412_v1, %v3416_v10  ;;  %v3424_v15 = vld [vmem:[#allocation5 + $0x4b0] sm:$0xff] }
 0x2c9   :  { %17142 = vmatprep.mubr.msk.bf16.mxu1 %vm9274_vm0, %v22846_v29 }
 0x2ca   :  { %11130 = vmatpush1.bf16.msra.mxu0 %v16220_v16  ;;  %v3409_v16 = vld [vmem:[#allocation5 + $0x438] sm:$0xff] }
 0x2cb   :  { %12034 = vmatpush1.bf16.msra.mxu1 %v16222_v19  ;;  %11131 = vmatprep.subr.bf16.mxu0 %v16229_v47  ;;  %v16252_v19 = vcombine.low %v3396_v43, %v3400_v17  ;;  %v16254_v47 = vcombine.low %v3397_v62, %v3401_v0  ;;  %v16263_v31 = vcombine.high %v3405_v27, %v3409_v16  ;;  %v24779_v62 = vld [vmem:[#allocation43_spill] sm:$0xff] }
 0x2cc   :  { %12035 = vmatprep.subr.bf16.mxu1 %v16231_v12  ;;  %v16261_v12 = vcombine.high %v3404_v4, %v3408_v8  ;;  %v16277_v17 = vcombine.high %v3420_v54, %v3424_v15 }
 0x2cd   :  { %10183 = vmatmul.mubr.bf16.gmra.mrb[24].mxu0 %v24776_v52 }
 0x2ce   :  { %11087 = vmatmul.mubr.bf16.gmra.mrb[24].mxu1 %v24776_v52  ;;  %11132 = vmatpush1.bf16.msra.mxu0 %v16228_v50  ;;  %v3413_v50 = vld [vmem:[#allocation5 + $0x458] sm:$0xff] }
 0x2cf   :  { %12036 = vmatpush1.bf16.msra.mxu1 %v16230_v48  ;;  %11133 = vmatprep.subr.bf16.mxu0 %v16237_v58  ;;  %v3417_v48 = vld [vmem:[#allocation5 + $0x478] sm:$0xff]  ;;  %v16260_v58 = vcombine.low %v3404_v4, %v3408_v8  ;;  %v16276_v4 = vcombine.low %v3420_v54, %v3424_v15 }
 0x2d0   :  { %12037 = vmatprep.subr.bf16.mxu1 %v16239_v6  ;;  %17135 = vmatprep.mubr.msk.bf16.mxu0 %vm9274_vm0, %v22932_v36  ;;  %v16262_v6 = vcombine.low %v3405_v27, %v3409_v16  ;;  %v16271_v14 = vcombine.high %v3413_v50, %v3417_v48  ;;  %v16270_v43 = vcombine.low %v3413_v50, %v3417_v48  ;;  %v24781_v48 = vld [vmem:[#allocation53_spill] sm:$0xff]  ;;  %v3449_v54 = vld [vmem:[#allocation5 + $0x578] sm:$0xff] }
 0x2d1   :  { %17143 = vmatprep.mubr.msk.bf16.mxu1 %vm9274_vm0, %v22932_v36 }
 0x2d2   :  { %11134 = vmatpush1.bf16.msra.mxu0 %v16236_v37  ;;  %v24778_v37 = vld [vmem:[#allocation34_spill] sm:$0xff] }
 0x2d3   :  { %12038 = vmatpush1.bf16.msra.mxu1 %v16238_v13  ;;  %11135 = vmatprep.subr.bf16.mxu0 %v16245_v22  ;;  %v3421_v13 = vld [vmem:[#allocation5 + $0x498] sm:$0xff] }
 0x2d4   :  { %12039 = vmatprep.subr.bf16.mxu1 %v16247_v35  ;;  %v3425_v22 = vld [vmem:[#allocation5 + $0x4b8] sm:$0xff]  ;;  %v16268_v35 = vcombine.low %v3412_v1, %v3416_v10 }
 0x2d5   :  { %10193 = vmatmul.mubr.bf16.gmra.mrb[28].mxu0 %v22934_v60  ;;  %v16279_v0 = vcombine.high %v3421_v13, %v3425_v22  ;;  %v16278_v8 = vcombine.low %v3421_v13, %v3425_v22 }
 0x2d6   :  { %11097 = vmatmul.mubr.bf16.gmra.mrb[28].mxu1 %v22934_v60  ;;  %11136 = vmatpush1.bf16.msra.mxu0 %v16244_v18  ;;  %v3428_v18 = vld [vmem:[#allocation5 + $0x4d0] sm:$0xff] }
 0x2d7   :  { %12040 = vmatpush1.bf16.msra.mxu1 %v16246_v38  ;;  %11137 = vmatprep.subr.bf16.mxu0 %v16253_v44  ;;  %v3432_v38 = vld [vmem:[#allocation5 + $0x4f0] sm:$0xff]  ;;  %v3429_v44 = vld [vmem:[#allocation5 + $0x4d8] sm:$0xff] }
 0x2d8   :  { %12041 = vmatprep.subr.bf16.mxu1 %v16255_v61  ;;  %11139 = vmatprep.mubr.bf16.mxu0 %v24777_v28  ;;  %v3433_v61 = vld [vmem:[#allocation5 + $0x4f8] sm:$0xff]  ;;  %v16285_v27 = vcombine.high %v3428_v18, %v3432_v38  ;;  %v16284_v1 = vcombine.low %v3428_v18, %v3432_v38  ;;  %v3728_v60 = vld [vmem:[#allocation5 + $0xe30] sm:$0xff] }
 0x2d9   :  { %12043 = vmatprep.mubr.bf16.mxu1 %v24777_v28  ;;  %v16287_v16 = vcombine.high %v3429_v44, %v3433_v61  ;;  %v3437_v28 = vld [vmem:[#allocation5 + $0x518] sm:$0xff]  ;;  %v16286_v10 = vcombine.low %v3429_v44, %v3433_v61  ;;  %v24783_v61 = vld [vmem:[#allocation57_spill] sm:$0xff] }
 0x2da   :  { %11138 = vmatpush1.bf16.msra.mxu0 %v16252_v19  ;;  %v3436_v19 = vld [vmem:[#allocation5 + $0x510] sm:$0xff] }
 0x2db   :  { %12042 = vmatpush1.bf16.msra.mxu1 %v16254_v47  ;;  %11220 = vmatprep.subr.bf16.mxu0 %v16261_v12  ;;  %v3440_v47 = vld [vmem:[#allocation5 + $0x530] sm:$0xff]  ;;  %v24780_v12 = vld [vmem:[#allocation44_spill] sm:$0xff] }
 0x2dc   :  { %12124 = vmatprep.subr.bf16.mxu1 %v16263_v31  ;;  %v3441_v31 = vld [vmem:[#allocation5 + $0x538] sm:$0xff]  ;;  %v16293_v50 = vcombine.high %v3436_v19, %v3440_v47  ;;  %v16292_v15 = vcombine.low %v3436_v19, %v3440_v47 }
 0x2dd   :  { %11140 = vmatmul.mubr.bf16.vlgmr.msra.gmra.mrb[32].mxu0 %v24778_v37  ;;  %v3465_v19 = vld [vmem:[#allocation5 + $0x5f8] sm:$0xff] }
 0x2de   :  { %12044 = vmatmul.mubr.bf16.vlgmr.msra.gmra.mrb[32].mxu1 %v24778_v37  ;;  %11221 = vmatpush1.bf16.msra.mxu0 %v16260_v58  ;;  %v16295_v58 = vcombine.high %v3437_v28, %v3441_v31  ;;  %v16294_v37 = vcombine.low %v3437_v28, %v3441_v31 }
 0x2df   :  { %12125 = vmatpush1.bf16.msra.mxu1 %v16262_v6  ;;  %11222 = vmatprep.subr.bf16.mxu0 %v16269_v55  ;;  %v3444_v6 = vld [vmem:[#allocation5 + $0x550] sm:$0xff] }
 0x2e0   :  { %12126 = vmatprep.subr.bf16.mxu1 %v16271_v14  ;;  %11149 = vmatprep.mubr.bf16.mxu0 %v24779_v62  ;;  %v3448_v55 = vld [vmem:[#allocation5 + $0x570] sm:$0xff]  ;;  %v3445_v14 = vld [vmem:[#allocation5 + $0x558] sm:$0xff] }
 0x2e1   :  { %12053 = vmatprep.mubr.bf16.mxu1 %v24779_v62  ;;  %v16301_v13 = vcombine.high %v3444_v6, %v3448_v55  ;;  %v16303_v22 = vcombine.high %v3445_v14, %v3449_v54  ;;  %v3453_v62 = vld [vmem:[#allocation5 + $0x598] sm:$0xff]  ;;  %v16300_v18 = vcombine.low %v3444_v6, %v3448_v55  ;;  %v16302_v38 = vcombine.low %v3445_v14, %v3449_v54 }
 0x2e2   :  { %11223 = vmatpush1.bf16.msra.mxu0 %v16268_v35  ;;  %v3452_v35 = vld [vmem:[#allocation5 + $0x590] sm:$0xff]  ;;  %v24785_v54 = vld [vmem:[#allocation62_spill] sm:$0xff] }
 0x2e3   :  { %12127 = vmatpush1.bf16.msra.mxu1 %v16270_v43  ;;  %11224 = vmatprep.subr.bf16.mxu0 %v16277_v17  ;;  %v3456_v43 = vld [vmem:[#allocation5 + $0x5b0] sm:$0xff]  ;;  %v24782_v17 = vld [vmem:[#allocation54_spill] sm:$0xff] }
 0x2e4   :  { %12128 = vmatprep.subr.bf16.mxu1 %v16279_v0  ;;  %v3457_v0 = vld [vmem:[#allocation5 + $0x5b8] sm:$0xff]  ;;  %v16309_v44 = vcombine.high %v3452_v35, %v3456_v43  ;;  %v16308_v47 = vcombine.low %v3452_v35, %v3456_v43 }
 0x2e5   :  { %11150 = vmatmul.mubr.bf16.gmra.mrb[36].mxu0 %v24780_v12  ;;  %v3481_v35 = vld [vmem:[#allocation5 + $0x678] sm:$0xff] }
 0x2e6   :  { %12054 = vmatmul.mubr.bf16.gmra.mrb[36].mxu1 %v24780_v12  ;;  %11225 = vmatpush1.bf16.msra.mxu0 %v16276_v4  ;;  %v16311_v4 = vcombine.high %v3453_v62, %v3457_v0  ;;  %v16310_v12 = vcombine.low %v3453_v62, %v3457_v0 }
 0x2e7   :  { %12129 = vmatpush1.bf16.msra.mxu1 %v16278_v8  ;;  %11226 = vmatprep.subr.bf16.mxu0 %v16285_v27  ;;  %v3460_v8 = vld [vmem:[#allocation5 + $0x5d0] sm:$0xff] }
 0x2e8   :  { %12130 = vmatprep.subr.bf16.mxu1 %v16287_v16  ;;  %11159 = vmatprep.mubr.bf16.mxu0 %v24781_v48  ;;  %v3464_v27 = vld [vmem:[#allocation5 + $0x5f0] sm:$0xff]  ;;  %v3461_v16 = vld [vmem:[#allocation5 + $0x5d8] sm:$0xff] }
 0x2e9   :  { %12063 = vmatprep.mubr.bf16.mxu1 %v24781_v48  ;;  %v16317_v28 = vcombine.high %v3460_v8, %v3464_v27  ;;  %v16319_v31 = vcombine.high %v3461_v16, %v3465_v19  ;;  %v3469_v48 = vld [vmem:[#allocation5 + $0x618] sm:$0xff]  ;;  %v16316_v6 = vcombine.low %v3460_v8, %v3464_v27  ;;  %v16318_v55 = vcombine.low %v3461_v16, %v3465_v19  ;;  %v24787_v19 = vld [vmem:[#allocation25_spill] sm:$0xff] }
 0x2ea   :  { %11227 = vmatpush1.bf16.msra.mxu0 %v16284_v1  ;;  %v3468_v1 = vld [vmem:[#allocation5 + $0x610] sm:$0xff] }
 0x2eb   :  { %12131 = vmatpush1.bf16.msra.mxu1 %v16286_v10  ;;  %11228 = vmatprep.subr.bf16.mxu0 %v16293_v50  ;;  %v3472_v10 = vld [vmem:[#allocation5 + $0x630] sm:$0xff]  ;;  %v24784_v50 = vld [vmem:[#allocation58_spill] sm:$0xff] }
 0x2ec   :  { %12132 = vmatprep.subr.bf16.mxu1 %v16295_v58  ;;  %v3473_v58 = vld [vmem:[#allocation5 + $0x638] sm:$0xff]  ;;  %v16325_v14 = vcombine.high %v3468_v1, %v3472_v10  ;;  %v16324_v43 = vcombine.low %v3468_v1, %v3472_v10 }
 0x2ed   :  { %11160 = vmatmul.mubr.bf16.gmra.mrb[40].mxu0 %v24782_v17  ;;  %v3497_v1 = vld [vmem:[#allocation5 + $0x6f8] sm:$0xff] }
 0x2ee   :  { %12064 = vmatmul.mubr.bf16.gmra.mrb[40].mxu1 %v24782_v17  ;;  %11229 = vmatpush1.bf16.msra.mxu0 %v16292_v15  ;;  %v16327_v15 = vcombine.high %v3469_v48, %v3473_v58  ;;  %v16326_v17 = vcombine.low %v3469_v48, %v3473_v58 }
 0x2ef   :  { %12133 = vmatpush1.bf16.msra.mxu1 %v16294_v37  ;;  %11230 = vmatprep.subr.bf16.mxu0 %v16301_v13  ;;  %v3476_v37 = vld [vmem:[#allocation5 + $0x650] sm:$0xff] }
 0x2f0   :  { %12134 = vmatprep.subr.bf16.mxu1 %v16303_v22  ;;  %11169 = vmatprep.mubr.bf16.mxu0 %v24783_v61  ;;  %v3480_v13 = vld [vmem:[#allocation5 + $0x670] sm:$0xff]  ;;  %v3477_v22 = vld [vmem:[#allocation5 + $0x658] sm:$0xff] }
 0x2f1   :  { %12073 = vmatprep.mubr.bf16.mxu1 %v24783_v61  ;;  %v16333_v62 = vcombine.high %v3476_v37, %v3480_v13  ;;  %v16335_v0 = vcombine.high %v3477_v22, %v3481_v35  ;;  %v3485_v61 = vld [vmem:[#allocation5 + $0x698] sm:$0xff]  ;;  %v16332_v8 = vcombine.low %v3476_v37, %v3480_v13  ;;  %v16334_v27 = vcombine.low %v3477_v22, %v3481_v35  ;;  %v24789_v35 = vld [vmem:[#allocation45_spill] sm:$0xff] }
 0x2f2   :  { %11231 = vmatpush1.bf16.msra.mxu0 %v16300_v18  ;;  %v3484_v18 = vld [vmem:[#allocation5 + $0x690] sm:$0xff] }
 0x2f3   :  { %12135 = vmatpush1.bf16.msra.mxu1 %v16302_v38  ;;  %11232 = vmatprep.subr.bf16.mxu0 %v16309_v44  ;;  %v3488_v38 = vld [vmem:[#allocation5 + $0x6b0] sm:$0xff]  ;;  %v24786_v44 = vld [vmem:[#allocation63_spill] sm:$0xff] }
 0x2f4   :  { %12136 = vmatprep.subr.bf16.mxu1 %v16311_v4  ;;  %v3489_v4 = vld [vmem:[#allocation5 + $0x6b8] sm:$0xff]  ;;  %v16341_v16 = vcombine.high %v3484_v18, %v3488_v38  ;;  %v16340_v10 = vcombine.low %v3484_v18, %v3488_v38 }
 0x2f5   :  { %11170 = vmatmul.mubr.bf16.gmra.mrb[44].mxu0 %v24784_v50  ;;  %v3513_v18 = vld [vmem:[#allocation5 + $0x778] sm:$0xff] }
 0x2f6   :  { %12074 = vmatmul.mubr.bf16.gmra.mrb[44].mxu1 %v24784_v50  ;;  %11233 = vmatpush1.bf16.msra.mxu0 %v16308_v47  ;;  %v16343_v47 = vcombine.high %v3485_v61, %v3489_v4  ;;  %v16342_v50 = vcombine.low %v3485_v61, %v3489_v4 }
 0x2f7   :  { %12137 = vmatpush1.bf16.msra.mxu1 %v16310_v12  ;;  %11234 = vmatprep.subr.bf16.mxu0 %v16317_v28  ;;  %v3492_v12 = vld [vmem:[#allocation5 + $0x6d0] sm:$0xff] }
 0x2f8   :  { %12138 = vmatprep.subr.bf16.mxu1 %v16319_v31  ;;  %11179 = vmatprep.mubr.bf16.mxu0 %v24785_v54  ;;  %v3496_v28 = vld [vmem:[#allocation5 + $0x6f0] sm:$0xff]  ;;  %v3493_v31 = vld [vmem:[#allocation5 + $0x6d8] sm:$0xff] }
 0x2f9   :  { %12083 = vmatprep.mubr.bf16.mxu1 %v24785_v54  ;;  %v16349_v48 = vcombine.high %v3492_v12, %v3496_v28  ;;  %v16351_v58 = vcombine.high %v3493_v31, %v3497_v1  ;;  %v3501_v54 = vld [vmem:[#allocation5 + $0x718] sm:$0xff]  ;;  %v16348_v37 = vcombine.low %v3492_v12, %v3496_v28  ;;  %v16350_v13 = vcombine.low %v3493_v31, %v3497_v1  ;;  %v24791_v1 = vld [vmem:[#allocation32_spill] sm:$0xff] }
 0x2fa   :  { %11235 = vmatpush1.bf16.msra.mxu0 %v16316_v6  ;;  %v3500_v6 = vld [vmem:[#allocation5 + $0x710] sm:$0xff] }
 0x2fb   :  { %12139 = vmatpush1.bf16.msra.mxu1 %v16318_v55  ;;  %11236 = vmatprep.subr.bf16.mxu0 %v16325_v14  ;;  %v3504_v55 = vld [vmem:[#allocation5 + $0x730] sm:$0xff]  ;;  %v24788_v14 = vld [vmem:[#allocation26_spill] sm:$0xff] }
 0x2fc   :  { %12140 = vmatprep.subr.bf16.mxu1 %v16327_v15  ;;  %v3505_v15 = vld [vmem:[#allocation5 + $0x738] sm:$0xff]  ;;  %v16357_v22 = vcombine.high %v3500_v6, %v3504_v55  ;;  %v16356_v38 = vcombine.low %v3500_v6, %v3504_v55 }
 0x2fd   :  { %11180 = vmatmul.mubr.bf16.gmra.mrb[48].mxu0 %v24786_v44  ;;  %v3529_v6 = vld [vmem:[#allocation5 + $0x7f8] sm:$0xff] }
 0x2fe   :  { %12084 = vmatmul.mubr.bf16.gmra.mrb[48].mxu1 %v24786_v44  ;;  %11237 = vmatpush1.bf16.msra.mxu0 %v16324_v43  ;;  %v16359_v43 = vcombine.high %v3501_v54, %v3505_v15  ;;  %v16358_v44 = vcombine.low %v3501_v54, %v3505_v15 }
 0x2ff   :  { %12141 = vmatpush1.bf16.msra.mxu1 %v16326_v17  ;;  %11238 = vmatprep.subr.bf16.mxu0 %v16333_v62  ;;  %v3508_v17 = vld [vmem:[#allocation5 + $0x750] sm:$0xff] }
 0x300   :  { %12142 = vmatprep.subr.bf16.mxu1 %v16335_v0  ;;  %11189 = vmatprep.mubr.bf16.mxu0 %v24787_v19  ;;  %v3512_v62 = vld [vmem:[#allocation5 + $0x770] sm:$0xff]  ;;  %v3509_v0 = vld [vmem:[#allocation5 + $0x758] sm:$0xff] }
 0x301   :  { %12093 = vmatprep.mubr.bf16.mxu1 %v24787_v19  ;;  %v16365_v61 = vcombine.high %v3508_v17, %v3512_v62  ;;  %v16367_v4 = vcombine.high %v3509_v0, %v3513_v18  ;;  %v3517_v19 = vld [vmem:[#allocation5 + $0x798] sm:$0xff]  ;;  %v16364_v12 = vcombine.low %v3508_v17, %v3512_v62  ;;  %v16366_v28 = vcombine.low %v3509_v0, %v3513_v18  ;;  %v24793_v18 = vld [vmem:[#allocation17_spill] sm:$0xff] }
 0x302   :  { %11239 = vmatpush1.bf16.msra.mxu0 %v16332_v8  ;;  %v3516_v8 = vld [vmem:[#allocation5 + $0x790] sm:$0xff] }
 0x303   :  { %12143 = vmatpush1.bf16.msra.mxu1 %v16334_v27  ;;  %11240 = vmatprep.subr.bf16.mxu0 %v16341_v16  ;;  %v3520_v27 = vld [vmem:[#allocation5 + $0x7b0] sm:$0xff] }
 0x304   :  { %12144 = vmatprep.subr.bf16.mxu1 %v16343_v47  ;;  %v24790_v16 = vld [vmem:[#allocation33_spill] sm:$0xff]  ;;  %v3521_v47 = vld [vmem:[#allocation5 + $0x7b8] sm:$0xff]  ;;  %v16373_v31 = vcombine.high %v3516_v8, %v3520_v27  ;;  %v16372_v55 = vcombine.low %v3516_v8, %v3520_v27 }
 0x305   :  { %11190 = vmatmul.mubr.bf16.gmra.mrb[52].mxu0 %v24788_v14  ;;  %v3545_v8 = vld [vmem:[#allocation5 + $0x878] sm:$0xff] }
 0x306   :  { %12094 = vmatmul.mubr.bf16.gmra.mrb[52].mxu1 %v24788_v14  ;;  %11241 = vmatpush1.bf16.msra.mxu0 %v16340_v10  ;;  %v16375_v10 = vcombine.high %v3517_v19, %v3521_v47  ;;  %v16374_v14 = vcombine.low %v3517_v19, %v3521_v47 }
 0x307   :  { %12145 = vmatpush1.bf16.msra.mxu1 %v16342_v50  ;;  %11242 = vmatprep.subr.bf16.mxu0 %v16349_v48  ;;  %v3524_v50 = vld [vmem:[#allocation5 + $0x7d0] sm:$0xff] }
 0x308   :  { %12146 = vmatprep.subr.bf16.mxu1 %v16351_v58  ;;  %11199 = vmatprep.mubr.bf16.mxu0 %v24789_v35  ;;  %v3528_v48 = vld [vmem:[#allocation5 + $0x7f0] sm:$0xff]  ;;  %v3525_v58 = vld [vmem:[#allocation5 + $0x7d8] sm:$0xff] }
 0x309   :  { %12103 = vmatprep.mubr.bf16.mxu1 %v24789_v35  ;;  %v16381_v54 = vcombine.high %v3524_v50, %v3528_v48  ;;  %v16383_v15 = vcombine.high %v3525_v58, %v3529_v6  ;;  %v3533_v35 = vld [vmem:[#allocation5 + $0x818] sm:$0xff]  ;;  %v16380_v17 = vcombine.low %v3524_v50, %v3528_v48  ;;  %v16382_v62 = vcombine.low %v3525_v58, %v3529_v6  ;;  %v24795_v6 = vld [vmem:[#allocation21_spill] sm:$0xff] }
 0x30a   :  { %11243 = vmatpush1.bf16.msra.mxu0 %v16348_v37  ;;  %v3532_v37 = vld [vmem:[#allocation5 + $0x810] sm:$0xff] }
 0x30b   :  { %12147 = vmatpush1.bf16.msra.mxu1 %v16350_v13  ;;  %11244 = vmatprep.subr.bf16.mxu0 %v16357_v22  ;;  %v3536_v13 = vld [vmem:[#allocation5 + $0x830] sm:$0xff]  ;;  %v24792_v22 = vld [vmem:[#allocation38_spill] sm:$0xff] }
 0x30c   :  { %12148 = vmatprep.subr.bf16.mxu1 %v16359_v43  ;;  %v3537_v43 = vld [vmem:[#allocation5 + $0x838] sm:$0xff]  ;;  %v16389_v0 = vcombine.high %v3532_v37, %v3536_v13  ;;  %v16388_v27 = vcombine.low %v3532_v37, %v3536_v13 }
 0x30d   :  { %11200 = vmatmul.mubr.bf16.gmra.mrb[56].mxu0 %v24790_v16  ;;  %v3561_v37 = vld [vmem:[#allocation5 + $0x8f8] sm:$0xff] }
 0x30e   :  { %12104 = vmatmul.mubr.bf16.gmra.mrb[56].mxu1 %v24790_v16  ;;  %11245 = vmatpush1.bf16.msra.mxu0 %v16356_v38  ;;  %v16391_v38 = vcombine.high %v3533_v35, %v3537_v43  ;;  %v16390_v16 = vcombine.low %v3533_v35, %v3537_v43 }
 0x30f   :  { %12149 = vmatpush1.bf16.msra.mxu1 %v16358_v44  ;;  %11246 = vmatprep.subr.bf16.mxu0 %v16365_v61  ;;  %v3540_v44 = vld [vmem:[#allocation5 + $0x850] sm:$0xff] }
 0x310   :  { %12150 = vmatprep.subr.bf16.mxu1 %v16367_v4  ;;  %11209 = vmatprep.mubr.bf16.mxu0 %v24791_v1  ;;  %v3544_v61 = vld [vmem:[#allocation5 + $0x870] sm:$0xff]  ;;  %v3541_v4 = vld [vmem:[#allocation5 + $0x858] sm:$0xff] }
 0x311   :  { %12113 = vmatprep.mubr.bf16.mxu1 %v24791_v1  ;;  %v16397_v19 = vcombine.high %v3540_v44, %v3544_v61  ;;  %v16399_v47 = vcombine.high %v3541_v4, %v3545_v8  ;;  %v3549_v1 = vld [vmem:[#allocation5 + $0x898] sm:$0xff]  ;;  %v16396_v50 = vcombine.low %v3540_v44, %v3544_v61  ;;  %v16398_v48 = vcombine.low %v3541_v4, %v3545_v8  ;;  %v24797_v8 = vld [vmem:[#allocation23_spill] sm:$0xff] }
 0x312   :  { %11247 = vmatpush1.bf16.msra.mxu0 %v16364_v12  ;;  %v3548_v12 = vld [vmem:[#allocation5 + $0x890] sm:$0xff] }
 0x313   :  { %12151 = vmatpush1.bf16.msra.mxu1 %v16366_v28  ;;  %11248 = vmatprep.subr.bf16.mxu0 %v16373_v31  ;;  %v3552_v28 = vld [vmem:[#allocation5 + $0x8b0] sm:$0xff]  ;;  %v24794_v31 = vld [vmem:[#allocation16_spill] sm:$0xff] }
 0x314   :  { %12152 = vmatprep.subr.bf16.mxu1 %v16375_v10  ;;  %v3553_v10 = vld [vmem:[#allocation5 + $0x8b8] sm:$0xff]  ;;  %v16405_v58 = vcombine.high %v3548_v12, %v3552_v28  ;;  %v16404_v13 = vcombine.low %v3548_v12, %v3552_v28 }
 0x315   :  { %11210 = vmatmul.mubr.bf16.gmra.mrb[60].mxu0 %v24792_v22  ;;  %v3577_v12 = vld [vmem:[#allocation5 + $0x978] sm:$0xff] }
 0x316   :  { %12114 = vmatmul.mubr.bf16.gmra.mrb[60].mxu1 %v24792_v22  ;;  %11249 = vmatpush1.bf16.msra.mxu0 %v16372_v55  ;;  %v16407_v55 = vcombine.high %v3549_v1, %v3553_v10  ;;  %v16406_v22 = vcombine.low %v3549_v1, %v3553_v10 }
 0x317   :  { %12153 = vmatpush1.bf16.msra.mxu1 %v16374_v14  ;;  %11250 = vmatprep.subr.bf16.mxu0 %v16381_v54  ;;  %v3556_v14 = vld [vmem:[#allocation5 + $0x8d0] sm:$0xff] }
 0x318   :  { %12154 = vmatprep.subr.bf16.mxu1 %v16383_v15  ;;  %11252 = vmatprep.mubr.bf16.mxu0 %v24793_v18  ;;  %v3560_v54 = vld [vmem:[#allocation5 + $0x8f0] sm:$0xff]  ;;  %v3557_v15 = vld [vmem:[#allocation5 + $0x8d8] sm:$0xff] }
 0x319   :  { %12156 = vmatprep.mubr.bf16.mxu1 %v24793_v18  ;;  %v16413_v35 = vcombine.high %v3556_v14, %v3560_v54  ;;  %v16415_v43 = vcombine.high %v3557_v15, %v3561_v37  ;;  %v3565_v18 = vld [vmem:[#allocation5 + $0x918] sm:$0xff]  ;;  %v16412_v44 = vcombine.low %v3556_v14, %v3560_v54  ;;  %v16414_v61 = vcombine.low %v3557_v15, %v3561_v37  ;;  %v24799_v37 = vld [vmem:[#allocation24_spill] sm:$0xff] }
 0x31a   :  { %11251 = vmatpush1.bf16.msra.mxu0 %v16380_v17  ;;  %v3564_v17 = vld [vmem:[#allocation5 + $0x910] sm:$0xff] }
 0x31b   :  { %12155 = vmatpush1.bf16.msra.mxu1 %v16382_v62  ;;  %11333 = vmatprep.subr.bf16.mxu0 %v16389_v0  ;;  %v3568_v62 = vld [vmem:[#allocation5 + $0x930] sm:$0xff]  ;;  %v24796_v0 = vld [vmem:[#allocation20_spill] sm:$0xff] }
 0x31c   :  { %12237 = vmatprep.subr.bf16.mxu1 %v16391_v38  ;;  %v3569_v38 = vld [vmem:[#allocation5 + $0x938] sm:$0xff]  ;;  %v16421_v4 = vcombine.high %v3564_v17, %v3568_v62  ;;  %v16420_v28 = vcombine.low %v3564_v17, %v3568_v62 }
 0x31d   :  { %11253 = vmatmul.mubr.bf16.vlgmr.msra.gmra.mrb[32].mxu0 %v24794_v31  ;;  %v3593_v17 = vld [vmem:[#allocation5 + $0x9f8] sm:$0xff] }
 0x31e   :  { %12157 = vmatmul.mubr.bf16.vlgmr.msra.gmra.mrb[32].mxu1 %v24794_v31  ;;  %11334 = vmatpush1.bf16.msra.mxu0 %v16388_v27  ;;  %v16423_v27 = vcombine.high %v3565_v18, %v3569_v38  ;;  %v16422_v31 = vcombine.low %v3565_v18, %v3569_v38 }
 0x31f   :  { %12238 = vmatpush1.bf16.msra.mxu1 %v16390_v16  ;;  %11335 = vmatprep.subr.bf16.mxu0 %v16397_v19  ;;  %v3572_v16 = vld [vmem:[#allocation5 + $0x950] sm:$0xff] }
 0x320   :  { %12239 = vmatprep.subr.bf16.mxu1 %v16399_v47  ;;  %11262 = vmatprep.mubr.bf16.mxu0 %v24795_v6  ;;  %v3576_v19 = vld [vmem:[#allocation5 + $0x970] sm:$0xff]  ;;  %v3573_v47 = vld [vmem:[#allocation5 + $0x958] sm:$0xff] }
 0x321   :  { %12166 = vmatprep.mubr.bf16.mxu1 %v24795_v6  ;;  %v16429_v1 = vcombine.high %v3572_v16, %v3576_v19  ;;  %v16431_v10 = vcombine.high %v3573_v47, %v3577_v12  ;;  %v3581_v6 = vld [vmem:[#allocation5 + $0x998] sm:$0xff]  ;;  %v16428_v14 = vcombine.low %v3572_v16, %v3576_v19  ;;  %v16430_v54 = vcombine.low %v3573_v47, %v3577_v12  ;;  %v24801_v12 = vld [vmem:[#allocation29_spill] sm:$0xff] }
 0x322   :  { %11336 = vmatpush1.bf16.msra.mxu0 %v16396_v50  ;;  %v3580_v50 = vld [vmem:[#allocation5 + $0x990] sm:$0xff] }
 0x323   :  { %12240 = vmatpush1.bf16.msra.mxu1 %v16398_v48  ;;  %11337 = vmatprep.subr.bf16.mxu0 %v16405_v58  ;;  %v3584_v48 = vld [vmem:[#allocation5 + $0x9b0] sm:$0xff]  ;;  %v24798_v58 = vld [vmem:[#allocation22_spill] sm:$0xff] }
 0x324   :  { %12241 = vmatprep.subr.bf16.mxu1 %v16407_v55  ;;  %v3585_v55 = vld [vmem:[#allocation5 + $0x9b8] sm:$0xff]  ;;  %v16437_v15 = vcombine.high %v3580_v50, %v3584_v48  ;;  %v16436_v62 = vcombine.low %v3580_v50, %v3584_v48 }
 0x325   :  { %11263 = vmatmul.mubr.bf16.gmra.mrb[36].mxu0 %v24796_v0  ;;  %v3609_v50 = vld [vmem:[#allocation5 + $0xa78] sm:$0xff] }
 0x326   :  { %12167 = vmatmul.mubr.bf16.gmra.mrb[36].mxu1 %v24796_v0  ;;  %11338 = vmatpush1.bf16.msra.mxu0 %v16404_v13  ;;  %v16439_v13 = vcombine.high %v3581_v6, %v3585_v55  ;;  %v16438_v0 = vcombine.low %v3581_v6, %v3585_v55 }
 0x327   :  { %12242 = vmatpush1.bf16.msra.mxu1 %v16406_v22  ;;  %11339 = vmatprep.subr.bf16.mxu0 %v16413_v35  ;;  %v3588_v22 = vld [vmem:[#allocation5 + $0x9d0] sm:$0xff] }
 0x328   :  { %12243 = vmatprep.subr.bf16.mxu1 %v16415_v43  ;;  %11272 = vmatprep.mubr.bf16.mxu0 %v24797_v8  ;;  %v3592_v35 = vld [vmem:[#allocation5 + $0x9f0] sm:$0xff]  ;;  %v3589_v43 = vld [vmem:[#allocation5 + $0x9d8] sm:$0xff] }
 0x329   :  { %12176 = vmatprep.mubr.bf16.mxu1 %v24797_v8  ;;  %v16445_v18 = vcombine.high %v3588_v22, %v3592_v35  ;;  %v16447_v38 = vcombine.high %v3589_v43, %v3593_v17  ;;  %v3597_v8 = vld [vmem:[#allocation5 + $0xa18] sm:$0xff]  ;;  %v16444_v16 = vcombine.low %v3588_v22, %v3592_v35  ;;  %v16446_v19 = vcombine.low %v3589_v43, %v3593_v17 }
 0x32a   :  { %11340 = vmatpush1.bf16.msra.mxu0 %v16412_v44  ;;  %v3596_v44 = vld [vmem:[#allocation5 + $0xa10] sm:$0xff]  ;;  %v24803_v17 = vld [vmem:[#allocation46_spill] sm:$0xff] }
 0x32b   :  { %12244 = vmatpush1.bf16.msra.mxu1 %v16414_v61  ;;  %11341 = vmatprep.subr.bf16.mxu0 %v16421_v4  ;;  %v3600_v61 = vld [vmem:[#allocation5 + $0xa30] sm:$0xff]  ;;  %v24800_v4 = vld [vmem:[#allocation27_spill] sm:$0xff] }
 0x32c   :  { %12245 = vmatprep.subr.bf16.mxu1 %v16423_v27  ;;  %v3601_v27 = vld [vmem:[#allocation5 + $0xa38] sm:$0xff]  ;;  %v16453_v47 = vcombine.high %v3596_v44, %v3600_v61  ;;  %v16452_v48 = vcombine.low %v3596_v44, %v3600_v61 }
 0x32d   :  { %11273 = vmatmul.mubr.bf16.gmra.mrb[40].mxu0 %v24798_v58  ;;  %v3625_v44 = vld [vmem:[#allocation5 + $0xaf8] sm:$0xff] }
 0x32e   :  { %12177 = vmatmul.mubr.bf16.gmra.mrb[40].mxu1 %v24798_v58  ;;  %11342 = vmatpush1.bf16.msra.mxu0 %v16420_v28  ;;  %v16455_v28 = vcombine.high %v3597_v8, %v3601_v27  ;;  %v16454_v58 = vcombine.low %v3597_v8, %v3601_v27 }
 0x32f   :  { %12246 = vmatpush1.bf16.msra.mxu1 %v16422_v31  ;;  %11343 = vmatprep.subr.bf16.mxu0 %v16429_v1  ;;  %v3604_v31 = vld [vmem:[#allocation5 + $0xa50] sm:$0xff] }
 0x330   :  { %12247 = vmatprep.subr.bf16.mxu1 %v16431_v10  ;;  %11282 = vmatprep.mubr.bf16.mxu0 %v24799_v37  ;;  %v3608_v1 = vld [vmem:[#allocation5 + $0xa70] sm:$0xff]  ;;  %v3605_v10 = vld [vmem:[#allocation5 + $0xa58] sm:$0xff] }
 0x331   :  { %12186 = vmatprep.mubr.bf16.mxu1 %v24799_v37  ;;  %v16461_v6 = vcombine.high %v3604_v31, %v3608_v1  ;;  %v16463_v55 = vcombine.high %v3605_v10, %v3609_v50  ;;  %v3613_v37 = vld [vmem:[#allocation5 + $0xa98] sm:$0xff]  ;;  %v16460_v22 = vcombine.low %v3604_v31, %v3608_v1  ;;  %v16462_v35 = vcombine.low %v3605_v10, %v3609_v50  ;;  %v24805_v50 = vld [vmem:[#allocation36_spill] sm:$0xff] }
 0x332   :  { %11344 = vmatpush1.bf16.msra.mxu0 %v16428_v14  ;;  %v3612_v14 = vld [vmem:[#allocation5 + $0xa90] sm:$0xff] }
 0x333   :  { %12248 = vmatpush1.bf16.msra.mxu1 %v16430_v54  ;;  %11345 = vmatprep.subr.bf16.mxu0 %v16437_v15  ;;  %v3616_v54 = vld [vmem:[#allocation5 + $0xab0] sm:$0xff]  ;;  %v24802_v15 = vld [vmem:[#allocation28_spill] sm:$0xff] }
 0x334   :  { %12249 = vmatprep.subr.bf16.mxu1 %v16439_v13  ;;  %v3617_v13 = vld [vmem:[#allocation5 + $0xab8] sm:$0xff]  ;;  %v16469_v43 = vcombine.high %v3612_v14, %v3616_v54  ;;  %v16468_v61 = vcombine.low %v3612_v14, %v3616_v54 }
 0x335   :  { %11283 = vmatmul.mubr.bf16.gmra.mrb[44].mxu0 %v24800_v4  ;;  %v3641_v14 = vld [vmem:[#allocation5 + $0xb78] sm:$0xff] }
 0x336   :  { %12187 = vmatmul.mubr.bf16.gmra.mrb[44].mxu1 %v24800_v4  ;;  %11346 = vmatpush1.bf16.msra.mxu0 %v16436_v62  ;;  %v16471_v62 = vcombine.high %v3613_v37, %v3617_v13  ;;  %v16470_v4 = vcombine.low %v3613_v37, %v3617_v13 }
 0x337   :  { %12250 = vmatpush1.bf16.msra.mxu1 %v16438_v0  ;;  %11347 = vmatprep.subr.bf16.mxu0 %v16445_v18  ;;  %v3620_v0 = vld [vmem:[#allocation5 + $0xad0] sm:$0xff] }
 0x338   :  { %12251 = vmatprep.subr.bf16.mxu1 %v16447_v38  ;;  %11292 = vmatprep.mubr.bf16.mxu0 %v24801_v12  ;;  %v3624_v18 = vld [vmem:[#allocation5 + $0xaf0] sm:$0xff]  ;;  %v3621_v38 = vld [vmem:[#allocation5 + $0xad8] sm:$0xff] }
 0x339   :  { %12196 = vmatprep.mubr.bf16.mxu1 %v24801_v12  ;;  %v16477_v8 = vcombine.high %v3620_v0, %v3624_v18  ;;  %v16479_v27 = vcombine.high %v3621_v38, %v3625_v44  ;;  %v3629_v12 = vld [vmem:[#allocation5 + $0xb18] sm:$0xff]  ;;  %v16476_v31 = vcombine.low %v3620_v0, %v3624_v18  ;;  %v16478_v1 = vcombine.low %v3621_v38, %v3625_v44  ;;  %v24807_v44 = vld [vmem:[#allocation37_spill] sm:$0xff] }
 0x33a   :  { %11348 = vmatpush1.bf16.msra.mxu0 %v16444_v16  ;;  %v3628_v16 = vld [vmem:[#allocation5 + $0xb10] sm:$0xff] }
 0x33b   :  { %12252 = vmatpush1.bf16.msra.mxu1 %v16446_v19  ;;  %11349 = vmatprep.subr.bf16.mxu0 %v16453_v47  ;;  %v3632_v19 = vld [vmem:[#allocation5 + $0xb30] sm:$0xff]  ;;  %v24804_v47 = vld [vmem:[#allocation47_spill] sm:$0xff] }
 0x33c   :  { %12253 = vmatprep.subr.bf16.mxu1 %v16455_v28  ;;  %v3633_v28 = vld [vmem:[#allocation5 + $0xb38] sm:$0xff]  ;;  %v16485_v10 = vcombine.high %v3628_v16, %v3632_v19  ;;  %v16484_v54 = vcombine.low %v3628_v16, %v3632_v19 }
 0x33d   :  { %11293 = vmatmul.mubr.bf16.gmra.mrb[48].mxu0 %v24802_v15  ;;  %v3657_v16 = vld [vmem:[#allocation5 + $0xbf8] sm:$0xff] }
 0x33e   :  { %12197 = vmatmul.mubr.bf16.gmra.mrb[48].mxu1 %v24802_v15  ;;  %11350 = vmatpush1.bf16.msra.mxu0 %v16452_v48  ;;  %v16487_v48 = vcombine.high %v3629_v12, %v3633_v28  ;;  %v16486_v15 = vcombine.low %v3629_v12, %v3633_v28 }
 0x33f   :  { %12254 = vmatpush1.bf16.msra.mxu1 %v16454_v58  ;;  %11351 = vmatprep.subr.bf16.mxu0 %v16461_v6  ;;  %v3636_v58 = vld [vmem:[#allocation5 + $0xb50] sm:$0xff] }
 0x340   :  { %12255 = vmatprep.subr.bf16.mxu1 %v16463_v55  ;;  %11302 = vmatprep.mubr.bf16.mxu0 %v24803_v17  ;;  %v3640_v6 = vld [vmem:[#allocation5 + $0xb70] sm:$0xff]  ;;  %v3637_v55 = vld [vmem:[#allocation5 + $0xb58] sm:$0xff] }
 0x341   :  { %12206 = vmatprep.mubr.bf16.mxu1 %v24803_v17  ;;  %v16493_v37 = vcombine.high %v3636_v58, %v3640_v6  ;;  %v16495_v13 = vcombine.high %v3637_v55, %v3641_v14  ;;  %v3645_v17 = vld [vmem:[#allocation5 + $0xb98] sm:$0xff]  ;;  %v16492_v0 = vcombine.low %v3636_v58, %v3640_v6  ;;  %v16494_v18 = vcombine.low %v3637_v55, %v3641_v14  ;;  %v24809_v14 = vld [vmem:[#allocation69_spill] sm:$0xff] }
 0x342   :  { %11352 = vmatpush1.bf16.msra.mxu0 %v16460_v22  ;;  %v3644_v22 = vld [vmem:[#allocation5 + $0xb90] sm:$0xff] }
 0x343   :  { %12256 = vmatpush1.bf16.msra.mxu1 %v16462_v35  ;;  %11353 = vmatprep.subr.bf16.mxu0 %v16469_v43  ;;  %v3648_v35 = vld [vmem:[#allocation5 + $0xbb0] sm:$0xff]  ;;  %v24806_v43 = vld [vmem:[#allocation35_spill] sm:$0xff] }
 0x344   :  { %12257 = vmatprep.subr.bf16.mxu1 %v16471_v62  ;;  %v3649_v62 = vld [vmem:[#allocation5 + $0xbb8] sm:$0xff]  ;;  %v16501_v38 = vcombine.high %v3644_v22, %v3648_v35  ;;  %v16500_v19 = vcombine.low %v3644_v22, %v3648_v35 }
 0x345   :  { %11303 = vmatmul.mubr.bf16.gmra.mrb[52].mxu0 %v24804_v47  ;;  %v3673_v22 = vld [vmem:[#allocation5 + $0xc78] sm:$0xff] }
 0x346   :  { %12207 = vmatmul.mubr.bf16.gmra.mrb[52].mxu1 %v24804_v47  ;;  %11354 = vmatpush1.bf16.msra.mxu0 %v16468_v61  ;;  %v16503_v61 = vcombine.high %v3645_v17, %v3649_v62  ;;  %v16502_v47 = vcombine.low %v3645_v17, %v3649_v62 }
 0x347   :  { %12258 = vmatpush1.bf16.msra.mxu1 %v16470_v4  ;;  %11355 = vmatprep.subr.bf16.mxu0 %v16477_v8  ;;  %v3652_v4 = vld [vmem:[#allocation5 + $0xbd0] sm:$0xff] }
 0x348   :  { %12259 = vmatprep.subr.bf16.mxu1 %v16479_v27  ;;  %11312 = vmatprep.mubr.bf16.mxu0 %v24805_v50  ;;  %v3656_v8 = vld [vmem:[#allocation5 + $0xbf0] sm:$0xff]  ;;  %v3653_v27 = vld [vmem:[#allocation5 + $0xbd8] sm:$0xff] }
 0x349   :  { %12216 = vmatprep.mubr.bf16.mxu1 %v24805_v50  ;;  %v16509_v12 = vcombine.high %v3652_v4, %v3656_v8  ;;  %v16511_v28 = vcombine.high %v3653_v27, %v3657_v16  ;;  %v3661_v50 = vld [vmem:[#allocation5 + $0xc18] sm:$0xff]  ;;  %v16508_v58 = vcombine.low %v3652_v4, %v3656_v8  ;;  %v16510_v6 = vcombine.low %v3653_v27, %v3657_v16  ;;  %v24811_v16 = vld [vmem:[#allocation71_spill] sm:$0xff] }
 0x34a   :  { %11356 = vmatpush1.bf16.msra.mxu0 %v16476_v31  ;;  %v3660_v31 = vld [vmem:[#allocation5 + $0xc10] sm:$0xff] }
 0x34b   :  { %12260 = vmatpush1.bf16.msra.mxu1 %v16478_v1  ;;  %11357 = vmatprep.subr.bf16.mxu0 %v16485_v10  ;;  %v3664_v1 = vld [vmem:[#allocation5 + $0xc30] sm:$0xff]  ;;  %v24808_v10 = vld [vmem:[#allocation40_spill] sm:$0xff] }
 0x34c   :  { %12261 = vmatprep.subr.bf16.mxu1 %v16487_v48  ;;  %v3665_v48 = vld [vmem:[#allocation5 + $0xc38] sm:$0xff]  ;;  %v16517_v55 = vcombine.high %v3660_v31, %v3664_v1  ;;  %v16516_v35 = vcombine.low %v3660_v31, %v3664_v1 }
 0x34d   :  { %11313 = vmatmul.mubr.bf16.gmra.mrb[56].mxu0 %v24806_v43  ;;  %v3689_v31 = vld [vmem:[#allocation5 + $0xcf8] sm:$0xff] }
 0x34e   :  { %12217 = vmatmul.mubr.bf16.gmra.mrb[56].mxu1 %v24806_v43  ;;  %11358 = vmatpush1.bf16.msra.mxu0 %v16484_v54  ;;  %v16519_v54 = vcombine.high %v3661_v50, %v3665_v48  ;;  %v16518_v43 = vcombine.low %v3661_v50, %v3665_v48 }
 0x34f   :  { %12262 = vmatpush1.bf16.msra.mxu1 %v16486_v15  ;;  %11359 = vmatprep.subr.bf16.mxu0 %v16493_v37  ;;  %v3668_v15 = vld [vmem:[#allocation5 + $0xc50] sm:$0xff] }
 0x350   :  { %12263 = vmatprep.subr.bf16.mxu1 %v16495_v13  ;;  %11322 = vmatprep.mubr.bf16.mxu0 %v24807_v44  ;;  %v3672_v37 = vld [vmem:[#allocation5 + $0xc70] sm:$0xff]  ;;  %v3669_v13 = vld [vmem:[#allocation5 + $0xc58] sm:$0xff] }
 0x351   :  { %12226 = vmatprep.mubr.bf16.mxu1 %v24807_v44  ;;  %v16525_v17 = vcombine.high %v3668_v15, %v3672_v37  ;;  %v16527_v62 = vcombine.high %v3669_v13, %v3673_v22  ;;  %v3677_v44 = vld [vmem:[#allocation5 + $0xc98] sm:$0xff]  ;;  %v16524_v4 = vcombine.low %v3668_v15, %v3672_v37  ;;  %v16526_v8 = vcombine.low %v3669_v13, %v3673_v22 }
 0x352   :  { %11360 = vmatpush1.bf16.msra.mxu0 %v16492_v0  ;;  %v3676_v0 = vld [vmem:[#allocation5 + $0xc90] sm:$0xff]  ;;  %v24813_v22 = vld [vmem:[#allocation42_spill] sm:$0xff] }
 0x353   :  { %12264 = vmatpush1.bf16.msra.mxu1 %v16494_v18  ;;  %11361 = vmatprep.subr.bf16.mxu0 %v16501_v38  ;;  %v3680_v18 = vld [vmem:[#allocation5 + $0xcb0] sm:$0xff]  ;;  %v24810_v38 = vld [vmem:[#allocation70_spill] sm:$0xff] }
 0x354   :  { %12265 = vmatprep.subr.bf16.mxu1 %v16503_v61  ;;  %v3681_v61 = vld [vmem:[#allocation5 + $0xcb8] sm:$0xff]  ;;  %v16533_v27 = vcombine.high %v3676_v0, %v3680_v18  ;;  %v16532_v1 = vcombine.low %v3676_v0, %v3680_v18 }
 0x355   :  { %11323 = vmatmul.mubr.bf16.gmra.mrb[60].mxu0 %v24808_v10  ;;  %v3705_v0 = vld [vmem:[#allocation5 + $0xd78] sm:$0xff] }
 0x356   :  { %12227 = vmatmul.mubr.bf16.gmra.mrb[60].mxu1 %v24808_v10  ;;  %11362 = vmatpush1.bf16.msra.mxu0 %v16500_v19  ;;  %v16535_v19 = vcombine.high %v3677_v44, %v3681_v61  ;;  %v16534_v10 = vcombine.low %v3677_v44, %v3681_v61 }
 0x357   :  { %12266 = vmatpush1.bf16.msra.mxu1 %v16502_v47  ;;  %11363 = vmatprep.subr.bf16.mxu0 %v16509_v12  ;;  %v3684_v47 = vld [vmem:[#allocation5 + $0xcd0] sm:$0xff] }
 0x358   :  { %12267 = vmatprep.subr.bf16.mxu1 %v16511_v28  ;;  %11365 = vmatprep.mubr.bf16.mxu0 %v24809_v14  ;;  %v3688_v12 = vld [vmem:[#allocation5 + $0xcf0] sm:$0xff]  ;;  %v3685_v28 = vld [vmem:[#allocation5 + $0xcd8] sm:$0xff] }
 0x359   :  { %12269 = vmatprep.mubr.bf16.mxu1 %v24809_v14  ;;  %v16541_v50 = vcombine.high %v3684_v47, %v3688_v12  ;;  %v16543_v48 = vcombine.high %v3685_v28, %v3689_v31  ;;  %v3693_v14 = vld [vmem:[#allocation5 + $0xd18] sm:$0xff]  ;;  %v16540_v15 = vcombine.low %v3684_v47, %v3688_v12  ;;  %v16542_v37 = vcombine.low %v3685_v28, %v3689_v31  ;;  %v3716_v31 = vld [vmem:[#allocation5 + $0xdd0] sm:$0xff] }
 0x35a   :  { %11364 = vmatpush1.bf16.msra.mxu0 %v16508_v58  ;;  %v3692_v58 = vld [vmem:[#allocation5 + $0xd10] sm:$0xff] }
 0x35b   :  { %12268 = vmatpush1.bf16.msra.mxu1 %v16510_v6  ;;  %11446 = vmatprep.subr.bf16.mxu0 %v16517_v55  ;;  %v3696_v6 = vld [vmem:[#allocation5 + $0xd30] sm:$0xff]  ;;  %v24812_v55 = vld [vmem:[#allocation72_spill] sm:$0xff] }
 0x35c   :  { %12350 = vmatprep.subr.bf16.mxu1 %v16519_v54  ;;  %v3697_v54 = vld [vmem:[#allocation5 + $0xd38] sm:$0xff]  ;;  %v16549_v13 = vcombine.high %v3692_v58, %v3696_v6  ;;  %v16548_v18 = vcombine.low %v3692_v58, %v3696_v6 }
 0x35d   :  { %11366 = vmatmul.mubr.bf16.vlgmr.msra.gmra.mrb[32].mxu0 %v24810_v38  ;;  %v3717_v58 = vld [vmem:[#allocation5 + $0xdd8] sm:$0xff] }
 0x35e   :  { %12270 = vmatmul.mubr.bf16.vlgmr.msra.gmra.mrb[32].mxu1 %v24810_v38  ;;  %11447 = vmatpush1.bf16.msra.mxu0 %v16516_v35  ;;  %v16551_v35 = vcombine.high %v3693_v14, %v3697_v54  ;;  %v16550_v38 = vcombine.low %v3693_v14, %v3697_v54  ;;  %v3721_v6 = vld [vmem:[#allocation5 + $0xdf8] sm:$0xff] }
 0x35f   :  { %12351 = vmatpush1.bf16.msra.mxu1 %v16518_v43  ;;  %11448 = vmatprep.subr.bf16.mxu0 %v16525_v17  ;;  %v3700_v43 = vld [vmem:[#allocation5 + $0xd50] sm:$0xff] }
 0x360   :  { %12352 = vmatprep.subr.bf16.mxu1 %v16527_v62  ;;  %11375 = vmatprep.mubr.bf16.mxu0 %v24811_v16  ;;  %v3704_v17 = vld [vmem:[#allocation5 + $0xd70] sm:$0xff]  ;;  %v3701_v62 = vld [vmem:[#allocation5 + $0xd58] sm:$0xff] }
 0x361   :  { %12279 = vmatprep.mubr.bf16.mxu1 %v24811_v16  ;;  %v16557_v44 = vcombine.high %v3700_v43, %v3704_v17  ;;  %v16559_v61 = vcombine.high %v3701_v62, %v3705_v0  ;;  %v3709_v16 = vld [vmem:[#allocation5 + $0xd98] sm:$0xff]  ;;  %v16556_v47 = vcombine.low %v3700_v43, %v3704_v17  ;;  %v16558_v12 = vcombine.low %v3701_v62, %v3705_v0 }
 0x362   :  { %11449 = vmatpush1.bf16.msra.mxu0 %v16524_v4  ;;  %v3708_v4 = vld [vmem:[#allocation5 + $0xd90] sm:$0xff]  ;;  %v16575_v0 = vcombine.high %v3717_v58, %v3721_v6 }
 0x363   :  { %12353 = vmatpush1.bf16.msra.mxu1 %v16526_v8  ;;  %11450 = vmatprep.subr.bf16.mxu0 %v16533_v27  ;;  %v3712_v8 = vld [vmem:[#allocation5 + $0xdb0] sm:$0xff]  ;;  %v24814_v27 = vld [vmem:[#allocation60_spill] sm:$0xff] }
 0x364   :  { %12354 = vmatprep.subr.bf16.mxu1 %v16535_v19  ;;  %v3713_v19 = vld [vmem:[#allocation5 + $0xdb8] sm:$0xff]  ;;  %v16565_v28 = vcombine.high %v3708_v4, %v3712_v8 }
 0x365   :  { %11376 = vmatmul.mubr.bf16.gmra.mrb[36].mxu0 %v24812_v55 }
 0x366   :  { %12280 = vmatmul.mubr.bf16.gmra.mrb[36].mxu1 %v24812_v55  ;;  %11451 = vmatpush1.bf16.msra.mxu0 %v16532_v1 }
 0x367   :  { %12355 = vmatpush1.bf16.msra.mxu1 %v16534_v10  ;;  %11452 = vmatprep.subr.bf16.mxu0 %v16541_v50  ;;  %v24815_v10 = vld [vmem:[#allocation31_spill] sm:$0xff]  ;;  %v16567_v50 = vcombine.high %v3709_v16, %v3713_v19 }
 0x368   :  { %12356 = vmatprep.subr.bf16.mxu1 %v16543_v48  ;;  %11385 = vmatprep.mubr.bf16.mxu0 %v24813_v22  ;;  %v3720_v48 = vld [vmem:[#allocation5 + $0xdf0] sm:$0xff] }
 0x369   :  { %12289 = vmatprep.mubr.bf16.mxu1 %v24813_v22  ;;  %v16573_v62 = vcombine.high %v3716_v31, %v3720_v48 }
 0x36a   :  { %11453 = vmatpush1.bf16.msra.mxu0 %v16540_v15 }
 0x36b   :  { %12357 = vmatpush1.bf16.msra.mxu1 %v16542_v37  ;;  %11454 = vmatprep.subr.bf16.mxu0 %v16549_v13  ;;  %v16564_v37 = vcombine.low %v3708_v4, %v3712_v8  ;;  %v16566_v13 = vcombine.low %v3709_v16, %v3713_v19  ;;  %v24817_v16 = vld [vmem:[#allocation19_spill] sm:$0xff]  ;;  %v3725_v19 = vld [vmem:[#allocation5 + $0xe18] sm:$0xff] }
 0x36c   :  { %12358 = vmatprep.subr.bf16.mxu1 %v16551_v35 }
 0x36d   :  { %11386 = vmatmul.mubr.bf16.gmra.mrb[40].mxu0 %v24814_v27 }
 0x36e   :  { %12290 = vmatmul.mubr.bf16.gmra.mrb[40].mxu1 %v24814_v27  ;;  %11455 = vmatpush1.bf16.msra.mxu0 %v16548_v18  ;;  %v23321_v18 = vld [vmem:[#allocation5 + $0xe10] sm:$0xff] }
 0x36f   :  { %12359 = vmatpush1.bf16.msra.mxu1 %v16550_v38  ;;  %11456 = vmatprep.subr.bf16.mxu0 %v16557_v44 }
 0x370   :  { %v10124_v1 = vpop.f32.mrb[0].mxu0  ;;  %12360 = vmatprep.subr.bf16.mxu1 %v16559_v61  ;;  %11395 = vmatprep.mubr.bf16.mxu0 %v24815_v10 }
 0x371   :  { %v11028_v55 = vpop.f32.mrb[0].mxu1  ;;  %v10126_v14 = vpop.f32.mrb[1].mxu0  ;;  %12299 = vmatprep.mubr.bf16.mxu1 %v24815_v10  ;;  %v12915_v22 = vmax.f32 %v10124_v1, 0.0 }
 0x372   :  { %v11030_v54 = vpop.f32.mrb[1].mxu1  ;;  %v10128_v15 = vpop.f32.mrb[2].mxu0  ;;  %11457 = vmatpush1.bf16.msra.mxu0 %v16556_v47  ;;  %v12917_v38 = vmax.f32 %v11028_v55, 0.0  ;;  %v12916_v44 = vmax.f32 %v10126_v14, 0.0  ;;  %v16572_v55 = vcombine.low %v3716_v31, %v3720_v48 }
 0x373   :  { %v12923_v35 = vmax.f32 %v10128_v15, 0.0  ;;  %v11032_v43 = vpop.f32.mrb[2].mxu1  ;;  %12361 = vmatpush1.bf16.msra.mxu1 %v16558_v12  ;;  %v10130_v17 = vpop.f32.mrb[3].mxu0  ;;  %11458 = vmatprep.subr.bf16.mxu0 %v16565_v28  ;;  %v12918_v47 = vmax.f32 %v11030_v54, 0.0  ;;  %v3729_v12 = vld [vmem:[#allocation5 + $0xe38] sm:$0xff]  ;;  %v16581_v54 = vcombine.high %v23321_v18, %v3728_v60  ;;  %v3732_v15 = vld [vmem:[#allocation5 + $0xe50] sm:$0xff] }
 0x374   :  { %v12925_v61 = vmax.f32 %v11032_v43, 0.0  ;;  %v12924_v27 = vmax.f32 %v10130_v17, 0.0  ;;  %v11034_v10 = vpop.f32.mrb[3].mxu1  ;;  %12362 = vmatprep.subr.bf16.mxu1 %v16567_v50  ;;  %v16574_v50 = vcombine.low %v3717_v58, %v3721_v6  ;;  %v16583_v43 = vcombine.high %v3725_v19, %v3729_v12  ;;  %v3736_v17 = vld [vmem:[#allocation5 + $0xe70] sm:$0xff] }
 0x375   :  { %v23323_v4 = vpack.c.bf16 %v12923_v35, %v12915_v22  ;;  %v12926_v8 = vmax.f32 %v11034_v10, 0.0  ;;  %11396 = vmatmul.mubr.bf16.gmra.mrb[44].mxu0 %v24817_v16  ;;  %v24821_v35 = vld [vmem:[#allocation67_spill] sm:$0xff]  ;;  %v16580_v58 = vcombine.low %v23321_v18, %v3728_v60  ;;  %v16582_v6 = vcombine.low %v3725_v19, %v3729_v12  ;;  %v24823_v19 = vld [vmem:[#allocation49_spill] sm:$0xff]  ;;  %v3741_v12 = vld [vmem:[#allocation5 + $0xe98] sm:$0xff] }
 0x376   :  { %v23326_v28 = vpack.c.bf16 %v12925_v61, %v12917_v38  ;;  %v23328_v1 = vpack.c.bf16 %v12924_v27, %v12916_v44  ;;  %12300 = vmatmul.mubr.bf16.gmra.mrb[44].mxu1 %v24817_v16  ;;  %11459 = vmatpush1.bf16.msra.mxu0 %v16564_v37  ;;  %v3733_v38 = vld [vmem:[#allocation5 + $0xe58] sm:$0xff]  ;;  %v16589_v10 = vcombine.high %v3732_v15, %v3736_v17 }
 0x377   :  { %24816 = vst [vmem:[#allocation112_spill] sm:$0xff] %v23323_v4  ;;  %v23331_v14 = vpack.c.bf16 %v12926_v8, %v12918_v47  ;;  %12363 = vmatpush1.bf16.msra.mxu1 %v16566_v13  ;;  %11460 = vmatprep.subr.bf16.mxu0 %v16573_v62  ;;  %v3737_v44 = vld [vmem:[#allocation5 + $0xe78] sm:$0xff]  ;;  %v23337_v8 = vld [vmem:[#allocation5 + $0xe90] sm:$0xff] }
 0x378   :  { %24818 = vst [vmem:[#allocation113_spill] sm:$0xff] %v23326_v28  ;;  %24819 = vst [vmem:[#allocation83_spill] sm:$0xff] %v23328_v1  ;;  %v10134_v22 = vpop.f32.mrb[4].mxu0  ;;  %12364 = vmatprep.subr.bf16.mxu1 %v16575_v0  ;;  %11405 = vmatprep.mubr.bf16.mxu0 %v24821_v35  ;;  %v16591_v47 = vcombine.high %v3733_v38, %v3737_v44 }
 0x379   :  { %24820 = vst [vmem:[#allocation82_spill] sm:$0xff] %v23331_v14  ;;  %v11038_v61 = vpop.f32.mrb[4].mxu1  ;;  %v10136_v27 = vpop.f32.mrb[5].mxu0  ;;  %12309 = vmatprep.mubr.bf16.mxu1 %v24821_v35  ;;  %v12931_v37 = vmax.f32 %v10134_v22, 0.0 }
 0x37a   :  { %v11040_v31 = vpop.f32.mrb[5].mxu1  ;;  %v10138_v48 = vpop.f32.mrb[6].mxu0  ;;  %11461 = vmatpush1.bf16.msra.mxu0 %v16572_v55  ;;  %v12933_v16 = vmax.f32 %v11038_v61, 0.0  ;;  %v12932_v28 = vmax.f32 %v10136_v27, 0.0  ;;  %v3744_v55 = vld [vmem:[#allocation5 + $0xeb0] sm:$0xff]  ;;  %v16588_v61 = vcombine.low %v3732_v15, %v3736_v17 }
 0x37b   :  { %v12939_v13 = vmax.f32 %v10138_v48, 0.0  ;;  %v11042_v62 = vpop.f32.mrb[6].mxu1  ;;  %12365 = vmatpush1.bf16.msra.mxu1 %v16574_v50  ;;  %v10140_v0 = vpop.f32.mrb[7].mxu0  ;;  %11462 = vmatprep.subr.bf16.mxu0 %v16581_v54  ;;  %v12934_v1 = vmax.f32 %v11040_v31, 0.0  ;;  %v3745_v50 = vld [vmem:[#allocation5 + $0xeb8] sm:$0xff]  ;;  %v16597_v31 = vcombine.high %v23337_v8, %v3744_v55  ;;  %v16596_v17 = vcombine.low %v23337_v8, %v3744_v55 }
 0x37c   :  { %v12941_v14 = vmax.f32 %v11042_v62, 0.0  ;;  %v12940_v35 = vmax.f32 %v10140_v0, 0.0  ;;  %v11044_v4 = vpop.f32.mrb[7].mxu1  ;;  %12366 = vmatprep.subr.bf16.mxu1 %v16583_v43  ;;  %v16590_v43 = vcombine.low %v3733_v38, %v3737_v44  ;;  %v3753_v62 = vld [vmem:[#allocation5 + $0xef8] sm:$0xff]  ;;  %v16598_v38 = vcombine.low %v3741_v12, %v3745_v50 }
 0x37d   :  { %v23339_v60 = vpack.c.bf16 %v12939_v13, %v12931_v37  ;;  %v12942_v18 = vmax.f32 %v11044_v4, 0.0  ;;  %11406 = vmatmul.mubr.bf16.gmra.mrb[48].mxu0 %v24823_v19  ;;  %v3748_v4 = vld [vmem:[#allocation5 + $0xed0] sm:$0xff] }
 0x37e   :  { %v23342_v54 = vpack.c.bf16 %v12941_v14, %v12933_v16  ;;  %v23344_v22 = vpack.c.bf16 %v12940_v35, %v12932_v28  ;;  %12310 = vmatmul.mubr.bf16.gmra.mrb[48].mxu1 %v24823_v19  ;;  %11463 = vmatpush1.bf16.msra.mxu0 %v16580_v58  ;;  %v24827_v37 = vld [vmem:[#allocation73_spill] sm:$0xff]  ;;  %v16599_v14 = vcombine.high %v3741_v12, %v3745_v50  ;;  %v3749_v28 = vld [vmem:[#allocation5 + $0xed8] sm:$0xff] }
 0x37f   :  { %24822 = vst [vmem:[#allocation119_spill] sm:$0xff] %v23339_v60  ;;  %v23347_v27 = vpack.c.bf16 %v12942_v18, %v12934_v1  ;;  %12367 = vmatpush1.bf16.msra.mxu1 %v16582_v6  ;;  %11464 = vmatprep.subr.bf16.mxu0 %v16589_v10  ;;  %v3752_v13 = vld [vmem:[#allocation5 + $0xef0] sm:$0xff]  ;;  %v16607_v35 = vcombine.high %v3749_v28, %v3753_v62  ;;  %v24829_v12 = vld [vmem:[#allocation74_spill] sm:$0xff] }
 0x380   :  { %24824 = vst [vmem:[#allocation116_spill] sm:$0xff] %v23342_v54  ;;  %24825 = vst [vmem:[#allocation121_spill] sm:$0xff] %v23344_v22  ;;  %v10144_v48 = vpop.f32.mrb[8].mxu0  ;;  %12368 = vmatprep.subr.bf16.mxu1 %v16591_v47  ;;  %11415 = vmatprep.mubr.bf16.mxu0 %v24827_v37  ;;  %v16605_v47 = vcombine.high %v3748_v4, %v3752_v13  ;;  %v23353_v18 = vld [vmem:[#allocation5 + $0xf10] sm:$0xff]  ;;  %v3757_v50 = vld [vmem:[#allocation5 + $0xf18] sm:$0xff] }
 0x381   :  { %24826 = vst [vmem:[#allocation120_spill] sm:$0xff] %v23347_v27  ;;  %v11048_v0 = vpop.f32.mrb[8].mxu1  ;;  %v10146_v16 = vpop.f32.mrb[9].mxu0  ;;  %12319 = vmatprep.mubr.bf16.mxu1 %v24827_v37  ;;  %v12947_v44 = vmax.f32 %v10144_v48, 0.0 }
 0x382   :  { %v11050_v1 = vpop.f32.mrb[9].mxu1  ;;  %v10148_v15 = vpop.f32.mrb[10].mxu0  ;;  %11465 = vmatpush1.bf16.msra.mxu0 %v16588_v61  ;;  %v12949_v19 = vmax.f32 %v11048_v0, 0.0  ;;  %v12948_v54 = vmax.f32 %v10146_v16, 0.0  ;;  %v3760_v61 = vld [vmem:[#allocation5 + $0xf30] sm:$0xff]  ;;  %v16604_v0 = vcombine.low %v3748_v4, %v3752_v13 }
 0x383   :  { %v12955_v58 = vmax.f32 %v10148_v15, 0.0  ;;  %v11052_v6 = vpop.f32.mrb[10].mxu1  ;;  %12369 = vmatpush1.bf16.msra.mxu1 %v16590_v43  ;;  %v10150_v10 = vpop.f32.mrb[11].mxu0  ;;  %11466 = vmatprep.subr.bf16.mxu0 %v16597_v31  ;;  %v12950_v22 = vmax.f32 %v11050_v1, 0.0  ;;  %v3761_v43 = vld [vmem:[#allocation5 + $0xf38] sm:$0xff]  ;;  %v16613_v1 = vcombine.high %v23353_v18, %v3760_v61  ;;  %v16612_v13 = vcombine.low %v23353_v18, %v3760_v61 }
 0x384   :  { %v12957_v27 = vmax.f32 %v11052_v6, 0.0  ;;  %v12956_v37 = vmax.f32 %v10150_v10, 0.0  ;;  %v11054_v60 = vpop.f32.mrb[11].mxu1  ;;  %12370 = vmatprep.subr.bf16.mxu1 %v16599_v14  ;;  %v16606_v14 = vcombine.low %v3749_v28, %v3753_v62  ;;  %v3769_v6 = vld [vmem:[#allocation5 + $0xf78] sm:$0xff]  ;;  %v16614_v28 = vcombine.low %v3757_v50, %v3761_v43 }
 0x385   :  { %v23355_v8 = vpack.c.bf16 %v12955_v58, %v12947_v44  ;;  %v12958_v55 = vmax.f32 %v11054_v60, 0.0  ;;  %11416 = vmatmul.mubr.bf16.gmra.mrb[52].mxu0 %v24829_v12  ;;  %v3764_v60 = vld [vmem:[#allocation5 + $0xf50] sm:$0xff]  ;;  %v24833_v44 = vld [vmem:[#allocation75_spill] sm:$0xff] }
 0x386   :  { %v23358_v31 = vpack.c.bf16 %v12957_v27, %v12949_v19  ;;  %v23360_v48 = vpack.c.bf16 %v12956_v37, %v12948_v54  ;;  %12320 = vmatmul.mubr.bf16.gmra.mrb[52].mxu1 %v24829_v12  ;;  %11467 = vmatpush1.bf16.msra.mxu0 %v16596_v17  ;;  %v16615_v27 = vcombine.high %v3757_v50, %v3761_v43  ;;  %v3768_v58 = vld [vmem:[#allocation5 + $0xf70] sm:$0xff]  ;;  %v3765_v54 = vld [vmem:[#allocation5 + $0xf58] sm:$0xff]  ;;  %v24835_v50 = vld [vmem:[#allocation76_spill] sm:$0xff] }
 0x387   :  { %24828 = vst [vmem:[#allocation123_spill] sm:$0xff] %v23355_v8  ;;  %v23363_v16 = vpack.c.bf16 %v12958_v55, %v12950_v22  ;;  %12371 = vmatpush1.bf16.msra.mxu1 %v16598_v38  ;;  %11468 = vmatprep.subr.bf16.mxu0 %v16605_v47  ;;  %v16623_v37 = vcombine.high %v3765_v54, %v3769_v6  ;;  %v23369_v55 = vld [vmem:[#allocation5 + $0xf90] sm:$0xff]  ;;  %v3773_v43 = vld [vmem:[#allocation5 + $0xf98] sm:$0xff] }
 0x388   :  { %24830 = vst [vmem:[#allocation122_spill] sm:$0xff] %v23358_v31  ;;  %24831 = vst [vmem:[#allocation125_spill] sm:$0xff] %v23360_v48  ;;  %v10154_v15 = vpop.f32.mrb[12].mxu0  ;;  %12372 = vmatprep.subr.bf16.mxu1 %v16607_v35  ;;  %11425 = vmatprep.mubr.bf16.mxu0 %v24833_v44  ;;  %v16621_v35 = vcombine.high %v3764_v60, %v3768_v58 }
 0x389   :  { %24832 = vst [vmem:[#allocation124_spill] sm:$0xff] %v23363_v16  ;;  %v11058_v10 = vpop.f32.mrb[12].mxu1  ;;  %v10156_v19 = vpop.f32.mrb[13].mxu0  ;;  %12329 = vmatprep.mubr.bf16.mxu1 %v24833_v44  ;;  %v12963_v62 = vmax.f32 %v10154_v15, 0.0 }
 0x38a   :  { %v11060_v22 = vpop.f32.mrb[13].mxu1  ;;  %v10158_v4 = vpop.f32.mrb[14].mxu0  ;;  %11469 = vmatpush1.bf16.msra.mxu0 %v16604_v0  ;;  %v12965_v12 = vmax.f32 %v11058_v10, 0.0  ;;  %v12964_v31 = vmax.f32 %v10156_v19, 0.0  ;;  %v3776_v0 = vld [vmem:[#allocation5 + $0xfb0] sm:$0xff]  ;;  %v16620_v10 = vcombine.low %v3764_v60, %v3768_v58 }
 0x38b   :  { %v12971_v17 = vmax.f32 %v10158_v4, 0.0  ;;  %v11062_v38 = vpop.f32.mrb[14].mxu1  ;;  %12373 = vmatpush1.bf16.msra.mxu1 %v16606_v14  ;;  %v10160_v47 = vpop.f32.mrb[15].mxu0  ;;  %11470 = vmatprep.subr.bf16.mxu0 %v16613_v1  ;;  %v12966_v48 = vmax.f32 %v11060_v22, 0.0  ;;  %v3777_v14 = vld [vmem:[#allocation5 + $0xfb8] sm:$0xff]  ;;  %v16629_v22 = vcombine.high %v23369_v55, %v3776_v0  ;;  %v16628_v58 = vcombine.low %v23369_v55, %v3776_v0 }
 0x38c   :  { %v12973_v16 = vmax.f32 %v11062_v38, 0.0  ;;  %v12972_v44 = vmax.f32 %v10160_v47, 0.0  ;;  %v11064_v8 = vpop.f32.mrb[15].mxu1  ;;  %12374 = vmatprep.subr.bf16.mxu1 %v16615_v27  ;;  %v16622_v27 = vcombine.low %v3765_v54, %v3769_v6  ;;  %v3785_v38 = vld [vmem:[#allocation5 + $0xff8] sm:$0xff]  ;;  %v16630_v54 = vcombine.low %v3773_v43, %v3777_v14 }
 0x38d   :  { %v23371_v18 = vpack.c.bf16 %v12971_v17, %v12963_v62  ;;  %v12974_v61 = vmax.f32 %v11064_v8, 0.0  ;;  %11426 = vmatmul.mubr.bf16.gmra.mrb[56].mxu0 %v24835_v50  ;;  %v3780_v8 = vld [vmem:[#allocation5 + $0xfd0] sm:$0xff] }
 0x38e   :  { %v23374_v1 = vpack.c.bf16 %v12973_v16, %v12965_v12  ;;  %v23376_v15 = vpack.c.bf16 %v12972_v44, %v12964_v31  ;;  %12330 = vmatmul.mubr.bf16.gmra.mrb[56].mxu1 %v24835_v50  ;;  %11471 = vmatpush1.bf16.msra.mxu0 %v16612_v13  ;;  %v24839_v62 = vld [vmem:[#allocation77_spill] sm:$0xff]  ;;  %v16631_v16 = vcombine.high %v3773_v43, %v3777_v14  ;;  %v3781_v31 = vld [vmem:[#allocation5 + $0xfd8] sm:$0xff] }
 0x38f   :  { %24834 = vst [vmem:[#allocation127_spill] sm:$0xff] %v23371_v18  ;;  %v23379_v19 = vpack.c.bf16 %v12974_v61, %v12966_v48  ;;  %12375 = vmatpush1.bf16.msra.mxu1 %v16614_v28  ;;  %11472 = vmatprep.subr.bf16.mxu0 %v16621_v35  ;;  %v3784_v17 = vld [vmem:[#allocation5 + $0xff0] sm:$0xff]  ;;  %v16639_v44 = vcombine.high %v3781_v31, %v3785_v38  ;;  %v24841_v43 = vld [vmem:[#allocation78_spill] sm:$0xff] }
 0x390   :  { %24836 = vst [vmem:[#allocation126_spill] sm:$0xff] %v23374_v1  ;;  %24837 = vst [vmem:[#allocation129_spill] sm:$0xff] %v23376_v15  ;;  %v10164_v4 = vpop.f32.mrb[16].mxu0  ;;  %12376 = vmatprep.subr.bf16.mxu1 %v16623_v37  ;;  %11435 = vmatprep.mubr.bf16.mxu0 %v24839_v62  ;;  %v16637_v37 = vcombine.high %v3780_v8, %v3784_v17  ;;  %v23385_v61 = vld [vmem:[#allocation5 + $0x1010] sm:$0xff]  ;;  %v3789_v14 = vld [vmem:[#allocation5 + $0x1018] sm:$0xff] }
 0x391   :  { %24838 = vst [vmem:[#allocation128_spill] sm:$0xff] %v23379_v19  ;;  %v11068_v47 = vpop.f32.mrb[16].mxu1  ;;  %v10166_v12 = vpop.f32.mrb[17].mxu0  ;;  %12339 = vmatprep.mubr.bf16.mxu1 %v24839_v62  ;;  %v12979_v6 = vmax.f32 %v10164_v4, 0.0 }
 0x392   :  { %v11070_v48 = vpop.f32.mrb[17].mxu1  ;;  %v10168_v60 = vpop.f32.mrb[18].mxu0  ;;  %11473 = vmatpush1.bf16.msra.mxu0 %v16620_v10  ;;  %v12981_v50 = vmax.f32 %v11068_v47, 0.0  ;;  %v12980_v1 = vmax.f32 %v10166_v12, 0.0  ;;  %v3792_v10 = vld [vmem:[#allocation5 + $0x1030] sm:$0xff]  ;;  %v16636_v47 = vcombine.low %v3780_v8, %v3784_v17 }
 0x393   :  { %v12987_v13 = vmax.f32 %v10168_v60, 0.0  ;;  %v11072_v28 = vpop.f32.mrb[18].mxu1  ;;  %12377 = vmatpush1.bf16.msra.mxu1 %v16622_v27  ;;  %v10170_v35 = vpop.f32.mrb[19].mxu0  ;;  %11474 = vmatprep.subr.bf16.mxu0 %v16629_v22  ;;  %v12982_v15 = vmax.f32 %v11070_v48, 0.0  ;;  %v3793_v27 = vld [vmem:[#allocation5 + $0x1038] sm:$0xff]  ;;  %v16645_v48 = vcombine.high %v23385_v61, %v3792_v10  ;;  %v16644_v17 = vcombine.low %v23385_v61, %v3792_v10 }
 0x394   :  { %v12989_v19 = vmax.f32 %v11072_v28, 0.0  ;;  %v12988_v62 = vmax.f32 %v10170_v35, 0.0  ;;  %v11074_v18 = vpop.f32.mrb[19].mxu1  ;;  %12378 = vmatprep.subr.bf16.mxu1 %v16631_v16  ;;  %v16638_v16 = vcombine.low %v3781_v31, %v3785_v38  ;;  %v3801_v28 = vld [vmem:[#allocation5 + $0x1078] sm:$0xff]  ;;  %v16646_v31 = vcombine.low %v3789_v14, %v3793_v27 }
 0x395   :  { %v23387_v55 = vpack.c.bf16 %v12987_v13, %v12979_v6  ;;  %v12990_v0 = vmax.f32 %v11074_v18, 0.0  ;;  %11436 = vmatmul.mubr.bf16.gmra.mrb[60].mxu0 %v24841_v43  ;;  %v3796_v18 = vld [vmem:[#allocation5 + $0x1050] sm:$0xff]  ;;  %v24845_v6 = vld [vmem:[#allocation48_spill] sm:$0xff] }
 0x396   :  { %v23390_v22 = vpack.c.bf16 %v12989_v19, %v12981_v50  ;;  %v23392_v4 = vpack.c.bf16 %v12988_v62, %v12980_v1  ;;  %12340 = vmatmul.mubr.bf16.gmra.mrb[60].mxu1 %v24841_v43  ;;  %11475 = vmatpush1.bf16.msra.mxu0 %v16628_v58  ;;  %v16647_v19 = vcombine.high %v3789_v14, %v3793_v27  ;;  %v3800_v13 = vld [vmem:[#allocation5 + $0x1070] sm:$0xff]  ;;  %v3797_v1 = vld [vmem:[#allocation5 + $0x1058] sm:$0xff]  ;;  %v24847_v14 = vld [vmem:[#allocation51_spill] sm:$0xff] }
 0x397   :  { %24840 = vst [vmem:[#allocation133_spill] sm:$0xff] %v23387_v55  ;;  %v23395_v12 = vpack.c.bf16 %v12990_v0, %v12982_v15  ;;  %12379 = vmatpush1.bf16.msra.mxu1 %v16630_v54  ;;  %11476 = vmatprep.subr.bf16.mxu0 %v16637_v37  ;;  %v16655_v62 = vcombine.high %v3797_v1, %v3801_v28  ;;  %v23401_v0 = vld [vmem:[#allocation5 + $0x1090] sm:$0xff]  ;;  %v3805_v27 = vld [vmem:[#allocation5 + $0x1098] sm:$0xff] }
 0x398   :  { %24842 = vst [vmem:[#allocation132_spill] sm:$0xff] %v23390_v22  ;;  %24843 = vst [vmem:[#allocation135_spill] sm:$0xff] %v23392_v4  ;;  %v10174_v60 = vpop.f32.mrb[20].mxu0  ;;  %12380 = vmatprep.subr.bf16.mxu1 %v16639_v44  ;;  %11478 = vmatprep.mubr.bf16.mxu0 %v24845_v6  ;;  %v16653_v44 = vcombine.high %v3796_v18, %v3800_v13 }
 0x399   :  { %24844 = vst [vmem:[#allocation134_spill] sm:$0xff] %v23395_v12  ;;  %v11078_v35 = vpop.f32.mrb[20].mxu1  ;;  %v10176_v50 = vpop.f32.mrb[21].mxu0  ;;  %12382 = vmatprep.mubr.bf16.mxu1 %v24845_v6  ;;  %v12995_v38 = vmax.f32 %v10174_v60, 0.0 }
 0x39a   :  { %v11080_v15 = vpop.f32.mrb[21].mxu1  ;;  %v10178_v8 = vpop.f32.mrb[22].mxu0  ;;  %11477 = vmatpush1.bf16.msra.mxu0 %v16636_v47  ;;  %v12997_v43 = vmax.f32 %v11078_v35, 0.0  ;;  %v12996_v22 = vmax.f32 %v10176_v50, 0.0  ;;  %v3808_v47 = vld [vmem:[#allocation5 + $0x10b0] sm:$0xff]  ;;  %v16652_v35 = vcombine.low %v3796_v18, %v3800_v13 }
 0x39b   :  { %v13003_v58 = vmax.f32 %v10178_v8, 0.0  ;;  %v11082_v54 = vpop.f32.mrb[22].mxu1  ;;  %12381 = vmatpush1.bf16.msra.mxu1 %v16638_v16  ;;  %v10180_v37 = vpop.f32.mrb[23].mxu0  ;;  %11559 = vmatprep.subr.bf16.mxu0 %v16645_v48  ;;  %v12998_v4 = vmax.f32 %v11080_v15, 0.0  ;;  %v3809_v16 = vld [vmem:[#allocation5 + $0x10b8] sm:$0xff]  ;;  %v16661_v15 = vcombine.high %v23401_v0, %v3808_v47  ;;  %v16660_v13 = vcombine.low %v23401_v0, %v3808_v47 }
 0x39c   :  { %v13005_v12 = vmax.f32 %v11082_v54, 0.0  ;;  %v13004_v6 = vmax.f32 %v10180_v37, 0.0  ;;  %v11084_v55 = vpop.f32.mrb[23].mxu1  ;;  %12463 = vmatprep.subr.bf16.mxu1 %v16647_v19  ;;  %v16654_v19 = vcombine.low %v3797_v1, %v3801_v28  ;;  %v3817_v54 = vld [vmem:[#allocation5 + $0x10f8] sm:$0xff]  ;;  %v16662_v1 = vcombine.low %v3805_v27, %v3809_v16 }
 0x39d   :  { %v23403_v61 = vpack.c.bf16 %v13003_v58, %v12995_v38  ;;  %v13006_v10 = vmax.f32 %v11084_v55, 0.0  ;;  %11479 = vmatmul.mubr.bf16.vlgmr.msra.gmra.mrb[32].mxu0 %v24847_v14  ;;  %v3812_v55 = vld [vmem:[#allocation5 + $0x10d0] sm:$0xff]  ;;  %v24851_v38 = vld [vmem:[#allocation50_spill] sm:$0xff] }
 0x39e   :  { %v23406_v48 = vpack.c.bf16 %v13005_v12, %v12997_v43  ;;  %v23408_v60 = vpack.c.bf16 %v13004_v6, %v12996_v22  ;;  %12383 = vmatmul.mubr.bf16.vlgmr.msra.gmra.mrb[32].mxu1 %v24847_v14  ;;  %11560 = vmatpush1.bf16.msra.mxu0 %v16644_v17  ;;  %v16663_v12 = vcombine.high %v3805_v27, %v3809_v16  ;;  %v3816_v58 = vld [vmem:[#allocation5 + $0x10f0] sm:$0xff]  ;;  %v3813_v22 = vld [vmem:[#allocation5 + $0x10d8] sm:$0xff]  ;;  %v24853_v27 = vld [vmem:[#allocation52_spill] sm:$0xff] }
 0x39f   :  { %24846 = vst [vmem:[#allocation139_spill] sm:$0xff] %v23403_v61  ;;  %v23411_v50 = vpack.c.bf16 %v13006_v10, %v12998_v4  ;;  %12464 = vmatpush1.bf16.msra.mxu1 %v16646_v31  ;;  %11561 = vmatprep.subr.bf16.mxu0 %v16653_v44  ;;  %v16671_v6 = vcombine.high %v3813_v22, %v3817_v54  ;;  %v23417_v10 = vld [vmem:[#allocation5 + $0x1110] sm:$0xff]  ;;  %v3821_v16 = vld [vmem:[#allocation5 + $0x1118] sm:$0xff] }
 0x3a0   :  { %24848 = vst [vmem:[#allocation136_spill] sm:$0xff] %v23406_v48  ;;  %24849 = vst [vmem:[#allocation141_spill] sm:$0xff] %v23408_v60  ;;  %v10184_v8 = vpop.f32.mrb[24].mxu0  ;;  %12465 = vmatprep.subr.bf16.mxu1 %v16655_v62  ;;  %11488 = vmatprep.mubr.bf16.mxu0 %v24851_v38  ;;  %v16669_v62 = vcombine.high %v3812_v55, %v3816_v58 }
 0x3a1   :  { %24850 = vst [vmem:[#allocation140_spill] sm:$0xff] %v23411_v50  ;;  %v11088_v37 = vpop.f32.mrb[24].mxu1  ;;  %v10186_v43 = vpop.f32.mrb[25].mxu0  ;;  %12392 = vmatprep.mubr.bf16.mxu1 %v24851_v38  ;;  %v13011_v28 = vmax.f32 %v10184_v8, 0.0 }
 0x3a2   :  { %v11090_v4 = vpop.f32.mrb[25].mxu1  ;;  %v10188_v18 = vpop.f32.mrb[26].mxu0  ;;  %11562 = vmatpush1.bf16.msra.mxu0 %v16652_v35  ;;  %v13013_v14 = vmax.f32 %v11088_v37, 0.0  ;;  %v13012_v48 = vmax.f32 %v10186_v43, 0.0  ;;  %v3824_v35 = vld [vmem:[#allocation5 + $0x1130] sm:$0xff]  ;;  %v16668_v37 = vcombine.low %v3812_v55, %v3816_v58 }
 0x3a3   :  { %v13019_v17 = vmax.f32 %v10188_v18, 0.0  ;;  %v11092_v31 = vpop.f32.mrb[26].mxu1  ;;  %12466 = vmatpush1.bf16.msra.mxu1 %v16654_v19  ;;  %v10190_v44 = vpop.f32.mrb[27].mxu0  ;;  %11563 = vmatprep.subr.bf16.mxu0 %v16661_v15  ;;  %v13014_v60 = vmax.f32 %v11090_v4, 0.0  ;;  %v3825_v19 = vld [vmem:[#allocation5 + $0x1138] sm:$0xff]  ;;  %v16677_v4 = vcombine.high %v23417_v10, %v3824_v35  ;;  %v16676_v58 = vcombine.low %v23417_v10, %v3824_v35  ;;  %v24858_v35 = vld [vmem:[#allocation56_spill] sm:$0xff] }
 0x3a4   :  { %v13021_v50 = vmax.f32 %v11092_v31, 0.0  ;;  %v13020_v38 = vmax.f32 %v10190_v44, 0.0  ;;  %v11094_v61 = vpop.f32.mrb[27].mxu1  ;;  %12467 = vmatprep.subr.bf16.mxu1 %v16663_v12  ;;  %v16670_v12 = vcombine.low %v3813_v22, %v3817_v54  ;;  %v3833_v31 = vld [vmem:[#allocation5 + $0x1178] sm:$0xff]  ;;  %v16678_v22 = vcombine.low %v3821_v16, %v3825_v19 }
 0x3a5   :  { %v23419_v0 = vpack.c.bf16 %v13019_v17, %v13011_v28  ;;  %v13022_v47 = vmax.f32 %v11094_v61, 0.0  ;;  %11489 = vmatmul.mubr.bf16.gmra.mrb[36].mxu0 %v24853_v27  ;;  %v3828_v61 = vld [vmem:[#allocation5 + $0x1150] sm:$0xff]  ;;  %v24857_v28 = vld [vmem:[#allocation55_spill] sm:$0xff] }
 0x3a6   :  { %v23422_v15 = vpack.c.bf16 %v13021_v50, %v13013_v14  ;;  %v23424_v8 = vpack.c.bf16 %v13020_v38, %v13012_v48  ;;  %12393 = vmatmul.mubr.bf16.gmra.mrb[36].mxu1 %v24853_v27  ;;  %11564 = vmatpush1.bf16.msra.mxu0 %v16660_v13  ;;  %v16679_v50 = vcombine.high %v3821_v16, %v3825_v19  ;;  %v3832_v17 = vld [vmem:[#allocation5 + $0x1170] sm:$0xff]  ;;  %v3829_v48 = vld [vmem:[#allocation5 + $0x1158] sm:$0xff] }
 0x3a7   :  { %24852 = vst [vmem:[#allocation143_spill] sm:$0xff] %v23419_v0  ;;  %v23427_v43 = vpack.c.bf16 %v13022_v47, %v13014_v60  ;;  %12468 = vmatpush1.bf16.msra.mxu1 %v16662_v1  ;;  %11565 = vmatprep.subr.bf16.mxu0 %v16669_v62  ;;  %v16687_v38 = vcombine.high %v3829_v48, %v3833_v31  ;;  %v3836_v47 = vld [vmem:[#allocation5 + $0x1190] sm:$0xff]  ;;  %v3837_v16 = vld [vmem:[#allocation5 + $0x1198] sm:$0xff] }
 0x3a8   :  { %24854 = vst [vmem:[#allocation142_spill] sm:$0xff] %v23422_v15  ;;  %24855 = vst [vmem:[#allocation145_spill] sm:$0xff] %v23424_v8  ;;  %v10194_v18 = vpop.f32.mrb[28].mxu0  ;;  %12469 = vmatprep.subr.bf16.mxu1 %v16671_v6  ;;  %11498 = vmatprep.mubr.bf16.mxu0 %v24857_v28  ;;  %v16685_v6 = vcombine.high %v3828_v61, %v3832_v17  ;;  %v3840_v8 = vld [vmem:[#allocation5 + $0x11b0] sm:$0xff]  ;;  %v3841_v19 = vld [vmem:[#allocation5 + $0x11b8] sm:$0xff] }
 0x3a9   :  { %24856 = vst [vmem:[#allocation144_spill] sm:$0xff] %v23427_v43  ;;  %v11098_v44 = vpop.f32.mrb[28].mxu1  ;;  %v10196_v14 = vpop.f32.mrb[29].mxu0  ;;  %12402 = vmatprep.mubr.bf16.mxu1 %v24857_v28  ;;  %v13027_v54 = vmax.f32 %v10194_v18, 0.0  ;;  %v16684_v18 = vcombine.low %v3828_v61, %v3832_v17  ;;  %v16694_v61 = vcombine.low %v3837_v16, %v3841_v19 }
 0x3aa   :  { %v11100_v60 = vpop.f32.mrb[29].mxu1  ;;  %v10198_v55 = vpop.f32.mrb[30].mxu0  ;;  %11566 = vmatpush1.bf16.msra.mxu0 %v16668_v37  ;;  %v13029_v27 = vmax.f32 %v11098_v44, 0.0  ;;  %v13028_v15 = vmax.f32 %v10196_v14, 0.0  ;;  %v16693_v14 = vcombine.high %v3836_v47, %v3840_v8 }
 0x3ab   :  { %v13035_v13 = vmax.f32 %v10198_v55, 0.0  ;;  %v11102_v1 = vpop.f32.mrb[30].mxu1  ;;  %12470 = vmatpush1.bf16.msra.mxu1 %v16670_v12  ;;  %v10200_v62 = vpop.f32.mrb[31].mxu0  ;;  %11567 = vmatprep.subr.bf16.mxu0 %v16677_v4  ;;  %v13030_v37 = vmax.f32 %v11100_v60, 0.0  ;;  %v24859_v60 = vld [vmem:[#allocation59_spill] sm:$0xff]  ;;  %v16695_v55 = vcombine.high %v3837_v16, %v3841_v19 }
 0x3ac   :  { %v13037_v43 = vmax.f32 %v11102_v1, 0.0  ;;  %v13036_v0 = vmax.f32 %v10200_v62, 0.0  ;;  %v11104_v28 = vpop.f32.mrb[31].mxu1  ;;  %12471 = vmatprep.subr.bf16.mxu1 %v16679_v50  ;;  %v16686_v50 = vcombine.low %v3829_v48, %v3833_v31  ;;  %v3852_v48 = vld [vmem:[#allocation5 + $0x1210] sm:$0xff]  ;;  %v3853_v1 = vld [vmem:[#allocation5 + $0x1218] sm:$0xff] }
 0x3ad   :  { %v23433_v36 = vpack.c.bf16 %v13035_v13, %v13027_v54  ;;  %v13038_v10 = vmax.f32 %v11104_v28, 0.0  ;;  %11499 = vmatmul.mubr.bf16.gmra.mrb[40].mxu0 %v24858_v35  ;;  %v3844_v54 = vld [vmem:[#allocation5 + $0x11d0] sm:$0xff]  ;;  %v3857_v62 = vld [vmem:[#allocation5 + $0x1238] sm:$0xff] }
 0x3ae   :  { %v23436_v12 = vpack.c.bf16 %v13037_v43, %v13029_v27  ;;  %v23438_v4 = vpack.c.bf16 %v13036_v0, %v13028_v15  ;;  %12403 = vmatmul.mubr.bf16.gmra.mrb[40].mxu1 %v24858_v35  ;;  %11568 = vmatpush1.bf16.msra.mxu0 %v16676_v58  ;;  %v3848_v13 = vld [vmem:[#allocation5 + $0x11f0] sm:$0xff]  ;;  %v3845_v0 = vld [vmem:[#allocation5 + $0x11d8] sm:$0xff]  ;;  %v16692_v43 = vcombine.low %v3836_v47, %v3840_v8 }
 0x3af   :  { %v23441_v44 = vpack.c.bf16 %v13038_v10, %v13030_v37  ;;  %12472 = vmatpush1.bf16.msra.mxu1 %v16678_v22  ;;  %11569 = vmatprep.subr.bf16.mxu0 %v16685_v6  ;;  %v3849_v15 = vld [vmem:[#allocation5 + $0x11f8] sm:$0xff]  ;;  %v16701_v17 = vcombine.high %v3844_v54, %v3848_v13  ;;  %v3856_v31 = vld [vmem:[#allocation5 + $0x1230] sm:$0xff]  ;;  %v16700_v6 = vcombine.low %v3844_v54, %v3848_v13 }
 0x3b0   :  { %12473 = vmatprep.subr.bf16.mxu1 %v16687_v38  ;;  %11508 = vmatprep.mubr.bf16.mxu0 %v24859_v60  ;;  %v16703_v58 = vcombine.high %v3845_v0, %v3849_v15  ;;  %v24860_v22 = vld [vmem:[#allocation61_spill] sm:$0xff]  ;;  %v16702_v38 = vcombine.low %v3845_v0, %v3849_v15  ;;  %v16709_v8 = vcombine.high %v3852_v48, %v3856_v31  ;;  %v3861_v10 = vld [vmem:[#allocation5 + $0x1258] sm:$0xff] }
 0x3b1   :  { %12412 = vmatprep.mubr.bf16.mxu1 %v24859_v60  ;;  %v24861_v47 = vld [vmem:[#allocation41_spill] sm:$0xff]  ;;  %v16711_v27 = vcombine.high %v3853_v1, %v3857_v62  ;;  %v3865_v35 = vld [vmem:[#allocation5 + $0x1278] sm:$0xff]  ;;  %v16708_v16 = vcombine.low %v3852_v48, %v3856_v31  ;;  %v16710_v19 = vcombine.low %v3853_v1, %v3857_v62 }
 0x3b2   :  { %11570 = vmatpush1.bf16.msra.mxu0 %v16684_v18  ;;  %v3860_v28 = vld [vmem:[#allocation5 + $0x1250] sm:$0xff]  ;;  %v3869_v54 = vld [vmem:[#allocation5 + $0x1298] sm:$0xff]  ;;  %v16718_v15 = vcombine.low %v3861_v10, %v3865_v35 }
 0x3b3   :  { %12474 = vmatpush1.bf16.msra.mxu1 %v16686_v50  ;;  %11571 = vmatprep.subr.bf16.mxu0 %v16693_v14  ;;  %v3864_v37 = vld [vmem:[#allocation5 + $0x1270] sm:$0xff]  ;;  %v16719_v50 = vcombine.high %v3861_v10, %v3865_v35  ;;  %v3873_v13 = vld [vmem:[#allocation5 + $0x12b8] sm:$0xff] }
 0x3b4   :  { %12475 = vmatprep.subr.bf16.mxu1 %v16695_v55  ;;  %v16717_v18 = vcombine.high %v3860_v28, %v3864_v37  ;;  %v3868_v14 = vld [vmem:[#allocation5 + $0x1290] sm:$0xff]  ;;  %v24862_v55 = vld [vmem:[#allocation30_spill] sm:$0xff]  ;;  %v16716_v0 = vcombine.low %v3860_v28, %v3864_v37  ;;  %v16726_v62 = vcombine.low %v3869_v54, %v3873_v13 }
 0x3b5   :  { %11509 = vmatmul.mubr.bf16.gmra.mrb[44].mxu0 %v24860_v22  ;;  %v3872_v60 = vld [vmem:[#allocation5 + $0x12b0] sm:$0xff]  ;;  %v3877_v31 = vld [vmem:[#allocation5 + $0x12d8] sm:$0xff] }
 0x3b6   :  { %12413 = vmatmul.mubr.bf16.gmra.mrb[44].mxu1 %v24860_v22  ;;  %11572 = vmatpush1.bf16.msra.mxu0 %v16692_v43  ;;  %v16725_v43 = vcombine.high %v3868_v14, %v3872_v60  ;;  %v3880_v48 = vld [vmem:[#allocation5 + $0x12f0] sm:$0xff]  ;;  %v3881_v22 = vld [vmem:[#allocation5 + $0x12f8] sm:$0xff]  ;;  %v16724_v1 = vcombine.low %v3868_v14, %v3872_v60 }
 0x3b7   :  { %12476 = vmatpush1.bf16.msra.mxu1 %v16694_v61  ;;  %11573 = vmatprep.subr.bf16.mxu0 %v16701_v17  ;;  %v24863_v61 = vld [vmem:[#allocation18_spill] sm:$0xff]  ;;  %v16727_v17 = vcombine.high %v3869_v54, %v3873_v13  ;;  %v16734_v35 = vcombine.low %v3877_v31, %v3881_v22  ;;  %v3896_v14 = vld [vmem:[#allocation5 + $0x1370] sm:$0xff] }
 0x3b8   :  { %12477 = vmatprep.subr.bf16.mxu1 %v16703_v58  ;;  %11518 = vmatprep.mubr.bf16.mxu0 %v24861_v47  ;;  %v3876_v58 = vld [vmem:[#allocation5 + $0x12d0] sm:$0xff]  ;;  %v3885_v28 = vld [vmem:[#allocation5 + $0x1318] sm:$0xff] }
 0x3b9   :  { %12422 = vmatprep.mubr.bf16.mxu1 %v24861_v47  ;;  %v3888_v47 = vld [vmem:[#allocation5 + $0x1330] sm:$0xff]  ;;  %v3889_v37 = vld [vmem:[#allocation5 + $0x1338] sm:$0xff]  ;;  %v16732_v10 = vcombine.low %v3876_v58, %v3880_v48 }
 0x3ba   :  { %11574 = vmatpush1.bf16.msra.mxu0 %v16700_v6  ;;  %v16733_v6 = vcombine.high %v3876_v58, %v3880_v48  ;;  %v3893_v60 = vld [vmem:[#allocation5 + $0x1358] sm:$0xff]  ;;  %v16742_v13 = vcombine.low %v3885_v28, %v3889_v37 }
 0x3bb   :  { %12478 = vmatpush1.bf16.msra.mxu1 %v16702_v38  ;;  %11575 = vmatprep.subr.bf16.mxu0 %v16709_v8  ;;  %v16735_v38 = vcombine.high %v3877_v31, %v3881_v22  ;;  %v3884_v8 = vld [vmem:[#allocation5 + $0x1310] sm:$0xff]  ;;  %v3901_v58 = vld [vmem:[#allocation5 + $0x1398] sm:$0xff] }
 0x3bc   :  { %12479 = vmatprep.subr.bf16.mxu1 %v16711_v27  ;;  %v24864_v27 = vld [vmem:[#allocation64_spill] sm:$0xff]  ;;  %v16740_v54 = vcombine.low %v3884_v8, %v3888_v47  ;;  %v3905_v48 = vld [vmem:[#allocation5 + $0x13b8] sm:$0xff] }
 0x3bd   :  { %11519 = vmatmul.mubr.bf16.gmra.mrb[48].mxu0 %v24862_v55 }
 0x3be   :  { %12423 = vmatmul.mubr.bf16.gmra.mrb[48].mxu1 %v24862_v55  ;;  %11576 = vmatpush1.bf16.msra.mxu0 %v16708_v16  ;;  %v16741_v16 = vcombine.high %v3884_v8, %v3888_v47  ;;  %v3897_v55 = vld [vmem:[#allocation5 + $0x1378] sm:$0xff]  ;;  %v3912_v8 = vld [vmem:[#allocation5 + $0x13f0] sm:$0xff] }
 0x3bf   :  { %12480 = vmatpush1.bf16.msra.mxu1 %v16710_v19  ;;  %11577 = vmatprep.subr.bf16.mxu0 %v16717_v18  ;;  %v24865_v19 = vld [vmem:[#allocation65_spill] sm:$0xff]  ;;  %v16743_v18 = vcombine.high %v3885_v28, %v3889_v37  ;;  %v16750_v22 = vcombine.low %v3893_v60, %v3897_v55  ;;  %v3909_v47 = vld [vmem:[#allocation5 + $0x13d8] sm:$0xff]  ;;  %v16758_v37 = vcombine.low %v3901_v58, %v3905_v48 }
 0x3c0   :  { %12481 = vmatprep.subr.bf16.mxu1 %v16719_v50  ;;  %11528 = vmatprep.mubr.bf16.mxu0 %v24863_v61  ;;  %v3892_v50 = vld [vmem:[#allocation5 + $0x1350] sm:$0xff] }
 0x3c1   :  { %12432 = vmatprep.mubr.bf16.mxu1 %v24863_v61  ;;  %v3904_v61 = vld [vmem:[#allocation5 + $0x13b0] sm:$0xff]  ;;  %v16748_v31 = vcombine.low %v3892_v50, %v3896_v14 }
 0x3c2   :  { %11578 = vmatpush1.bf16.msra.mxu0 %v16716_v0  ;;  %v16749_v0 = vcombine.high %v3892_v50, %v3896_v14  ;;  %v3917_v50 = vld [vmem:[#allocation5 + $0x1418] sm:$0xff] }
 0x3c3   :  { %12482 = vmatpush1.bf16.msra.mxu1 %v16718_v15  ;;  %11579 = vmatprep.subr.bf16.mxu0 %v16725_v43  ;;  %v16751_v15 = vcombine.high %v3893_v60, %v3897_v55  ;;  %v3900_v43 = vld [vmem:[#allocation5 + $0x1390] sm:$0xff]  ;;  %v3921_v14 = vld [vmem:[#allocation5 + $0x1438] sm:$0xff] }
 0x3c4   :  { %12483 = vmatprep.subr.bf16.mxu1 %v16727_v17  ;;  %v24866_v17 = vld [vmem:[#allocation66_spill] sm:$0xff]  ;;  %v16756_v28 = vcombine.low %v3900_v43, %v3904_v61 }
 0x3c5   :  { %11529 = vmatmul.mubr.bf16.gmra.mrb[52].mxu0 %v24864_v27 }
 0x3c6   :  { %12433 = vmatmul.mubr.bf16.gmra.mrb[52].mxu1 %v24864_v27  ;;  %11580 = vmatpush1.bf16.msra.mxu0 %v16724_v1  ;;  %v16757_v1 = vcombine.high %v3900_v43, %v3904_v61  ;;  %v3913_v27 = vld [vmem:[#allocation5 + $0x13f8] sm:$0xff]  ;;  %v3928_v43 = vld [vmem:[#allocation5 + $0x1470] sm:$0xff] }
 0x3c7   :  { %12484 = vmatpush1.bf16.msra.mxu1 %v16726_v62  ;;  %11581 = vmatprep.subr.bf16.mxu0 %v16733_v6  ;;  %v24867_v62 = vld [vmem:[#allocation68_spill] sm:$0xff]  ;;  %v16759_v6 = vcombine.high %v3901_v58, %v3905_v48  ;;  %v16766_v55 = vcombine.low %v3909_v47, %v3913_v27  ;;  %v3925_v61 = vld [vmem:[#allocation5 + $0x1458] sm:$0xff]  ;;  %v16774_v48 = vcombine.low %v3917_v50, %v3921_v14 }
 0x3c8   :  { %12485 = vmatprep.subr.bf16.mxu1 %v16735_v38  ;;  %11538 = vmatprep.mubr.bf16.mxu0 %v24865_v19  ;;  %v3908_v38 = vld [vmem:[#allocation5 + $0x13d0] sm:$0xff] }
 0x3c9   :  { %12442 = vmatprep.mubr.bf16.mxu1 %v24865_v19  ;;  %v3920_v19 = vld [vmem:[#allocation5 + $0x1430] sm:$0xff]  ;;  %v16764_v60 = vcombine.low %v3908_v38, %v3912_v8 }
 0x3ca   :  { %11582 = vmatpush1.bf16.msra.mxu0 %v16732_v10  ;;  %v16765_v10 = vcombine.high %v3908_v38, %v3912_v8  ;;  %v3933_v38 = vld [vmem:[#allocation5 + $0x1498] sm:$0xff] }
 0x3cb   :  { %12486 = vmatpush1.bf16.msra.mxu1 %v16734_v35  ;;  %11583 = vmatprep.subr.bf16.mxu0 %v16741_v16  ;;  %v16767_v35 = vcombine.high %v3909_v47, %v3913_v27  ;;  %v3916_v16 = vld [vmem:[#allocation5 + $0x1410] sm:$0xff]  ;;  %v3937_v8 = vld [vmem:[#allocation5 + $0x14b8] sm:$0xff] }
 0x3cc   :  { %12487 = vmatprep.subr.bf16.mxu1 %v16743_v18  ;;  %v24868_v18 = vld [vmem:[#allocation39_spill] sm:$0xff]  ;;  %v16772_v58 = vcombine.low %v3916_v16, %v3920_v19 }
 0x3cd   :  { %11539 = vmatmul.mubr.bf16.gmra.mrb[56].mxu0 %v24866_v17 }
 0x3ce   :  { %12443 = vmatmul.mubr.bf16.gmra.mrb[56].mxu1 %v24866_v17  ;;  %11584 = vmatpush1.bf16.msra.mxu0 %v16740_v54  ;;  %v16773_v54 = vcombine.high %v3916_v16, %v3920_v19  ;;  %v3929_v17 = vld [vmem:[#allocation5 + $0x1478] sm:$0xff]  ;;  %v3944_v16 = vld [vmem:[#allocation5 + $0x14f0] sm:$0xff] }
 0x3cf   :  { %12488 = vmatpush1.bf16.msra.mxu1 %v16742_v13  ;;  %11585 = vmatprep.subr.bf16.mxu0 %v16749_v0  ;;  %v24869_v13 = vld [vmem:[#allocation79_spill] sm:$0xff]  ;;  %v16775_v0 = vcombine.high %v3917_v50, %v3921_v14  ;;  %v16782_v27 = vcombine.low %v3925_v61, %v3929_v17  ;;  %v3941_v19 = vld [vmem:[#allocation5 + $0x14d8] sm:$0xff]  ;;  %v16790_v14 = vcombine.low %v3933_v38, %v3937_v8 }
 0x3d0   :  { %12489 = vmatprep.subr.bf16.mxu1 %v16751_v15  ;;  %11548 = vmatprep.mubr.bf16.mxu0 %v24867_v62  ;;  %v3924_v15 = vld [vmem:[#allocation5 + $0x1450] sm:$0xff] }
 0x3d1   :  { %12452 = vmatprep.mubr.bf16.mxu1 %v24867_v62  ;;  %v3936_v62 = vld [vmem:[#allocation5 + $0x14b0] sm:$0xff]  ;;  %v16780_v47 = vcombine.low %v3924_v15, %v3928_v43 }
 0x3d2   :  { %11586 = vmatpush1.bf16.msra.mxu0 %v16748_v31  ;;  %v16781_v31 = vcombine.high %v3924_v15, %v3928_v43  ;;  %v3949_v15 = vld [vmem:[#allocation5 + $0x1518] sm:$0xff] }
 0x3d3   :  { %12490 = vmatpush1.bf16.msra.mxu1 %v16750_v22  ;;  %11587 = vmatprep.subr.bf16.mxu0 %v16757_v1  ;;  %v16783_v22 = vcombine.high %v3925_v61, %v3929_v17  ;;  %v3932_v1 = vld [vmem:[#allocation5 + $0x1490] sm:$0xff]  ;;  %v3953_v43 = vld [vmem:[#allocation5 + $0x1538] sm:$0xff] }
 0x3d4   :  { %12491 = vmatprep.subr.bf16.mxu1 %v16759_v6  ;;  %v24870_v6 = vld [vmem:[#allocation89_spill] sm:$0xff]  ;;  %v16788_v50 = vcombine.low %v3932_v1, %v3936_v62 }
 0x3d5   :  { %11549 = vmatmul.mubr.bf16.gmra.mrb[60].mxu0 %v24868_v18 }
 0x3d6   :  { %12453 = vmatmul.mubr.bf16.gmra.mrb[60].mxu1 %v24868_v18  ;;  %11588 = vmatpush1.bf16.msra.mxu0 %v16756_v28  ;;  %v16789_v28 = vcombine.high %v3932_v1, %v3936_v62  ;;  %v3945_v18 = vld [vmem:[#allocation5 + $0x14f8] sm:$0xff]  ;;  %v3960_v1 = vld [vmem:[#allocation5 + $0x1570] sm:$0xff] }
 0x3d7   :  { %12492 = vmatpush1.bf16.msra.mxu1 %v16758_v37  ;;  %11589 = vmatprep.subr.bf16.mxu0 %v16765_v10  ;;  %v24871_v37 = vld [vmem:[#allocation88_spill] sm:$0xff]  ;;  %v16791_v10 = vcombine.high %v3933_v38, %v3937_v8  ;;  %v16798_v17 = vcombine.low %v3941_v19, %v3945_v18  ;;  %v3957_v62 = vld [vmem:[#allocation5 + $0x1558] sm:$0xff]  ;;  %v16806_v8 = vcombine.low %v3949_v15, %v3953_v43 }
 0x3d8   :  { %12493 = vmatprep.subr.bf16.mxu1 %v16767_v35  ;;  %11591 = vmatprep.mubr.bf16.mxu0 %v24869_v13  ;;  %v3940_v35 = vld [vmem:[#allocation5 + $0x14d0] sm:$0xff] }
 0x3d9   :  { %12495 = vmatprep.mubr.bf16.mxu1 %v24869_v13  ;;  %v3952_v13 = vld [vmem:[#allocation5 + $0x1530] sm:$0xff]  ;;  %v16796_v61 = vcombine.low %v3940_v35, %v3944_v16 }
 0x3da   :  { %11590 = vmatpush1.bf16.msra.mxu0 %v16764_v60  ;;  %v16797_v60 = vcombine.high %v3940_v35, %v3944_v16  ;;  %v3965_v35 = vld [vmem:[#allocation5 + $0x1598] sm:$0xff] }
 0x3db   :  { %12494 = vmatpush1.bf16.msra.mxu1 %v16766_v55  ;;  %11672 = vmatprep.subr.bf16.mxu0 %v16773_v54  ;;  %v16799_v55 = vcombine.high %v3941_v19, %v3945_v18  ;;  %v3948_v54 = vld [vmem:[#allocation5 + $0x1510] sm:$0xff]  ;;  %v3969_v16 = vld [vmem:[#allocation5 + $0x15b8] sm:$0xff] }
 0x3dc   :  { %12576 = vmatprep.subr.bf16.mxu1 %v16775_v0  ;;  %v24872_v0 = vld [vmem:[#allocation90_spill] sm:$0xff]  ;;  %v16804_v38 = vcombine.low %v3948_v54, %v3952_v13 }
 0x3dd   :  { %11592 = vmatmul.mubr.bf16.vlgmr.msra.gmra.mrb[32].mxu0 %v24870_v6 }
 0x3de   :  { %12496 = vmatmul.mubr.bf16.vlgmr.msra.gmra.mrb[32].mxu1 %v24870_v6  ;;  %11673 = vmatpush1.bf16.msra.mxu0 %v16772_v58  ;;  %v16805_v58 = vcombine.high %v3948_v54, %v3952_v13  ;;  %v3961_v6 = vld [vmem:[#allocation5 + $0x1578] sm:$0xff]  ;;  %v3976_v54 = vld [vmem:[#allocation5 + $0x15f0] sm:$0xff] }
 0x3df   :  { %12577 = vmatpush1.bf16.msra.mxu1 %v16774_v48  ;;  %11674 = vmatprep.subr.bf16.mxu0 %v16781_v31  ;;  %v24873_v48 = vld [vmem:[#allocation94_spill] sm:$0xff]  ;;  %v16807_v31 = vcombine.high %v3949_v15, %v3953_v43  ;;  %v16814_v18 = vcombine.low %v3957_v62, %v3961_v6  ;;  %v16822_v43 = vcombine.low %v3965_v35, %v3969_v16 }
 0x3e0   :  { %12578 = vmatprep.subr.bf16.mxu1 %v16783_v22  ;;  %11601 = vmatprep.mubr.bf16.mxu0 %v24871_v37  ;;  %v3956_v22 = vld [vmem:[#allocation5 + $0x1550] sm:$0xff]  ;;  %v3973_v13 = vld [vmem:[#allocation5 + $0x15d8] sm:$0xff] }
 0x3e1   :  { %12505 = vmatprep.mubr.bf16.mxu1 %v24871_v37  ;;  %v3968_v37 = vld [vmem:[#allocation5 + $0x15b0] sm:$0xff]  ;;  %v16812_v19 = vcombine.low %v3956_v22, %v3960_v1 }
 0x3e2   :  { %11675 = vmatpush1.bf16.msra.mxu0 %v16780_v47  ;;  %v16813_v47 = vcombine.high %v3956_v22, %v3960_v1  ;;  %v3981_v22 = vld [vmem:[#allocation5 + $0x1618] sm:$0xff] }
 0x3e3   :  { %12579 = vmatpush1.bf16.msra.mxu1 %v16782_v27  ;;  %11676 = vmatprep.subr.bf16.mxu0 %v16789_v28  ;;  %v16815_v27 = vcombine.high %v3957_v62, %v3961_v6  ;;  %v3964_v28 = vld [vmem:[#allocation5 + $0x1590] sm:$0xff]  ;;  %v3985_v1 = vld [vmem:[#allocation5 + $0x1638] sm:$0xff] }
 0x3e4   :  { %12580 = vmatprep.subr.bf16.mxu1 %v16791_v10  ;;  %v24874_v10 = vld [vmem:[#allocation96_spill] sm:$0xff]  ;;  %v16820_v15 = vcombine.low %v3964_v28, %v3968_v37 }
 0x3e5   :  { %11602 = vmatmul.mubr.bf16.gmra.mrb[36].mxu0 %v24872_v0 }
 0x3e6   :  { %12506 = vmatmul.mubr.bf16.gmra.mrb[36].mxu1 %v24872_v0  ;;  %11677 = vmatpush1.bf16.msra.mxu0 %v16788_v50  ;;  %v16821_v50 = vcombine.high %v3964_v28, %v3968_v37  ;;  %v3977_v0 = vld [vmem:[#allocation5 + $0x15f8] sm:$0xff]  ;;  %v3992_v28 = vld [vmem:[#allocation5 + $0x1670] sm:$0xff] }
 0x3e7   :  { %12581 = vmatpush1.bf16.msra.mxu1 %v16790_v14  ;;  %11678 = vmatprep.subr.bf16.mxu0 %v16797_v60  ;;  %v24875_v14 = vld [vmem:[#allocation95_spill] sm:$0xff]  ;;  %v16823_v60 = vcombine.high %v3965_v35, %v3969_v16  ;;  %v16830_v6 = vcombine.low %v3973_v13, %v3977_v0  ;;  %v3989_v37 = vld [vmem:[#allocation5 + $0x1658] sm:$0xff]  ;;  %v16838_v16 = vcombine.low %v3981_v22, %v3985_v1 }
 0x3e8   :  { %12582 = vmatprep.subr.bf16.mxu1 %v16799_v55  ;;  %11611 = vmatprep.mubr.bf16.mxu0 %v24873_v48  ;;  %v3972_v55 = vld [vmem:[#allocation5 + $0x15d0] sm:$0xff] }
 0x3e9   :  { %12515 = vmatprep.mubr.bf16.mxu1 %v24873_v48  ;;  %v3984_v48 = vld [vmem:[#allocation5 + $0x1630] sm:$0xff]  ;;  %v16828_v62 = vcombine.low %v3972_v55, %v3976_v54 }
 0x3ea   :  { %11679 = vmatpush1.bf16.msra.mxu0 %v16796_v61  ;;  %v16829_v61 = vcombine.high %v3972_v55, %v3976_v54  ;;  %v3997_v55 = vld [vmem:[#allocation5 + $0x1698] sm:$0xff] }
 0x3eb   :  { %12583 = vmatpush1.bf16.msra.mxu1 %v16798_v17  ;;  %11680 = vmatprep.subr.bf16.mxu0 %v16805_v58  ;;  %v16831_v17 = vcombine.high %v3973_v13, %v3977_v0  ;;  %v3980_v58 = vld [vmem:[#allocation5 + $0x1610] sm:$0xff]  ;;  %v4001_v54 = vld [vmem:[#allocation5 + $0x16b8] sm:$0xff] }
 0x3ec   :  { %12584 = vmatprep.subr.bf16.mxu1 %v16807_v31  ;;  %v24876_v31 = vld [vmem:[#allocation99_spill] sm:$0xff]  ;;  %v16836_v35 = vcombine.low %v3980_v58, %v3984_v48 }
 0x3ed   :  { %11612 = vmatmul.mubr.bf16.gmra.mrb[40].mxu0 %v24874_v10 }
 0x3ee   :  { %12516 = vmatmul.mubr.bf16.gmra.mrb[40].mxu1 %v24874_v10  ;;  %11681 = vmatpush1.bf16.msra.mxu0 %v16804_v38  ;;  %v16837_v38 = vcombine.high %v3980_v58, %v3984_v48  ;;  %v3993_v10 = vld [vmem:[#allocation5 + $0x1678] sm:$0xff]  ;;  %v4008_v58 = vld [vmem:[#allocation5 + $0x16f0] sm:$0xff] }
 0x3ef   :  { %12585 = vmatpush1.bf16.msra.mxu1 %v16806_v8  ;;  %11682 = vmatprep.subr.bf16.mxu0 %v16813_v47  ;;  %v24877_v8 = vld [vmem:[#allocation101_spill] sm:$0xff]  ;;  %v16839_v47 = vcombine.high %v3981_v22, %v3985_v1  ;;  %v16846_v0 = vcombine.low %v3989_v37, %v3993_v10  ;;  %v4005_v48 = vld [vmem:[#allocation5 + $0x16d8] sm:$0xff]  ;;  %v16854_v1 = vcombine.low %v3997_v55, %v4001_v54 }
 0x3f0   :  { %12586 = vmatprep.subr.bf16.mxu1 %v16815_v27  ;;  %11621 = vmatprep.mubr.bf16.mxu0 %v24875_v14  ;;  %v3988_v27 = vld [vmem:[#allocation5 + $0x1650] sm:$0xff] }
 0x3f1   :  { %12525 = vmatprep.mubr.bf16.mxu1 %v24875_v14  ;;  %v4000_v14 = vld [vmem:[#allocation5 + $0x16b0] sm:$0xff]  ;;  %v16844_v13 = vcombine.low %v3988_v27, %v3992_v28 }
 0x3f2   :  { %11683 = vmatpush1.bf16.msra.mxu0 %v16812_v19  ;;  %v16845_v19 = vcombine.high %v3988_v27, %v3992_v28  ;;  %v4013_v27 = vld [vmem:[#allocation5 + $0x1718] sm:$0xff] }
 0x3f3   :  { %12587 = vmatpush1.bf16.msra.mxu1 %v16814_v18  ;;  %11684 = vmatprep.subr.bf16.mxu0 %v16821_v50  ;;  %v16847_v18 = vcombine.high %v3989_v37, %v3993_v10  ;;  %v3996_v50 = vld [vmem:[#allocation5 + $0x1690] sm:$0xff]  ;;  %v4017_v28 = vld [vmem:[#allocation5 + $0x1738] sm:$0xff] }
 0x3f4   :  { %12588 = vmatprep.subr.bf16.mxu1 %v16823_v60  ;;  %v24878_v60 = vld [vmem:[#allocation100_spill] sm:$0xff]  ;;  %v16852_v22 = vcombine.low %v3996_v50, %v4000_v14 }
 0x3f5   :  { %11622 = vmatmul.mubr.bf16.gmra.mrb[44].mxu0 %v24876_v31 }
 0x3f6   :  { %12526 = vmatmul.mubr.bf16.gmra.mrb[44].mxu1 %v24876_v31  ;;  %11685 = vmatpush1.bf16.msra.mxu0 %v16820_v15  ;;  %v16853_v15 = vcombine.high %v3996_v50, %v4000_v14  ;;  %v4009_v31 = vld [vmem:[#allocation5 + $0x16f8] sm:$0xff]  ;;  %v4024_v50 = vld [vmem:[#allocation5 + $0x1770] sm:$0xff] }
 0x3f7   :  { %12589 = vmatpush1.bf16.msra.mxu1 %v16822_v43  ;;  %11686 = vmatprep.subr.bf16.mxu0 %v16829_v61  ;;  %v24879_v43 = vld [vmem:[#allocation103_spill] sm:$0xff]  ;;  %v16855_v61 = vcombine.high %v3997_v55, %v4001_v54  ;;  %v16862_v10 = vcombine.low %v4005_v48, %v4009_v31  ;;  %v4021_v14 = vld [vmem:[#allocation5 + $0x1758] sm:$0xff]  ;;  %v16870_v54 = vcombine.low %v4013_v27, %v4017_v28 }
 0x3f8   :  { %12590 = vmatprep.subr.bf16.mxu1 %v16831_v17  ;;  %11631 = vmatprep.mubr.bf16.mxu0 %v24877_v8  ;;  %v4004_v17 = vld [vmem:[#allocation5 + $0x16d0] sm:$0xff] }
 0x3f9   :  { %12535 = vmatprep.mubr.bf16.mxu1 %v24877_v8  ;;  %v4016_v8 = vld [vmem:[#allocation5 + $0x1730] sm:$0xff]  ;;  %v16860_v37 = vcombine.low %v4004_v17, %v4008_v58 }
 0x3fa   :  { %11687 = vmatpush1.bf16.msra.mxu0 %v16828_v62  ;;  %v16861_v62 = vcombine.high %v4004_v17, %v4008_v58  ;;  %v4029_v17 = vld [vmem:[#allocation5 + $0x1798] sm:$0xff] }
 0x3fb   :  { %12591 = vmatpush1.bf16.msra.mxu1 %v16830_v6  ;;  %11688 = vmatprep.subr.bf16.mxu0 %v16837_v38  ;;  %v16863_v6 = vcombine.high %v4005_v48, %v4009_v31  ;;  %v4012_v38 = vld [vmem:[#allocation5 + $0x1710] sm:$0xff]  ;;  %v4033_v58 = vld [vmem:[#allocation5 + $0x17b8] sm:$0xff] }
 0x3fc   :  { %12592 = vmatprep.subr.bf16.mxu1 %v16839_v47  ;;  %v24880_v47 = vld [vmem:[#allocation102_spill] sm:$0xff]  ;;  %v16868_v55 = vcombine.low %v4012_v38, %v4016_v8 }
 0x3fd   :  { %11632 = vmatmul.mubr.bf16.gmra.mrb[48].mxu0 %v24878_v60 }
 0x3fe   :  { %12536 = vmatmul.mubr.bf16.gmra.mrb[48].mxu1 %v24878_v60  ;;  %11689 = vmatpush1.bf16.msra.mxu0 %v16836_v35  ;;  %v16869_v35 = vcombine.high %v4012_v38, %v4016_v8  ;;  %v4025_v60 = vld [vmem:[#allocation5 + $0x1778] sm:$0xff]  ;;  %v4040_v38 = vld [vmem:[#allocation5 + $0x17f0] sm:$0xff] }
 0x3ff   :  { %12593 = vmatpush1.bf16.msra.mxu1 %v16838_v16  ;;  %11690 = vmatprep.subr.bf16.mxu0 %v16845_v19  ;;  %v24881_v16 = vld [vmem:[#allocation107_spill] sm:$0xff]  ;;  %v16871_v19 = vcombine.high %v4013_v27, %v4017_v28  ;;  %v16878_v31 = vcombine.low %v4021_v14, %v4025_v60  ;;  %v4037_v8 = vld [vmem:[#allocation5 + $0x17d8] sm:$0xff]  ;;  %v16886_v28 = vcombine.low %v4029_v17, %v4033_v58 }
 0x400   :  { %12594 = vmatprep.subr.bf16.mxu1 %v16847_v18  ;;  %11641 = vmatprep.mubr.bf16.mxu0 %v24879_v43  ;;  %v4020_v18 = vld [vmem:[#allocation5 + $0x1750] sm:$0xff] }
 0x401   :  { %12545 = vmatprep.mubr.bf16.mxu1 %v24879_v43  ;;  %v4032_v43 = vld [vmem:[#allocation5 + $0x17b0] sm:$0xff]  ;;  %v16876_v48 = vcombine.low %v4020_v18, %v4024_v50 }
 0x402   :  { %11691 = vmatpush1.bf16.msra.mxu0 %v16844_v13  ;;  %v16877_v13 = vcombine.high %v4020_v18, %v4024_v50  ;;  %v4045_v18 = vld [vmem:[#allocation5 + $0x1818] sm:$0xff] }
 0x403   :  { %12595 = vmatpush1.bf16.msra.mxu1 %v16846_v0  ;;  %11692 = vmatprep.subr.bf16.mxu0 %v16853_v15  ;;  %v16879_v0 = vcombine.high %v4021_v14, %v4025_v60  ;;  %v4028_v15 = vld [vmem:[#allocation5 + $0x1790] sm:$0xff]  ;;  %v4049_v50 = vld [vmem:[#allocation5 + $0x1838] sm:$0xff] }
 0x404   :  { %12596 = vmatprep.subr.bf16.mxu1 %v16855_v61  ;;  %v24882_v61 = vld [vmem:[#allocation106_spill] sm:$0xff]  ;;  %v16884_v27 = vcombine.low %v4028_v15, %v4032_v43 }
 0x405   :  { %11642 = vmatmul.mubr.bf16.gmra.mrb[52].mxu0 %v24880_v47 }
 0x406   :  { %12546 = vmatmul.mubr.bf16.gmra.mrb[52].mxu1 %v24880_v47  ;;  %11693 = vmatpush1.bf16.msra.mxu0 %v16852_v22  ;;  %v16885_v22 = vcombine.high %v4028_v15, %v4032_v43  ;;  %v4041_v47 = vld [vmem:[#allocation5 + $0x17f8] sm:$0xff]  ;;  %v4056_v15 = vld [vmem:[#allocation5 + $0x1870] sm:$0xff] }
 0x407   :  { %12597 = vmatpush1.bf16.msra.mxu1 %v16854_v1  ;;  %11694 = vmatprep.subr.bf16.mxu0 %v16861_v62  ;;  %v24883_v1 = vld [vmem:[#allocation109_spill] sm:$0xff]  ;;  %v16887_v62 = vcombine.high %v4029_v17, %v4033_v58  ;;  %v16894_v60 = vcombine.low %v4037_v8, %v4041_v47  ;;  %v4053_v43 = vld [vmem:[#allocation5 + $0x1858] sm:$0xff]  ;;  %v16902_v58 = vcombine.low %v4045_v18, %v4049_v50 }
 0x408   :  { %12598 = vmatprep.subr.bf16.mxu1 %v16863_v6  ;;  %11651 = vmatprep.mubr.bf16.mxu0 %v24881_v16  ;;  %v4036_v6 = vld [vmem:[#allocation5 + $0x17d0] sm:$0xff] }
 0x409   :  { %12555 = vmatprep.mubr.bf16.mxu1 %v24881_v16  ;;  %v4048_v16 = vld [vmem:[#allocation5 + $0x1830] sm:$0xff]  ;;  %v16892_v14 = vcombine.low %v4036_v6, %v4040_v38 }
 0x40a   :  { %11695 = vmatpush1.bf16.msra.mxu0 %v16860_v37  ;;  %v16893_v37 = vcombine.high %v4036_v6, %v4040_v38  ;;  %v4061_v6 = vld [vmem:[#allocation5 + $0x1898] sm:$0xff] }
 0x40b   :  { %12599 = vmatpush1.bf16.msra.mxu1 %v16862_v10  ;;  %11696 = vmatprep.subr.bf16.mxu0 %v16869_v35  ;;  %v16895_v10 = vcombine.high %v4037_v8, %v4041_v47  ;;  %v4044_v35 = vld [vmem:[#allocation5 + $0x1810] sm:$0xff]  ;;  %v4065_v38 = vld [vmem:[#allocation5 + $0x18b8] sm:$0xff] }
 0x40c   :  { %12600 = vmatprep.subr.bf16.mxu1 %v16871_v19  ;;  %v24884_v19 = vld [vmem:[#allocation108_spill] sm:$0xff]  ;;  %v16900_v17 = vcombine.low %v4044_v35, %v4048_v16 }
 0x40d   :  { %11652 = vmatmul.mubr.bf16.gmra.mrb[56].mxu0 %v24882_v61 }
 0x40e   :  { %12556 = vmatmul.mubr.bf16.gmra.mrb[56].mxu1 %v24882_v61  ;;  %11697 = vmatpush1.bf16.msra.mxu0 %v16868_v55  ;;  %v16901_v55 = vcombine.high %v4044_v35, %v4048_v16  ;;  %v4057_v61 = vld [vmem:[#allocation5 + $0x1878] sm:$0xff]  ;;  %v4072_v35 = vld [vmem:[#allocation5 + $0x18f0] sm:$0xff] }
 0x40f   :  { %12601 = vmatpush1.bf16.msra.mxu1 %v16870_v54  ;;  %11698 = vmatprep.subr.bf16.mxu0 %v16877_v13  ;;  %v24885_v54 = vld [vmem:[#allocation86_spill] sm:$0xff]  ;;  %v16903_v13 = vcombine.high %v4045_v18, %v4049_v50  ;;  %v16910_v47 = vcombine.low %v4053_v43, %v4057_v61  ;;  %v16918_v50 = vcombine.low %v4061_v6, %v4065_v38 }
 0x410   :  { %12602 = vmatprep.subr.bf16.mxu1 %v16879_v0  ;;  %11661 = vmatprep.mubr.bf16.mxu0 %v24883_v1  ;;  %v4052_v0 = vld [vmem:[#allocation5 + $0x1850] sm:$0xff]  ;;  %v4069_v16 = vld [vmem:[#allocation5 + $0x18d8] sm:$0xff] }
 0x411   :  { %12565 = vmatprep.mubr.bf16.mxu1 %v24883_v1  ;;  %v4064_v1 = vld [vmem:[#allocation5 + $0x18b0] sm:$0xff]  ;;  %v16908_v8 = vcombine.low %v4052_v0, %v4056_v15 }
 0x412   :  { %11699 = vmatpush1.bf16.msra.mxu0 %v16876_v48  ;;  %v16909_v48 = vcombine.high %v4052_v0, %v4056_v15  ;;  %v4077_v0 = vld [vmem:[#allocation5 + $0x1918] sm:$0xff] }
 0x413   :  { %12603 = vmatpush1.bf16.msra.mxu1 %v16878_v31  ;;  %11700 = vmatprep.subr.bf16.mxu0 %v16885_v22  ;;  %v16911_v31 = vcombine.high %v4053_v43, %v4057_v61  ;;  %v4060_v22 = vld [vmem:[#allocation5 + $0x1890] sm:$0xff]  ;;  %v4081_v15 = vld [vmem:[#allocation5 + $0x1938] sm:$0xff] }
 0x414   :  { %12604 = vmatprep.subr.bf16.mxu1 %v16887_v62  ;;  %v24886_v62 = vld [vmem:[#allocation87_spill] sm:$0xff]  ;;  %v16916_v18 = vcombine.low %v4060_v22, %v4064_v1 }
 0x415   :  { %11662 = vmatmul.mubr.bf16.gmra.mrb[60].mxu0 %v24884_v19 }
 0x416   :  { %12566 = vmatmul.mubr.bf16.gmra.mrb[60].mxu1 %v24884_v19  ;;  %11701 = vmatpush1.bf16.msra.mxu0 %v16884_v27  ;;  %v16917_v27 = vcombine.high %v4060_v22, %v4064_v1  ;;  %v4073_v19 = vld [vmem:[#allocation5 + $0x18f8] sm:$0xff]  ;;  %v4088_v22 = vld [vmem:[#allocation5 + $0x1970] sm:$0xff] }
 0x417   :  { %12605 = vmatpush1.bf16.msra.mxu1 %v16886_v28  ;;  %11702 = vmatprep.subr.bf16.mxu0 %v16893_v37  ;;  %v24887_v28 = vld [vmem:[#allocation92_spill] sm:$0xff]  ;;  %v16919_v37 = vcombine.high %v4061_v6, %v4065_v38  ;;  %v16926_v61 = vcombine.low %v4069_v16, %v4073_v19  ;;  %v4085_v1 = vld [vmem:[#allocation5 + $0x1958] sm:$0xff]  ;;  %v16934_v38 = vcombine.low %v4077_v0, %v4081_v15 }
 0x418   :  { %12606 = vmatprep.subr.bf16.mxu1 %v16895_v10  ;;  %11704 = vmatprep.mubr.bf16.mxu0 %v24885_v54  ;;  %v4068_v10 = vld [vmem:[#allocation5 + $0x18d0] sm:$0xff] }
 0x419   :  { %12608 = vmatprep.mubr.bf16.mxu1 %v24885_v54  ;;  %v4080_v54 = vld [vmem:[#allocation5 + $0x1930] sm:$0xff]  ;;  %v16924_v43 = vcombine.low %v4068_v10, %v4072_v35 }
 0x41a   :  { %11703 = vmatpush1.bf16.msra.mxu0 %v16892_v14  ;;  %v16925_v14 = vcombine.high %v4068_v10, %v4072_v35  ;;  %v4093_v10 = vld [vmem:[#allocation5 + $0x1998] sm:$0xff] }
 0x41b   :  { %12607 = vmatpush1.bf16.msra.mxu1 %v16894_v60  ;;  %11785 = vmatprep.subr.bf16.mxu0 %v16901_v55  ;;  %v16927_v60 = vcombine.high %v4069_v16, %v4073_v19  ;;  %v4076_v55 = vld [vmem:[#allocation5 + $0x1910] sm:$0xff]  ;;  %v4097_v35 = vld [vmem:[#allocation5 + $0x19b8] sm:$0xff] }
 0x41c   :  { %12689 = vmatprep.subr.bf16.mxu1 %v16903_v13  ;;  %v24888_v13 = vld [vmem:[#allocation93_spill] sm:$0xff]  ;;  %v16932_v6 = vcombine.low %v4076_v55, %v4080_v54 }
 0x41d   :  { %11705 = vmatmul.mubr.bf16.vlgmr.msra.gmra.mrb[32].mxu0 %v24886_v62 }
 0x41e   :  { %12609 = vmatmul.mubr.bf16.vlgmr.msra.gmra.mrb[32].mxu1 %v24886_v62  ;;  %11786 = vmatpush1.bf16.msra.mxu0 %v16900_v17  ;;  %v16933_v17 = vcombine.high %v4076_v55, %v4080_v54  ;;  %v4089_v62 = vld [vmem:[#allocation5 + $0x1978] sm:$0xff]  ;;  %v4104_v55 = vld [vmem:[#allocation5 + $0x19f0] sm:$0xff] }
 0x41f   :  { %12690 = vmatpush1.bf16.msra.mxu1 %v16902_v58  ;;  %11787 = vmatprep.subr.bf16.mxu0 %v16909_v48  ;;  %v24889_v58 = vld [vmem:[#allocation97_spill] sm:$0xff]  ;;  %v16935_v48 = vcombine.high %v4077_v0, %v4081_v15  ;;  %v16942_v19 = vcombine.low %v4085_v1, %v4089_v62  ;;  %v4101_v54 = vld [vmem:[#allocation5 + $0x19d8] sm:$0xff]  ;;  %v16950_v15 = vcombine.low %v4093_v10, %v4097_v35 }
 0x420   :  { %12691 = vmatprep.subr.bf16.mxu1 %v16911_v31  ;;  %11714 = vmatprep.mubr.bf16.mxu0 %v24887_v28  ;;  %v4084_v31 = vld [vmem:[#allocation5 + $0x1950] sm:$0xff] }
 0x421   :  { %12618 = vmatprep.mubr.bf16.mxu1 %v24887_v28  ;;  %v4096_v28 = vld [vmem:[#allocation5 + $0x19b0] sm:$0xff]  ;;  %v16940_v16 = vcombine.low %v4084_v31, %v4088_v22 }
 0x422   :  { %11788 = vmatpush1.bf16.msra.mxu0 %v16908_v8  ;;  %v16941_v8 = vcombine.high %v4084_v31, %v4088_v22  ;;  %v4109_v31 = vld [vmem:[#allocation5 + $0x1a18] sm:$0xff] }
 0x423   :  { %12692 = vmatpush1.bf16.msra.mxu1 %v16910_v47  ;;  %11789 = vmatprep.subr.bf16.mxu0 %v16917_v27  ;;  %v16943_v47 = vcombine.high %v4085_v1, %v4089_v62  ;;  %v4092_v27 = vld [vmem:[#allocation5 + $0x1990] sm:$0xff]  ;;  %v4113_v22 = vld [vmem:[#allocation5 + $0x1a38] sm:$0xff] }
 0x424   :  { %12693 = vmatprep.subr.bf16.mxu1 %v16919_v37  ;;  %v24890_v37 = vld [vmem:[#allocation98_spill] sm:$0xff]  ;;  %v16948_v0 = vcombine.low %v4092_v27, %v4096_v28 }
 0x425   :  { %11715 = vmatmul.mubr.bf16.gmra.mrb[36].mxu0 %v24888_v13 }
 0x426   :  { %12619 = vmatmul.mubr.bf16.gmra.mrb[36].mxu1 %v24888_v13  ;;  %11790 = vmatpush1.bf16.msra.mxu0 %v16916_v18  ;;  %v16949_v18 = vcombine.high %v4092_v27, %v4096_v28  ;;  %v4105_v13 = vld [vmem:[#allocation5 + $0x19f8] sm:$0xff]  ;;  %v4120_v27 = vld [vmem:[#allocation5 + $0x1a70] sm:$0xff] }
 0x427   :  { %12694 = vmatpush1.bf16.msra.mxu1 %v16918_v50  ;;  %11791 = vmatprep.subr.bf16.mxu0 %v16925_v14  ;;  %v24891_v50 = vld [vmem:[#allocation104_spill] sm:$0xff]  ;;  %v16951_v14 = vcombine.high %v4093_v10, %v4097_v35  ;;  %v16958_v62 = vcombine.low %v4101_v54, %v4105_v13  ;;  %v4117_v28 = vld [vmem:[#allocation5 + $0x1a58] sm:$0xff]  ;;  %v16966_v35 = vcombine.low %v4109_v31, %v4113_v22 }
 0x428   :  { %12695 = vmatprep.subr.bf16.mxu1 %v16927_v60  ;;  %11724 = vmatprep.mubr.bf16.mxu0 %v24889_v58  ;;  %v4100_v60 = vld [vmem:[#allocation5 + $0x19d0] sm:$0xff] }
 0x429   :  { %12628 = vmatprep.mubr.bf16.mxu1 %v24889_v58  ;;  %v4112_v58 = vld [vmem:[#allocation5 + $0x1a30] sm:$0xff]  ;;  %v16956_v1 = vcombine.low %v4100_v60, %v4104_v55 }
 0x42a   :  { %11792 = vmatpush1.bf16.msra.mxu0 %v16924_v43  ;;  %v16957_v43 = vcombine.high %v4100_v60, %v4104_v55  ;;  %v4125_v60 = vld [vmem:[#allocation5 + $0x1a98] sm:$0xff] }
 0x42b   :  { %12696 = vmatpush1.bf16.msra.mxu1 %v16926_v61  ;;  %11793 = vmatprep.subr.bf16.mxu0 %v16933_v17  ;;  %v16959_v61 = vcombine.high %v4101_v54, %v4105_v13  ;;  %v4108_v17 = vld [vmem:[#allocation5 + $0x1a10] sm:$0xff]  ;;  %v4129_v55 = vld [vmem:[#allocation5 + $0x1ab8] sm:$0xff] }
 0x42c   :  { %12697 = vmatprep.subr.bf16.mxu1 %v16935_v48  ;;  %v24892_v48 = vld [vmem:[#allocation105_spill] sm:$0xff]  ;;  %v16964_v10 = vcombine.low %v4108_v17, %v4112_v58 }
 0x42d   :  { %11725 = vmatmul.mubr.bf16.gmra.mrb[40].mxu0 %v24890_v37 }
 0x42e   :  { %12629 = vmatmul.mubr.bf16.gmra.mrb[40].mxu1 %v24890_v37  ;;  %11794 = vmatpush1.bf16.msra.mxu0 %v16932_v6  ;;  %v16965_v6 = vcombine.high %v4108_v17, %v4112_v58  ;;  %v4121_v37 = vld [vmem:[#allocation5 + $0x1a78] sm:$0xff]  ;;  %v4136_v17 = vld [vmem:[#allocation5 + $0x1af0] sm:$0xff] }
 0x42f   :  { %12698 = vmatpush1.bf16.msra.mxu1 %v16934_v38  ;;  %11795 = vmatprep.subr.bf16.mxu0 %v16941_v8  ;;  %v24893_v38 = vld [vmem:[#allocation114_spill] sm:$0xff]  ;;  %v16967_v8 = vcombine.high %v4109_v31, %v4113_v22  ;;  %v16974_v13 = vcombine.low %v4117_v28, %v4121_v37  ;;  %v16982_v22 = vcombine.low %v4125_v60, %v4129_v55 }
 0x430   :  { %12699 = vmatprep.subr.bf16.mxu1 %v16943_v47  ;;  %11734 = vmatprep.mubr.bf16.mxu0 %v24891_v50  ;;  %v4116_v47 = vld [vmem:[#allocation5 + $0x1a50] sm:$0xff]  ;;  %v4133_v58 = vld [vmem:[#allocation5 + $0x1ad8] sm:$0xff] }
 0x431   :  { %12638 = vmatprep.mubr.bf16.mxu1 %v24891_v50  ;;  %v4128_v50 = vld [vmem:[#allocation5 + $0x1ab0] sm:$0xff]  ;;  %v16972_v54 = vcombine.low %v4116_v47, %v4120_v27 }
 0x432   :  { %11796 = vmatpush1.bf16.msra.mxu0 %v16940_v16  ;;  %v16973_v16 = vcombine.high %v4116_v47, %v4120_v27  ;;  %v4141_v47 = vld [vmem:[#allocation5 + $0x1b18] sm:$0xff] }
 0x433   :  { %12700 = vmatpush1.bf16.msra.mxu1 %v16942_v19  ;;  %11797 = vmatprep.subr.bf16.mxu0 %v16949_v18  ;;  %v16975_v19 = vcombine.high %v4117_v28, %v4121_v37  ;;  %v4124_v18 = vld [vmem:[#allocation5 + $0x1a90] sm:$0xff]  ;;  %v4145_v27 = vld [vmem:[#allocation5 + $0x1b38] sm:$0xff] }
 0x434   :  { %12701 = vmatprep.subr.bf16.mxu1 %v16951_v14  ;;  %v24894_v14 = vld [vmem:[#allocation115_spill] sm:$0xff]  ;;  %v16980_v31 = vcombine.low %v4124_v18, %v4128_v50 }
 0x435   :  { %11735 = vmatmul.mubr.bf16.gmra.mrb[44].mxu0 %v24892_v48 }
 0x436   :  { %12639 = vmatmul.mubr.bf16.gmra.mrb[44].mxu1 %v24892_v48  ;;  %11798 = vmatpush1.bf16.msra.mxu0 %v16948_v0  ;;  %v16981_v0 = vcombine.high %v4124_v18, %v4128_v50  ;;  %v4137_v48 = vld [vmem:[#allocation5 + $0x1af8] sm:$0xff]  ;;  %v4152_v18 = vld [vmem:[#allocation5 + $0x1b70] sm:$0xff] }
 0x437   :  { %12702 = vmatpush1.bf16.msra.mxu1 %v16950_v15  ;;  %11799 = vmatprep.subr.bf16.mxu0 %v16957_v43  ;;  %v24895_v15 = vld [vmem:[#allocation81_spill] sm:$0xff]  ;;  %v16983_v43 = vcombine.high %v4125_v60, %v4129_v55  ;;  %v16990_v37 = vcombine.low %v4133_v58, %v4137_v48  ;;  %v4149_v50 = vld [vmem:[#allocation5 + $0x1b58] sm:$0xff]  ;;  %v16998_v55 = vcombine.low %v4141_v47, %v4145_v27 }
 0x438   :  { %12703 = vmatprep.subr.bf16.mxu1 %v16959_v61  ;;  %11744 = vmatprep.mubr.bf16.mxu0 %v24893_v38  ;;  %v4132_v61 = vld [vmem:[#allocation5 + $0x1ad0] sm:$0xff] }
 0x439   :  { %12648 = vmatprep.mubr.bf16.mxu1 %v24893_v38  ;;  %v4144_v38 = vld [vmem:[#allocation5 + $0x1b30] sm:$0xff]  ;;  %v16988_v28 = vcombine.low %v4132_v61, %v4136_v17 }
 0x43a   :  { %11800 = vmatpush1.bf16.msra.mxu0 %v16956_v1  ;;  %v16989_v1 = vcombine.high %v4132_v61, %v4136_v17  ;;  %v4157_v61 = vld [vmem:[#allocation5 + $0x1b98] sm:$0xff] }
 0x43b   :  { %12704 = vmatpush1.bf16.msra.mxu1 %v16958_v62  ;;  %11801 = vmatprep.subr.bf16.mxu0 %v16965_v6  ;;  %v16991_v62 = vcombine.high %v4133_v58, %v4137_v48  ;;  %v4140_v6 = vld [vmem:[#allocation5 + $0x1b10] sm:$0xff]  ;;  %v4161_v17 = vld [vmem:[#allocation5 + $0x1bb8] sm:$0xff] }
 0x43c   :  { %12705 = vmatprep.subr.bf16.mxu1 %v16967_v8  ;;  %v24896_v8 = vld [vmem:[#allocation80_spill] sm:$0xff]  ;;  %v16996_v60 = vcombine.low %v4140_v6, %v4144_v38 }
 0x43d   :  { %11745 = vmatmul.mubr.bf16.gmra.mrb[48].mxu0 %v24894_v14 }
 0x43e   :  { %12649 = vmatmul.mubr.bf16.gmra.mrb[48].mxu1 %v24894_v14  ;;  %11802 = vmatpush1.bf16.msra.mxu0 %v16964_v10  ;;  %v16997_v10 = vcombine.high %v4140_v6, %v4144_v38  ;;  %v4153_v14 = vld [vmem:[#allocation5 + $0x1b78] sm:$0xff]  ;;  %v4168_v6 = vld [vmem:[#allocation5 + $0x1bf0] sm:$0xff] }
 0x43f   :  { %12706 = vmatpush1.bf16.msra.mxu1 %v16966_v35  ;;  %11803 = vmatprep.subr.bf16.mxu0 %v16973_v16  ;;  %v24897_v35 = vld [vmem:[#allocation85_spill] sm:$0xff]  ;;  %v16999_v16 = vcombine.high %v4141_v47, %v4145_v27  ;;  %v17006_v48 = vcombine.low %v4149_v50, %v4153_v14  ;;  %v4165_v38 = vld [vmem:[#allocation5 + $0x1bd8] sm:$0xff]  ;;  %v17014_v27 = vcombine.low %v4157_v61, %v4161_v17 }
 0x440   :  { %12707 = vmatprep.subr.bf16.mxu1 %v16975_v19  ;;  %11754 = vmatprep.mubr.bf16.mxu0 %v24895_v15  ;;  %v4148_v19 = vld [vmem:[#allocation5 + $0x1b50] sm:$0xff] }
 0x441   :  { %12658 = vmatprep.mubr.bf16.mxu1 %v24895_v15  ;;  %v4160_v15 = vld [vmem:[#allocation5 + $0x1bb0] sm:$0xff]  ;;  %v17004_v58 = vcombine.low %v4148_v19, %v4152_v18 }
 0x442   :  { %11804 = vmatpush1.bf16.msra.mxu0 %v16972_v54  ;;  %v17005_v54 = vcombine.high %v4148_v19, %v4152_v18  ;;  %v4177_v19 = vld [vmem:[#allocation5 + $0x1c38] sm:$0xff] }
 0x443   :  { %12708 = vmatpush1.bf16.msra.mxu1 %v16974_v13  ;;  %11805 = vmatprep.subr.bf16.mxu0 %v16981_v0  ;;  %v17007_v13 = vcombine.high %v4149_v50, %v4153_v14  ;;  %v4156_v0 = vld [vmem:[#allocation5 + $0x1b90] sm:$0xff] }
 0x444   :  { %12709 = vmatprep.subr.bf16.mxu1 %v16983_v43  ;;  %v24898_v43 = vld [vmem:[#allocation84_spill] sm:$0xff]  ;;  %v17012_v47 = vcombine.low %v4156_v0, %v4160_v15 }
 0x445   :  { %11755 = vmatmul.mubr.bf16.gmra.mrb[52].mxu0 %v24896_v8 }
 0x446   :  { %12659 = vmatmul.mubr.bf16.gmra.mrb[52].mxu1 %v24896_v8  ;;  %11806 = vmatpush1.bf16.msra.mxu0 %v16980_v31  ;;  %v17013_v31 = vcombine.high %v4156_v0, %v4160_v15  ;;  %v4169_v8 = vld [vmem:[#allocation5 + $0x1bf8] sm:$0xff] }
 0x447   :  { %12710 = vmatpush1.bf16.msra.mxu1 %v16982_v22  ;;  %11807 = vmatprep.subr.bf16.mxu0 %v16989_v1  ;;  %v24899_v22 = vld [vmem:[#allocation91_spill] sm:$0xff]  ;;  %v17015_v1 = vcombine.high %v4157_v61, %v4161_v17  ;;  %v17022_v50 = vcombine.low %v4165_v38, %v4169_v8  ;;  %v4181_v0 = vld [vmem:[#allocation5 + $0x1c58] sm:$0xff]  ;;  %v4192_v61 = vld [vmem:[#allocation5 + $0x1cb0] sm:$0xff] }
 0x448   :  { %12711 = vmatprep.subr.bf16.mxu1 %v16991_v62  ;;  %11764 = vmatprep.mubr.bf16.mxu0 %v24897_v35  ;;  %v4164_v62 = vld [vmem:[#allocation5 + $0x1bd0] sm:$0xff]  ;;  %v4185_v15 = vld [vmem:[#allocation5 + $0x1c78] sm:$0xff] }
 0x449   :  { %12668 = vmatprep.mubr.bf16.mxu1 %v24897_v35  ;;  %v4176_v35 = vld [vmem:[#allocation5 + $0x1c30] sm:$0xff]  ;;  %v17020_v18 = vcombine.low %v4164_v62, %v4168_v6 }
 0x44a   :  { %11808 = vmatpush1.bf16.msra.mxu0 %v16988_v28  ;;  %v17021_v28 = vcombine.high %v4164_v62, %v4168_v6  ;;  %v4200_v62 = vld [vmem:[#allocation5 + $0x1cf0] sm:$0xff]  ;;  %v17038_v6 = vcombine.low %v4181_v0, %v4185_v15 }
 0x44b   :  { %12712 = vmatpush1.bf16.msra.mxu1 %v16990_v37  ;;  %11809 = vmatprep.subr.bf16.mxu0 %v16997_v10  ;;  %v17023_v37 = vcombine.high %v4165_v38, %v4169_v8  ;;  %v4172_v10 = vld [vmem:[#allocation5 + $0x1c10] sm:$0xff] }
 0x44c   :  { %12713 = vmatprep.subr.bf16.mxu1 %v16999_v16  ;;  %v4173_v16 = vld [vmem:[#allocation5 + $0x1c18] sm:$0xff]  ;;  %v17029_v14 = vcombine.high %v4172_v10, %v4176_v35 }
 0x44d   :  { %11765 = vmatmul.mubr.bf16.gmra.mrb[56].mxu0 %v24898_v43  ;;  %v17030_v17 = vcombine.low %v4173_v16, %v4177_v19 }
 0x44e   :  { %12669 = vmatmul.mubr.bf16.gmra.mrb[56].mxu1 %v24898_v43  ;;  %11810 = vmatpush1.bf16.msra.mxu0 %v16996_v60  ;;  %v4180_v60 = vld [vmem:[#allocation5 + $0x1c50] sm:$0xff] }
 0x44f   :  { %12714 = vmatpush1.bf16.msra.mxu1 %v16998_v55  ;;  %11811 = vmatprep.subr.bf16.mxu0 %v17005_v54  ;;  %v4184_v55 = vld [vmem:[#allocation5 + $0x1c70] sm:$0xff]  ;;  %v17031_v54 = vcombine.high %v4173_v16, %v4177_v19  ;;  %v4205_v16 = vld [vmem:[#allocation5 + $0x1d18] sm:$0xff] }
 0x450   :  { %12715 = vmatprep.subr.bf16.mxu1 %v17007_v13  ;;  %11774 = vmatprep.mubr.bf16.mxu0 %v24899_v22  ;;  %v17028_v13 = vcombine.low %v4172_v10, %v4176_v35  ;;  %v4188_v43 = vld [vmem:[#allocation5 + $0x1c90] sm:$0xff]  ;;  %v4209_v19 = vld [vmem:[#allocation5 + $0x1d38] sm:$0xff] }
 0x451   :  { %12678 = vmatprep.mubr.bf16.mxu1 %v24899_v22  ;;  %v17045_v22 = vcombine.high %v4188_v43, %v4192_v61  ;;  %v17044_v8 = vcombine.low %v4188_v43, %v4192_v61  ;;  %v4224_v43 = vld [vmem:[#allocation5 + $0x1db0] sm:$0xff] }
 0x452   :  { %11812 = vmatpush1.bf16.msra.mxu0 %v17004_v58  ;;  %v17039_v58 = vcombine.high %v4181_v0, %v4185_v15  ;;  %v17062_v15 = vcombine.low %v4205_v16, %v4209_v19 }
 0x453   :  { %12716 = vmatpush1.bf16.msra.mxu1 %v17006_v48  ;;  %11813 = vmatprep.subr.bf16.mxu0 %v17013_v31  ;;  %v17036_v48 = vcombine.low %v4180_v60, %v4184_v55  ;;  %v4189_v31 = vld [vmem:[#allocation5 + $0x1c98] sm:$0xff] }
 0x454   :  { %12717 = vmatprep.subr.bf16.mxu1 %v17015_v1  ;;  %v4196_v1 = vld [vmem:[#allocation5 + $0x1cd0] sm:$0xff] }
 0x455   :  { %11775 = vmatmul.mubr.bf16.gmra.mrb[60].mxu0 %v22172_v9  ;;  %v17052_v35 = vcombine.low %v4196_v1, %v4200_v62 }
 0x456   :  { %12679 = vmatmul.mubr.bf16.gmra.mrb[60].mxu1 %v22172_v9  ;;  %11814 = vmatpush1.bf16.msra.mxu0 %v17012_v47  ;;  %v17037_v9 = vcombine.high %v4180_v60, %v4184_v55  ;;  %v4197_v47 = vld [vmem:[#allocation5 + $0x1cd8] sm:$0xff]  ;;  %v4216_v60 = vld [vmem:[#allocation5 + $0x1d70] sm:$0xff]  ;;  %v17063_v55 = vcombine.high %v4205_v16, %v4209_v19 }
 0x457   :  { %12718 = vmatpush1.bf16.msra.mxu1 %v17014_v27  ;;  %11815 = vmatprep.subr.bf16.mxu0 %v17021_v28  ;;  %v17053_v27 = vcombine.high %v4196_v1, %v4200_v62  ;;  %v4204_v28 = vld [vmem:[#allocation5 + $0x1d10] sm:$0xff]  ;;  %v4229_v62 = vld [vmem:[#allocation5 + $0x1dd8] sm:$0xff] }
 0x458   :  { %12719 = vmatprep.subr.bf16.mxu1 %v17023_v37  ;;  %11817 = vmatprep.mubr.bf16.mxu0 %v22915_v26  ;;  %v4208_v37 = vld [vmem:[#allocation5 + $0x1d30] sm:$0xff] }
 0x459   :  { %12721 = vmatprep.mubr.bf16.mxu1 %v22915_v26  ;;  %v4193_v26 = vld [vmem:[#allocation5 + $0x1cb8] sm:$0xff]  ;;  %v4244_v16 = vld [vmem:[#allocation5 + $0x1e50] sm:$0xff] }
 0x45a   :  { %11816 = vmatpush1.bf16.msra.mxu0 %v17020_v18  ;;  %v17047_v38 = vcombine.high %v4189_v31, %v4193_v26  ;;  %v17046_v10 = vcombine.low %v4189_v31, %v4193_v26  ;;  %v17061_v18 = vcombine.high %v4204_v28, %v4208_v37  ;;  %v4228_v26 = vld [vmem:[#allocation5 + $0x1dd0] sm:$0xff] }
 0x45b   :  { %12720 = vmatpush1.bf16.msra.mxu1 %v17022_v50  ;;  %11898 = vmatprep.subr.bf16.mxu0 %v17029_v14  ;;  %v4212_v14 = vld [vmem:[#allocation5 + $0x1d50] sm:$0xff] }
 0x45c   :  { %12802 = vmatprep.subr.bf16.mxu1 %v17031_v54  ;;  %v17060_v54 = vcombine.low %v4204_v28, %v4208_v37  ;;  %v17069_v0 = vcombine.high %v4212_v14, %v4216_v60  ;;  %v17068_v61 = vcombine.low %v4212_v14, %v4216_v60  ;;  %v4241_v28 = vld [vmem:[#allocation5 + $0x1e38] sm:$0xff]  ;;  %v4248_v19 = vld [vmem:[#allocation5 + $0x1e70] sm:$0xff] }
 0x45d   :  { %11818 = vmatmul.mubr.bf16.vlgmr.msra.gmra.mrb[32].mxu0 %v22948_v20  ;;  %v17101_v60 = vcombine.high %v4244_v16, %v4248_v19 }
 0x45e   :  { %12722 = vmatmul.mubr.bf16.vlgmr.msra.gmra.mrb[32].mxu1 %v22948_v20  ;;  %11899 = vmatpush1.bf16.msra.mxu0 %v17028_v13  ;;  %v4201_v20 = vld [vmem:[#allocation5 + $0x1cf8] sm:$0xff] }
 0x45f   :  { %11900 = vmatprep.subr.bf16.mxu0 %v17037_v9  ;;  %11827 = vmatprep.mubr.bf16.mxu0 %v22967_v59  ;;  %v17054_v50 = vcombine.low %v4197_v47, %v4201_v20  ;;  %v4213_v13 = vld [vmem:[#allocation5 + $0x1d58] sm:$0xff]  ;;  %v4220_v9 = vld [vmem:[#allocation5 + $0x1d90] sm:$0xff] }
 0x460   :  { %12731 = vmatprep.mubr.bf16.mxu1 %v22967_v59  ;;  %12803 = vmatpush1.bf16.msra.mxu1 %v17030_v17  ;;  %v17055_v59 = vcombine.high %v4197_v47, %v4201_v20  ;;  %v4221_v17 = vld [vmem:[#allocation5 + $0x1d98] sm:$0xff]  ;;  %v4240_v47 = vld [vmem:[#allocation5 + $0x1e30] sm:$0xff] }
 0x461   :  { %12804 = vmatprep.subr.bf16.mxu1 %v17039_v58  ;;  %v4225_v58 = vld [vmem:[#allocation5 + $0x1db8] sm:$0xff] }
 0x462   :  { %11901 = vmatpush1.bf16.msra.mxu0 %v17036_v48  ;;  %v17077_v48 = vcombine.high %v4220_v9, %v4224_v43  ;;  %v17079_v1 = vcombine.high %v4221_v17, %v4225_v58 }
 0x463   :  { %11902 = vmatprep.subr.bf16.mxu0 %v17045_v22  ;;  %v4232_v22 = vld [vmem:[#allocation5 + $0x1df0] sm:$0xff] }
 0x464   :  { %12805 = vmatpush1.bf16.msra.mxu1 %v17038_v6  ;;  %v4233_v6 = vld [vmem:[#allocation5 + $0x1df8] sm:$0xff]  ;;  %v17084_v37 = vcombine.low %v4228_v26, %v4232_v22 }
 0x465   :  { %11828 = vmatmul.mubr.bf16.gmra.mrb[36].mxu0 %v22990_v45  ;;  %12806 = vmatprep.subr.bf16.mxu1 %v17047_v38  ;;  %v17085_v38 = vcombine.high %v4228_v26, %v4232_v22  ;;  %v17087_v20 = vcombine.high %v4229_v62, %v4233_v6  ;;  %v4268_v26 = vld [vmem:[#allocation5 + $0x1f10] sm:$0xff] }
 0x466   :  { %12732 = vmatmul.mubr.bf16.gmra.mrb[36].mxu1 %v22990_v45  ;;  %11903 = vmatpush1.bf16.msra.mxu0 %v17044_v8  ;;  %v4217_v45 = vld [vmem:[#allocation5 + $0x1d78] sm:$0xff]  ;;  %v17078_v8 = vcombine.low %v4221_v17, %v4225_v58  ;;  %v4272_v22 = vld [vmem:[#allocation5 + $0x1f30] sm:$0xff] }
 0x467   :  { %11837 = vmatprep.mubr.bf16.mxu0 %v22993_v23  ;;  %11904 = vmatprep.subr.bf16.mxu0 %v17053_v27  ;;  %v17070_v31 = vcombine.low %v4213_v13, %v4217_v45  ;;  %v4237_v27 = vld [vmem:[#allocation5 + $0x1e18] sm:$0xff] }
 0x468   :  { %12741 = vmatprep.mubr.bf16.mxu1 %v22993_v23  ;;  %12807 = vmatpush1.bf16.msra.mxu1 %v17046_v10  ;;  %v17071_v23 = vcombine.high %v4213_v13, %v4217_v45  ;;  %v17094_v14 = vcombine.low %v4237_v27, %v4241_v28  ;;  %v4253_v13 = vld [vmem:[#allocation5 + $0x1e98] sm:$0xff] }
 0x469   :  { %12808 = vmatprep.subr.bf16.mxu1 %v17055_v59  ;;  %v17086_v59 = vcombine.low %v4229_v62, %v4233_v6  ;;  %v4257_v45 = vld [vmem:[#allocation5 + $0x1eb8] sm:$0xff] }
 0x46a   :  { %11905 = vmatpush1.bf16.msra.mxu0 %v17052_v35  ;;  %v17095_v35 = vcombine.high %v4237_v27, %v4241_v28  ;;  %v4261_v17 = vld [vmem:[#allocation5 + $0x1ed8] sm:$0xff]  ;;  %v18685_v27 = vld [vmem:[#allocation7 + $0x24] ss:$16 sps:$4 sm:$0xff]  }
 0x46b   :  { %11906 = vmatprep.subr.bf16.mxu0 %v17061_v18  ;;  %v4245_v18 = vld [vmem:[#allocation5 + $0x1e58] sm:$0xff] }
 0x46c   :  { %12809 = vmatpush1.bf16.msra.mxu1 %v17054_v50  ;;  %v4249_v50 = vld [vmem:[#allocation5 + $0x1e78] sm:$0xff] }
 0x46d   :  { %11838 = vmatmul.mubr.bf16.gmra.mrb[40].mxu0 %v23027_v63  ;;  %12810 = vmatprep.subr.bf16.mxu1 %v17063_v55  ;;  %v4252_v55 = vld [vmem:[#allocation5 + $0x1e90] sm:$0xff]  ;;  %v4265_v58 = vld [vmem:[#allocation5 + $0x1ef8] sm:$0xff] }
 0x46e   :  { %12742 = vmatmul.mubr.bf16.gmra.mrb[40].mxu1 %v23027_v63  ;;  %11907 = vmatpush1.bf16.msra.mxu0 %v17060_v54  ;;  %v17076_v63 = vcombine.low %v4220_v9, %v4224_v43  ;;  %v4256_v54 = vld [vmem:[#allocation5 + $0x1eb0] sm:$0xff]  ;;  %v17111_v43 = vcombine.high %v4253_v13, %v4257_v45  ;;  %v4273_v62 = vld [vmem:[#allocation5 + $0x1f38] sm:$0xff] }
 0x46f   :  { %11847 = vmatprep.mubr.bf16.mxu0 %v23041_v42  ;;  %12751 = vmatprep.mubr.bf16.mxu1 %v23041_v42  ;;  %v4236_v42 = vld [vmem:[#allocation5 + $0x1e10] sm:$0xff]  ;;  %v17109_v9 = vcombine.high %v4252_v55, %v4256_v54  ;;  %v18688_v28 = vld [vmem:[#allocation7 + $0x2c] ss:$16 sps:$4 sm:$0xff]  }
 0x470   :  { %11908 = vmatprep.subr.bf16.mxu0 %v17069_v0  ;;  %12811 = vmatpush1.bf16.msra.mxu1 %v17062_v15  ;;  %v17093_v10 = vcombine.high %v4236_v42, %v4240_v47  ;;  %v17100_v0 = vcombine.low %v4244_v16, %v4248_v19  ;;  %v17102_v15 = vcombine.low %v4245_v18, %v4249_v50  ;;  %v18695_v16 = vld [vmem:[#allocation7 + $0x60] ss:$16 sps:$4 sm:$0xff]   ;;  %v18698_v19 = vld [vmem:[#allocation7 + $0x68] ss:$16 sps:$4 sm:$0xff]  }
 0x471   :  { %12812 = vmatprep.subr.bf16.mxu1 %v17071_v23  ;;  %v4260_v23 = vld [vmem:[#allocation5 + $0x1ed0] sm:$0xff] }
 0x472   :  { %11909 = vmatpush1.bf16.msra.mxu0 %v17068_v61  ;;  %v4264_v61 = vld [vmem:[#allocation5 + $0x1ef0] sm:$0xff] }
 0x473   :  { %11910 = vmatprep.subr.bf16.mxu0 %v17077_v48  ;;  %v17110_v48 = vcombine.low %v4253_v13, %v4257_v45  ;;  %v17116_v6 = vcombine.low %v4260_v23, %v4264_v61  ;;  %v18716_v13 = vld [vmem:[#allocation7 + $0xc8] ss:$16 sps:$4 sm:$0xff]   ;;  %v18724_v45 = vld [vmem:[#allocation7 + $0xec] ss:$16 sps:$4 sm:$0xff]  }
 0x474   :  { %12813 = vmatpush1.bf16.msra.mxu1 %v17070_v31  ;;  %v17117_v31 = vcombine.high %v4260_v23, %v4264_v61  ;;  %v18728_v23 = vld [vmem:[#allocation7 + $0x108] ss:$16 sps:$4 sm:$0xff]   ;;  %v18736_v61 = vld [vmem:[#allocation7 + $0x12c] ss:$16 sps:$4 sm:$0xff]  }
 0x475   :  { %11848 = vmatmul.mubr.bf16.gmra.mrb[44].mxu0 %v23069_v2  ;;  %12814 = vmatprep.subr.bf16.mxu1 %v17079_v1  ;;  %v4269_v1 = vld [vmem:[#allocation5 + $0x1f18] sm:$0xff] }
 0x476   :  { %12752 = vmatmul.mubr.bf16.gmra.mrb[44].mxu1 %v23069_v2  ;;  %11857 = vmatprep.mubr.bf16.mxu0 %v23077_v3  ;;  %v17092_v2 = vcombine.low %v4236_v42, %v4240_v47  ;;  %v17124_v42 = vcombine.low %v4268_v26, %v4272_v22  ;;  %v17126_v47 = vcombine.low %v4269_v1, %v4273_v62 }
 0x477   :  { %11911 = vmatpush1.bf16.msra.mxu0 %v17076_v63  ;;  %12761 = vmatprep.mubr.bf16.mxu1 %v23077_v3  ;;  %v17103_v3 = vcombine.high %v4245_v18, %v4249_v50  ;;  %v17118_v63 = vcombine.low %v4261_v17, %v4265_v58  ;;  %v18703_v18 = vld [vmem:[#allocation7 + $0x84] ss:$16 sps:$4 sm:$0xff]   ;;  %v18701_v50 = vld [vmem:[#allocation7 + $0x80] ss:$16 sps:$4 sm:$0xff]  }
 0x478   :  { %11912 = vmatprep.subr.bf16.mxu0 %v17085_v38  ;;  %12815 = vmatpush1.bf16.msra.mxu1 %v17078_v8  ;;  %v17125_v38 = vcombine.high %v4268_v26, %v4272_v22  ;;  %v17127_v8 = vcombine.high %v4269_v1, %v4273_v62  ;;  %v18743_v26 = vld [vmem:[#allocation7 + $0x160] ss:$16 sps:$4 sm:$0xff]   ;;  %v18746_v22 = vld [vmem:[#allocation7 + $0x168] ss:$16 sps:$4 sm:$0xff]   ;;  %v18751_v1 = vld [vmem:[#allocation7 + $0x184] ss:$16 sps:$4 sm:$0xff]  }
 0x479   :  { %12816 = vmatprep.subr.bf16.mxu1 %v17087_v20  ;;  %v18682_v20 = vld [vmem:[#allocation7 + $0xc] ss:$16 sps:$4 sm:$0xff]   ;;  %v18749_v62 = vld [vmem:[#allocation7 + $0x180] ss:$16 sps:$4 sm:$0xff]  }
 0x47b   :  { %11913 = vmatpush1.bf16.msra.mxu0 %v17084_v37  ;;  %v18686_v37 = vld [vmem:[#allocation7 + $0x28] ss:$16 sps:$4 sm:$0xff]  }
 0x47c   :  { %11914 = vmatprep.subr.bf16.mxu0 %v17093_v10  ;;  %12817 = vmatpush1.bf16.msra.mxu1 %v17086_v59  ;;  %v18694_v10 = vld [vmem:[#allocation7 + $0x4c] ss:$16 sps:$4 sm:$0xff]   ;;  %v18692_v59 = vld [vmem:[#allocation7 + $0x48] ss:$16 sps:$4 sm:$0xff]  }
 0x47d   :  { %11858 = vmatmul.mubr.bf16.gmra.mrb[48].mxu0 %v23099_v41  ;;  %12818 = vmatprep.subr.bf16.mxu1 %v17095_v35  ;;  %v18700_v35 = vld [vmem:[#allocation7 + $0x6c] ss:$16 sps:$4 sm:$0xff]  }
 0x47e   :  { %12762 = vmatmul.mubr.bf16.gmra.mrb[48].mxu1 %v23099_v41  ;;  %11867 = vmatprep.mubr.bf16.mxu0 %v23101_v57  ;;  %v17108_v41 = vcombine.low %v4252_v55, %v4256_v54  ;;  %v18715_v55 = vld [vmem:[#allocation7 + $0xc4] ss:$16 sps:$4 sm:$0xff]   ;;  %v18713_v54 = vld [vmem:[#allocation7 + $0xc0] ss:$16 sps:$4 sm:$0xff]  }
 0x47f   :  { %12771 = vmatprep.mubr.bf16.mxu1 %v23101_v57  ;;  %11915 = vmatpush1.bf16.msra.mxu0 %v17092_v2  ;;  %v17119_v57 = vcombine.high %v4261_v17, %v4265_v58  ;;  %v18704_v2 = vld [vmem:[#allocation7 + $0x88] ss:$16 sps:$4 sm:$0xff]   ;;  %v18731_v17 = vld [vmem:[#allocation7 + $0x120] ss:$16 sps:$4 sm:$0xff]  }
 0x480   :  { %11916 = vmatprep.subr.bf16.mxu0 %v17101_v60  ;;  %12819 = vmatpush1.bf16.msra.mxu1 %v17094_v14  ;;  %v18712_v14 = vld [vmem:[#allocation7 + $0xac] ss:$16 sps:$4 sm:$0xff]   ;;  %v18707_v60 = vld [vmem:[#allocation7 + $0xa0] ss:$16 sps:$4 sm:$0xff]   ;;  %v18734_v58 = vld [vmem:[#allocation7 + $0x128] ss:$16 sps:$4 sm:$0xff]  }
 0x481   :  { %12820 = vmatprep.subr.bf16.mxu1 %v17103_v3  ;;  %v18710_v3 = vld [vmem:[#allocation7 + $0xa8] ss:$16 sps:$4 sm:$0xff]  }
 0x483   :  { %11917 = vmatpush1.bf16.msra.mxu0 %v17100_v0  ;;  %v18719_v0 = vld [vmem:[#allocation7 + $0xe0] ss:$16 sps:$4 sm:$0xff]  }
 0x484   :  { %12821 = vmatpush1.bf16.msra.mxu1 %v17102_v15  ;;  %11918 = vmatprep.subr.bf16.mxu0 %v17109_v9  ;;  %v18722_v15 = vld [vmem:[#allocation7 + $0xe8] ss:$16 sps:$4 sm:$0xff]   ;;  %v18727_v9 = vld [vmem:[#allocation7 + $0x104] ss:$16 sps:$4 sm:$0xff]  }
 0x485   :  { %11868 = vmatmul.mubr.bf16.gmra.mrb[52].mxu0 %v23141_v32  ;;  %12822 = vmatprep.subr.bf16.mxu1 %v17111_v43  ;;  %v18725_v43 = vld [vmem:[#allocation7 + $0x100] ss:$16 sps:$4 sm:$0xff]  }
 0x486   :  { %12772 = vmatmul.mubr.bf16.gmra.mrb[52].mxu1 %v23141_v32  ;;  %11877 = vmatprep.mubr.bf16.mxu0 %v23149_v39  ;;  %v18679_v32 = vld [vmem:[#allocation7 + $0x4] ss:$16 sps:$4 sm:$0xff]  }
 0x487   :  { %12781 = vmatprep.mubr.bf16.mxu1 %v23149_v39  ;;  %11919 = vmatpush1.bf16.msra.mxu0 %v17108_v41  ;;  %v18677_v39 = vld [vmem:[#allocation7] ss:$16 sps:$4 sm:$0xff]   ;;  %v18739_v41 = vld [vmem:[#allocation7 + $0x144] ss:$16 sps:$4 sm:$0xff]  }
 0x488   :  { %12823 = vmatpush1.bf16.msra.mxu1 %v17110_v48  ;;  %11920 = vmatprep.subr.bf16.mxu0 %v17117_v31  ;;  %v18737_v48 = vld [vmem:[#allocation7 + $0x140] ss:$16 sps:$4 sm:$0xff]   ;;  %v18740_v31 = vld [vmem:[#allocation7 + $0x148] ss:$16 sps:$4 sm:$0xff]  }
 0x489   :  { %12824 = vmatprep.subr.bf16.mxu1 %v17119_v57  ;;  %v18748_v57 = vld [vmem:[#allocation7 + $0x16c] ss:$16 sps:$4 sm:$0xff]  }
 0x48b   :  { %11921 = vmatpush1.bf16.msra.mxu0 %v17116_v6  ;;  %v18752_v6 = vld [vmem:[#allocation7 + $0x188] ss:$16 sps:$4 sm:$0xff]  }
 0x48c   :  { %12825 = vmatpush1.bf16.msra.mxu1 %v17118_v63  ;;  %11922 = vmatprep.subr.bf16.mxu0 %v17125_v38  ;;  %v18760_v63 = vld [vmem:[#allocation7 + $0x1ac] ss:$16 sps:$4 sm:$0xff]   ;;  %v18755_v38 = vld [vmem:[#allocation7 + $0x1a0] ss:$16 sps:$4 sm:$0xff]  }
 0x48d   :  { %11878 = vmatmul.mubr.bf16.gmra.mrb[56].mxu0 %v23171_v5  ;;  %12826 = vmatprep.subr.bf16.mxu1 %v17127_v8  ;;  %v18758_v8 = vld [vmem:[#allocation7 + $0x1a8] ss:$16 sps:$4 sm:$0xff]  }
 0x48e   :  { %12782 = vmatmul.mubr.bf16.gmra.mrb[56].mxu1 %v23171_v5  ;;  %11887 = vmatprep.mubr.bf16.mxu0 %v23173_v53  ;;  %v18680_v5 = vld [vmem:[#allocation7 + $0x8] ss:$16 sps:$4 sm:$0xff]  }
 0x48f   :  { %12791 = vmatprep.mubr.bf16.mxu1 %v23173_v53  ;;  %11923 = vmatpush1.bf16.msra.mxu0 %v17124_v42  ;;  %v18683_v53 = vld [vmem:[#allocation7 + $0x20] ss:$16 sps:$4 sm:$0xff]   ;;  %v18763_v42 = vld [vmem:[#allocation7 + $0x1c4] ss:$16 sps:$4 sm:$0xff]  }
 0x490   :  { %12827 = vmatpush1.bf16.msra.mxu1 %v17126_v47  ;;  %14643 = vmatprep.subr.bf16.mxu0 %v18679_v32  ;;  %v18766_v47 = vld [vmem:[#allocation7 + $0x1cc] ss:$16 sps:$4 sm:$0xff]   ;;  %v18761_v32 = vld [vmem:[#allocation7 + $0x1c0] ss:$16 sps:$4 sm:$0xff]  }
 0x491   :  { %15095 = vmatprep.subr.bf16.mxu1 %v18682_v20  ;;  %v18764_v20 = vld [vmem:[#allocation7 + $0x1c8] ss:$16 sps:$4 sm:$0xff]  }
 0x495   :  { %11888 = vmatmul.mubr.bf16.gmra.mrb[60].mxu0 %v23187_v34 }
 0x496   :  { %12792 = vmatmul.mubr.bf16.gmra.mrb[60].mxu1 %v23187_v34  ;;  %17144 = vmatprep.mubr.msk.bf16.mxu0 %vm9274_vm0, %v23189_v24  ;;  %v18691_v34 = vld [vmem:[#allocation7 + $0x44] ss:$16 sps:$4 sm:$0xff]  }
 0x497   :  { %17152 = vmatprep.mubr.msk.bf16.mxu1 %vm9274_vm0, %v23189_v24  ;;  %v18689_v24 = vld [vmem:[#allocation7 + $0x40] ss:$16 sps:$4 sm:$0xff]  }
 0x49d   :  { %11931 = vmatmul.mubr.bf16.vlgmr.msra.gmra.mrb[32].mxu0 %v23197_v33 }
 0x49e   :  { %12835 = vmatmul.mubr.bf16.vlgmr.msra.gmra.mrb[32].mxu1 %v23197_v33  ;;  %14644 = vmatpush1.bf16.msra.mxu0 %v18677_v39  ;;  %v18697_v33 = vld [vmem:[#allocation7 + $0x64] ss:$16 sps:$4 sm:$0xff]   ;;  %v24901_v39 = vld [vmem:[#allocation154_spill] sm:$0xff] }
 0x49f   :  { %15096 = vmatpush1.bf16.msra.mxu1 %v18680_v5  ;;  %14645 = vmatprep.subr.bf16.mxu0 %v18685_v27  ;;  %v18772_v5 = vld [vmem:[#allocation7 + $0x1ec] ss:$16 sps:$4 sm:$0xff]   ;;  %v18767_v27 = vld [vmem:[#allocation7 + $0x1e0] ss:$16 sps:$4 sm:$0xff]  }
 0x4a0   :  { %15097 = vmatprep.subr.bf16.mxu1 %v18688_v28  ;;  %17145 = vmatprep.mubr.msk.bf16.mxu0 %vm9274_vm0, %v24766_v51  ;;  %v24902_v28 = vld [vmem:[#allocation83_spill] sm:$0xff] }
 0x4a1   :  { %17153 = vmatprep.mubr.msk.bf16.mxu1 %vm9274_vm0, %v24766_v51  ;;  %v18706_v51 = vld [vmem:[#allocation7 + $0x8c] ss:$16 sps:$4 sm:$0xff]  }
 0x4a2   :  { %14646 = vmatpush1.bf16.msra.mxu0 %v18683_v53  ;;  %v18770_v53 = vld [vmem:[#allocation7 + $0x1e8] ss:$16 sps:$4 sm:$0xff]  }
 0x4a3   :  { %15098 = vmatpush1.bf16.msra.mxu1 %v18686_v37  ;;  %14647 = vmatprep.subr.bf16.mxu0 %v18691_v34  ;;  %v18775_v37 = vld [vmem:[#allocation7 + $0x204] ss:$16 sps:$4 sm:$0xff]   ;;  %v18778_v34 = vld [vmem:[#allocation7 + $0x20c] ss:$16 sps:$4 sm:$0xff]  }
 0x4a4   :  { %15099 = vmatprep.subr.bf16.mxu1 %v18694_v10  ;;  %v18773_v10 = vld [vmem:[#allocation7 + $0x200] ss:$16 sps:$4 sm:$0xff]  }
 0x4a5   :  { %11941 = vmatmul.mubr.bf16.gmra.mrb[36].mxu0 %v24767_v25 }
 0x4a6   :  { %12845 = vmatmul.mubr.bf16.gmra.mrb[36].mxu1 %v24767_v25  ;;  %14648 = vmatpush1.bf16.msra.mxu0 %v18689_v24  ;;  %v18709_v25 = vld [vmem:[#allocation7 + $0xa4] ss:$16 sps:$4 sm:$0xff]   ;;  %v18776_v24 = vld [vmem:[#allocation7 + $0x208] ss:$16 sps:$4 sm:$0xff]  }
 0x4a7   :  { %15100 = vmatpush1.bf16.msra.mxu1 %v18692_v59  ;;  %14649 = vmatprep.subr.bf16.mxu0 %v18697_v33  ;;  %v18781_v59 = vld [vmem:[#allocation7 + $0x224] ss:$16 sps:$4 sm:$0xff]   ;;  %v24903_v33 = vld [vmem:[#allocation112_spill] sm:$0xff] }
 0x4a8   :  { %15101 = vmatprep.subr.bf16.mxu1 %v18700_v35  ;;  %17146 = vmatprep.mubr.msk.bf16.mxu0 %vm9274_vm0, %v24768_v40  ;;  %v18784_v35 = vld [vmem:[#allocation7 + $0x22c] ss:$16 sps:$4 sm:$0xff]  }
 0x4a9   :  { %17154 = vmatprep.mubr.msk.bf16.mxu1 %vm9274_vm0, %v24768_v40  ;;  %v18718_v40 = vld [vmem:[#allocation7 + $0xcc] ss:$16 sps:$4 sm:$0xff]  }
 0x4aa   :  { %14650 = vmatpush1.bf16.msra.mxu0 %v18695_v16  ;;  %v24904_v16 = vld [vmem:[#allocation121_spill] sm:$0xff] }
 0x4ab   :  { %15102 = vmatpush1.bf16.msra.mxu1 %v18698_v19  ;;  %14651 = vmatprep.subr.bf16.mxu0 %v18703_v18  ;;  %v18779_v19 = vld [vmem:[#allocation7 + $0x220] ss:$16 sps:$4 sm:$0xff]   ;;  %v18782_v18 = vld [vmem:[#allocation7 + $0x228] ss:$16 sps:$4 sm:$0xff]  }
 0x4ac   :  { %15103 = vmatprep.subr.bf16.mxu1 %v18706_v51  ;;  %v18787_v51 = vld [vmem:[#allocation7 + $0x244] ss:$16 sps:$4 sm:$0xff]  }
 0x4ad   :  { %11951 = vmatmul.mubr.bf16.gmra.mrb[40].mxu0 %v24769_v56 }
 0x4ae   :  { %12855 = vmatmul.mubr.bf16.gmra.mrb[40].mxu1 %v24769_v56  ;;  %14652 = vmatpush1.bf16.msra.mxu0 %v18701_v50  ;;  %v18721_v56 = vld [vmem:[#allocation7 + $0xe4] ss:$16 sps:$4 sm:$0xff]   ;;  %v18790_v50 = vld [vmem:[#allocation7 + $0x24c] ss:$16 sps:$4 sm:$0xff]  }
 0x4af   :  { %15104 = vmatpush1.bf16.msra.mxu1 %v18704_v2  ;;  %14653 = vmatprep.subr.bf16.mxu0 %v18709_v25  ;;  %v18785_v2 = vld [vmem:[#allocation7 + $0x240] ss:$16 sps:$4 sm:$0xff]   ;;  %v18788_v25 = vld [vmem:[#allocation7 + $0x248] ss:$16 sps:$4 sm:$0xff]  }
 0x4b0   :  { %15105 = vmatprep.subr.bf16.mxu1 %v18712_v14  ;;  %17147 = vmatprep.mubr.msk.bf16.mxu0 %vm9274_vm0, %v24770_v49  ;;  %v18793_v14 = vld [vmem:[#allocation7 + $0x264] ss:$16 sps:$4 sm:$0xff]  }
 0x4b1   :  { %17155 = vmatprep.mubr.msk.bf16.mxu1 %vm9274_vm0, %v24770_v49  ;;  %v18730_v49 = vld [vmem:[#allocation7 + $0x10c] ss:$16 sps:$4 sm:$0xff]  }
 0x4b2   :  { %14654 = vmatpush1.bf16.msra.mxu0 %v18707_v60  ;;  %v24905_v60 = vld [vmem:[#allocation119_spill] sm:$0xff] }
 0x4b3   :  { %15106 = vmatpush1.bf16.msra.mxu1 %v18710_v3  ;;  %14655 = vmatprep.subr.bf16.mxu0 %v18715_v55  ;;  %v18796_v3 = vld [vmem:[#allocation7 + $0x26c] ss:$16 sps:$4 sm:$0xff]   ;;  %v24906_v55 = vld [vmem:[#allocation125_spill] sm:$0xff] }
 0x4b4   :  { %15107 = vmatprep.subr.bf16.mxu1 %v18718_v40  ;;  %v18791_v40 = vld [vmem:[#allocation7 + $0x260] ss:$16 sps:$4 sm:$0xff]  }
 0x4b5   :  { %11961 = vmatmul.mubr.bf16.gmra.mrb[44].mxu0 %v24771_v11 }
 0x4b6   :  { %12865 = vmatmul.mubr.bf16.gmra.mrb[44].mxu1 %v24771_v11  ;;  %14656 = vmatpush1.bf16.msra.mxu0 %v18713_v54  ;;  %v18733_v11 = vld [vmem:[#allocation7 + $0x124] ss:$16 sps:$4 sm:$0xff]   ;;  %v18794_v54 = vld [vmem:[#allocation7 + $0x268] ss:$16 sps:$4 sm:$0xff]  }
 0x4b7   :  { %15108 = vmatpush1.bf16.msra.mxu1 %v18716_v13  ;;  %14657 = vmatprep.subr.bf16.mxu0 %v18721_v56  ;;  %v18799_v13 = vld [vmem:[#allocation7 + $0x284] ss:$16 sps:$4 sm:$0xff]   ;;  %v18802_v56 = vld [vmem:[#allocation7 + $0x28c] ss:$16 sps:$4 sm:$0xff]  }
 0x4b8   :  { %15109 = vmatprep.subr.bf16.mxu1 %v18724_v45  ;;  %17148 = vmatprep.mubr.msk.bf16.mxu0 %vm9274_vm0, %v24772_v21  ;;  %v18797_v45 = vld [vmem:[#allocation7 + $0x280] ss:$16 sps:$4 sm:$0xff]  }
 0x4b9   :  { %17156 = vmatprep.mubr.msk.bf16.mxu1 %vm9274_vm0, %v24772_v21  ;;  %v18742_v21 = vld [vmem:[#allocation7 + $0x14c] ss:$16 sps:$4 sm:$0xff]  }
 0x4ba   :  { %14658 = vmatpush1.bf16.msra.mxu0 %v18719_v0  ;;  %v18800_v0 = vld [vmem:[#allocation7 + $0x288] ss:$16 sps:$4 sm:$0xff]  }
 0x4bb   :  { %15110 = vmatpush1.bf16.msra.mxu1 %v18722_v15  ;;  %14659 = vmatprep.subr.bf16.mxu0 %v18727_v9  ;;  %v18805_v15 = vld [vmem:[#allocation7 + $0x2a4] ss:$16 sps:$4 sm:$0xff]  }
 0x4bc   :  { %15111 = vmatprep.subr.bf16.mxu1 %v18730_v49  ;;  %v24907_v9 = vld [vmem:[#allocation123_spill] sm:$0xff]  ;;  %v18808_v49 = vld [vmem:[#allocation7 + $0x2ac] ss:$16 sps:$4 sm:$0xff]  }
 0x4bd   :  { %11971 = vmatmul.mubr.bf16.gmra.mrb[48].mxu0 %v24773_v7 }
 0x4be   :  { %12875 = vmatmul.mubr.bf16.gmra.mrb[48].mxu1 %v24773_v7  ;;  %14660 = vmatpush1.bf16.msra.mxu0 %v18725_v43  ;;  %v18745_v7 = vld [vmem:[#allocation7 + $0x164] ss:$16 sps:$4 sm:$0xff]  }
 0x4bf   :  { %15112 = vmatpush1.bf16.msra.mxu1 %v18728_v23  ;;  %14661 = vmatprep.subr.bf16.mxu0 %v18733_v11  ;;  %v24908_v43 = vld [vmem:[#allocation129_spill] sm:$0xff]  ;;  %v18806_v11 = vld [vmem:[#allocation7 + $0x2a8] ss:$16 sps:$4 sm:$0xff]  }
 0x4c0   :  { %15113 = vmatprep.subr.bf16.mxu1 %v18736_v61  ;;  %17149 = vmatprep.mubr.msk.bf16.mxu0 %vm9274_vm0, %v24774_v30  ;;  %v18803_v23 = vld [vmem:[#allocation7 + $0x2a0] ss:$16 sps:$4 sm:$0xff]   ;;  %v18811_v61 = vld [vmem:[#allocation7 + $0x2c4] ss:$16 sps:$4 sm:$0xff]  }
 0x4c1   :  { %17157 = vmatprep.mubr.msk.bf16.mxu1 %vm9274_vm0, %v24774_v30  ;;  %v18754_v30 = vld [vmem:[#allocation7 + $0x18c] ss:$16 sps:$4 sm:$0xff]  }
 0x4c2   :  { %14662 = vmatpush1.bf16.msra.mxu0 %v18731_v17  ;;  %v18814_v17 = vld [vmem:[#allocation7 + $0x2cc] ss:$16 sps:$4 sm:$0xff]  }
 0x4c3   :  { %15114 = vmatpush1.bf16.msra.mxu1 %v18734_v58  ;;  %14663 = vmatprep.subr.bf16.mxu0 %v18739_v41  ;;  %v18809_v58 = vld [vmem:[#allocation7 + $0x2c0] ss:$16 sps:$4 sm:$0xff]   ;;  %v18812_v41 = vld [vmem:[#allocation7 + $0x2c8] ss:$16 sps:$4 sm:$0xff]  }
 0x4c4   :  { %15115 = vmatprep.subr.bf16.mxu1 %v18742_v21  ;;  %v18817_v21 = vld [vmem:[#allocation7 + $0x2e4] ss:$16 sps:$4 sm:$0xff]  }
 0x4c5   :  { %11981 = vmatmul.mubr.bf16.gmra.mrb[52].mxu0 %v24775_v46 }
 0x4c6   :  { %12885 = vmatmul.mubr.bf16.gmra.mrb[52].mxu1 %v24775_v46  ;;  %14664 = vmatpush1.bf16.msra.mxu0 %v18737_v48  ;;  %v18757_v46 = vld [vmem:[#allocation7 + $0x1a4] ss:$16 sps:$4 sm:$0xff]  }
 0x4c7   :  { %15116 = vmatpush1.bf16.msra.mxu1 %v18740_v31  ;;  %14665 = vmatprep.subr.bf16.mxu0 %v18745_v7  ;;  %v24909_v48 = vld [vmem:[#allocation127_spill] sm:$0xff]  ;;  %v18820_v31 = vld [vmem:[#allocation7 + $0x2ec] ss:$16 sps:$4 sm:$0xff]  }
 0x4c8   :  { %15117 = vmatprep.subr.bf16.mxu1 %v18748_v57  ;;  %17150 = vmatprep.mubr.msk.bf16.mxu0 %vm9274_vm0, %v22846_v29  ;;  %v24910_v7 = vld [vmem:[#allocation135_spill] sm:$0xff] }
 0x4c9   :  { %17158 = vmatprep.mubr.msk.bf16.mxu1 %vm9274_vm0, %v22846_v29  ;;  %v24900_v29 = vld [vmem:[#allocation153_spill] sm:$0xff] }
 0x4ca   :  { %14666 = vmatpush1.bf16.msra.mxu0 %v18743_v26  ;;  %v18815_v57 = vld [vmem:[#allocation7 + $0x2e0] ss:$16 sps:$4 sm:$0xff]   ;;  %v18818_v26 = vld [vmem:[#allocation7 + $0x2e8] ss:$16 sps:$4 sm:$0xff]  }
 0x4cb   :  { %15118 = vmatpush1.bf16.msra.mxu1 %v18746_v22  ;;  %14667 = vmatprep.subr.bf16.mxu0 %v18751_v1  ;;  %v18823_v22 = vld [vmem:[#allocation7 + $0x304] ss:$16 sps:$4 sm:$0xff]   ;;  %v18826_v1 = vld [vmem:[#allocation7 + $0x30c] ss:$16 sps:$4 sm:$0xff]  }
 0x4cc   :  { %15119 = vmatprep.subr.bf16.mxu1 %v18754_v30  ;;  %v18821_v30 = vld [vmem:[#allocation7 + $0x300] ss:$16 sps:$4 sm:$0xff]  }
 0x4cd   :  { %11991 = vmatmul.mubr.bf16.gmra.mrb[56].mxu0 %v24776_v52 }
 0x4ce   :  { %12895 = vmatmul.mubr.bf16.gmra.mrb[56].mxu1 %v24776_v52  ;;  %14668 = vmatpush1.bf16.msra.mxu0 %v18749_v62  ;;  %v18769_v52 = vld [vmem:[#allocation7 + $0x1e4] ss:$16 sps:$4 sm:$0xff]   ;;  %v18824_v62 = vld [vmem:[#allocation7 + $0x308] ss:$16 sps:$4 sm:$0xff]  }
 0x4cf   :  { %15120 = vmatpush1.bf16.msra.mxu1 %v18752_v6  ;;  %14669 = vmatprep.subr.bf16.mxu0 %v18757_v46  ;;  %v18829_v6 = vld [vmem:[#allocation7 + $0x324] ss:$16 sps:$4 sm:$0xff]  }
 0x4d0   :  { %15121 = vmatprep.subr.bf16.mxu1 %v18760_v63  ;;  %17151 = vmatprep.mubr.msk.bf16.mxu0 %vm9274_vm0, %v24900_v29  ;;  %v24911_v46 = vld [vmem:[#allocation133_spill] sm:$0xff]  ;;  %v18832_v63 = vld [vmem:[#allocation7 + $0x32c] ss:$16 sps:$4 sm:$0xff]  }
 0x4d1   :  { %17159 = vmatprep.mubr.msk.bf16.mxu1 %vm9274_vm0, %v24900_v29  ;;  %v18835_v29 = vld [vmem:[#allocation7 + $0x344] ss:$16 sps:$4 sm:$0xff]  }
 0x4d2   :  { %14670 = vmatpush1.bf16.msra.mxu0 %v18755_v38  ;;  %v24912_v38 = vld [vmem:[#allocation141_spill] sm:$0xff] }
 0x4d3   :  { %15122 = vmatpush1.bf16.msra.mxu1 %v18758_v8  ;;  %14671 = vmatprep.subr.bf16.mxu0 %v18763_v42  ;;  %v18827_v8 = vld [vmem:[#allocation7 + $0x320] ss:$16 sps:$4 sm:$0xff]   ;;  %v18830_v42 = vld [vmem:[#allocation7 + $0x328] ss:$16 sps:$4 sm:$0xff]  }
 0x4d4   :  { %15123 = vmatprep.subr.bf16.mxu1 %v18766_v47  ;;  %v18838_v47 = vld [vmem:[#allocation7 + $0x34c] ss:$16 sps:$4 sm:$0xff]  }
 0x4d5   :  { %12001 = vmatmul.mubr.bf16.gmra.mrb[60].mxu0 %v24901_v39 }
 0x4d6   :  { %12905 = vmatmul.mubr.bf16.gmra.mrb[60].mxu1 %v24901_v39  ;;  %14672 = vmatpush1.bf16.msra.mxu0 %v18761_v32  ;;  %v18833_v32 = vld [vmem:[#allocation7 + $0x340] ss:$16 sps:$4 sm:$0xff]  }
 0x4d7   :  { %14675 = vmatprep.mubr.bf16.mxu0 %v24902_v28  ;;  %15124 = vmatpush1.bf16.msra.mxu1 %v18764_v20  ;;  %v18836_v20 = vld [vmem:[#allocation7 + $0x348] ss:$16 sps:$4 sm:$0xff]   ;;  %v24913_v39 = vld [vmem:[#allocation139_spill] sm:$0xff] }
 0x4d8   :  { %15127 = vmatprep.mubr.bf16.mxu1 %v24902_v28  ;;  %14673 = vmatprep.subr.bf16.mxu0 %v18769_v52  ;;  %v18841_v52 = vld [vmem:[#allocation7 + $0x364] ss:$16 sps:$4 sm:$0xff]   ;;  %v18839_v28 = vld [vmem:[#allocation7 + $0x360] ss:$16 sps:$4 sm:$0xff]  }
 0x4d9   :  { %15125 = vmatprep.subr.bf16.mxu1 %v18772_v5  ;;  %v18844_v5 = vld [vmem:[#allocation7 + $0x36c] ss:$16 sps:$4 sm:$0xff]  }
 0x4da   :  { %14674 = vmatpush1.bf16.msra.mxu0 %v18767_v27  ;;  %v24914_v27 = vld [vmem:[#allocation145_spill] sm:$0xff] }
 0x4db   :  { %15126 = vmatpush1.bf16.msra.mxu1 %v18770_v53  ;;  %14756 = vmatprep.subr.bf16.mxu0 %v18775_v37  ;;  %v18842_v53 = vld [vmem:[#allocation7 + $0x368] ss:$16 sps:$4 sm:$0xff]   ;;  %v18847_v37 = vld [vmem:[#allocation7 + $0x384] ss:$16 sps:$4 sm:$0xff]  }
 0x4dc   :  { %15208 = vmatprep.subr.bf16.mxu1 %v18778_v34  ;;  %v18850_v34 = vld [vmem:[#allocation7 + $0x38c] ss:$16 sps:$4 sm:$0xff]  }
 0x4dd   :  { %14676 = vmatmul.mubr.bf16.vlgmr.msra.gmra.mrb[64].mxu0 %v24903_v33 }
 0x4de   :  { %15128 = vmatmul.mubr.bf16.vlgmr.msra.gmra.mrb[64].mxu1 %v24903_v33  ;;  %14685 = vmatprep.mubr.bf16.mxu0 %v24904_v16  ;;  %v24915_v33 = vld [vmem:[#allocation143_spill] sm:$0xff] }
 0x4df   :  { %14757 = vmatpush1.bf16.msra.mxu0 %v18773_v10  ;;  %15137 = vmatprep.mubr.bf16.mxu1 %v24904_v16  ;;  %v18845_v10 = vld [vmem:[#allocation7 + $0x380] ss:$16 sps:$4 sm:$0xff]  }
 0x4e0   :  { %15209 = vmatpush1.bf16.msra.mxu1 %v18776_v24  ;;  %14758 = vmatprep.subr.bf16.mxu0 %v18781_v59  ;;  %v18848_v24 = vld [vmem:[#allocation7 + $0x388] ss:$16 sps:$4 sm:$0xff]   ;;  %v18853_v59 = vld [vmem:[#allocation7 + $0x3a4] ss:$16 sps:$4 sm:$0xff]   ;;  %v18851_v16 = vld [vmem:[#allocation7 + $0x3a0] ss:$16 sps:$4 sm:$0xff]  }
 0x4e1   :  { %15210 = vmatprep.subr.bf16.mxu1 %v18784_v35  ;;  %v18856_v35 = vld [vmem:[#allocation7 + $0x3ac] ss:$16 sps:$4 sm:$0xff]  }
 0x4e3   :  { %14759 = vmatpush1.bf16.msra.mxu0 %v18779_v19  ;;  %v18854_v19 = vld [vmem:[#allocation7 + $0x3a8] ss:$16 sps:$4 sm:$0xff]  }
 0x4e4   :  { %15211 = vmatpush1.bf16.msra.mxu1 %v18782_v18  ;;  %14760 = vmatprep.subr.bf16.mxu0 %v18787_v51  ;;  %v18859_v18 = vld [vmem:[#allocation7 + $0x3c4] ss:$16 sps:$4 sm:$0xff]   ;;  %v18862_v51 = vld [vmem:[#allocation7 + $0x3cc] ss:$16 sps:$4 sm:$0xff]  }
 0x4e5   :  { %14686 = vmatmul.mubr.bf16.gmra.mrb[68].mxu0 %v24905_v60  ;;  %15212 = vmatprep.subr.bf16.mxu1 %v18790_v50  ;;  %v18857_v50 = vld [vmem:[#allocation7 + $0x3c0] ss:$16 sps:$4 sm:$0xff]  }
 0x4e6   :  { %15138 = vmatmul.mubr.bf16.gmra.mrb[68].mxu1 %v24905_v60  ;;  %14695 = vmatprep.mubr.bf16.mxu0 %v24906_v55  ;;  %v18863_v60 = vld [vmem:[#allocation7 + $0x3e0] ss:$16 sps:$4 sm:$0xff]  }
 0x4e7   :  { %14761 = vmatpush1.bf16.msra.mxu0 %v18785_v2  ;;  %15147 = vmatprep.mubr.bf16.mxu1 %v24906_v55  ;;  %v18860_v2 = vld [vmem:[#allocation7 + $0x3c8] ss:$16 sps:$4 sm:$0xff]   ;;  %v18871_v55 = vld [vmem:[#allocation7 + $0x404] ss:$16 sps:$4 sm:$0xff]  }
 0x4e8   :  { %15213 = vmatpush1.bf16.msra.mxu1 %v18788_v25  ;;  %14762 = vmatprep.subr.bf16.mxu0 %v18793_v14  ;;  %v18865_v25 = vld [vmem:[#allocation7 + $0x3e4] ss:$16 sps:$4 sm:$0xff]   ;;  %v18868_v14 = vld [vmem:[#allocation7 + $0x3ec] ss:$16 sps:$4 sm:$0xff]  }
 0x4e9   :  { %15214 = vmatprep.subr.bf16.mxu1 %v18796_v3  ;;  %v18866_v3 = vld [vmem:[#allocation7 + $0x3e8] ss:$16 sps:$4 sm:$0xff]  }
 0x4eb   :  { %14763 = vmatpush1.bf16.msra.mxu0 %v18791_v40  ;;  %v18874_v40 = vld [vmem:[#allocation7 + $0x40c] ss:$16 sps:$4 sm:$0xff]  }
 0x4ec   :  { %15215 = vmatpush1.bf16.msra.mxu1 %v18794_v54  ;;  %14764 = vmatprep.subr.bf16.mxu0 %v18799_v13  ;;  %v18869_v54 = vld [vmem:[#allocation7 + $0x400] ss:$16 sps:$4 sm:$0xff]   ;;  %v18872_v13 = vld [vmem:[#allocation7 + $0x408] ss:$16 sps:$4 sm:$0xff]  }
 0x4ed   :  { %14696 = vmatmul.mubr.bf16.gmra.mrb[72].mxu0 %v24907_v9  ;;  %15216 = vmatprep.subr.bf16.mxu1 %v18802_v56  ;;  %v18877_v56 = vld [vmem:[#allocation7 + $0x424] ss:$16 sps:$4 sm:$0xff]  }
 0x4ee   :  { %15148 = vmatmul.mubr.bf16.gmra.mrb[72].mxu1 %v24907_v9  ;;  %14705 = vmatprep.mubr.bf16.mxu0 %v24908_v43  ;;  %v18878_v9 = vld [vmem:[#allocation7 + $0x428] ss:$16 sps:$4 sm:$0xff]  }
 0x4ef   :  { %14765 = vmatpush1.bf16.msra.mxu0 %v18797_v45  ;;  %15157 = vmatprep.mubr.bf16.mxu1 %v24908_v43  ;;  %v18880_v45 = vld [vmem:[#allocation7 + $0x42c] ss:$16 sps:$4 sm:$0xff]  }
 0x4f0   :  { %15217 = vmatpush1.bf16.msra.mxu1 %v18800_v0  ;;  %14766 = vmatprep.subr.bf16.mxu0 %v18805_v15  ;;  %v24918_v0 = vld [vmem:[#allocation120_spill] sm:$0xff]  ;;  %v18875_v15 = vld [vmem:[#allocation7 + $0x420] ss:$16 sps:$4 sm:$0xff]  }
 0x4f1   :  { %15218 = vmatprep.subr.bf16.mxu1 %v18808_v49  ;;  %v18883_v49 = vld [vmem:[#allocation7 + $0x444] ss:$16 sps:$4 sm:$0xff]   ;;  %v18886_v43 = vld [vmem:[#allocation7 + $0x44c] ss:$16 sps:$4 sm:$0xff]  }
 0x4f3   :  { %14767 = vmatpush1.bf16.msra.mxu0 %v18803_v23  ;;  %v18881_v23 = vld [vmem:[#allocation7 + $0x440] ss:$16 sps:$4 sm:$0xff]  }
 0x4f4   :  { %15219 = vmatpush1.bf16.msra.mxu1 %v18806_v11  ;;  %14768 = vmatprep.subr.bf16.mxu0 %v18811_v61  ;;  %v18884_v11 = vld [vmem:[#allocation7 + $0x448] ss:$16 sps:$4 sm:$0xff]   ;;  %v18889_v61 = vld [vmem:[#allocation7 + $0x464] ss:$16 sps:$4 sm:$0xff]  }
 0x4f5   :  { %14706 = vmatmul.mubr.bf16.gmra.mrb[76].mxu0 %v24909_v48  ;;  %15220 = vmatprep.subr.bf16.mxu1 %v18814_v17  ;;  %v24919_v17 = vld [vmem:[#allocation116_spill] sm:$0xff] }
 0x4f6   :  { %15158 = vmatmul.mubr.bf16.gmra.mrb[76].mxu1 %v24909_v48  ;;  %14715 = vmatprep.mubr.bf16.mxu0 %v24910_v7  ;;  %v18890_v48 = vld [vmem:[#allocation7 + $0x468] ss:$16 sps:$4 sm:$0xff]  }
 0x4f7   :  { %14769 = vmatpush1.bf16.msra.mxu0 %v18809_v58  ;;  %15167 = vmatprep.mubr.bf16.mxu1 %v24910_v7  ;;  %v18892_v58 = vld [vmem:[#allocation7 + $0x46c] ss:$16 sps:$4 sm:$0xff]  }
 0x4f8   :  { %15221 = vmatpush1.bf16.msra.mxu1 %v18812_v41  ;;  %14770 = vmatprep.subr.bf16.mxu0 %v18817_v21  ;;  %v24920_v41 = vld [vmem:[#allocation124_spill] sm:$0xff]  ;;  %v18887_v21 = vld [vmem:[#allocation7 + $0x460] ss:$16 sps:$4 sm:$0xff]  }
 0x4f9   :  { %15222 = vmatprep.subr.bf16.mxu1 %v18820_v31  ;;  %v18895_v31 = vld [vmem:[#allocation7 + $0x484] ss:$16 sps:$4 sm:$0xff]   ;;  %v18898_v7 = vld [vmem:[#allocation7 + $0x48c] ss:$16 sps:$4 sm:$0xff]  }
 0x4fb   :  { %14771 = vmatpush1.bf16.msra.mxu0 %v18815_v57  ;;  %v18893_v57 = vld [vmem:[#allocation7 + $0x480] ss:$16 sps:$4 sm:$0xff]  }
 0x4fc   :  { %15223 = vmatpush1.bf16.msra.mxu1 %v18818_v26  ;;  %14772 = vmatprep.subr.bf16.mxu0 %v18823_v22  ;;  %v18896_v26 = vld [vmem:[#allocation7 + $0x488] ss:$16 sps:$4 sm:$0xff]   ;;  %v18901_v22 = vld [vmem:[#allocation7 + $0x4a4] ss:$16 sps:$4 sm:$0xff]  }
 0x4fd   :  { %14716 = vmatmul.mubr.bf16.gmra.mrb[80].mxu0 %v24911_v46  ;;  %15224 = vmatprep.subr.bf16.mxu1 %v18826_v1  ;;  %v24921_v1 = vld [vmem:[#allocation122_spill] sm:$0xff] }
 0x4fe   :  { %15168 = vmatmul.mubr.bf16.gmra.mrb[80].mxu1 %v24911_v46  ;;  %14725 = vmatprep.mubr.bf16.mxu0 %v24912_v38  ;;  %v18902_v46 = vld [vmem:[#allocation7 + $0x4a8] ss:$16 sps:$4 sm:$0xff]  }
 0x4ff   :  { %14773 = vmatpush1.bf16.msra.mxu0 %v18821_v30  ;;  %15177 = vmatprep.mubr.bf16.mxu1 %v24912_v38  ;;  %v18904_v30 = vld [vmem:[#allocation7 + $0x4ac] ss:$16 sps:$4 sm:$0xff]  }
 0x500   :  { %15225 = vmatpush1.bf16.msra.mxu1 %v18824_v62  ;;  %14774 = vmatprep.subr.bf16.mxu0 %v18829_v6  ;;  %v24922_v62 = vld [vmem:[#allocation128_spill] sm:$0xff]  ;;  %v18899_v6 = vld [vmem:[#allocation7 + $0x4a0] ss:$16 sps:$4 sm:$0xff]  }
 0x501   :  { %15226 = vmatprep.subr.bf16.mxu1 %v18832_v63  ;;  %v18907_v63 = vld [vmem:[#allocation7 + $0x4c4] ss:$16 sps:$4 sm:$0xff]   ;;  %v18910_v38 = vld [vmem:[#allocation7 + $0x4cc] ss:$16 sps:$4 sm:$0xff]  }
 0x503   :  { %14775 = vmatpush1.bf16.msra.mxu0 %v18827_v8  ;;  %v18905_v8 = vld [vmem:[#allocation7 + $0x4c0] ss:$16 sps:$4 sm:$0xff]  }
 0x504   :  { %15227 = vmatpush1.bf16.msra.mxu1 %v18830_v42  ;;  %14776 = vmatprep.subr.bf16.mxu0 %v18835_v29  ;;  %v18908_v42 = vld [vmem:[#allocation7 + $0x4c8] ss:$16 sps:$4 sm:$0xff]   ;;  %v18913_v29 = vld [vmem:[#allocation7 + $0x4e4] ss:$16 sps:$4 sm:$0xff]  }
 0x505   :  { %14726 = vmatmul.mubr.bf16.gmra.mrb[84].mxu0 %v24913_v39  ;;  %15228 = vmatprep.subr.bf16.mxu1 %v18838_v47  ;;  %v24923_v47 = vld [vmem:[#allocation126_spill] sm:$0xff] }
 0x506   :  { %15178 = vmatmul.mubr.bf16.gmra.mrb[84].mxu1 %v24913_v39  ;;  %14735 = vmatprep.mubr.bf16.mxu0 %v24914_v27  ;;  %v18914_v39 = vld [vmem:[#allocation7 + $0x4e8] ss:$16 sps:$4 sm:$0xff]  }
 0x507   :  { %14777 = vmatpush1.bf16.msra.mxu0 %v18833_v32  ;;  %15187 = vmatprep.mubr.bf16.mxu1 %v24914_v27  ;;  %v18916_v32 = vld [vmem:[#allocation7 + $0x4ec] ss:$16 sps:$4 sm:$0xff]  }
 0x508   :  { %15229 = vmatpush1.bf16.msra.mxu1 %v18836_v20  ;;  %14778 = vmatprep.subr.bf16.mxu0 %v18841_v52  ;;  %v24924_v20 = vld [vmem:[#allocation134_spill] sm:$0xff]  ;;  %v18911_v52 = vld [vmem:[#allocation7 + $0x4e0] ss:$16 sps:$4 sm:$0xff]  }
 0x509   :  { %15230 = vmatprep.subr.bf16.mxu1 %v18844_v5  ;;  %v18919_v5 = vld [vmem:[#allocation7 + $0x504] ss:$16 sps:$4 sm:$0xff]   ;;  %v18922_v27 = vld [vmem:[#allocation7 + $0x50c] ss:$16 sps:$4 sm:$0xff]  }
 0x50b   :  { %14779 = vmatpush1.bf16.msra.mxu0 %v18839_v28  ;;  %v18917_v28 = vld [vmem:[#allocation7 + $0x500] ss:$16 sps:$4 sm:$0xff]  }
 0x50c   :  { %15231 = vmatpush1.bf16.msra.mxu1 %v18842_v53  ;;  %14780 = vmatprep.subr.bf16.mxu0 %v18847_v37  ;;  %v18920_v53 = vld [vmem:[#allocation7 + $0x508] ss:$16 sps:$4 sm:$0xff]   ;;  %v18925_v37 = vld [vmem:[#allocation7 + $0x524] ss:$16 sps:$4 sm:$0xff]  }
 0x50d   :  { %14736 = vmatmul.mubr.bf16.gmra.mrb[88].mxu0 %v24915_v33  ;;  %15232 = vmatprep.subr.bf16.mxu1 %v18850_v34  ;;  %v24925_v34 = vld [vmem:[#allocation132_spill] sm:$0xff] }
 0x50e   :  { %15188 = vmatmul.mubr.bf16.gmra.mrb[88].mxu1 %v24915_v33  ;;  %14745 = vmatprep.mubr.bf16.mxu0 %v23438_v4  ;;  %v18926_v33 = vld [vmem:[#allocation7 + $0x528] ss:$16 sps:$4 sm:$0xff]  }
 0x50f   :  { %14781 = vmatpush1.bf16.msra.mxu0 %v18845_v10  ;;  %15197 = vmatprep.mubr.bf16.mxu1 %v23438_v4  ;;  %v24916_v4 = vld [vmem:[#allocation82_spill] sm:$0xff] }
 0x510   :  { %15233 = vmatpush1.bf16.msra.mxu1 %v18848_v24  ;;  %14782 = vmatprep.subr.bf16.mxu0 %v18853_v59  ;;  %v18928_v10 = vld [vmem:[#allocation7 + $0x52c] ss:$16 sps:$4 sm:$0xff]   ;;  %v18923_v59 = vld [vmem:[#allocation7 + $0x520] ss:$16 sps:$4 sm:$0xff]  }
 0x511   :  { %15234 = vmatprep.subr.bf16.mxu1 %v18856_v35  ;;  %v24926_v24 = vld [vmem:[#allocation140_spill] sm:$0xff]  ;;  %v18931_v35 = vld [vmem:[#allocation7 + $0x544] ss:$16 sps:$4 sm:$0xff]  }
 0x513   :  { %14783 = vmatpush1.bf16.msra.mxu0 %v18851_v16  ;;  %v18934_v16 = vld [vmem:[#allocation7 + $0x54c] ss:$16 sps:$4 sm:$0xff]  }
 0x514   :  { %15235 = vmatpush1.bf16.msra.mxu1 %v18854_v19  ;;  %14784 = vmatprep.subr.bf16.mxu0 %v18859_v18  ;;  %v18929_v19 = vld [vmem:[#allocation7 + $0x540] ss:$16 sps:$4 sm:$0xff]   ;;  %v18932_v18 = vld [vmem:[#allocation7 + $0x548] ss:$16 sps:$4 sm:$0xff]  }
 0x515   :  { %14746 = vmatmul.mubr.bf16.gmra.mrb[92].mxu0 %v23433_v36  ;;  %15236 = vmatprep.subr.bf16.mxu1 %v18862_v51  ;;  %v18937_v51 = vld [vmem:[#allocation7 + $0x564] ss:$16 sps:$4 sm:$0xff]  }
 0x516   :  { %15198 = vmatmul.mubr.bf16.gmra.mrb[92].mxu1 %v23433_v36  ;;  %14788 = vmatprep.mubr.bf16.mxu0 %v24916_v4  ;;  %v24917_v36 = vld [vmem:[#allocation113_spill] sm:$0xff] }
 0x517   :  { %14785 = vmatpush1.bf16.msra.mxu0 %v18857_v50  ;;  %15240 = vmatprep.mubr.bf16.mxu1 %v24916_v4  ;;  %v24927_v50 = vld [vmem:[#allocation136_spill] sm:$0xff] }
 0x518   :  { %15237 = vmatpush1.bf16.msra.mxu1 %v18860_v2  ;;  %14786 = vmatprep.subr.bf16.mxu0 %v18865_v25  ;;  %v18940_v2 = vld [vmem:[#allocation7 + $0x56c] ss:$16 sps:$4 sm:$0xff]   ;;  %v18938_v4 = vld [vmem:[#allocation7 + $0x568] ss:$16 sps:$4 sm:$0xff]  }
 0x519   :  { %15238 = vmatprep.subr.bf16.mxu1 %v18868_v14  ;;  %v24928_v25 = vld [vmem:[#allocation144_spill] sm:$0xff]  ;;  %v18935_v14 = vld [vmem:[#allocation7 + $0x560] ss:$16 sps:$4 sm:$0xff]  }
 0x51b   :  { %14787 = vmatpush1.bf16.msra.mxu0 %v18863_v60  ;;  %v18943_v60 = vld [vmem:[#allocation7 + $0x584] ss:$16 sps:$4 sm:$0xff]  }
 0x51c   :  { %15239 = vmatpush1.bf16.msra.mxu1 %v18866_v3  ;;  %14869 = vmatprep.subr.bf16.mxu0 %v18871_v55  ;;  %v18946_v3 = vld [vmem:[#allocation7 + $0x58c] ss:$16 sps:$4 sm:$0xff]   ;;  %v18941_v55 = vld [vmem:[#allocation7 + $0x580] ss:$16 sps:$4 sm:$0xff]  }
 0x51d   :  { %15321 = vmatprep.subr.bf16.mxu1 %v18874_v40  ;;  %v18944_v40 = vld [vmem:[#allocation7 + $0x588] ss:$16 sps:$4 sm:$0xff]  }
 0x51e   :  { %14789 = vmatmul.mubr.bf16.vlgmr.msra.gmra.mrb[64].mxu0 %v24917_v36 }
 0x51f   :  { %15241 = vmatmul.mubr.bf16.vlgmr.msra.gmra.mrb[64].mxu1 %v24917_v36  ;;  %14798 = vmatprep.mubr.bf16.mxu0 %v24918_v0  ;;  %v18947_v36 = vld [vmem:[#allocation7 + $0x5a0] ss:$16 sps:$4 sm:$0xff]  }
 0x520   :  { %15250 = vmatprep.mubr.bf16.mxu1 %v24918_v0  ;;  %14870 = vmatpush1.bf16.msra.mxu0 %v18869_v54  ;;  %v18949_v54 = vld [vmem:[#allocation7 + $0x5a4] ss:$16 sps:$4 sm:$0xff]  }
 0x521   :  { %15322 = vmatpush1.bf16.msra.mxu1 %v18872_v13  ;;  %14871 = vmatprep.subr.bf16.mxu0 %v18877_v56  ;;  %v24929_v13 = vld [vmem:[#allocation142_spill] sm:$0xff]  ;;  %v18955_v0 = vld [vmem:[#allocation7 + $0x5c4] ss:$16 sps:$4 sm:$0xff]  }
 0x522   :  { %15323 = vmatprep.subr.bf16.mxu1 %v18880_v45  ;;  %v18952_v56 = vld [vmem:[#allocation7 + $0x5ac] ss:$16 sps:$4 sm:$0xff]   ;;  %v18950_v45 = vld [vmem:[#allocation7 + $0x5a8] ss:$16 sps:$4 sm:$0xff]  }
 0x524   :  { %14872 = vmatpush1.bf16.msra.mxu0 %v18875_v15  ;;  %v18958_v15 = vld [vmem:[#allocation7 + $0x5cc] ss:$16 sps:$4 sm:$0xff]  }
 0x525   :  { %15324 = vmatpush1.bf16.msra.mxu1 %v18878_v9  ;;  %14873 = vmatprep.subr.bf16.mxu0 %v18883_v49  ;;  %v18953_v9 = vld [vmem:[#allocation7 + $0x5c0] ss:$16 sps:$4 sm:$0xff]   ;;  %v18956_v49 = vld [vmem:[#allocation7 + $0x5c8] ss:$16 sps:$4 sm:$0xff]  }
 0x526   :  { %14799 = vmatmul.mubr.bf16.gmra.mrb[68].mxu0 %v24919_v17  ;;  %15325 = vmatprep.subr.bf16.mxu1 %v18886_v43  ;;  %v18961_v43 = vld [vmem:[#allocation7 + $0x5e4] ss:$16 sps:$4 sm:$0xff]  }
 0x527   :  { %15251 = vmatmul.mubr.bf16.gmra.mrb[68].mxu1 %v24919_v17  ;;  %14808 = vmatprep.mubr.bf16.mxu0 %v24920_v41  ;;  %v18970_v17 = vld [vmem:[#allocation7 + $0x60c] ss:$16 sps:$4 sm:$0xff]  }
 0x528   :  { %15260 = vmatprep.mubr.bf16.mxu1 %v24920_v41  ;;  %14874 = vmatpush1.bf16.msra.mxu0 %v18881_v23  ;;  %v18964_v23 = vld [vmem:[#allocation7 + $0x5ec] ss:$16 sps:$4 sm:$0xff]  }
 0x529   :  { %15326 = vmatpush1.bf16.msra.mxu1 %v18884_v11  ;;  %14875 = vmatprep.subr.bf16.mxu0 %v18889_v61  ;;  %v18962_v11 = vld [vmem:[#allocation7 + $0x5e8] ss:$16 sps:$4 sm:$0xff]   ;;  %v18967_v61 = vld [vmem:[#allocation7 + $0x604] ss:$16 sps:$4 sm:$0xff]  }
 0x52a   :  { %15327 = vmatprep.subr.bf16.mxu1 %v18892_v58 }
 0x52c   :  { %14876 = vmatpush1.bf16.msra.mxu0 %v18887_v21 }
 0x52d   :  { %15328 = vmatpush1.bf16.msra.mxu1 %v18890_v48  ;;  %14877 = vmatprep.subr.bf16.mxu0 %v18895_v31 }
 0x52e   :  { %14809 = vmatmul.mubr.bf16.gmra.mrb[72].mxu0 %v24921_v1  ;;  %15329 = vmatprep.subr.bf16.mxu1 %v18898_v7 }
 0x52f   :  { %15261 = vmatmul.mubr.bf16.gmra.mrb[72].mxu1 %v24921_v1  ;;  %14818 = vmatprep.mubr.bf16.mxu0 %v24922_v62 }
 0x530   :  { %15270 = vmatprep.mubr.bf16.mxu1 %v24922_v62  ;;  %14878 = vmatpush1.bf16.msra.mxu0 %v18893_v57 }
 0x531   :  { %15330 = vmatpush1.bf16.msra.mxu1 %v18896_v26  ;;  %14879 = vmatprep.subr.bf16.mxu0 %v18901_v22 }
 0x532   :  { %15331 = vmatprep.subr.bf16.mxu1 %v18904_v30 }
 0x534   :  { %14880 = vmatpush1.bf16.msra.mxu0 %v18899_v6 }
 0x535   :  { %15332 = vmatpush1.bf16.msra.mxu1 %v18902_v46  ;;  %14881 = vmatprep.subr.bf16.mxu0 %v18907_v63 }
 0x536   :  { %14819 = vmatmul.mubr.bf16.gmra.mrb[76].mxu0 %v24923_v47  ;;  %15333 = vmatprep.subr.bf16.mxu1 %v18910_v38 }
 0x537   :  { %15271 = vmatmul.mubr.bf16.gmra.mrb[76].mxu1 %v24923_v47  ;;  %14828 = vmatprep.mubr.bf16.mxu0 %v24924_v20  ;;  %v18968_v47 = vld [vmem:[#allocation7 + $0x608] ss:$16 sps:$4 sm:$0xff]  }
 0x538   :  { %15280 = vmatprep.mubr.bf16.mxu1 %v24924_v20  ;;  %14882 = vmatpush1.bf16.msra.mxu0 %v18905_v8  ;;  %v18973_v20 = vld [vmem:[#allocation7 + $0x624] ss:$16 sps:$4 sm:$0xff]  }
 0x539   :  { %15334 = vmatpush1.bf16.msra.mxu1 %v18908_v42  ;;  %14883 = vmatprep.subr.bf16.mxu0 %v18913_v29  ;;  %v18965_v29 = vld [vmem:[#allocation7 + $0x600] ss:$16 sps:$4 sm:$0xff]  }
 0x53a   :  { %15335 = vmatprep.subr.bf16.mxu1 %v18916_v32 }
 0x53c   :  { %14884 = vmatpush1.bf16.msra.mxu0 %v18911_v52  ;;  %v18976_v52 = vld [vmem:[#allocation7 + $0x62c] ss:$16 sps:$4 sm:$0xff]  }
 0x53d   :  { %15336 = vmatpush1.bf16.msra.mxu1 %v18914_v39  ;;  %14885 = vmatprep.subr.bf16.mxu0 %v18919_v5 }
 0x53e   :  { %14829 = vmatmul.mubr.bf16.gmra.mrb[80].mxu0 %v24925_v34  ;;  %15337 = vmatprep.subr.bf16.mxu1 %v18922_v27 }
 0x53f   :  { %15281 = vmatmul.mubr.bf16.gmra.mrb[80].mxu1 %v24925_v34  ;;  %14838 = vmatprep.mubr.bf16.mxu0 %v24926_v24  ;;  %v18974_v34 = vld [vmem:[#allocation7 + $0x628] ss:$16 sps:$4 sm:$0xff]  }
 0x540   :  { %15290 = vmatprep.mubr.bf16.mxu1 %v24926_v24  ;;  %14886 = vmatpush1.bf16.msra.mxu0 %v18917_v28  ;;  %v18971_v28 = vld [vmem:[#allocation7 + $0x620] ss:$16 sps:$4 sm:$0xff]  }
 0x541   :  { %15338 = vmatpush1.bf16.msra.mxu1 %v18920_v53  ;;  %14887 = vmatprep.subr.bf16.mxu0 %v18925_v37 }
 0x542   :  { %15339 = vmatprep.subr.bf16.mxu1 %v18928_v10  ;;  %v18979_v10 = vld [vmem:[#allocation7 + $0x644] ss:$16 sps:$4 sm:$0xff]  }
 0x544   :  { %14888 = vmatpush1.bf16.msra.mxu0 %v18923_v59 }
 0x545   :  { %15340 = vmatpush1.bf16.msra.mxu1 %v18926_v33  ;;  %14889 = vmatprep.subr.bf16.mxu0 %v18931_v35 }
 0x546   :  { %14839 = vmatmul.mubr.bf16.gmra.mrb[84].mxu0 %v24927_v50  ;;  %15341 = vmatprep.subr.bf16.mxu1 %v18934_v16  ;;  %v18982_v16 = vld [vmem:[#allocation7 + $0x64c] ss:$16 sps:$4 sm:$0xff]  }
 0x547   :  { %15291 = vmatmul.mubr.bf16.gmra.mrb[84].mxu1 %v24927_v50  ;;  %14848 = vmatprep.mubr.bf16.mxu0 %v24928_v25 }
 0x548   :  { %15300 = vmatprep.mubr.bf16.mxu1 %v24928_v25  ;;  %14890 = vmatpush1.bf16.msra.mxu0 %v18929_v19 }
 0x549   :  { %15342 = vmatpush1.bf16.msra.mxu1 %v18932_v18  ;;  %14891 = vmatprep.subr.bf16.mxu0 %v18937_v51 }
 0x54a   :  { %15343 = vmatprep.subr.bf16.mxu1 %v18940_v2 }
 0x54c   :  { %14892 = vmatpush1.bf16.msra.mxu0 %v18935_v14 }
 0x54d   :  { %15344 = vmatpush1.bf16.msra.mxu1 %v18938_v4  ;;  %14893 = vmatprep.subr.bf16.mxu0 %v18943_v60 }
 0x54e   :  { %14849 = vmatmul.mubr.bf16.gmra.mrb[88].mxu0 %v24929_v13  ;;  %15345 = vmatprep.subr.bf16.mxu1 %v18946_v3 }
 0x54f   :  { %15301 = vmatmul.mubr.bf16.gmra.mrb[88].mxu1 %v24929_v13  ;;  %14858 = vmatprep.mubr.bf16.mxu0 %v23441_v44  ;;  %v18985_v13 = vld [vmem:[#allocation7 + $0x664] ss:$16 sps:$4 sm:$0xff]  }
 0x550   :  { %15310 = vmatprep.mubr.bf16.mxu1 %v23441_v44  ;;  %14894 = vmatpush1.bf16.msra.mxu0 %v18941_v55  ;;  %v18959_v44 = vld [vmem:[#allocation7 + $0x5e0] ss:$16 sps:$4 sm:$0xff]  }
 0x551   :  { %15346 = vmatpush1.bf16.msra.mxu1 %v18944_v40  ;;  %14895 = vmatprep.subr.bf16.mxu0 %v18949_v54  ;;  %v18977_v55 = vld [vmem:[#allocation7 + $0x640] ss:$16 sps:$4 sm:$0xff]   ;;  %v18980_v40 = vld [vmem:[#allocation7 + $0x648] ss:$16 sps:$4 sm:$0xff]  }
 0x552   :  { %15347 = vmatprep.subr.bf16.mxu1 %v18952_v56  ;;  %v18988_v56 = vld [vmem:[#allocation7 + $0x66c] ss:$16 sps:$4 sm:$0xff]  }
 0x554   :  { %14896 = vmatpush1.bf16.msra.mxu0 %v18947_v36 }
 0x555   :  { %15348 = vmatpush1.bf16.msra.mxu1 %v18950_v45  ;;  %14897 = vmatprep.subr.bf16.mxu0 %v18955_v0 }
 0x556   :  { %14859 = vmatmul.mubr.bf16.gmra.mrb[92].mxu0 %v23436_v12  ;;  %15349 = vmatprep.subr.bf16.mxu1 %v18958_v15  ;;  %v18983_v15 = vld [vmem:[#allocation7 + $0x660] ss:$16 sps:$4 sm:$0xff]  }
 0x557   :  { %15311 = vmatmul.mubr.bf16.gmra.mrb[92].mxu1 %v23436_v12 }
 0x558   :  { %14898 = vmatpush1.bf16.msra.mxu0 %v18953_v9 }
 0x559   :  { %15350 = vmatpush1.bf16.msra.mxu1 %v18956_v49  ;;  %14899 = vmatprep.subr.bf16.mxu0 %v18961_v43  ;;  %v18986_v43 = vld [vmem:[#allocation7 + $0x668] ss:$16 sps:$4 sm:$0xff]  }
 0x55a   :  { %15351 = vmatprep.subr.bf16.mxu1 %v18964_v23  ;;  %v18991_v23 = vld [vmem:[#allocation7 + $0x684] ss:$16 sps:$4 sm:$0xff]  }
 0x55c   :  { %14900 = vmatpush1.bf16.msra.mxu0 %v18959_v44 }
 0x55d   :  { %15352 = vmatpush1.bf16.msra.mxu1 %v18962_v11  ;;  %14982 = vmatprep.subr.bf16.mxu0 %v18967_v61 }
 0x55e   :  { %15434 = vmatprep.subr.bf16.mxu1 %v18970_v17 }
 0x570   :  { %v11932_v58 = vpop.f32.mrb[32].mxu0 }
 0x571   :  { %v12836_v41 = vpop.f32.mrb[32].mxu1  ;;  %v11934_v21 = vpop.f32.mrb[33].mxu0  ;;  %v12919_v7 = vmax.f32 %v11932_v58, 0.0  ;;  %v18994_v58 = vld [vmem:[#allocation7 + $0x68c] ss:$16 sps:$4 sm:$0xff]  }
 0x572   :  { %v12838_v48 = vpop.f32.mrb[33].mxu1  ;;  %v11936_v31 = vpop.f32.mrb[34].mxu0  ;;  %v12921_v22 = vmax.f32 %v12836_v41, 0.0  ;;  %v12920_v1 = vmax.f32 %v11934_v21, 0.0 }
 0x573   :  { %v12927_v57 = vmax.f32 %v11936_v31, 0.0  ;;  %v12840_v12 = vpop.f32.mrb[34].mxu1  ;;  %v11938_v26 = vpop.f32.mrb[35].mxu0  ;;  %v12922_v46 = vmax.f32 %v12838_v48, 0.0 }
 0x574   :  { %v12929_v30 = vmax.f32 %v12840_v12, 0.0  ;;  %v12928_v62 = vmax.f32 %v11938_v26, 0.0  ;;  %v12842_v6 = vpop.f32.mrb[35].mxu1 }
 0x575   :  { %v13047_v63 = vpack.c.bf16 %v12927_v57, %v12919_v7  ;;  %v12930_v38 = vmax.f32 %v12842_v6, 0.0 }
 0x576   :  { %v23671_v8 = vpack.c.bf16 %v12929_v30, %v12921_v22  ;;  %v13048_v42 = vpack.c.bf16 %v12928_v62, %v12920_v1  ;;  %v18989_v30 = vld [vmem:[#allocation7 + $0x680] ss:$16 sps:$4 sm:$0xff]   ;;  %v18992_v62 = vld [vmem:[#allocation7 + $0x688] ss:$16 sps:$4 sm:$0xff]  }
 0x577   :  { %v23673_v32 = vpack.c.bf16 %v12930_v38, %v12922_v46  ;;  %v18997_v46 = vld [vmem:[#allocation7 + $0x6a4] ss:$16 sps:$4 sm:$0xff]  }
 0x578   :  { %v11942_v39 = vpop.f32.mrb[36].mxu0  ;;  %14901 = vmatprep.mubr.bf16.mxu0 %v13048_v42  ;;  %15353 = vmatprep.mubr.bf16.mxu1 %v13048_v42 }
 0x579   :  { %v12846_v5 = vpop.f32.mrb[36].mxu1  ;;  %v11944_v27 = vpop.f32.mrb[37].mxu0  ;;  %14902 = vmatmul.mubr.bf16.vlgmr.msra.gmra.mrb[64].mxu0 %v13047_v63  ;;  %15354 = vmatmul.mubr.bf16.vlgmr.msra.gmra.mrb[64].mxu1 %v13047_v63  ;;  %v12935_v24 = vmax.f32 %v11942_v39, 0.0  ;;  %v19000_v63 = vld [vmem:[#allocation7 + $0x6ac] ss:$16 sps:$4 sm:$0xff]  }
 0x57a   :  { %v12848_v53 = vpop.f32.mrb[37].mxu1  ;;  %v11946_v37 = vpop.f32.mrb[38].mxu0  ;;  %14983 = vmatpush1.bf16.msra.mxu0 %v18965_v29  ;;  %15435 = vmatpush1.bf16.msra.mxu1 %v18968_v47  ;;  %v12937_v19 = vmax.f32 %v12846_v5, 0.0  ;;  %v12936_v18 = vmax.f32 %v11944_v27, 0.0  ;;  %v18995_v47 = vld [vmem:[#allocation7 + $0x6a0] ss:$16 sps:$4 sm:$0xff]  }
 0x57b   :  { %v12943_v59 = vmax.f32 %v11946_v37, 0.0  ;;  %v12850_v33 = vpop.f32.mrb[38].mxu1  ;;  %v11948_v35 = vpop.f32.mrb[39].mxu0  ;;  %14984 = vmatprep.subr.bf16.mxu0 %v18973_v20  ;;  %15436 = vmatprep.subr.bf16.mxu1 %v18976_v52  ;;  %v12938_v25 = vmax.f32 %v12848_v53, 0.0  ;;  %v18998_v39 = vld [vmem:[#allocation7 + $0x6a8] ss:$16 sps:$4 sm:$0xff]  }
 0x57c   :  { %v12945_v51 = vmax.f32 %v12850_v33, 0.0  ;;  %v12944_v50 = vmax.f32 %v11948_v35, 0.0  ;;  %v12852_v2 = vpop.f32.mrb[39].mxu1  ;;  %v19003_v5 = vld [vmem:[#allocation7 + $0x6c4] ss:$16 sps:$4 sm:$0xff]  }
 0x57d   :  { %v13055_v14 = vpack.c.bf16 %v12943_v59, %v12935_v24  ;;  %v12946_v4 = vmax.f32 %v12852_v2, 0.0  ;;  %v19001_v2 = vld [vmem:[#allocation7 + $0x6c0] ss:$16 sps:$4 sm:$0xff]  }
 0x57e   :  { %v23675_v60 = vpack.c.bf16 %v12945_v51, %v12937_v19  ;;  %v13056_v3 = vpack.c.bf16 %v12944_v50, %v12936_v18  ;;  %14985 = vmatpush1.bf16.msra.mxu0 %v18971_v28  ;;  %15437 = vmatpush1.bf16.msra.mxu1 %v18974_v34  ;;  %v19006_v34 = vld [vmem:[#allocation7 + $0x6cc] ss:$16 sps:$4 sm:$0xff]  }
 0x57f   :  { %v23677_v54 = vpack.c.bf16 %v12946_v4, %v12938_v25  ;;  %14986 = vmatprep.subr.bf16.mxu0 %v18979_v10  ;;  %15438 = vmatprep.subr.bf16.mxu1 %v18982_v16  ;;  %v19004_v25 = vld [vmem:[#allocation7 + $0x6c8] ss:$16 sps:$4 sm:$0xff]   ;;  %v19009_v4 = vld [vmem:[#allocation7 + $0x6e4] ss:$16 sps:$4 sm:$0xff]  }
 0x580   :  { %v11952_v36 = vpop.f32.mrb[40].mxu0  ;;  %14911 = vmatprep.mubr.bf16.mxu0 %v13056_v3  ;;  %15363 = vmatprep.mubr.bf16.mxu1 %v13056_v3  ;;  %v19012_v3 = vld [vmem:[#allocation7 + $0x6ec] ss:$16 sps:$4 sm:$0xff]  }
 0x581   :  { %v12856_v45 = vpop.f32.mrb[40].mxu1  ;;  %v11954_v0 = vpop.f32.mrb[41].mxu0  ;;  %14912 = vmatmul.mubr.bf16.gmra.mrb[68].mxu0 %v13055_v14  ;;  %15364 = vmatmul.mubr.bf16.gmra.mrb[68].mxu1 %v13055_v14  ;;  %v12951_v44 = vmax.f32 %v11952_v36, 0.0 }
 0x582   :  { %v12858_v9 = vpop.f32.mrb[41].mxu1  ;;  %v11956_v49 = vpop.f32.mrb[42].mxu0  ;;  %14987 = vmatpush1.bf16.msra.mxu0 %v18977_v55  ;;  %15439 = vmatpush1.bf16.msra.mxu1 %v18980_v40  ;;  %v12953_v41 = vmax.f32 %v12856_v45, 0.0  ;;  %v12952_v21 = vmax.f32 %v11954_v0, 0.0  ;;  %v19010_v0 = vld [vmem:[#allocation7 + $0x6e8] ss:$16 sps:$4 sm:$0xff]  }
 0x583   :  { %v12959_v11 = vmax.f32 %v11956_v49, 0.0  ;;  %v12860_v61 = vpop.f32.mrb[42].mxu1  ;;  %v11958_v17 = vpop.f32.mrb[43].mxu0  ;;  %14988 = vmatprep.subr.bf16.mxu0 %v18985_v13  ;;  %15440 = vmatprep.subr.bf16.mxu1 %v18988_v56  ;;  %v12954_v57 = vmax.f32 %v12858_v9, 0.0  ;;  %v19007_v56 = vld [vmem:[#allocation7 + $0x6e0] ss:$16 sps:$4 sm:$0xff]  }
 0x584   :  { %v12961_v48 = vmax.f32 %v12860_v61, 0.0  ;;  %v12960_v31 = vmax.f32 %v11958_v17, 0.0  ;;  %v12862_v7 = vpop.f32.mrb[43].mxu1 }
 0x585   :  { %v13063_v12 = vpack.c.bf16 %v12959_v11, %v12951_v44  ;;  %v12962_v26 = vmax.f32 %v12862_v7, 0.0  ;;  %v19018_v44 = vld [vmem:[#allocation7 + $0x70c] ss:$16 sps:$4 sm:$0xff]  }
 0x586   :  { %v23679_v22 = vpack.c.bf16 %v12961_v48, %v12953_v41  ;;  %v13064_v1 = vpack.c.bf16 %v12960_v31, %v12952_v21  ;;  %14989 = vmatpush1.bf16.msra.mxu0 %v18983_v15  ;;  %15441 = vmatpush1.bf16.msra.mxu1 %v18986_v43  ;;  %v19015_v15 = vld [vmem:[#allocation7 + $0x704] ss:$16 sps:$4 sm:$0xff]  }
 0x587   :  { %v23681_v6 = vpack.c.bf16 %v12962_v26, %v12954_v57  ;;  %14990 = vmatprep.subr.bf16.mxu0 %v18991_v23  ;;  %15442 = vmatprep.subr.bf16.mxu1 %v18994_v58  ;;  %v19016_v26 = vld [vmem:[#allocation7 + $0x708] ss:$16 sps:$4 sm:$0xff]  }
 0x588   :  { %v11962_v38 = vpop.f32.mrb[44].mxu0  ;;  %14921 = vmatprep.mubr.bf16.mxu0 %v13064_v1  ;;  %15373 = vmatprep.mubr.bf16.mxu1 %v13064_v1 }
 0x589   :  { %v12866_v42 = vpop.f32.mrb[44].mxu1  ;;  %v11964_v29 = vpop.f32.mrb[45].mxu0  ;;  %14922 = vmatmul.mubr.bf16.gmra.mrb[72].mxu0 %v13063_v12  ;;  %15374 = vmatmul.mubr.bf16.gmra.mrb[72].mxu1 %v13063_v12  ;;  %v12967_v27 = vmax.f32 %v11962_v38, 0.0  ;;  %v19013_v12 = vld [vmem:[#allocation7 + $0x700] ss:$16 sps:$4 sm:$0xff]  }
 0x58a   :  { %v12868_v20 = vpop.f32.mrb[45].mxu1  ;;  %v11966_v52 = vpop.f32.mrb[46].mxu0  ;;  %14991 = vmatpush1.bf16.msra.mxu0 %v18989_v30  ;;  %15443 = vmatpush1.bf16.msra.mxu1 %v18992_v62  ;;  %v12969_v10 = vmax.f32 %v12866_v42, 0.0  ;;  %v12968_v24 = vmax.f32 %v11964_v29, 0.0  ;;  %v19021_v30 = vld [vmem:[#allocation7 + $0x724] ss:$16 sps:$4 sm:$0xff]  }
 0x58b   :  { %v12975_v28 = vmax.f32 %v11966_v52, 0.0  ;;  %v12870_v53 = vpop.f32.mrb[46].mxu1  ;;  %v11968_v37 = vpop.f32.mrb[47].mxu0  ;;  %14992 = vmatprep.subr.bf16.mxu0 %v18997_v46  ;;  %15444 = vmatprep.subr.bf16.mxu1 %v19000_v63  ;;  %v12970_v16 = vmax.f32 %v12868_v20, 0.0  ;;  %v19024_v62 = vld [vmem:[#allocation7 + $0x72c] ss:$16 sps:$4 sm:$0xff]  }
 0x58c   :  { %v12977_v59 = vmax.f32 %v12870_v53, 0.0  ;;  %v12976_v33 = vmax.f32 %v11968_v37, 0.0  ;;  %v12872_v35 = vpop.f32.mrb[47].mxu1  ;;  %v19019_v42 = vld [vmem:[#allocation7 + $0x720] ss:$16 sps:$4 sm:$0xff]  }
 0x58d   :  { %v13071_v19 = vpack.c.bf16 %v12975_v28, %v12967_v27  ;;  %v12978_v18 = vmax.f32 %v12872_v35, 0.0  ;;  %v19022_v20 = vld [vmem:[#allocation7 + $0x728] ss:$16 sps:$4 sm:$0xff]   ;;  %v19027_v52 = vld [vmem:[#allocation7 + $0x744] ss:$16 sps:$4 sm:$0xff]  }
 0x58e   :  { %v23683_v51 = vpack.c.bf16 %v12977_v59, %v12969_v10  ;;  %v13072_v50 = vpack.c.bf16 %v12976_v33, %v12968_v24  ;;  %14993 = vmatpush1.bf16.msra.mxu0 %v18995_v47  ;;  %15445 = vmatpush1.bf16.msra.mxu1 %v18998_v39  ;;  %v19030_v53 = vld [vmem:[#allocation7 + $0x74c] ss:$16 sps:$4 sm:$0xff]  }
 0x58f   :  { %v23685_v14 = vpack.c.bf16 %v12978_v18, %v12970_v16  ;;  %14994 = vmatprep.subr.bf16.mxu0 %v19003_v5  ;;  %15446 = vmatprep.subr.bf16.mxu1 %v19006_v34 }
 0x590   :  { %v11972_v55 = vpop.f32.mrb[48].mxu0  ;;  %14931 = vmatprep.mubr.bf16.mxu0 %v13072_v50  ;;  %15383 = vmatprep.mubr.bf16.mxu1 %v13072_v50  ;;  %v19025_v50 = vld [vmem:[#allocation7 + $0x740] ss:$16 sps:$4 sm:$0xff]  }
 0x591   :  { %v12876_v40 = vpop.f32.mrb[48].mxu1  ;;  %v11974_v13 = vpop.f32.mrb[49].mxu0  ;;  %14932 = vmatmul.mubr.bf16.gmra.mrb[76].mxu0 %v13071_v19  ;;  %15384 = vmatmul.mubr.bf16.gmra.mrb[76].mxu1 %v13071_v19  ;;  %v12983_v9 = vmax.f32 %v11972_v55, 0.0 }
 0x592   :  { %v12878_v36 = vpop.f32.mrb[49].mxu1  ;;  %v11976_v45 = vpop.f32.mrb[50].mxu0  ;;  %14995 = vmatpush1.bf16.msra.mxu0 %v19001_v2  ;;  %15447 = vmatpush1.bf16.msra.mxu1 %v19004_v25  ;;  %v12985_v11 = vmax.f32 %v12876_v40, 0.0  ;;  %v12984_v61 = vmax.f32 %v11974_v13, 0.0  ;;  %v19028_v2 = vld [vmem:[#allocation7 + $0x748] ss:$16 sps:$4 sm:$0xff]  }
 0x593   :  { %v12991_v49 = vmax.f32 %v11976_v45, 0.0  ;;  %v12880_v43 = vpop.f32.mrb[50].mxu1  ;;  %v11978_v23 = vpop.f32.mrb[51].mxu0  ;;  %14996 = vmatprep.subr.bf16.mxu0 %v19009_v4  ;;  %15448 = vmatprep.subr.bf16.mxu1 %v19012_v3  ;;  %v12986_v21 = vmax.f32 %v12878_v36, 0.0  ;;  %v19033_v4 = vld [vmem:[#allocation7 + $0x764] ss:$16 sps:$4 sm:$0xff]  }
 0x594   :  { %v12993_v17 = vmax.f32 %v12880_v43, 0.0  ;;  %v12992_v58 = vmax.f32 %v11978_v23, 0.0  ;;  %v12882_v41 = vpop.f32.mrb[51].mxu1  ;;  %v19036_v3 = vld [vmem:[#allocation7 + $0x76c] ss:$16 sps:$4 sm:$0xff]  }
 0x595   :  { %v13079_v48 = vpack.c.bf16 %v12991_v49, %v12983_v9  ;;  %v12994_v31 = vmax.f32 %v12882_v41, 0.0 }
 0x596   :  { %v23687_v7 = vpack.c.bf16 %v12993_v17, %v12985_v11  ;;  %v13080_v57 = vpack.c.bf16 %v12992_v58, %v12984_v61  ;;  %14997 = vmatpush1.bf16.msra.mxu0 %v19007_v56  ;;  %15449 = vmatpush1.bf16.msra.mxu1 %v19010_v0  ;;  %v19031_v56 = vld [vmem:[#allocation7 + $0x760] ss:$16 sps:$4 sm:$0xff]   ;;  %v19034_v0 = vld [vmem:[#allocation7 + $0x768] ss:$16 sps:$4 sm:$0xff]  }
 0x597   :  { %v23689_v1 = vpack.c.bf16 %v12994_v31, %v12986_v21  ;;  %14998 = vmatprep.subr.bf16.mxu0 %v19015_v15  ;;  %15450 = vmatprep.subr.bf16.mxu1 %v19018_v44  ;;  %v19039_v15 = vld [vmem:[#allocation7 + $0x784] ss:$16 sps:$4 sm:$0xff]   ;;  %v19042_v44 = vld [vmem:[#allocation7 + $0x78c] ss:$16 sps:$4 sm:$0xff]  }
 0x598   :  { %v11982_v46 = vpop.f32.mrb[52].mxu0  ;;  %14941 = vmatprep.mubr.bf16.mxu0 %v13080_v57  ;;  %15393 = vmatprep.mubr.bf16.mxu1 %v13080_v57 }
 0x599   :  { %v12886_v63 = vpop.f32.mrb[52].mxu1  ;;  %v11984_v38 = vpop.f32.mrb[53].mxu0  ;;  %14942 = vmatmul.mubr.bf16.gmra.mrb[80].mxu0 %v13079_v48  ;;  %15394 = vmatmul.mubr.bf16.gmra.mrb[80].mxu1 %v13079_v48  ;;  %v12999_v39 = vmax.f32 %v11982_v46, 0.0  ;;  %v19045_v46 = vld [vmem:[#allocation7 + $0x7a4] ss:$16 sps:$4 sm:$0xff]  }
 0x59a   :  { %v12888_v29 = vpop.f32.mrb[53].mxu1  ;;  %v11986_v47 = vpop.f32.mrb[54].mxu0  ;;  %14999 = vmatpush1.bf16.msra.mxu0 %v19013_v12  ;;  %15451 = vmatpush1.bf16.msra.mxu1 %v19016_v26  ;;  %v13001_v37 = vmax.f32 %v12886_v63, 0.0  ;;  %v13000_v34 = vmax.f32 %v11984_v38, 0.0  ;;  %v19037_v26 = vld [vmem:[#allocation7 + $0x780] ss:$16 sps:$4 sm:$0xff]  }
 0x59b   :  { %v13007_v5 = vmax.f32 %v11986_v47, 0.0  ;;  %v12890_v27 = vpop.f32.mrb[54].mxu1  ;;  %v11988_v28 = vpop.f32.mrb[55].mxu0  ;;  %15000 = vmatprep.subr.bf16.mxu0 %v19021_v30  ;;  %15452 = vmatprep.subr.bf16.mxu1 %v19024_v62  ;;  %v13002_v33 = vmax.f32 %v12888_v29, 0.0  ;;  %v19040_v30 = vld [vmem:[#allocation7 + $0x788] ss:$16 sps:$4 sm:$0xff]  }
 0x59c   :  { %v13009_v10 = vmax.f32 %v12890_v27, 0.0  ;;  %v13008_v24 = vmax.f32 %v11988_v28, 0.0  ;;  %v12892_v59 = vpop.f32.mrb[55].mxu1  ;;  %v19048_v63 = vld [vmem:[#allocation7 + $0x7ac] ss:$16 sps:$4 sm:$0xff]  }
 0x59d   :  { %v13087_v35 = vpack.c.bf16 %v13007_v5, %v12999_v39  ;;  %v13010_v16 = vmax.f32 %v12892_v59, 0.0  ;;  %v19043_v47 = vld [vmem:[#allocation7 + $0x7a0] ss:$16 sps:$4 sm:$0xff]   ;;  %v19046_v39 = vld [vmem:[#allocation7 + $0x7a8] ss:$16 sps:$4 sm:$0xff]  }
 0x59e   :  { %v23691_v19 = vpack.c.bf16 %v13009_v10, %v13001_v37  ;;  %v13088_v18 = vpack.c.bf16 %v13008_v24, %v13000_v34  ;;  %15001 = vmatpush1.bf16.msra.mxu0 %v19019_v42  ;;  %15453 = vmatpush1.bf16.msra.mxu1 %v19022_v20  ;;  %v19051_v5 = vld [vmem:[#allocation7 + $0x7c4] ss:$16 sps:$4 sm:$0xff]   ;;  %v19054_v34 = vld [vmem:[#allocation7 + $0x7cc] ss:$16 sps:$4 sm:$0xff]  }
 0x59f   :  { %v23693_v25 = vpack.c.bf16 %v13010_v16, %v13002_v33  ;;  %15002 = vmatprep.subr.bf16.mxu0 %v19027_v52  ;;  %15454 = vmatprep.subr.bf16.mxu1 %v19030_v53 }
 0x5a0   :  { %v11992_v55 = vpop.f32.mrb[56].mxu0  ;;  %14951 = vmatprep.mubr.bf16.mxu0 %v13088_v18  ;;  %15403 = vmatprep.mubr.bf16.mxu1 %v13088_v18 }
 0x5a1   :  { %v12896_v40 = vpop.f32.mrb[56].mxu1  ;;  %v11994_v13 = vpop.f32.mrb[57].mxu0  ;;  %14952 = vmatmul.mubr.bf16.gmra.mrb[84].mxu0 %v13087_v35  ;;  %15404 = vmatmul.mubr.bf16.gmra.mrb[84].mxu1 %v13087_v35  ;;  %v13015_v9 = vmax.f32 %v11992_v55, 0.0 }
 0x5a2   :  { %v12898_v36 = vpop.f32.mrb[57].mxu1  ;;  %v11996_v45 = vpop.f32.mrb[58].mxu0  ;;  %15003 = vmatpush1.bf16.msra.mxu0 %v19025_v50  ;;  %15455 = vmatpush1.bf16.msra.mxu1 %v19028_v2  ;;  %v13017_v11 = vmax.f32 %v12896_v40, 0.0  ;;  %v13016_v61 = vmax.f32 %v11994_v13, 0.0  ;;  %v19052_v40 = vld [vmem:[#allocation7 + $0x7c8] ss:$16 sps:$4 sm:$0xff]  }
 0x5a3   :  { %v13023_v49 = vmax.f32 %v11996_v45, 0.0  ;;  %v12900_v43 = vpop.f32.mrb[58].mxu1  ;;  %v11998_v23 = vpop.f32.mrb[59].mxu0  ;;  %15004 = vmatprep.subr.bf16.mxu0 %v19033_v4  ;;  %15456 = vmatprep.subr.bf16.mxu1 %v19036_v3  ;;  %v13018_v21 = vmax.f32 %v12898_v36, 0.0  ;;  %v19049_v3 = vld [vmem:[#allocation7 + $0x7c0] ss:$16 sps:$4 sm:$0xff]  }
 0x5a4   :  { %v13025_v17 = vmax.f32 %v12900_v43, 0.0  ;;  %v13024_v58 = vmax.f32 %v11998_v23, 0.0  ;;  %v12902_v41 = vpop.f32.mrb[59].mxu1  ;;  %v19057_v13 = vld [vmem:[#allocation7 + $0x7e4] ss:$16 sps:$4 sm:$0xff]   ;;  %v19065_v43 = vld [vmem:[#allocation8 + $0x48] sm:$0xff]  }
 0x5a5   :  { %v13095_v48 = vpack.c.bf16 %v13023_v49, %v13015_v9  ;;  %v13026_v31 = vmax.f32 %v12902_v41, 0.0  ;;  %v19055_v36 = vld [vmem:[#allocation7 + $0x7e0] ss:$16 sps:$4 sm:$0xff]   ;;  %v19058_v45 = vld [vmem:[#allocation7 + $0x7e8] ss:$16 sps:$4 sm:$0xff]  }
 0x5a6   :  { %v23695_v57 = vpack.c.bf16 %v13025_v17, %v13017_v11  ;;  %v13096_v12 = vpack.c.bf16 %v13024_v58, %v13016_v61  ;;  %15005 = vmatpush1.bf16.msra.mxu0 %v19031_v56  ;;  %15457 = vmatpush1.bf16.msra.mxu1 %v19034_v0  ;;  %v19060_v56 = vld [vmem:[#allocation7 + $0x7ec] ss:$16 sps:$4 sm:$0xff]   ;;  %v19061_v0 = vld [vmem:[#allocation8 + $0x40] sm:$0xff]   ;;  %v19069_v11 = vld [vmem:[#allocation8 + $0x50] sm:$0xff]  }
 0x5a7   :  { %v23697_v62 = vpack.c.bf16 %v13026_v31, %v13018_v21  ;;  %15006 = vmatprep.subr.bf16.mxu0 %v19039_v15  ;;  %15458 = vmatprep.subr.bf16.mxu1 %v19042_v44  ;;  %v19062_v15 = vld [vmem:[#allocation8 + $0xc0] sm:$0xff]   ;;  %v19066_v23 = vld [vmem:[#allocation8 + $0xc8] sm:$0xff]   ;;  %v19070_v61 = vld [vmem:[#allocation8 + $0xd0] sm:$0xff]  }
 0x5a8   :  { %v12002_v38 = vpop.f32.mrb[60].mxu0  ;;  %14961 = vmatprep.mubr.bf16.mxu0 %v13096_v12  ;;  %15413 = vmatprep.mubr.bf16.mxu1 %v13096_v12  ;;  %v19063_v9 = vld [vmem:[#allocation8] sm:$0xff]   ;;  %v19068_v44 = vld [vmem:[#allocation8 + $0x88] sm:$0xff]   ;;  %v19071_v17 = vld [vmem:[#allocation8 + $0x10] sm:$0xff]  }
 0x5a9   :  { %v12906_v42 = vpop.f32.mrb[60].mxu1  ;;  %v12004_v29 = vpop.f32.mrb[61].mxu0  ;;  %14962 = vmatmul.mubr.bf16.gmra.mrb[88].mxu0 %v13095_v48  ;;  %15414 = vmatmul.mubr.bf16.gmra.mrb[88].mxu1 %v13095_v48  ;;  %v13031_v27 = vmax.f32 %v12002_v38, 0.0  ;;  %v19064_v49 = vld [vmem:[#allocation8 + $0x80] sm:$0xff]   ;;  %v19072_v58 = vld [vmem:[#allocation8 + $0x90] sm:$0xff]   ;;  %v19073_v41 = vld [vmem:[#allocation8 + $0x58] sm:$0xff]  }
 0x5aa   :  { %v12908_v20 = vpop.f32.mrb[61].mxu1  ;;  %v12006_v52 = vpop.f32.mrb[62].mxu0  ;;  %15007 = vmatpush1.bf16.msra.mxu0 %v19037_v26  ;;  %15459 = vmatpush1.bf16.msra.mxu1 %v19040_v30  ;;  %v13033_v10 = vmax.f32 %v12906_v42, 0.0  ;;  %v13032_v24 = vmax.f32 %v12004_v29, 0.0  ;;  %v19076_v21 = vld [vmem:[#allocation8 + $0x98] sm:$0xff]   ;;  %v19077_v48 = vld [vmem:[#allocation8 + $0x60] sm:$0xff]  }
 0x5ab   :  { %v13039_v28 = vmax.f32 %v12006_v52, 0.0  ;;  %v12910_v53 = vpop.f32.mrb[62].mxu1  ;;  %v12008_v37 = vpop.f32.mrb[63].mxu0  ;;  %15008 = vmatprep.subr.bf16.mxu0 %v19045_v46  ;;  %15460 = vmatprep.subr.bf16.mxu1 %v19048_v63  ;;  %v13034_v16 = vmax.f32 %v12908_v20, 0.0  ;;  %v19078_v31 = vld [vmem:[#allocation8 + $0xe0] sm:$0xff]   ;;  %v19081_v30 = vld [vmem:[#allocation8 + $0x68] sm:$0xff]  }
 0x5ac   :  { %v13041_v59 = vmax.f32 %v12910_v53, 0.0  ;;  %v13040_v33 = vmax.f32 %v12008_v37, 0.0  ;;  %v12912_v35 = vpop.f32.mrb[63].mxu1  ;;  %v19079_v12 = vld [vmem:[#allocation8 + $0x20] sm:$0xff]   ;;  %v19084_v46 = vld [vmem:[#allocation8 + $0xa8] sm:$0xff]   ;;  %v19085_v63 = vld [vmem:[#allocation8 + $0x70] sm:$0xff]  }
 0x5ad   :  { %v13103_v18 = vpack.c.bf16 %v13039_v28, %v13031_v27  ;;  %v13042_v50 = vmax.f32 %v12912_v35, 0.0  ;;  %v19080_v26 = vld [vmem:[#allocation8 + $0xa0] sm:$0xff]   ;;  %v19086_v38 = vld [vmem:[#allocation8 + $0xf0] sm:$0xff]  }
 0x5ae   :  { %v23699_v2 = vpack.c.bf16 %v13041_v59, %v13033_v10  ;;  %v13104_v4 = vpack.c.bf16 %v13040_v33, %v13032_v24  ;;  %15009 = vmatpush1.bf16.msra.mxu0 %v19043_v47  ;;  %15461 = vmatpush1.bf16.msra.mxu1 %v19046_v39  ;;  %v19087_v42 = vld [vmem:[#allocation8 + $0x30] sm:$0xff]  }
 0x5af   :  { %v23701_v55 = vpack.c.bf16 %v13042_v50, %v13034_v16  ;;  %15010 = vmatprep.subr.bf16.mxu0 %v19051_v5  ;;  %15462 = vmatprep.subr.bf16.mxu1 %v19054_v34  ;;  %v19088_v29 = vld [vmem:[#allocation8 + $0xb0] sm:$0xff]  }
 0x5b0   :  { %14971 = vmatprep.mubr.bf16.mxu0 %v13104_v4  ;;  %15423 = vmatprep.mubr.bf16.mxu1 %v13104_v4 }
 0x5b1   :  { %14972 = vmatmul.mubr.bf16.gmra.mrb[92].mxu0 %v13103_v18  ;;  %15424 = vmatmul.mubr.bf16.gmra.mrb[92].mxu1 %v13103_v18 }
 0x5b2   :  { %15011 = vmatpush1.bf16.msra.mxu0 %v19049_v3  ;;  %15014 = vmatprep.mubr.bf16.mxu0 %v23673_v32 }
 0x5b3   :  { %15463 = vmatpush1.bf16.msra.mxu1 %v19052_v40  ;;  %15466 = vmatprep.mubr.bf16.mxu1 %v23673_v32  ;;  %v19067_v32 = vld [vmem:[#allocation8 + $0x8] sm:$0xff]  }
 0x5b4   :  { %15012 = vmatprep.subr.bf16.mxu0 %v19057_v13  ;;  %15464 = vmatprep.subr.bf16.mxu1 %v19060_v56 }
 0x5b6   :  { %15013 = vmatpush1.bf16.msra.mxu0 %v19055_v36 }
 0x5b7   :  { %15465 = vmatpush1.bf16.msra.mxu1 %v19058_v45  ;;  %17448 = vmatprep.subr.bf16.mxu0 %v19061_v0 }
 0x5b8   :  { %17512 = vmatprep.subr.bf16.mxu1 %v19062_v15 }
 0x5b9   :  { %15015 = vmatmul.mubr.bf16.vlgmr.msra.gmra.mrb[64].mxu0 %v23671_v8 }
 0x5ba   :  { %15467 = vmatmul.mubr.bf16.vlgmr.msra.gmra.mrb[64].mxu1 %v23671_v8  ;;  %15024 = vmatprep.mubr.bf16.mxu0 %v23677_v54  ;;  %v19074_v8 = vld [vmem:[#allocation8 + $0xd8] sm:$0xff]  }
 0x5bb   :  { %15476 = vmatprep.mubr.bf16.mxu1 %v23677_v54  ;;  %17449 = vmatpush3.bf16.msra.mxu0 %v19063_v9  ;;  %v19075_v54 = vld [vmem:[#allocation8 + $0x18] sm:$0xff]  }
 0x5bc   :  { %17513 = vmatpush3.bf16.msra.mxu1 %v19064_v49  ;;  %17450 = vmatprep.subr.bf16.mxu0 %v19065_v43 }
 0x5bd   :  { %17514 = vmatprep.subr.bf16.mxu1 %v19066_v23 }
 0x5bf   :  { %17451 = vmatpush3.bf16.msra.mxu0 %v19067_v32 }
 0x5c0   :  { %17515 = vmatpush3.bf16.msra.mxu1 %v19068_v44  ;;  %17452 = vmatprep.subr.bf16.mxu0 %v19069_v11 }
 0x5c1   :  { %15025 = vmatmul.mubr.bf16.gmra.mrb[68].mxu0 %v23675_v60  ;;  %17516 = vmatprep.subr.bf16.mxu1 %v19070_v61 }
 0x5c2   :  { %15477 = vmatmul.mubr.bf16.gmra.mrb[68].mxu1 %v23675_v60  ;;  %15034 = vmatprep.mubr.bf16.mxu0 %v23681_v6  ;;  %v19082_v60 = vld [vmem:[#allocation8 + $0xe8] sm:$0xff]  }
 0x5c3   :  { %15486 = vmatprep.mubr.bf16.mxu1 %v23681_v6  ;;  %17453 = vmatpush3.bf16.msra.mxu0 %v19071_v17  ;;  %v19083_v6 = vld [vmem:[#allocation8 + $0x28] sm:$0xff]  }
 0x5c4   :  { %17517 = vmatpush3.bf16.msra.mxu1 %v19072_v58  ;;  %17454 = vmatprep.subr.bf16.mxu0 %v19073_v41 }
 0x5c5   :  { %17518 = vmatprep.subr.bf16.mxu1 %v19074_v8 }
 0x5c7   :  { %17455 = vmatpush3.bf16.msra.mxu0 %v19075_v54 }
 0x5c8   :  { %17519 = vmatpush3.bf16.msra.mxu1 %v19076_v21  ;;  %17456 = vmatprep.subr.bf16.mxu0 %v19077_v48 }
 0x5c9   :  { %15035 = vmatmul.mubr.bf16.gmra.mrb[72].mxu0 %v23679_v22  ;;  %17520 = vmatprep.subr.bf16.mxu1 %v19078_v31 }
 0x5ca   :  { %15487 = vmatmul.mubr.bf16.gmra.mrb[72].mxu1 %v23679_v22  ;;  %15044 = vmatprep.mubr.bf16.mxu0 %v23685_v14  ;;  %v19089_v22 = vld [vmem:[#allocation8 + $0x78] sm:$0xff]  }
 0x5cb   :  { %15496 = vmatprep.mubr.bf16.mxu1 %v23685_v14  ;;  %17457 = vmatpush3.bf16.msra.mxu0 %v19079_v12  ;;  %v19091_v14 = vld [vmem:[#allocation8 + $0x38] sm:$0xff]  }
 0x5cc   :  { %17521 = vmatpush3.bf16.msra.mxu1 %v19080_v26  ;;  %17458 = vmatprep.subr.bf16.mxu0 %v19081_v30 }
 0x5cd   :  { %17522 = vmatprep.subr.bf16.mxu1 %v19082_v60 }
 0x5cf   :  { %17459 = vmatpush3.bf16.msra.mxu0 %v19083_v6 }
 0x5d0   :  { %17523 = vmatpush3.bf16.msra.mxu1 %v19084_v46  ;;  %17460 = vmatprep.subr.bf16.mxu0 %v19085_v63 }
 0x5d1   :  { %15045 = vmatmul.mubr.bf16.gmra.mrb[76].mxu0 %v23683_v51  ;;  %17524 = vmatprep.subr.bf16.mxu1 %v19086_v38 }
 0x5d2   :  { %15497 = vmatmul.mubr.bf16.gmra.mrb[76].mxu1 %v23683_v51  ;;  %15054 = vmatprep.mubr.bf16.mxu0 %v23689_v1  ;;  %v19090_v51 = vld [vmem:[#allocation8 + $0xf8] sm:$0xff]  }
 0x5d3   :  { %15506 = vmatprep.mubr.bf16.mxu1 %v23689_v1  ;;  %17461 = vmatpush3.bf16.msra.mxu0 %v19087_v42 }
 0x5d4   :  { %17525 = vmatpush3.bf16.msra.mxu1 %v19088_v29  ;;  %17462 = vmatprep.subr.bf16.mxu0 %v19089_v22 }
 0x5d5   :  { %17526 = vmatprep.subr.bf16.mxu1 %v19090_v51 }
 0x5d7   :  { %17463 = vmatpush3.bf16.msra.mxu0 %v19091_v14 }
 0x5d9   :  { %15055 = vmatmul.mubr.bf16.gmra.mrb[80].mxu0 %v23687_v7 }
 0x5da   :  { %15507 = vmatmul.mubr.bf16.gmra.mrb[80].mxu1 %v23687_v7  ;;  %15064 = vmatprep.mubr.bf16.mxu0 %v23693_v25  ;;  %v19092_v7 = vld [vmem:[#allocation8 + $0xb8] sm:$0xff]  }
 0x5db   :  { %15516 = vmatprep.mubr.bf16.mxu1 %v23693_v25  ;;  %17527 = vmatpush3.bf16.msra.mxu1 %v19092_v7 }
 0x5e1   :  { %15065 = vmatmul.mubr.bf16.gmra.mrb[84].mxu0 %v23691_v19 }
 0x5e2   :  { %15517 = vmatmul.mubr.bf16.gmra.mrb[84].mxu1 %v23691_v19  ;;  %15074 = vmatprep.mubr.bf16.mxu0 %v23697_v62 }
 0x5e3   :  { %15526 = vmatprep.mubr.bf16.mxu1 %v23697_v62 }
 0x5e9   :  { %15075 = vmatmul.mubr.bf16.gmra.mrb[88].mxu0 %v23695_v57 }
 0x5ea   :  { %15527 = vmatmul.mubr.bf16.gmra.mrb[88].mxu1 %v23695_v57  ;;  %15084 = vmatprep.mubr.bf16.mxu0 %v23701_v55 }
 0x5eb   :  { %15536 = vmatprep.mubr.bf16.mxu1 %v23701_v55 }
 0x5f1   :  { %15085 = vmatmul.mubr.bf16.gmra.mrb[92].mxu0 %v23699_v2 }
 0x5f2   :  { %15537 = vmatmul.mubr.bf16.gmra.mrb[92].mxu1 %v23699_v2 }
 0x68c   :  { %v15016_v1 = vpop.f32.mrb[64].mxu0 }
 0x68d   :  { %v15468_v19 = vpop.f32.mrb[64].mxu1  ;;  %v15018_v25 = vpop.f32.mrb[65].mxu0  ;;  %v15547_v47 = vmax.f32 %v15016_v1, 0.0 }
 0x68e   :  { %v15470_v57 = vpop.f32.mrb[65].mxu1  ;;  %v15020_v62 = vpop.f32.mrb[66].mxu0  ;;  %v15549_v5 = vmax.f32 %v15468_v19, 0.0  ;;  %v15548_v27 = vmax.f32 %v15018_v25, 0.0 }
 0x68f   :  { %v15551_v20 = vmax.f32 %v15020_v62, 0.0  ;;  %v15472_v52 = vpop.f32.mrb[66].mxu1  ;;  %v15022_v39 = vpop.f32.mrb[67].mxu0  ;;  %v15550_v34 = vmax.f32 %v15470_v57, 0.0 }
 0x690   :  { %v15553_v28 = vmax.f32 %v15472_v52, 0.0  ;;  %v15552_v53 = vmax.f32 %v15022_v39, 0.0  ;;  %v15474_v37 = vpop.f32.mrb[67].mxu1 }
 0x691   :  { %v15611_v10 = vpack.c.bf16 %v15551_v20, %v15547_v47  ;;  %v15554_v24 = vmax.f32 %v15474_v37, 0.0 }
 0x692   :  { %v15613_v59 = vpack.c.bf16 %v15553_v28, %v15549_v5  ;;  %v15612_v33 = vpack.c.bf16 %v15552_v53, %v15548_v27 }
 0x693   :  { %v15614_v35 = vpack.c.bf16 %v15554_v24, %v15550_v34 }
 0x694   :  { %v15026_v16 = vpop.f32.mrb[68].mxu0  ;;  %15931 = vmatprep.mubr.bf16.mxu0 %v15612_v33 }
 0x695   :  { %v15478_v18 = vpop.f32.mrb[68].mxu1  ;;  %16028 = vmatprep.mubr.bf16.mxu1 %v15614_v35  ;;  %v15028_v50 = vpop.f32.mrb[69].mxu0  ;;  %15932 = vmatmul.mubr.bf16.vlgmr.msra.gmra.mrb[96].mxu0 %v15611_v10  ;;  %v15555_v3 = vmax.f32 %v15026_v16, 0.0 }
 0x696   :  { %v15480_v2 = vpop.f32.mrb[69].mxu1  ;;  %16029 = vmatmul.mubr.bf16.vlgmr.msra.gmra.mrb[96].mxu1 %v15613_v59  ;;  %v15030_v4 = vpop.f32.mrb[70].mxu0  ;;  %v15557_v56 = vmax.f32 %v15478_v18, 0.0  ;;  %v15556_v36 = vmax.f32 %v15028_v50, 0.0 }
 0x697   :  { %v15559_v55 = vmax.f32 %v15030_v4, 0.0  ;;  %v15482_v40 = vpop.f32.mrb[70].mxu1  ;;  %v15032_v13 = vpop.f32.mrb[71].mxu0  ;;  %v15558_v9 = vmax.f32 %v15480_v2, 0.0 }
 0x698   :  { %v15561_v45 = vmax.f32 %v15482_v40, 0.0  ;;  %v15560_v0 = vmax.f32 %v15032_v13, 0.0  ;;  %v15484_v15 = vpop.f32.mrb[71].mxu1 }
 0x699   :  { %v15615_v49 = vpack.c.bf16 %v15559_v55, %v15555_v3  ;;  %v15562_v43 = vmax.f32 %v15484_v15, 0.0 }
 0x69a   :  { %v15617_v23 = vpack.c.bf16 %v15561_v45, %v15557_v56  ;;  %v15616_v32 = vpack.c.bf16 %v15560_v0, %v15556_v36 }
 0x69b   :  { %v15618_v44 = vpack.c.bf16 %v15562_v43, %v15558_v9 }
 0x69c   :  { %v15036_v11 = vpop.f32.mrb[72].mxu0  ;;  %15939 = vmatprep.mubr.bf16.mxu0 %v15616_v32 }
 0x69d   :  { %v15488_v61 = vpop.f32.mrb[72].mxu1  ;;  %16036 = vmatprep.mubr.bf16.mxu1 %v15618_v44  ;;  %v15038_v17 = vpop.f32.mrb[73].mxu0  ;;  %15940 = vmatmul.mubr.bf16.gmra.mrb[100].mxu0 %v15615_v49  ;;  %v15563_v8 = vmax.f32 %v15036_v11, 0.0 }
 0x69e   :  { %v15490_v58 = vpop.f32.mrb[73].mxu1  ;;  %16037 = vmatmul.mubr.bf16.gmra.mrb[100].mxu1 %v15617_v23  ;;  %v15040_v41 = vpop.f32.mrb[74].mxu0  ;;  %v15565_v31 = vmax.f32 %v15488_v61, 0.0  ;;  %v15564_v12 = vmax.f32 %v15038_v17, 0.0 }
 0x69f   :  { %v15567_v54 = vmax.f32 %v15040_v41, 0.0  ;;  %v15492_v21 = vpop.f32.mrb[74].mxu1  ;;  %v15042_v48 = vpop.f32.mrb[75].mxu0  ;;  %v15566_v6 = vmax.f32 %v15490_v58, 0.0 }
 0x6a0   :  { %v15569_v26 = vmax.f32 %v15492_v21, 0.0  ;;  %v15568_v30 = vmax.f32 %v15042_v48, 0.0  ;;  %v15494_v60 = vpop.f32.mrb[75].mxu1 }
 0x6a1   :  { %v15619_v46 = vpack.c.bf16 %v15567_v54, %v15563_v8  ;;  %v15570_v63 = vmax.f32 %v15494_v60, 0.0 }
 0x6a2   :  { %v15621_v38 = vpack.c.bf16 %v15569_v26, %v15565_v31  ;;  %v15620_v42 = vpack.c.bf16 %v15568_v30, %v15564_v12 }
 0x6a3   :  { %v15622_v29 = vpack.c.bf16 %v15570_v63, %v15566_v6 }
 0x6a4   :  { %v15046_v22 = vpop.f32.mrb[76].mxu0  ;;  %15947 = vmatprep.mubr.bf16.mxu0 %v15620_v42 }
 0x6a5   :  { %v15498_v51 = vpop.f32.mrb[76].mxu1  ;;  %16044 = vmatprep.mubr.bf16.mxu1 %v15622_v29  ;;  %v15048_v14 = vpop.f32.mrb[77].mxu0  ;;  %15948 = vmatmul.mubr.bf16.gmra.mrb[104].mxu0 %v15619_v46  ;;  %v15571_v19 = vmax.f32 %v15046_v22, 0.0 }
 0x6a6   :  { %v15500_v7 = vpop.f32.mrb[77].mxu1  ;;  %16045 = vmatmul.mubr.bf16.gmra.mrb[104].mxu1 %v15621_v38  ;;  %v15050_v1 = vpop.f32.mrb[78].mxu0  ;;  %v15573_v47 = vmax.f32 %v15498_v51, 0.0  ;;  %v15572_v20 = vmax.f32 %v15048_v14, 0.0 }
 0x6a7   :  { %v15575_v25 = vmax.f32 %v15050_v1, 0.0  ;;  %v15502_v57 = vpop.f32.mrb[78].mxu1  ;;  %v15052_v62 = vpop.f32.mrb[79].mxu0  ;;  %v15574_v27 = vmax.f32 %v15500_v7, 0.0 }
 0x6a8   :  { %v15577_v52 = vmax.f32 %v15502_v57, 0.0  ;;  %v15576_v39 = vmax.f32 %v15052_v62, 0.0  ;;  %v15504_v5 = vpop.f32.mrb[79].mxu1 }
 0x6a9   :  { %v15623_v28 = vpack.c.bf16 %v15575_v25, %v15571_v19  ;;  %v15578_v53 = vmax.f32 %v15504_v5, 0.0 }
 0x6aa   :  { %v15625_v37 = vpack.c.bf16 %v15577_v52, %v15573_v47  ;;  %v15624_v34 = vpack.c.bf16 %v15576_v39, %v15572_v20 }
 0x6ab   :  { %v15626_v10 = vpack.c.bf16 %v15578_v53, %v15574_v27 }
 0x6ac   :  { %v15056_v24 = vpop.f32.mrb[80].mxu0  ;;  %15955 = vmatprep.mubr.bf16.mxu0 %v15624_v34 }
 0x6ad   :  { %v15508_v59 = vpop.f32.mrb[80].mxu1  ;;  %16052 = vmatprep.mubr.bf16.mxu1 %v15626_v10  ;;  %v15058_v33 = vpop.f32.mrb[81].mxu0  ;;  %15956 = vmatmul.mubr.bf16.gmra.mrb[108].mxu0 %v15623_v28  ;;  %v15579_v18 = vmax.f32 %v15056_v24, 0.0 }
 0x6ae   :  { %v15510_v35 = vpop.f32.mrb[81].mxu1  ;;  %16053 = vmatmul.mubr.bf16.gmra.mrb[108].mxu1 %v15625_v37  ;;  %v15060_v16 = vpop.f32.mrb[82].mxu0  ;;  %v15581_v3 = vmax.f32 %v15508_v59, 0.0  ;;  %v15580_v55 = vmax.f32 %v15058_v33, 0.0 }
 0x6af   :  { %v15583_v50 = vmax.f32 %v15060_v16, 0.0  ;;  %v15512_v2 = vpop.f32.mrb[82].mxu1  ;;  %v15062_v4 = vpop.f32.mrb[83].mxu0  ;;  %v15582_v36 = vmax.f32 %v15510_v35, 0.0 }
 0x6b0   :  { %v15585_v40 = vmax.f32 %v15512_v2, 0.0  ;;  %v15584_v13 = vmax.f32 %v15062_v4, 0.0  ;;  %v15514_v56 = vpop.f32.mrb[83].mxu1 }
 0x6b1   :  { %v15627_v45 = vpack.c.bf16 %v15583_v50, %v15579_v18  ;;  %v15586_v0 = vmax.f32 %v15514_v56, 0.0 }
 0x6b2   :  { %v15629_v15 = vpack.c.bf16 %v15585_v40, %v15581_v3  ;;  %v15628_v9 = vpack.c.bf16 %v15584_v13, %v15580_v55 }
 0x6b3   :  { %v15630_v49 = vpack.c.bf16 %v15586_v0, %v15582_v36 }
 0x6b4   :  { %v15066_v43 = vpop.f32.mrb[84].mxu0  ;;  %15963 = vmatprep.mubr.bf16.mxu0 %v15628_v9 }
 0x6b5   :  { %v15518_v23 = vpop.f32.mrb[84].mxu1  ;;  %16060 = vmatprep.mubr.bf16.mxu1 %v15630_v49  ;;  %v15068_v32 = vpop.f32.mrb[85].mxu0  ;;  %15964 = vmatmul.mubr.bf16.gmra.mrb[112].mxu0 %v15627_v45  ;;  %v15587_v61 = vmax.f32 %v15066_v43, 0.0 }
 0x6b6   :  { %v15520_v44 = vpop.f32.mrb[85].mxu1  ;;  %16061 = vmatmul.mubr.bf16.gmra.mrb[112].mxu1 %v15629_v15  ;;  %v15070_v11 = vpop.f32.mrb[86].mxu0  ;;  %v15589_v8 = vmax.f32 %v15518_v23, 0.0  ;;  %v15588_v54 = vmax.f32 %v15068_v32, 0.0 }
 0x6b7   :  { %v15591_v17 = vmax.f32 %v15070_v11, 0.0  ;;  %v15522_v58 = vpop.f32.mrb[86].mxu1  ;;  %v15072_v41 = vpop.f32.mrb[87].mxu0  ;;  %v15590_v12 = vmax.f32 %v15520_v44, 0.0 }
 0x6b8   :  { %v15593_v21 = vmax.f32 %v15522_v58, 0.0  ;;  %v15592_v48 = vmax.f32 %v15072_v41, 0.0  ;;  %v15524_v31 = vpop.f32.mrb[87].mxu1 }
 0x6b9   :  { %v15631_v26 = vpack.c.bf16 %v15591_v17, %v15587_v61  ;;  %v15594_v30 = vmax.f32 %v15524_v31, 0.0 }
 0x6ba   :  { %v15633_v60 = vpack.c.bf16 %v15593_v21, %v15589_v8  ;;  %v15632_v6 = vpack.c.bf16 %v15592_v48, %v15588_v54 }
 0x6bb   :  { %v15634_v46 = vpack.c.bf16 %v15594_v30, %v15590_v12 }
 0x6bc   :  { %v15076_v63 = vpop.f32.mrb[88].mxu0  ;;  %15971 = vmatprep.mubr.bf16.mxu0 %v15632_v6 }
 0x6bd   :  { %v15528_v38 = vpop.f32.mrb[88].mxu1  ;;  %16068 = vmatprep.mubr.bf16.mxu1 %v15634_v46  ;;  %v15078_v42 = vpop.f32.mrb[89].mxu0  ;;  %15972 = vmatmul.mubr.bf16.gmra.mrb[116].mxu0 %v15631_v26  ;;  %v15595_v51 = vmax.f32 %v15076_v63, 0.0 }
 0x6be   :  { %v15530_v29 = vpop.f32.mrb[89].mxu1  ;;  %16069 = vmatmul.mubr.bf16.gmra.mrb[116].mxu1 %v15633_v60  ;;  %v15080_v22 = vpop.f32.mrb[90].mxu0  ;;  %v15597_v19 = vmax.f32 %v15528_v38, 0.0  ;;  %v15596_v25 = vmax.f32 %v15078_v42, 0.0 }
 0x6bf   :  { %v15599_v14 = vmax.f32 %v15080_v22, 0.0  ;;  %v15532_v7 = vpop.f32.mrb[90].mxu1  ;;  %v15082_v1 = vpop.f32.mrb[91].mxu0  ;;  %v15598_v20 = vmax.f32 %v15530_v29, 0.0 }
 0x6c0   :  { %v15601_v57 = vmax.f32 %v15532_v7, 0.0  ;;  %v15600_v62 = vmax.f32 %v15082_v1, 0.0  ;;  %v15534_v47 = vpop.f32.mrb[91].mxu1 }
 0x6c1   :  { %v15635_v52 = vpack.c.bf16 %v15599_v14, %v15595_v51  ;;  %v15602_v39 = vmax.f32 %v15534_v47, 0.0 }
 0x6c2   :  { %v15637_v5 = vpack.c.bf16 %v15601_v57, %v15597_v19  ;;  %v15636_v27 = vpack.c.bf16 %v15600_v62, %v15596_v25 }
 0x6c3   :  { %v15638_v28 = vpack.c.bf16 %v15602_v39, %v15598_v20 }
 0x6c4   :  { %v15086_v53 = vpop.f32.mrb[92].mxu0  ;;  %15979 = vmatprep.mubr.bf16.mxu0 %v15636_v27 }
 0x6c5   :  { %v15538_v37 = vpop.f32.mrb[92].mxu1  ;;  %16076 = vmatprep.mubr.bf16.mxu1 %v15638_v28  ;;  %v15088_v34 = vpop.f32.mrb[93].mxu0  ;;  %15980 = vmatmul.mubr.bf16.gmra.mrb[120].mxu0 %v15635_v52  ;;  %v15603_v59 = vmax.f32 %v15086_v53, 0.0 }
 0x6c6   :  { %v15540_v10 = vpop.f32.mrb[93].mxu1  ;;  %16077 = vmatmul.mubr.bf16.gmra.mrb[120].mxu1 %v15637_v5  ;;  %v15090_v24 = vpop.f32.mrb[94].mxu0  ;;  %v15605_v18 = vmax.f32 %v15538_v37, 0.0  ;;  %v15604_v50 = vmax.f32 %v15088_v34, 0.0 }
 0x6c7   :  { %v15607_v33 = vmax.f32 %v15090_v24, 0.0  ;;  %v15542_v35 = vpop.f32.mrb[94].mxu1  ;;  %v15092_v16 = vpop.f32.mrb[95].mxu0  ;;  %v15606_v55 = vmax.f32 %v15540_v10, 0.0 }
 0x6c8   :  { %v15609_v2 = vmax.f32 %v15542_v35, 0.0  ;;  %v15608_v4 = vmax.f32 %v15092_v16, 0.0  ;;  %v15544_v3 = vpop.f32.mrb[95].mxu1 }
 0x6c9   :  { %v15639_v40 = vpack.c.bf16 %v15607_v33, %v15603_v59  ;;  %v15610_v13 = vmax.f32 %v15544_v3, 0.0 }
 0x6ca   :  { %v15641_v56 = vpack.c.bf16 %v15609_v2, %v15605_v18  ;;  %v15640_v36 = vpack.c.bf16 %v15608_v4, %v15604_v50 }
 0x6cb   :  { %v15642_v45 = vpack.c.bf16 %v15610_v13, %v15606_v55 }
 0x6cc   :  { %15987 = vmatprep.mubr.bf16.mxu0 %v15640_v36 }
 0x6cd   :  { %16084 = vmatprep.mubr.bf16.mxu1 %v15642_v45  ;;  %15988 = vmatmul.mubr.bf16.gmra.mrb[124].mxu0 %v15639_v40 }
 0x6ce   :  { %16085 = vmatmul.mubr.bf16.gmra.mrb[124].mxu1 %v15641_v56 }
 0x768   :  { %v17464_v0 = vpop.f32.mrb[96].mxu0 }
 0x769   :  { %v17528_v15 = vpop.f32.mrb[96].mxu1  ;;  %v17465_v9 = vpop.f32.mrb[97].mxu0 }
 0x76a   :  { %v17466_v49 = vadd.f32 %v17465_v9, %v17464_v0  ;;  %v17529_v43 = vpop.f32.mrb[97].mxu1  ;;  %v17467_v23 = vpop.f32.mrb[98].mxu0 }
 0x76b   :  { %v17530_v32 = vadd.f32 %v17529_v43, %v17528_v15  ;;  %v17531_v44 = vpop.f32.mrb[98].mxu1  ;;  %v17468_v11 = vpop.f32.mrb[99].mxu0 }
 0x76c   :  { %v17469_v61 = vadd.f32 %v17468_v11, %v17467_v23  ;;  %v17532_v17 = vpop.f32.mrb[99].mxu1 }
 0x76d   :  { %v16031_v58 = vadd.f32 %v17530_v32, %v17466_v49  ;;  %v17533_v41 = vadd.f32 %v17532_v17, %v17531_v44 }
 0x76f   :  { %16093 = vst [vmem:[#allocation10] sm:$0xff] %v16031_v58  ;;  %v16034_v8 = vadd.f32 %v17533_v41, %v17469_v61 }
 0x770   :  { %v17470_v54 = vpop.f32.mrb[100].mxu0 }
 0x771   :  { %16094 = vst [vmem:[#allocation10 + $0x8] sm:$0xff] %v16034_v8  ;;  %v17534_v21 = vpop.f32.mrb[100].mxu1  ;;  %v17471_v48 = vpop.f32.mrb[101].mxu0 }
 0x772   :  { %v17472_v31 = vadd.f32 %v17471_v48, %v17470_v54  ;;  %v17535_v12 = vpop.f32.mrb[101].mxu1  ;;  %v17473_v26 = vpop.f32.mrb[102].mxu0 }
 0x773   :  { %v17536_v30 = vadd.f32 %v17535_v12, %v17534_v21  ;;  %v17537_v60 = vpop.f32.mrb[102].mxu1  ;;  %v17474_v6 = vpop.f32.mrb[103].mxu0 }
 0x774   :  { %v17475_v46 = vadd.f32 %v17474_v6, %v17473_v26  ;;  %v17538_v63 = vpop.f32.mrb[103].mxu1 }
 0x775   :  { %v16039_v38 = vadd.f32 %v17536_v30, %v17472_v31  ;;  %v17539_v42 = vadd.f32 %v17538_v63, %v17537_v60 }
 0x777   :  { %16095 = vst [vmem:[#allocation10 + $0x10] sm:$0xff] %v16039_v38  ;;  %v16042_v29 = vadd.f32 %v17539_v42, %v17475_v46 }
 0x778   :  { %v17476_v22 = vpop.f32.mrb[104].mxu0 }
 0x779   :  { %16096 = vst [vmem:[#allocation10 + $0x18] sm:$0xff] %v16042_v29  ;;  %v17540_v51 = vpop.f32.mrb[104].mxu1  ;;  %v17477_v14 = vpop.f32.mrb[105].mxu0 }
 0x77a   :  { %v17478_v7 = vadd.f32 %v17477_v14, %v17476_v22  ;;  %v17541_v1 = vpop.f32.mrb[105].mxu1  ;;  %v17479_v19 = vpop.f32.mrb[106].mxu0 }
 0x77b   :  { %v17542_v25 = vadd.f32 %v17541_v1, %v17540_v51  ;;  %v17543_v57 = vpop.f32.mrb[106].mxu1  ;;  %v17480_v62 = vpop.f32.mrb[107].mxu0 }
 0x77c   :  { %v17481_v47 = vadd.f32 %v17480_v62, %v17479_v19  ;;  %v17544_v20 = vpop.f32.mrb[107].mxu1 }
 0x77d   :  { %v16047_v52 = vadd.f32 %v17542_v25, %v17478_v7  ;;  %v17545_v39 = vadd.f32 %v17544_v20, %v17543_v57 }
 0x77f   :  { %16097 = vst [vmem:[#allocation10 + $0x20] sm:$0xff] %v16047_v52  ;;  %v16050_v5 = vadd.f32 %v17545_v39, %v17481_v47 }
 0x780   :  { %v17482_v27 = vpop.f32.mrb[108].mxu0 }
 0x781   :  { %16098 = vst [vmem:[#allocation10 + $0x28] sm:$0xff] %v16050_v5  ;;  %v17546_v28 = vpop.f32.mrb[108].mxu1  ;;  %v17483_v53 = vpop.f32.mrb[109].mxu0 }
 0x782   :  { %v17484_v37 = vadd.f32 %v17483_v53, %v17482_v27  ;;  %v17547_v34 = vpop.f32.mrb[109].mxu1  ;;  %v17485_v10 = vpop.f32.mrb[110].mxu0 }
 0x783   :  { %v17548_v24 = vadd.f32 %v17547_v34, %v17546_v28  ;;  %v17549_v59 = vpop.f32.mrb[110].mxu1  ;;  %v17486_v33 = vpop.f32.mrb[111].mxu0 }
 0x784   :  { %v17487_v35 = vadd.f32 %v17486_v33, %v17485_v10  ;;  %v17550_v16 = vpop.f32.mrb[111].mxu1 }
 0x785   :  { %v16055_v18 = vadd.f32 %v17548_v24, %v17484_v37  ;;  %v17551_v50 = vadd.f32 %v17550_v16, %v17549_v59 }
 0x787   :  { %16099 = vst [vmem:[#allocation10 + $0x30] sm:$0xff] %v16055_v18  ;;  %v16058_v2 = vadd.f32 %v17551_v50, %v17487_v35 }
 0x788   :  { %v17488_v4 = vpop.f32.mrb[112].mxu0 }
 0x789   :  { %16100 = vst [vmem:[#allocation10 + $0x38] sm:$0xff] %v16058_v2  ;;  %v17552_v3 = vpop.f32.mrb[112].mxu1  ;;  %v17489_v55 = vpop.f32.mrb[113].mxu0 }
 0x78a   :  { %v17490_v40 = vadd.f32 %v17489_v55, %v17488_v4  ;;  %v17553_v13 = vpop.f32.mrb[113].mxu1  ;;  %v17491_v56 = vpop.f32.mrb[114].mxu0 }
 0x78b   :  { %v17554_v36 = vadd.f32 %v17553_v13, %v17552_v3  ;;  %v17555_v45 = vpop.f32.mrb[114].mxu1  ;;  %v17492_v0 = vpop.f32.mrb[115].mxu0 }
 0x78c   :  { %v17493_v15 = vadd.f32 %v17492_v0, %v17491_v56  ;;  %v17556_v9 = vpop.f32.mrb[115].mxu1 }
 0x78d   :  { %v16063_v49 = vadd.f32 %v17554_v36, %v17490_v40  ;;  %v17557_v43 = vadd.f32 %v17556_v9, %v17555_v45 }
 0x78f   :  { %16101 = vst [vmem:[#allocation10 + $0x40] sm:$0xff] %v16063_v49  ;;  %v16066_v23 = vadd.f32 %v17557_v43, %v17493_v15 }
 0x790   :  { %v17494_v32 = vpop.f32.mrb[116].mxu0 }
 0x791   :  { %16102 = vst [vmem:[#allocation10 + $0x48] sm:$0xff] %v16066_v23  ;;  %v17558_v44 = vpop.f32.mrb[116].mxu1  ;;  %v17495_v11 = vpop.f32.mrb[117].mxu0 }
 0x792   :  { %v17496_v61 = vadd.f32 %v17495_v11, %v17494_v32  ;;  %v17559_v17 = vpop.f32.mrb[117].mxu1  ;;  %v17497_v58 = vpop.f32.mrb[118].mxu0 }
 0x793   :  { %v17560_v41 = vadd.f32 %v17559_v17, %v17558_v44  ;;  %v17561_v8 = vpop.f32.mrb[118].mxu1  ;;  %v17498_v54 = vpop.f32.mrb[119].mxu0 }
 0x794   :  { %v17499_v21 = vadd.f32 %v17498_v54, %v17497_v58  ;;  %v17562_v48 = vpop.f32.mrb[119].mxu1 }
 0x795   :  { %v16071_v31 = vadd.f32 %v17560_v41, %v17496_v61  ;;  %v17563_v12 = vadd.f32 %v17562_v48, %v17561_v8 }
 0x797   :  { %16103 = vst [vmem:[#allocation10 + $0x50] sm:$0xff] %v16071_v31  ;;  %v16074_v26 = vadd.f32 %v17563_v12, %v17499_v21 }
 0x798   :  { %v17500_v30 = vpop.f32.mrb[120].mxu0 }
 0x799   :  { %16104 = vst [vmem:[#allocation10 + $0x58] sm:$0xff] %v16074_v26  ;;  %v17564_v60 = vpop.f32.mrb[120].mxu1  ;;  %v17501_v6 = vpop.f32.mrb[121].mxu0 }
 0x79a   :  { %v17502_v46 = vadd.f32 %v17501_v6, %v17500_v30  ;;  %v17565_v63 = vpop.f32.mrb[121].mxu1  ;;  %v17503_v38 = vpop.f32.mrb[122].mxu0 }
 0x79b   :  { %v17566_v42 = vadd.f32 %v17565_v63, %v17564_v60  ;;  %v17567_v29 = vpop.f32.mrb[122].mxu1  ;;  %v17504_v22 = vpop.f32.mrb[123].mxu0 }
 0x79c   :  { %v17505_v51 = vadd.f32 %v17504_v22, %v17503_v38  ;;  %v17568_v14 = vpop.f32.mrb[123].mxu1 }
 0x79d   :  { %v16079_v7 = vadd.f32 %v17566_v42, %v17502_v46  ;;  %v17569_v1 = vadd.f32 %v17568_v14, %v17567_v29 }
 0x79f   :  { %16105 = vst [vmem:[#allocation10 + $0x60] sm:$0xff] %v16079_v7  ;;  %v16082_v19 = vadd.f32 %v17569_v1, %v17505_v51 }
 0x7a0   :  { %v17506_v25 = vpop.f32.mrb[124].mxu0 }
 0x7a1   :  { %16106 = vst [vmem:[#allocation10 + $0x68] sm:$0xff] %v16082_v19  ;;  %v17570_v57 = vpop.f32.mrb[124].mxu1  ;;  %v17507_v62 = vpop.f32.mrb[125].mxu0 }
 0x7a2   :  { %v17508_v47 = vadd.f32 %v17507_v62, %v17506_v25  ;;  %v17571_v20 = vpop.f32.mrb[125].mxu1  ;;  %v17509_v52 = vpop.f32.mrb[126].mxu0 }
 0x7a3   :  { %v17572_v39 = vadd.f32 %v17571_v20, %v17570_v57  ;;  %v17573_v5 = vpop.f32.mrb[126].mxu1  ;;  %v17510_v27 = vpop.f32.mrb[127].mxu0 }
 0x7a4   :  { %v17511_v28 = vadd.f32 %v17510_v27, %v17509_v52  ;;  %v17574_v53 = vpop.f32.mrb[127].mxu1 }
 0x7a5   :  { %v16087_v37 = vadd.f32 %v17572_v39, %v17508_v47  ;;  %v17575_v34 = vadd.f32 %v17574_v53, %v17573_v5 }
 0x7a7   :  { %16107 = vst [vmem:[#allocation10 + $0x70] sm:$0xff] %v16087_v37  ;;  %v16090_v10 = vadd.f32 %v17575_v34, %v17511_v28 }
 0x7a9   :  { %16108 = vst [vmem:[#allocation10 + $0x78] sm:$0xff] %v16090_v10 }
 0x7aa   :  { %16113 = vsyncadd [#allocation4], 2016  ;;  %s19222_s3 = smov [#allocation10]  }
 0x7ab   :  { %s16114_s15 = sshll.u32 %s19222_s3, 4  ;;  %s16115_s15 = int_to_ptr.vmem [resolvable:$true] %s16114_s15 }
 0x7ac   :  { %s19181_s16 = scalar_lea.vmem %s16115_s15, 32  ;;  %s19185_s17 = scalar_lea.vmem %s16115_s15, 2048 }
 0x7ad   :  { %p19182_p4 = scmp.ne.s32.totalorder %s16115_s15, %s19181_s16  ;;  %p19186_p5 = scmp.lt.s32.totalorder %s16115_s15, %s16115_s15 }
 0x7ae   :  { %p19187_p6 = scmp.lt.s32.totalorder %s19185_s17, %s19181_s16 }
 0x7b0   :  { %p19188_p7 = por %p19187_p6, %p19186_p5 }
 0x7b2   :  { %p19189_p8 = pnand %p19188_p7, %p19182_p4 }
 0x7b4   :  { %19192 = shalt.err (!%p19189_p8)
}
 0x7b5   :  { %s19193_s21 = scalar_lea.hbm %s23753_s4, 32 }
 0x7b6   :  { %p19194_p9 = scmp.ne.s32.totalorder %s23753_s4, %s19193_s21  ;;  %p19197_p10 = scmp.lt.u32.totalorder %s19193_s21, %s23753_s4 }
 0x7b8   :  { %p19199_p11 = pnand %p19197_p10, %p19194_p9 }
 0x7ba   :  { %19202 = shalt.err (!%p19199_p11)
}
 0x7bb   :  { %s19223_s0 = smov 2  }
 0x7bc   :  { %16120 = dma.vmem_to_hbm [thread:$0]  %s16115_s15, 32, %s23753_s4, [#allocation4], %s19214_s28, %s19214_s28, %s19223_s0  }
 0x7bd   :  { %19209 = dma.done.wait [#allocation4], 2048  }
 0x7be   :  { %19210 = vsyncadd [#allocation4], 4294965248 }
 0x7bf   :  { %16124 = vsyncpa [#allocation3], 1 }
 0x7c0   :  { %16125 = vsyncpa [#allocation6], 1 }
 0x7c1   :  { %16126 = vsyncpa [#allocation9], 1 }
 0x7c2   :  { %16127 = vsyncpa [#allocation4], 1 }

</bundles_post_ra>
